<compile_context>
chip_gen: v7x
topology: tpu7x:2x2x1
jax: 0.10.0
libtpu: 0.0.40
codegen_flags: <defaults>
</compile_context>

<pallas_src>
import numpy as np
import jax
import jax.numpy as jnp
from jax import lax
from jax.experimental import pallas as pl
from jax.experimental.pallas import tpu as pltpu

VMEM = pltpu.MemorySpace.VMEM
NUM_CLASSES = 10
BN_EPS = 1e-5
VMEM_LIMIT = 32 * 1024 * 1024          # explicit scoped-VMEM budget, safe on v5e/v6e/v7x
_LPAD = 16                              # sublane-aligned column offset for in-kernel padding
_WHOLE_IMAGE_MAX_PIXELS = 64 * 64       # whole-image-per-step path when H*W <= this


def _vmem_specs(n):
    return [pl.BlockSpec(memory_space=VMEM) for _ in range(n)]


def _pooled_row_tile(hp):
    """Pooled rows per grid step for the tiled fallback path (multiple of 8)."""
    if hp <= 64:
        return hp
    for cand in (64, 56, 48, 40, 32, 24, 16, 8):
        if hp % cand == 0:
            return cand
    return hp


# ------------------------------- kernel cores --------------------------------- #

def _conv_core(xp, col0, th, w, w_ref, scale_ref, bias_ref, o_ref):
    """Conv2d(3x3,'same') + folded BN + ReLU + MaxPool2d(2) on a padded VMEM value.

    xp:     (th+2, >= col0+w+1, Cin)  zero-padded rows; x lives at cols [col0, col0+w)
    w_ref:  (9, Cin, Cout) bf16, one (Cin, Cout) matrix per 3x3 tap
    scale_ref / bias_ref: (1, Cout) f32 folded BN scale / (conv bias + BN shift)
    o_ref:  (th//2, (w//2)*Cout) pooled output tile, lane-dense
    """
    cin = xp.shape[-1]
    cout = w_ref.shape[2]
    tph, wp = th // 2, w // 2

    # Conv as 9 shifted matmuls accumulated on the MXU in f32 (no im2col blowup).
    acc = None
    for k in range(9):
        dy, dx = divmod(k, 3)
        xs = xp[dy:dy + th, col0 - 1 + dx:col0 - 1 + dx + w, :].reshape(th * w, cin)
        part = jnp.dot(xs, w_ref[k], preferred_element_type=jnp.float32)
        acc = part if acc is None else acc + part                  # (th*w, Cout) f32

    # Folded BatchNorm (running stats) + ReLU, all in f32.
    y = jnp.maximum(acc * scale_ref[...] + bias_ref[...], 0.0)

    # MaxPool2d(2) fused in the epilogue: pool along W, then along H.
    r = y.reshape(th * wp, 2, cout)
    y = jnp.maximum(r[:, 0, :], r[:, 1, :])                        # (th*wp, Cout)
    r = y.reshape(tph, 2, wp, cout)
    y = jnp.maximum(r[:, 0], r[:, 1])                              # (tph, wp, Cout)

    # Lane-dense store; cast to the (bf16) output dtype only here.
    o_ref[...] = y.reshape(tph, wp * cout).astype(o_ref.dtype)


def conv_block_whole_kernel(x_ref, w_ref, scale_ref, bias_ref, o_ref, xpad_ref):
    """Whole-image-per-step variant with in-kernel 'same' padding (no HBM pad array).

    x_ref:    (H, W, Cin) bf16 unpadded image
    xpad_ref: (H+2, _LPAD+W+1, Cin) bf16 VMEM scratch; x stored at rows [1,H+1),
              cols [_LPAD, _LPAD+W) so the store stays sublane-aligned / unmasked.
    """
    h, w, _ = x_ref.shape
    xpad_ref[...] = jnp.zeros(xpad_ref.shape, xpad_ref.dtype)
    xpad_ref[1:h + 1, _LPAD:_LPAD + w, :] = x_ref[...]
    _conv_core(xpad_ref[...], _LPAD, h, w, w_ref, scale_ref, bias_ref, o_ref)


def conv_block_tiled_kernel(x_ref, w_ref, scale_ref, bias_ref, o_ref):
    """Row-tiled variant (large images): receives a pre-padded tile with row halo."""
    th2, w2, _ = x_ref.shape
    _conv_core(x_ref[...], 1, th2 - 2, w2 - 2, w_ref, scale_ref, bias_ref, o_ref)


def head_kernel(x_ref, w1_ref, b1_ref, w2_ref, b2_ref, o_ref):
    """GAP + Linear(256,128) + ReLU + Dropout(eval) + Linear(128, Cpad).

    x_ref:  (N, H*W, 256) bf16
    w1_ref: (256, 128) f32, b1_ref: (1, 128) f32
    w2_ref: (128, Cpad) f32, b2_ref: (1, Cpad) f32   (class dim padded to 128 lanes)
    o_ref:  (N, Cpad) f32
    """
    pooled = jnp.mean(x_ref[...].astype(jnp.float32), axis=1)                # (N, 256)
    h = jnp.dot(pooled, w1_ref[...], preferred_element_type=jnp.float32) + b1_ref[...]
    h = jnp.maximum(h, 0.0)
    # Dropout(p=0.4): identity in inference mode.
    out = jnp.dot(h, w2_ref[...], preferred_element_type=jnp.float32) + b2_ref[...]
    o_ref[...] = out.astype(o_ref.dtype)


# ------------------------------- wrappers (glue) ------------------------------ #

def conv_block(x_nhwc, blk):
    """One conv block. x_nhwc: (N, H, W, Cin) bf16 -> (N, H/2, W/2, Cout) bf16."""
    n, h, w, cin = x_nhwc.shape
    cout = blk["wk"].shape[2]
    hp, wp = h // 2, w // 2

    weight_specs = [
        pl.BlockSpec((9, cin, cout), lambda *a: (0, 0, 0)),   # resident in VMEM
        pl.BlockSpec((1, cout), lambda *a: (0, 0)),
        pl.BlockSpec((1, cout), lambda *a: (0, 0)),
    ]

    if h * w <= _WHOLE_IMAGE_MAX_PIXELS:
        # Whole image per grid step; padding done in-kernel -> no HBM pad roundtrip.
        out = pl.pallas_call(
            conv_block_whole_kernel,
            out_shape=jax.ShapeDtypeStruct((n, hp, wp * cout), jnp.bfloat16),
            grid=(n,),
            in_specs=[pl.BlockSpec((None, h, w, cin), lambda i: (i, 0, 0, 0))]
                     + weight_specs,
            out_specs=pl.BlockSpec((None, hp, wp * cout), lambda i: (i, 0, 0)),
            scratch_shapes=[pltpu.VMEM((h + 2, _LPAD + w + 1, cin), jnp.bfloat16)],
            compiler_params=pltpu.CompilerParams(
                dimension_semantics=("parallel",),
                vmem_limit_bytes=VMEM_LIMIT),
        )(x_nhwc, blk["wk"], blk["scale"], blk["bias"])
    else:
        # Large images: row tiles with a 2-row halo (pipelined, megacore-parallel).
        tph = _pooled_row_tile(hp)       # pooled rows per grid step
        th = 2 * tph                     # conv rows per grid step
        n_t = hp // tph
        xpad = jnp.pad(x_nhwc, ((0, 0), (1, 1), (1, 1), (0, 0)))
        x_halo = jnp.stack(
            [xpad[:, t * th: t * th + th + 2] for t in range(n_t)], axis=1)
        out = pl.pallas_call(
            conv_block_tiled_kernel,
            out_shape=jax.ShapeDtypeStruct((n, hp, wp * cout), jnp.bfloat16),
            grid=(n, n_t),
            in_specs=[pl.BlockSpec((None, None, th + 2, w + 2, cin),
                                   lambda i, t: (i, t, 0, 0, 0))]
                     + weight_specs,
            out_specs=pl.BlockSpec((None, tph, wp * cout), lambda i, t: (i, t, 0)),
            compiler_params=pltpu.CompilerParams(
                dimension_semantics=("parallel", "parallel"),
                vmem_limit_bytes=VMEM_LIMIT),
        )(x_halo, blk["wk"], blk["scale"], blk["bias"])

    return out.reshape(n, hp, wp, cout)      # contiguous -> free reshape back to NHWC


def head(x_nhwc, folded):
    n, h, w, c = x_nhwc.shape
    x = x_nhwc.reshape(n, h * w, c)
    return pl.pallas_call(
        head_kernel,
        out_shape=jax.ShapeDtypeStruct((n, folded["w2"].shape[1]), jnp.float32),
        in_specs=_vmem_specs(5),
        out_specs=pl.BlockSpec(memory_space=VMEM),
        compiler_params=pltpu.CompilerParams(vmem_limit_bytes=VMEM_LIMIT),
    )(x, folded["w1"], folded["b1"], folded["w2"], folded["b2"])


def plant_disease_model(x_nchw, folded, num_classes=NUM_CLASSES):
    # NCHW -> NHWC, bf16 activations between blocks (f32 math inside the kernels).
    x = jnp.transpose(x_nchw, (0, 2, 3, 1)).astype(jnp.bfloat16)
    for blk in folded["blocks"]:
        x = conv_block(x, blk)
    logits = head(x, folded)
    return logits[:, :num_classes]


# ----------------------------- parameter handling ----------------------------- #

def fold_params(params):
    """One-time preprocessing: per-tap bf16 conv weights + folded inference BN."""
    blocks = []
    for p in params["blocks"]:
        cout, cin = p["w"].shape[0], p["w"].shape[1]
        wk = jnp.transpose(p["w"], (2, 3, 1, 0)).reshape(9, cin, cout).astype(jnp.bfloat16)
        inv = p["gamma"] / jnp.sqrt(p["rvar"] + BN_EPS)
        scale = inv.reshape(1, cout).astype(jnp.float32)
        bias = (p["beta"] + (p["b"] - p["rmean"]) * inv).reshape(1, cout).astype(jnp.float32)
        blocks.append(dict(wk=wk, scale=scale, bias=bias))

    nc = params["w2"].shape[1]
    cpad = ((nc + 127) // 128) * 128          # pad class dim to full 128 lanes
    w2p = jnp.zeros((params["w2"].shape[0], cpad), jnp.float32).at[:, :nc].set(params["w2"])
    b2p = jnp.zeros((1, cpad), jnp.float32).at[0, :nc].set(params["b2"])
    return dict(blocks=blocks,
                w1=params["w1"].astype(jnp.float32),
                b1=params["b1"].reshape(1, -1).astype(jnp.float32),
                w2=w2p, b2=b2p)


def init_params(key, num_classes=NUM_CLASSES):
    chans = [(3, 32), (32, 64), (64, 128), (128, 256)]
    blocks = []
    for cin, cout in chans:
        key, *ks = jax.random.split(key, 7)
        blocks.append(dict(
            w=0.1 * jax.random.normal(ks[0], (cout, cin, 3, 3), jnp.float32),
            b=0.05 * jax.random.normal(ks[1], (cout,), jnp.float32),
            gamma=1.0 + 0.1 * jax.random.normal(ks[2], (cout,), jnp.float32),
            beta=0.05 * jax.random.normal(ks[3], (cout,), jnp.float32),
            rmean=0.05 * jax.random.normal(ks[4], (cout,), jnp.float32),
            rvar=1.0 + 0.1 * jax.random.uniform(ks[5], (cout,), jnp.float32),
        ))
    key, k1, k2, k3, k4 = jax.random.split(key, 5)
    return dict(
        blocks=blocks,
        w1=0.05 * jax.random.normal(k1, (256, 128), jnp.float32),   # Linear(256,128), (in,out)
        b1=0.05 * jax.random.normal(k2, (128,), jnp.float32),
        w2=0.05 * jax.random.normal(k3, (128, num_classes), jnp.float32),
        b2=0.05 * jax.random.normal(k4, (num_classes,), jnp.float32),
    )


# ----------------------------- pure-JAX reference ----------------------------- #

def reference_forward(x_nchw, params):
    """Reference with the same bf16 activation/weight quantization and f32 accumulation
    as the Pallas path (so tolerances stay tight); otherwise identical math to the
    PyTorch module in eval() mode."""
    y = jnp.transpose(x_nchw, (0, 2, 3, 1)).astype(jnp.bfloat16)
    for p in params["blocks"]:
        w = jnp.transpose(p["w"], (2, 3, 1, 0)).astype(jnp.bfloat16)
        z = lax.conv_general_dilated(
            y, w, window_strides=(1, 1), padding="SAME",
            dimension_numbers=("NHWC", "HWIO", "NHWC"),
            preferred_element_type=jnp.float32)
        inv = p["gamma"] / jnp.sqrt(p["rvar"] + BN_EPS)
        z = z * inv + (p["beta"] + (p["b"] - p["rmean"]) * inv)
        z = jnp.maximum(z, 0.0)
        n, h, w_, c = z.shape
        z = z.reshape(n, h // 2, 2, w_ // 2, 2, c).max(axis=(2, 4))
        y = z.astype(jnp.bfloat16)
    pooled = y.astype(jnp.float32).mean(axis=(1, 2))
    h = jnp.maximum(pooled @ params["w1"] + params["b1"], 0.0)
    return h @ params["w2"] + params["b2"]


# ------------------------------------- main ------------------------------------ #

if __name__ == "__main__":
    key = jax.random.PRNGKey(0)
    key_x, key_p = jax.random.split(key)
    x = jax.random.normal(key_x, (2, 3, 16, 16), jnp.float32)   # NCHW, like PyTorch
    params = init_params(key_p)
    folded = fold_params(params)                                 # one-time, outside jit

    fwd = jax.jit(plant_disease_model)
    out = jax.block_until_ready(fwd(x, folded))
    ref = jax.block_until_ready(reference_forward(x, params))

    assert out.shape == (2, NUM_CLASSES)
    np.testing.assert_allclose(np.asarray(out, dtype=np.float32),
                               np.asarray(ref, dtype=np.float32),
                               rtol=5e-3, atol=5e-3)
    print("KERNEL_OK")
</pallas_src>

<mosaic_0001>
module attributes {stable_mosaic.version = 11 : i64} {
  func.func @conv_block_whole_kernel(%arg0: i32, %arg1: memref<1x16x16x3xbf16, #tpu.memory_space<vmem>>, %arg2: memref<9x3x32xbf16, #tpu.memory_space<vmem>>, %arg3: memref<1x32xf32, #tpu.memory_space<vmem>>, %arg4: memref<1x32xf32, #tpu.memory_space<vmem>>, %arg5: memref<1x8x256xbf16, #tpu.memory_space<vmem>>, %arg6: memref<18x33x3xbf16, #tpu.memory_space<vmem>>) attributes {dimension_semantics = [#tpu.dimension_semantics<parallel>], iteration_bounds = array<i64: 2>, scalar_prefetch = 0 : i64, scratch_operands = 1 : i64, tpu.core_type = #tpu.core_type<tc>, window_params = [{transform_indices = @transform_0, window_bounds = array<i64: 1, 16, 16, 3>}, {pipeline_mode = #tpu.pipeline_mode<synchronous>, transform_indices = @transform_1, window_bounds = array<i64: 9, 3, 32>}, {pipeline_mode = #tpu.pipeline_mode<synchronous>, transform_indices = @transform_2, window_bounds = array<i64: 1, 32>}, {pipeline_mode = #tpu.pipeline_mode<synchronous>, transform_indices = @transform_3, window_bounds = array<i64: 1, 32>}, {transform_indices = @transform_4, window_bounds = array<i64: 1, 8, 256>}]} {
    %cst = arith.constant 0.000000e+00 : bf16
    %0 = vector.broadcast %cst : bf16 to vector<18x33x3xbf16>
    %c0 = arith.constant 0 : index
    %c0_0 = arith.constant 0 : index
    %c0_1 = arith.constant 0 : index
    %1 = vector.load %arg6[%c0, %c0_0, %c0_1] : memref<18x33x3xbf16, #tpu.memory_space<vmem>>, vector<18x33x3xbf16>
    tpu.vector_store %arg6[%c0, %c0_0, %c0_1], %0 {strides = array<i32>} : memref<18x33x3xbf16, #tpu.memory_space<vmem>>, vector<18x33x3xbf16>,
    %c0_2 = arith.constant 0 : index
    %c0_3 = arith.constant 0 : index
    %c0_4 = arith.constant 0 : index
    %c0_5 = arith.constant 0 : index
    %2 = vector.load %arg1[%c0_2, %c0_3, %c0_4, %c0_5] : memref<1x16x16x3xbf16, #tpu.memory_space<vmem>>, vector<1x16x16x3xbf16>
    %3 = vector.shape_cast %2 : vector<1x16x16x3xbf16> to vector<16x16x3xbf16>
    %c1 = arith.constant 1 : index
    %c16 = arith.constant 16 : index
    %c0_6 = arith.constant 0 : index
    %4 = vector.load %arg6[%c1, %c16, %c0_6] : memref<18x33x3xbf16, #tpu.memory_space<vmem>>, vector<16x16x3xbf16>
    tpu.vector_store %arg6[%c1, %c16, %c0_6], %3 {strides = array<i32>} : memref<18x33x3xbf16, #tpu.memory_space<vmem>>, vector<16x16x3xbf16>,
    %c0_7 = arith.constant 0 : index
    %c0_8 = arith.constant 0 : index
    %c0_9 = arith.constant 0 : index
    %5 = vector.load %arg6[%c0_7, %c0_8, %c0_9] : memref<18x33x3xbf16, #tpu.memory_space<vmem>>, vector<18x33x3xbf16>
    %6 = vector.extract_strided_slice %5 {offsets = [0, 15, 0], sizes = [16, 16, 3], strides = [1, 1, 1]} : vector<18x33x3xbf16> to vector<16x16x3xbf16>
    %7 = vector.shape_cast %6 : vector<16x16x3xbf16> to vector<256x3xbf16>
    %c0_10 = arith.constant 0 : index
    %c0_11 = arith.constant 0 : index
    %c0_12 = arith.constant 0 : index
    %8 = vector.load %arg2[%c0_10, %c0_11, %c0_12] : memref<9x3x32xbf16, #tpu.memory_space<vmem>>, vector<1x3x32xbf16>
    %9 = vector.shape_cast %8 : vector<1x3x32xbf16> to vector<3x32xbf16>
    %cst_13 = arith.constant dense<0.000000e+00> : vector<256x32xf32>
    %10 = tpu.matmul %7, %9, %cst_13 {dimension_numbers = #tpu.dot_dimension_numbers<[1], [0], [0], [1], [0, 0, 1, 1], [], []>} : vector<256x3xbf16>, vector<3x32xbf16>, vector<256x32xf32> -> vector<256x32xf32>
    %11 = vector.extract_strided_slice %5 {offsets = [0, 16, 0], sizes = [16, 16, 3], strides = [1, 1, 1]} : vector<18x33x3xbf16> to vector<16x16x3xbf16>
    %12 = vector.shape_cast %11 : vector<16x16x3xbf16> to vector<256x3xbf16>
    %c1_14 = arith.constant 1 : index
    %c0_15 = arith.constant 0 : index
    %c0_16 = arith.constant 0 : index
    %13 = vector.load %arg2[%c1_14, %c0_15, %c0_16] : memref<9x3x32xbf16, #tpu.memory_space<vmem>>, vector<1x3x32xbf16>
    %14 = vector.shape_cast %13 : vector<1x3x32xbf16> to vector<3x32xbf16>
    %cst_17 = arith.constant dense<0.000000e+00> : vector<256x32xf32>
    %15 = tpu.matmul %12, %14, %cst_17 {dimension_numbers = #tpu.dot_dimension_numbers<[1], [0], [0], [1], [0, 0, 1, 1], [], []>} : vector<256x3xbf16>, vector<3x32xbf16>, vector<256x32xf32> -> vector<256x32xf32>
    %16 = arith.addf %10, %15 : vector<256x32xf32>
    %17 = vector.extract_strided_slice %5 {offsets = [0, 17, 0], sizes = [16, 16, 3], strides = [1, 1, 1]} : vector<18x33x3xbf16> to vector<16x16x3xbf16>
    %18 = vector.shape_cast %17 : vector<16x16x3xbf16> to vector<256x3xbf16>
    %c2 = arith.constant 2 : index
    %c0_18 = arith.constant 0 : index
    %c0_19 = arith.constant 0 : index
    %19 = vector.load %arg2[%c2, %c0_18, %c0_19] : memref<9x3x32xbf16, #tpu.memory_space<vmem>>, vector<1x3x32xbf16>
    %20 = vector.shape_cast %19 : vector<1x3x32xbf16> to vector<3x32xbf16>
    %cst_20 = arith.constant dense<0.000000e+00> : vector<256x32xf32>
    %21 = tpu.matmul %18, %20, %cst_20 {dimension_numbers = #tpu.dot_dimension_numbers<[1], [0], [0], [1], [0, 0, 1, 1], [], []>} : vector<256x3xbf16>, vector<3x32xbf16>, vector<256x32xf32> -> vector<256x32xf32>
    %22 = arith.addf %16, %21 : vector<256x32xf32>
    %23 = vector.extract_strided_slice %5 {offsets = [1, 15, 0], sizes = [16, 16, 3], strides = [1, 1, 1]} : vector<18x33x3xbf16> to vector<16x16x3xbf16>
    %24 = vector.shape_cast %23 : vector<16x16x3xbf16> to vector<256x3xbf16>
    %c3 = arith.constant 3 : index
    %c0_21 = arith.constant 0 : index
    %c0_22 = arith.constant 0 : index
    %25 = vector.load %arg2[%c3, %c0_21, %c0_22] : memref<9x3x32xbf16, #tpu.memory_space<vmem>>, vector<1x3x32xbf16>
    %26 = vector.shape_cast %25 : vector<1x3x32xbf16> to vector<3x32xbf16>
    %cst_23 = arith.constant dense<0.000000e+00> : vector<256x32xf32>
    %27 = tpu.matmul %24, %26, %cst_23 {dimension_numbers = #tpu.dot_dimension_numbers<[1], [0], [0], [1], [0, 0, 1, 1], [], []>} : vector<256x3xbf16>, vector<3x32xbf16>, vector<256x32xf32> -> vector<256x32xf32>
    %28 = arith.addf %22, %27 : vector<256x32xf32>
    %29 = vector.extract_strided_slice %5 {offsets = [1, 16, 0], sizes = [16, 16, 3], strides = [1, 1, 1]} : vector<18x33x3xbf16> to vector<16x16x3xbf16>
    %30 = vector.shape_cast %29 : vector<16x16x3xbf16> to vector<256x3xbf16>
    %c4 = arith.constant 4 : index
    %c0_24 = arith.constant 0 : index
    %c0_25 = arith.constant 0 : index
    %31 = vector.load %arg2[%c4, %c0_24, %c0_25] : memref<9x3x32xbf16, #tpu.memory_space<vmem>>, vector<1x3x32xbf16>
    %32 = vector.shape_cast %31 : vector<1x3x32xbf16> to vector<3x32xbf16>
    %cst_26 = arith.constant dense<0.000000e+00> : vector<256x32xf32>
    %33 = tpu.matmul %30, %32, %cst_26 {dimension_numbers = #tpu.dot_dimension_numbers<[1], [0], [0], [1], [0, 0, 1, 1], [], []>} : vector<256x3xbf16>, vector<3x32xbf16>, vector<256x32xf32> -> vector<256x32xf32>
    %34 = arith.addf %28, %33 : vector<256x32xf32>
    %35 = vector.extract_strided_slice %5 {offsets = [1, 17, 0], sizes = [16, 16, 3], strides = [1, 1, 1]} : vector<18x33x3xbf16> to vector<16x16x3xbf16>
    %36 = vector.shape_cast %35 : vector<16x16x3xbf16> to vector<256x3xbf16>
    %c5 = arith.constant 5 : index
    %c0_27 = arith.constant 0 : index
    %c0_28 = arith.constant 0 : index
    %37 = vector.load %arg2[%c5, %c0_27, %c0_28] : memref<9x3x32xbf16, #tpu.memory_space<vmem>>, vector<1x3x32xbf16>
    %38 = vector.shape_cast %37 : vector<1x3x32xbf16> to vector<3x32xbf16>
    %cst_29 = arith.constant dense<0.000000e+00> : vector<256x32xf32>
    %39 = tpu.matmul %36, %38, %cst_29 {dimension_numbers = #tpu.dot_dimension_numbers<[1], [0], [0], [1], [0, 0, 1, 1], [], []>} : vector<256x3xbf16>, vector<3x32xbf16>, vector<256x32xf32> -> vector<256x32xf32>
    %40 = arith.addf %34, %39 : vector<256x32xf32>
    %41 = vector.extract_strided_slice %5 {offsets = [2, 15, 0], sizes = [16, 16, 3], strides = [1, 1, 1]} : vector<18x33x3xbf16> to vector<16x16x3xbf16>
    %42 = vector.shape_cast %41 : vector<16x16x3xbf16> to vector<256x3xbf16>
    %c6 = arith.constant 6 : index
    %c0_30 = arith.constant 0 : index
    %c0_31 = arith.constant 0 : index
    %43 = vector.load %arg2[%c6, %c0_30, %c0_31] : memref<9x3x32xbf16, #tpu.memory_space<vmem>>, vector<1x3x32xbf16>
    %44 = vector.shape_cast %43 : vector<1x3x32xbf16> to vector<3x32xbf16>
    %cst_32 = arith.constant dense<0.000000e+00> : vector<256x32xf32>
    %45 = tpu.matmul %42, %44, %cst_32 {dimension_numbers = #tpu.dot_dimension_numbers<[1], [0], [0], [1], [0, 0, 1, 1], [], []>} : vector<256x3xbf16>, vector<3x32xbf16>, vector<256x32xf32> -> vector<256x32xf32>
    %46 = arith.addf %40, %45 : vector<256x32xf32>
    %47 = vector.extract_strided_slice %5 {offsets = [2, 16, 0], sizes = [16, 16, 3], strides = [1, 1, 1]} : vector<18x33x3xbf16> to vector<16x16x3xbf16>
    %48 = vector.shape_cast %47 : vector<16x16x3xbf16> to vector<256x3xbf16>
    %c7 = arith.constant 7 : index
    %c0_33 = arith.constant 0 : index
    %c0_34 = arith.constant 0 : index
    %49 = vector.load %arg2[%c7, %c0_33, %c0_34] : memref<9x3x32xbf16, #tpu.memory_space<vmem>>, vector<1x3x32xbf16>
    %50 = vector.shape_cast %49 : vector<1x3x32xbf16> to vector<3x32xbf16>
    %cst_35 = arith.constant dense<0.000000e+00> : vector<256x32xf32>
    %51 = tpu.matmul %48, %50, %cst_35 {dimension_numbers = #tpu.dot_dimension_numbers<[1], [0], [0], [1], [0, 0, 1, 1], [], []>} : vector<256x3xbf16>, vector<3x32xbf16>, vector<256x32xf32> -> vector<256x32xf32>
    %52 = arith.addf %46, %51 : vector<256x32xf32>
    %53 = vector.extract_strided_slice %5 {offsets = [2, 17, 0], sizes = [16, 16, 3], strides = [1, 1, 1]} : vector<18x33x3xbf16> to vector<16x16x3xbf16>
    %54 = vector.shape_cast %53 : vector<16x16x3xbf16> to vector<256x3xbf16>
    %c8 = arith.constant 8 : index
    %c0_36 = arith.constant 0 : index
    %c0_37 = arith.constant 0 : index
    %55 = vector.load %arg2[%c8, %c0_36, %c0_37] : memref<9x3x32xbf16, #tpu.memory_space<vmem>>, vector<1x3x32xbf16>
    %56 = vector.shape_cast %55 : vector<1x3x32xbf16> to vector<3x32xbf16>
    %cst_38 = arith.constant dense<0.000000e+00> : vector<256x32xf32>
    %57 = tpu.matmul %54, %56, %cst_38 {dimension_numbers = #tpu.dot_dimension_numbers<[1], [0], [0], [1], [0, 0, 1, 1], [], []>} : vector<256x3xbf16>, vector<3x32xbf16>, vector<256x32xf32> -> vector<256x32xf32>
    %58 = arith.addf %52, %57 : vector<256x32xf32>
    %c0_39 = arith.constant 0 : index
    %c0_40 = arith.constant 0 : index
    %59 = vector.load %arg3[%c0_39, %c0_40] : memref<1x32xf32, #tpu.memory_space<vmem>>, vector<1x32xf32>
    %60 = vector.broadcast %59 : vector<1x32xf32> to vector<256x32xf32>
    %61 = arith.mulf %58, %60 : vector<256x32xf32>
    %c0_41 = arith.constant 0 : index
    %c0_42 = arith.constant 0 : index
    %62 = vector.load %arg4[%c0_41, %c0_42] : memref<1x32xf32, #tpu.memory_space<vmem>>, vector<1x32xf32>
    %63 = vector.broadcast %62 : vector<1x32xf32> to vector<256x32xf32>
    %64 = arith.addf %61, %63 : vector<256x32xf32>
    %cst_43 = arith.constant 0.000000e+00 : f32
    %65 = vector.broadcast %cst_43 : f32 to vector<256x32xf32>
    %66 = arith.maximumf %64, %65 : vector<256x32xf32>
    %67 = vector.shape_cast %66 : vector<256x32xf32> to vector<128x2x32xf32>
    %68 = vector.extract_strided_slice %67 {offsets = [0, 0, 0], sizes = [128, 1, 32], strides = [1, 1, 1]} : vector<128x2x32xf32> to vector<128x1x32xf32>
    %69 = vector.shape_cast %68 : vector<128x1x32xf32> to vector<128x32xf32>
    %70 = vector.extract_strided_slice %67 {offsets = [0, 1, 0], sizes = [128, 1, 32], strides = [1, 1, 1]} : vector<128x2x32xf32> to vector<128x1x32xf32>
    %71 = vector.shape_cast %70 : vector<128x1x32xf32> to vector<128x32xf32>
    %72 = arith.maximumf %69, %71 : vector<128x32xf32>
    %73 = vector.shape_cast %72 : vector<128x32xf32> to vector<8x2x8x32xf32>
    %74 = vector.extract_strided_slice %73 {offsets = [0, 0, 0, 0], sizes = [8, 1, 8, 32], strides = [1, 1, 1, 1]} : vector<8x2x8x32xf32> to vector<8x1x8x32xf32>
    %75 = vector.shape_cast %74 : vector<8x1x8x32xf32> to vector<8x8x32xf32>
    %76 = vector.extract_strided_slice %73 {offsets = [0, 1, 0, 0], sizes = [8, 1, 8, 32], strides = [1, 1, 1, 1]} : vector<8x2x8x32xf32> to vector<8x1x8x32xf32>
    %77 = vector.shape_cast %76 : vector<8x1x8x32xf32> to vector<8x8x32xf32>
    %78 = arith.maximumf %75, %77 : vector<8x8x32xf32>
    %79 = vector.shape_cast %78 : vector<8x8x32xf32> to vector<8x256xf32>
    %80 = arith.truncf %79 : vector<8x256xf32> to vector<8x256xbf16>
    %c0_44 = arith.constant 0 : index
    %c0_45 = arith.constant 0 : index
    %c0_46 = arith.constant 0 : index
    %81 = vector.load %arg5[%c0_44, %c0_45, %c0_46] : memref<1x8x256xbf16, #tpu.memory_space<vmem>>, vector<1x8x256xbf16>
    %82 = vector.shape_cast %81 : vector<1x8x256xbf16> to vector<8x256xbf16>
    %83 = vector.shape_cast %80 : vector<8x256xbf16> to vector<1x8x256xbf16>
    tpu.vector_store %arg5[%c0_44, %c0_45, %c0_46], %83 {strides = array<i32>} : memref<1x8x256xbf16, #tpu.memory_space<vmem>>, vector<1x8x256xbf16>,
    return
  }
  func.func @transform_0(%arg0: i32) -> (i32, i32, i32, i32) {
    %c0_i32 = arith.constant 0 : i32
    %c0_i32_0 = arith.constant 0 : i32
    %c0_i32_1 = arith.constant 0 : i32
    %c0_i32_2 = arith.constant 0 : i32
    return %arg0, %c0_i32, %c0_i32_0, %c0_i32_1 : i32, i32, i32, i32
  }
  func.func @transform_1(%arg0: i32) -> (i32, i32, i32) {
    %c0_i32 = arith.constant 0 : i32
    %c0_i32_0 = arith.constant 0 : i32
    %c0_i32_1 = arith.constant 0 : i32
    %c0_i32_2 = arith.constant 0 : i32
    return %c0_i32, %c0_i32_0, %c0_i32_1 : i32, i32, i32
  }
  func.func @transform_2(%arg0: i32) -> (i32, i32) {
    %c0_i32 = arith.constant 0 : i32
    %c0_i32_0 = arith.constant 0 : i32
    %c0_i32_1 = arith.constant 0 : i32
    return %c0_i32, %c0_i32_0 : i32, i32
  }
  func.func @transform_3(%arg0: i32) -> (i32, i32) {
    %c0_i32 = arith.constant 0 : i32
    %c0_i32_0 = arith.constant 0 : i32
    %c0_i32_1 = arith.constant 0 : i32
    return %c0_i32, %c0_i32_0 : i32, i32
  }
  func.func @transform_4(%arg0: i32) -> (i32, i32, i32) {
    %c0_i32 = arith.constant 0 : i32
    %c0_i32_0 = arith.constant 0 : i32
    %c0_i32_1 = arith.constant 0 : i32
    return %arg0, %c0_i32, %c0_i32_0 : i32, i32, i32
  }
}

module attributes {stable_mosaic.version = 11 : i64} {
  func.func @conv_block_whole_kernel(%arg0: i32, %arg1: memref<1x4x4x64xbf16, #tpu.memory_space<vmem>>, %arg2: memref<9x64x128xbf16, #tpu.memory_space<vmem>>, %arg3: memref<1x128xf32, #tpu.memory_space<vmem>>, %arg4: memref<1x128xf32, #tpu.memory_space<vmem>>, %arg5: memref<1x2x256xbf16, #tpu.memory_space<vmem>>, %arg6: memref<6x21x64xbf16, #tpu.memory_space<vmem>>) attributes {dimension_semantics = [#tpu.dimension_semantics<parallel>], iteration_bounds = array<i64: 2>, scalar_prefetch = 0 : i64, scratch_operands = 1 : i64, tpu.core_type = #tpu.core_type<tc>, window_params = [{transform_indices = @transform_0, window_bounds = array<i64: 1, 4, 4, 64>}, {pipeline_mode = #tpu.pipeline_mode<synchronous>, transform_indices = @transform_1, window_bounds = array<i64: 9, 64, 128>}, {pipeline_mode = #tpu.pipeline_mode<synchronous>, transform_indices = @transform_2, window_bounds = array<i64: 1, 128>}, {pipeline_mode = #tpu.pipeline_mode<synchronous>, transform_indices = @transform_3, window_bounds = array<i64: 1, 128>}, {transform_indices = @transform_4, window_bounds = array<i64: 1, 2, 256>}]} {
    %cst = arith.constant 0.000000e+00 : bf16
    %0 = vector.broadcast %cst : bf16 to vector<6x21x64xbf16>
    %c0 = arith.constant 0 : index
    %c0_0 = arith.constant 0 : index
    %c0_1 = arith.constant 0 : index
    %1 = vector.load %arg6[%c0, %c0_0, %c0_1] : memref<6x21x64xbf16, #tpu.memory_space<vmem>>, vector<6x21x64xbf16>
    tpu.vector_store %arg6[%c0, %c0_0, %c0_1], %0 {strides = array<i32>} : memref<6x21x64xbf16, #tpu.memory_space<vmem>>, vector<6x21x64xbf16>,
    %c0_2 = arith.constant 0 : index
    %c0_3 = arith.constant 0 : index
    %c0_4 = arith.constant 0 : index
    %c0_5 = arith.constant 0 : index
    %2 = vector.load %arg1[%c0_2, %c0_3, %c0_4, %c0_5] : memref<1x4x4x64xbf16, #tpu.memory_space<vmem>>, vector<1x4x4x64xbf16>
    %3 = vector.shape_cast %2 : vector<1x4x4x64xbf16> to vector<4x4x64xbf16>
    %c1 = arith.constant 1 : index
    %c16 = arith.constant 16 : index
    %c0_6 = arith.constant 0 : index
    %4 = vector.load %arg6[%c1, %c16, %c0_6] : memref<6x21x64xbf16, #tpu.memory_space<vmem>>, vector<4x4x64xbf16>
    tpu.vector_store %arg6[%c1, %c16, %c0_6], %3 {strides = array<i32>} : memref<6x21x64xbf16, #tpu.memory_space<vmem>>, vector<4x4x64xbf16>,
    %c0_7 = arith.constant 0 : index
    %c0_8 = arith.constant 0 : index
    %c0_9 = arith.constant 0 : index
    %5 = vector.load %arg6[%c0_7, %c0_8, %c0_9] : memref<6x21x64xbf16, #tpu.memory_space<vmem>>, vector<6x21x64xbf16>
    %6 = vector.extract_strided_slice %5 {offsets = [0, 15, 0], sizes = [4, 4, 64], strides = [1, 1, 1]} : vector<6x21x64xbf16> to vector<4x4x64xbf16>
    %7 = vector.shape_cast %6 : vector<4x4x64xbf16> to vector<16x64xbf16>
    %c0_10 = arith.constant 0 : index
    %c0_11 = arith.constant 0 : index
    %c0_12 = arith.constant 0 : index
    %8 = vector.load %arg2[%c0_10, %c0_11, %c0_12] : memref<9x64x128xbf16, #tpu.memory_space<vmem>>, vector<1x64x128xbf16>
    %9 = vector.shape_cast %8 : vector<1x64x128xbf16> to vector<64x128xbf16>
    %cst_13 = arith.constant dense<0.000000e+00> : vector<16x128xf32>
    %10 = tpu.matmul %7, %9, %cst_13 {dimension_numbers = #tpu.dot_dimension_numbers<[1], [0], [0], [1], [0, 0, 1, 1], [], []>} : vector<16x64xbf16>, vector<64x128xbf16>, vector<16x128xf32> -> vector<16x128xf32>
    %11 = vector.extract_strided_slice %5 {offsets = [0, 16, 0], sizes = [4, 4, 64], strides = [1, 1, 1]} : vector<6x21x64xbf16> to vector<4x4x64xbf16>
    %12 = vector.shape_cast %11 : vector<4x4x64xbf16> to vector<16x64xbf16>
    %c1_14 = arith.constant 1 : index
    %c0_15 = arith.constant 0 : index
    %c0_16 = arith.constant 0 : index
    %13 = vector.load %arg2[%c1_14, %c0_15, %c0_16] : memref<9x64x128xbf16, #tpu.memory_space<vmem>>, vector<1x64x128xbf16>
    %14 = vector.shape_cast %13 : vector<1x64x128xbf16> to vector<64x128xbf16>
    %cst_17 = arith.constant dense<0.000000e+00> : vector<16x128xf32>
    %15 = tpu.matmul %12, %14, %cst_17 {dimension_numbers = #tpu.dot_dimension_numbers<[1], [0], [0], [1], [0, 0, 1, 1], [], []>} : vector<16x64xbf16>, vector<64x128xbf16>, vector<16x128xf32> -> vector<16x128xf32>
    %16 = arith.addf %10, %15 : vector<16x128xf32>
    %17 = vector.extract_strided_slice %5 {offsets = [0, 17, 0], sizes = [4, 4, 64], strides = [1, 1, 1]} : vector<6x21x64xbf16> to vector<4x4x64xbf16>
    %18 = vector.shape_cast %17 : vector<4x4x64xbf16> to vector<16x64xbf16>
    %c2 = arith.constant 2 : index
    %c0_18 = arith.constant 0 : index
    %c0_19 = arith.constant 0 : index
    %19 = vector.load %arg2[%c2, %c0_18, %c0_19] : memref<9x64x128xbf16, #tpu.memory_space<vmem>>, vector<1x64x128xbf16>
    %20 = vector.shape_cast %19 : vector<1x64x128xbf16> to vector<64x128xbf16>
    %cst_20 = arith.constant dense<0.000000e+00> : vector<16x128xf32>
    %21 = tpu.matmul %18, %20, %cst_20 {dimension_numbers = #tpu.dot_dimension_numbers<[1], [0], [0], [1], [0, 0, 1, 1], [], []>} : vector<16x64xbf16>, vector<64x128xbf16>, vector<16x128xf32> -> vector<16x128xf32>
    %22 = arith.addf %16, %21 : vector<16x128xf32>
    %23 = vector.extract_strided_slice %5 {offsets = [1, 15, 0], sizes = [4, 4, 64], strides = [1, 1, 1]} : vector<6x21x64xbf16> to vector<4x4x64xbf16>
    %24 = vector.shape_cast %23 : vector<4x4x64xbf16> to vector<16x64xbf16>
    %c3 = arith.constant 3 : index
    %c0_21 = arith.constant 0 : index
    %c0_22 = arith.constant 0 : index
    %25 = vector.load %arg2[%c3, %c0_21, %c0_22] : memref<9x64x128xbf16, #tpu.memory_space<vmem>>, vector<1x64x128xbf16>
    %26 = vector.shape_cast %25 : vector<1x64x128xbf16> to vector<64x128xbf16>
    %cst_23 = arith.constant dense<0.000000e+00> : vector<16x128xf32>
    %27 = tpu.matmul %24, %26, %cst_23 {dimension_numbers = #tpu.dot_dimension_numbers<[1], [0], [0], [1], [0, 0, 1, 1], [], []>} : vector<16x64xbf16>, vector<64x128xbf16>, vector<16x128xf32> -> vector<16x128xf32>
    %28 = arith.addf %22, %27 : vector<16x128xf32>
    %29 = vector.extract_strided_slice %5 {offsets = [1, 16, 0], sizes = [4, 4, 64], strides = [1, 1, 1]} : vector<6x21x64xbf16> to vector<4x4x64xbf16>
    %30 = vector.shape_cast %29 : vector<4x4x64xbf16> to vector<16x64xbf16>
    %c4 = arith.constant 4 : index
    %c0_24 = arith.constant 0 : index
    %c0_25 = arith.constant 0 : index
    %31 = vector.load %arg2[%c4, %c0_24, %c0_25] : memref<9x64x128xbf16, #tpu.memory_space<vmem>>, vector<1x64x128xbf16>
    %32 = vector.shape_cast %31 : vector<1x64x128xbf16> to vector<64x128xbf16>
    %cst_26 = arith.constant dense<0.000000e+00> : vector<16x128xf32>
    %33 = tpu.matmul %30, %32, %cst_26 {dimension_numbers = #tpu.dot_dimension_numbers<[1], [0], [0], [1], [0, 0, 1, 1], [], []>} : vector<16x64xbf16>, vector<64x128xbf16>, vector<16x128xf32> -> vector<16x128xf32>
    %34 = arith.addf %28, %33 : vector<16x128xf32>
    %35 = vector.extract_strided_slice %5 {offsets = [1, 17, 0], sizes = [4, 4, 64], strides = [1, 1, 1]} : vector<6x21x64xbf16> to vector<4x4x64xbf16>
    %36 = vector.shape_cast %35 : vector<4x4x64xbf16> to vector<16x64xbf16>
    %c5 = arith.constant 5 : index
    %c0_27 = arith.constant 0 : index
    %c0_28 = arith.constant 0 : index
    %37 = vector.load %arg2[%c5, %c0_27, %c0_28] : memref<9x64x128xbf16, #tpu.memory_space<vmem>>, vector<1x64x128xbf16>
    %38 = vector.shape_cast %37 : vector<1x64x128xbf16> to vector<64x128xbf16>
    %cst_29 = arith.constant dense<0.000000e+00> : vector<16x128xf32>
    %39 = tpu.matmul %36, %38, %cst_29 {dimension_numbers = #tpu.dot_dimension_numbers<[1], [0], [0], [1], [0, 0, 1, 1], [], []>} : vector<16x64xbf16>, vector<64x128xbf16>, vector<16x128xf32> -> vector<16x128xf32>
    %40 = arith.addf %34, %39 : vector<16x128xf32>
    %41 = vector.extract_strided_slice %5 {offsets = [2, 15, 0], sizes = [4, 4, 64], strides = [1, 1, 1]} : vector<6x21x64xbf16> to vector<4x4x64xbf16>
    %42 = vector.shape_cast %41 : vector<4x4x64xbf16> to vector<16x64xbf16>
    %c6 = arith.constant 6 : index
    %c0_30 = arith.constant 0 : index
    %c0_31 = arith.constant 0 : index
    %43 = vector.load %arg2[%c6, %c0_30, %c0_31] : memref<9x64x128xbf16, #tpu.memory_space<vmem>>, vector<1x64x128xbf16>
    %44 = vector.shape_cast %43 : vector<1x64x128xbf16> to vector<64x128xbf16>
    %cst_32 = arith.constant dense<0.000000e+00> : vector<16x128xf32>
    %45 = tpu.matmul %42, %44, %cst_32 {dimension_numbers = #tpu.dot_dimension_numbers<[1], [0], [0], [1], [0, 0, 1, 1], [], []>} : vector<16x64xbf16>, vector<64x128xbf16>, vector<16x128xf32> -> vector<16x128xf32>
    %46 = arith.addf %40, %45 : vector<16x128xf32>
    %47 = vector.extract_strided_slice %5 {offsets = [2, 16, 0], sizes = [4, 4, 64], strides = [1, 1, 1]} : vector<6x21x64xbf16> to vector<4x4x64xbf16>
    %48 = vector.shape_cast %47 : vector<4x4x64xbf16> to vector<16x64xbf16>
    %c7 = arith.constant 7 : index
    %c0_33 = arith.constant 0 : index
    %c0_34 = arith.constant 0 : index
    %49 = vector.load %arg2[%c7, %c0_33, %c0_34] : memref<9x64x128xbf16, #tpu.memory_space<vmem>>, vector<1x64x128xbf16>
    %50 = vector.shape_cast %49 : vector<1x64x128xbf16> to vector<64x128xbf16>
    %cst_35 = arith.constant dense<0.000000e+00> : vector<16x128xf32>
    %51 = tpu.matmul %48, %50, %cst_35 {dimension_numbers = #tpu.dot_dimension_numbers<[1], [0], [0], [1], [0, 0, 1, 1], [], []>} : vector<16x64xbf16>, vector<64x128xbf16>, vector<16x128xf32> -> vector<16x128xf32>
    %52 = arith.addf %46, %51 : vector<16x128xf32>
    %53 = vector.extract_strided_slice %5 {offsets = [2, 17, 0], sizes = [4, 4, 64], strides = [1, 1, 1]} : vector<6x21x64xbf16> to vector<4x4x64xbf16>
    %54 = vector.shape_cast %53 : vector<4x4x64xbf16> to vector<16x64xbf16>
    %c8 = arith.constant 8 : index
    %c0_36 = arith.constant 0 : index
    %c0_37 = arith.constant 0 : index
    %55 = vector.load %arg2[%c8, %c0_36, %c0_37] : memref<9x64x128xbf16, #tpu.memory_space<vmem>>, vector<1x64x128xbf16>
    %56 = vector.shape_cast %55 : vector<1x64x128xbf16> to vector<64x128xbf16>
    %cst_38 = arith.constant dense<0.000000e+00> : vector<16x128xf32>
    %57 = tpu.matmul %54, %56, %cst_38 {dimension_numbers = #tpu.dot_dimension_numbers<[1], [0], [0], [1], [0, 0, 1, 1], [], []>} : vector<16x64xbf16>, vector<64x128xbf16>, vector<16x128xf32> -> vector<16x128xf32>
    %58 = arith.addf %52, %57 : vector<16x128xf32>
    %c0_39 = arith.constant 0 : index
    %c0_40 = arith.constant 0 : index
    %59 = vector.load %arg3[%c0_39, %c0_40] : memref<1x128xf32, #tpu.memory_space<vmem>>, vector<1x128xf32>
    %60 = vector.broadcast %59 : vector<1x128xf32> to vector<16x128xf32>
    %61 = arith.mulf %58, %60 : vector<16x128xf32>
    %c0_41 = arith.constant 0 : index
    %c0_42 = arith.constant 0 : index
    %62 = vector.load %arg4[%c0_41, %c0_42] : memref<1x128xf32, #tpu.memory_space<vmem>>, vector<1x128xf32>
    %63 = vector.broadcast %62 : vector<1x128xf32> to vector<16x128xf32>
    %64 = arith.addf %61, %63 : vector<16x128xf32>
    %cst_43 = arith.constant 0.000000e+00 : f32
    %65 = vector.broadcast %cst_43 : f32 to vector<16x128xf32>
    %66 = arith.maximumf %64, %65 : vector<16x128xf32>
    %67 = vector.shape_cast %66 : vector<16x128xf32> to vector<8x2x128xf32>
    %68 = vector.extract_strided_slice %67 {offsets = [0, 0, 0], sizes = [8, 1, 128], strides = [1, 1, 1]} : vector<8x2x128xf32> to vector<8x1x128xf32>
    %69 = vector.shape_cast %68 : vector<8x1x128xf32> to vector<8x128xf32>
    %70 = vector.extract_strided_slice %67 {offsets = [0, 1, 0], sizes = [8, 1, 128], strides = [1, 1, 1]} : vector<8x2x128xf32> to vector<8x1x128xf32>
    %71 = vector.shape_cast %70 : vector<8x1x128xf32> to vector<8x128xf32>
    %72 = arith.maximumf %69, %71 : vector<8x128xf32>
    %73 = vector.shape_cast %72 : vector<8x128xf32> to vector<2x2x2x128xf32>
    %74 = vector.extract_strided_slice %73 {offsets = [0, 0, 0, 0], sizes = [2, 1, 2, 128], strides = [1, 1, 1, 1]} : vector<2x2x2x128xf32> to vector<2x1x2x128xf32>
    %75 = vector.shape_cast %74 : vector<2x1x2x128xf32> to vector<2x2x128xf32>
    %76 = vector.extract_strided_slice %73 {offsets = [0, 1, 0, 0], sizes = [2, 1, 2, 128], strides = [1, 1, 1, 1]} : vector<2x2x2x128xf32> to vector<2x1x2x128xf32>
    %77 = vector.shape_cast %76 : vector<2x1x2x128xf32> to vector<2x2x128xf32>
    %78 = arith.maximumf %75, %77 : vector<2x2x128xf32>
    %79 = vector.shape_cast %78 : vector<2x2x128xf32> to vector<2x256xf32>
    %80 = arith.truncf %79 : vector<2x256xf32> to vector<2x256xbf16>
    %c0_44 = arith.constant 0 : index
    %c0_45 = arith.constant 0 : index
    %c0_46 = arith.constant 0 : index
    %81 = vector.load %arg5[%c0_44, %c0_45, %c0_46] : memref<1x2x256xbf16, #tpu.memory_space<vmem>>, vector<1x2x256xbf16>
    %82 = vector.shape_cast %81 : vector<1x2x256xbf16> to vector<2x256xbf16>
    %83 = vector.shape_cast %80 : vector<2x256xbf16> to vector<1x2x256xbf16>
    tpu.vector_store %arg5[%c0_44, %c0_45, %c0_46], %83 {strides = array<i32>} : memref<1x2x256xbf16, #tpu.memory_space<vmem>>, vector<1x2x256xbf16>,
    return
  }
  func.func @transform_0(%arg0: i32) -> (i32, i32, i32, i32) {
    %c0_i32 = arith.constant 0 : i32
    %c0_i32_0 = arith.constant 0 : i32
    %c0_i32_1 = arith.constant 0 : i32
    %c0_i32_2 = arith.constant 0 : i32
    return %arg0, %c0_i32, %c0_i32_0, %c0_i32_1 : i32, i32, i32, i32
  }
  func.func @transform_1(%arg0: i32) -> (i32, i32, i32) {
    %c0_i32 = arith.constant 0 : i32
    %c0_i32_0 = arith.constant 0 : i32
    %c0_i32_1 = arith.constant 0 : i32
    %c0_i32_2 = arith.constant 0 : i32
    return %c0_i32, %c0_i32_0, %c0_i32_1 : i32, i32, i32
  }
  func.func @transform_2(%arg0: i32) -> (i32, i32) {
    %c0_i32 = arith.constant 0 : i32
    %c0_i32_0 = arith.constant 0 : i32
    %c0_i32_1 = arith.constant 0 : i32
    return %c0_i32, %c0_i32_0 : i32, i32
  }
  func.func @transform_3(%arg0: i32) -> (i32, i32) {
    %c0_i32 = arith.constant 0 : i32
    %c0_i32_0 = arith.constant 0 : i32
    %c0_i32_1 = arith.constant 0 : i32
    return %c0_i32, %c0_i32_0 : i32, i32
  }
  func.func @transform_4(%arg0: i32) -> (i32, i32, i32) {
    %c0_i32 = arith.constant 0 : i32
    %c0_i32_0 = arith.constant 0 : i32
    %c0_i32_1 = arith.constant 0 : i32
    return %arg0, %c0_i32, %c0_i32_0 : i32, i32, i32
  }
}

module attributes {stable_mosaic.version = 11 : i64} {
  func.func @conv_block_whole_kernel(%arg0: i32, %arg1: memref<1x8x8x32xbf16, #tpu.memory_space<vmem>>, %arg2: memref<9x32x64xbf16, #tpu.memory_space<vmem>>, %arg3: memref<1x64xf32, #tpu.memory_space<vmem>>, %arg4: memref<1x64xf32, #tpu.memory_space<vmem>>, %arg5: memref<1x4x256xbf16, #tpu.memory_space<vmem>>, %arg6: memref<10x25x32xbf16, #tpu.memory_space<vmem>>) attributes {dimension_semantics = [#tpu.dimension_semantics<parallel>], iteration_bounds = array<i64: 2>, scalar_prefetch = 0 : i64, scratch_operands = 1 : i64, tpu.core_type = #tpu.core_type<tc>, window_params = [{transform_indices = @transform_0, window_bounds = array<i64: 1, 8, 8, 32>}, {pipeline_mode = #tpu.pipeline_mode<synchronous>, transform_indices = @transform_1, window_bounds = array<i64: 9, 32, 64>}, {pipeline_mode = #tpu.pipeline_mode<synchronous>, transform_indices = @transform_2, window_bounds = array<i64: 1, 64>}, {pipeline_mode = #tpu.pipeline_mode<synchronous>, transform_indices = @transform_3, window_bounds = array<i64: 1, 64>}, {transform_indices = @transform_4, window_bounds = array<i64: 1, 4, 256>}]} {
    %cst = arith.constant 0.000000e+00 : bf16
    %0 = vector.broadcast %cst : bf16 to vector<10x25x32xbf16>
    %c0 = arith.constant 0 : index
    %c0_0 = arith.constant 0 : index
    %c0_1 = arith.constant 0 : index
    %1 = vector.load %arg6[%c0, %c0_0, %c0_1] : memref<10x25x32xbf16, #tpu.memory_space<vmem>>, vector<10x25x32xbf16>
    tpu.vector_store %arg6[%c0, %c0_0, %c0_1], %0 {strides = array<i32>} : memref<10x25x32xbf16, #tpu.memory_space<vmem>>, vector<10x25x32xbf16>,
    %c0_2 = arith.constant 0 : index
    %c0_3 = arith.constant 0 : index
    %c0_4 = arith.constant 0 : index
    %c0_5 = arith.constant 0 : index
    %2 = vector.load %arg1[%c0_2, %c0_3, %c0_4, %c0_5] : memref<1x8x8x32xbf16, #tpu.memory_space<vmem>>, vector<1x8x8x32xbf16>
    %3 = vector.shape_cast %2 : vector<1x8x8x32xbf16> to vector<8x8x32xbf16>
    %c1 = arith.constant 1 : index
    %c16 = arith.constant 16 : index
    %c0_6 = arith.constant 0 : index
    %4 = vector.load %arg6[%c1, %c16, %c0_6] : memref<10x25x32xbf16, #tpu.memory_space<vmem>>, vector<8x8x32xbf16>
    tpu.vector_store %arg6[%c1, %c16, %c0_6], %3 {strides = array<i32>} : memref<10x25x32xbf16, #tpu.memory_space<vmem>>, vector<8x8x32xbf16>,
    %c0_7 = arith.constant 0 : index
    %c0_8 = arith.constant 0 : index
    %c0_9 = arith.constant 0 : index
    %5 = vector.load %arg6[%c0_7, %c0_8, %c0_9] : memref<10x25x32xbf16, #tpu.memory_space<vmem>>, vector<10x25x32xbf16>
    %6 = vector.extract_strided_slice %5 {offsets = [0, 15, 0], sizes = [8, 8, 32], strides = [1, 1, 1]} : vector<10x25x32xbf16> to vector<8x8x32xbf16>
    %7 = vector.shape_cast %6 : vector<8x8x32xbf16> to vector<64x32xbf16>
    %c0_10 = arith.constant 0 : index
    %c0_11 = arith.constant 0 : index
    %c0_12 = arith.constant 0 : index
    %8 = vector.load %arg2[%c0_10, %c0_11, %c0_12] : memref<9x32x64xbf16, #tpu.memory_space<vmem>>, vector<1x32x64xbf16>
    %9 = vector.shape_cast %8 : vector<1x32x64xbf16> to vector<32x64xbf16>
    %cst_13 = arith.constant dense<0.000000e+00> : vector<64x64xf32>
    %10 = tpu.matmul %7, %9, %cst_13 {dimension_numbers = #tpu.dot_dimension_numbers<[1], [0], [0], [1], [0, 0, 1, 1], [], []>} : vector<64x32xbf16>, vector<32x64xbf16>, vector<64x64xf32> -> vector<64x64xf32>
    %11 = vector.extract_strided_slice %5 {offsets = [0, 16, 0], sizes = [8, 8, 32], strides = [1, 1, 1]} : vector<10x25x32xbf16> to vector<8x8x32xbf16>
    %12 = vector.shape_cast %11 : vector<8x8x32xbf16> to vector<64x32xbf16>
    %c1_14 = arith.constant 1 : index
    %c0_15 = arith.constant 0 : index
    %c0_16 = arith.constant 0 : index
    %13 = vector.load %arg2[%c1_14, %c0_15, %c0_16] : memref<9x32x64xbf16, #tpu.memory_space<vmem>>, vector<1x32x64xbf16>
    %14 = vector.shape_cast %13 : vector<1x32x64xbf16> to vector<32x64xbf16>
    %cst_17 = arith.constant dense<0.000000e+00> : vector<64x64xf32>
    %15 = tpu.matmul %12, %14, %cst_17 {dimension_numbers = #tpu.dot_dimension_numbers<[1], [0], [0], [1], [0, 0, 1, 1], [], []>} : vector<64x32xbf16>, vector<32x64xbf16>, vector<64x64xf32> -> vector<64x64xf32>
    %16 = arith.addf %10, %15 : vector<64x64xf32>
    %17 = vector.extract_strided_slice %5 {offsets = [0, 17, 0], sizes = [8, 8, 32], strides = [1, 1, 1]} : vector<10x25x32xbf16> to vector<8x8x32xbf16>
    %18 = vector.shape_cast %17 : vector<8x8x32xbf16> to vector<64x32xbf16>
    %c2 = arith.constant 2 : index
    %c0_18 = arith.constant 0 : index
    %c0_19 = arith.constant 0 : index
    %19 = vector.load %arg2[%c2, %c0_18, %c0_19] : memref<9x32x64xbf16, #tpu.memory_space<vmem>>, vector<1x32x64xbf16>
    %20 = vector.shape_cast %19 : vector<1x32x64xbf16> to vector<32x64xbf16>
    %cst_20 = arith.constant dense<0.000000e+00> : vector<64x64xf32>
    %21 = tpu.matmul %18, %20, %cst_20 {dimension_numbers = #tpu.dot_dimension_numbers<[1], [0], [0], [1], [0, 0, 1, 1], [], []>} : vector<64x32xbf16>, vector<32x64xbf16>, vector<64x64xf32> -> vector<64x64xf32>
    %22 = arith.addf %16, %21 : vector<64x64xf32>
    %23 = vector.extract_strided_slice %5 {offsets = [1, 15, 0], sizes = [8, 8, 32], strides = [1, 1, 1]} : vector<10x25x32xbf16> to vector<8x8x32xbf16>
    %24 = vector.shape_cast %23 : vector<8x8x32xbf16> to vector<64x32xbf16>
    %c3 = arith.constant 3 : index
    %c0_21 = arith.constant 0 : index
    %c0_22 = arith.constant 0 : index
    %25 = vector.load %arg2[%c3, %c0_21, %c0_22] : memref<9x32x64xbf16, #tpu.memory_space<vmem>>, vector<1x32x64xbf16>
    %26 = vector.shape_cast %25 : vector<1x32x64xbf16> to vector<32x64xbf16>
    %cst_23 = arith.constant dense<0.000000e+00> : vector<64x64xf32>
    %27 = tpu.matmul %24, %26, %cst_23 {dimension_numbers = #tpu.dot_dimension_numbers<[1], [0], [0], [1], [0, 0, 1, 1], [], []>} : vector<64x32xbf16>, vector<32x64xbf16>, vector<64x64xf32> -> vector<64x64xf32>
    %28 = arith.addf %22, %27 : vector<64x64xf32>
    %29 = vector.extract_strided_slice %5 {offsets = [1, 16, 0], sizes = [8, 8, 32], strides = [1, 1, 1]} : vector<10x25x32xbf16> to vector<8x8x32xbf16>
    %30 = vector.shape_cast %29 : vector<8x8x32xbf16> to vector<64x32xbf16>
    %c4 = arith.constant 4 : index
    %c0_24 = arith.constant 0 : index
    %c0_25 = arith.constant 0 : index
    %31 = vector.load %arg2[%c4, %c0_24, %c0_25] : memref<9x32x64xbf16, #tpu.memory_space<vmem>>, vector<1x32x64xbf16>
    %32 = vector.shape_cast %31 : vector<1x32x64xbf16> to vector<32x64xbf16>
    %cst_26 = arith.constant dense<0.000000e+00> : vector<64x64xf32>
    %33 = tpu.matmul %30, %32, %cst_26 {dimension_numbers = #tpu.dot_dimension_numbers<[1], [0], [0], [1], [0, 0, 1, 1], [], []>} : vector<64x32xbf16>, vector<32x64xbf16>, vector<64x64xf32> -> vector<64x64xf32>
    %34 = arith.addf %28, %33 : vector<64x64xf32>
    %35 = vector.extract_strided_slice %5 {offsets = [1, 17, 0], sizes = [8, 8, 32], strides = [1, 1, 1]} : vector<10x25x32xbf16> to vector<8x8x32xbf16>
    %36 = vector.shape_cast %35 : vector<8x8x32xbf16> to vector<64x32xbf16>
    %c5 = arith.constant 5 : index
    %c0_27 = arith.constant 0 : index
    %c0_28 = arith.constant 0 : index
    %37 = vector.load %arg2[%c5, %c0_27, %c0_28] : memref<9x32x64xbf16, #tpu.memory_space<vmem>>, vector<1x32x64xbf16>
    %38 = vector.shape_cast %37 : vector<1x32x64xbf16> to vector<32x64xbf16>
    %cst_29 = arith.constant dense<0.000000e+00> : vector<64x64xf32>
    %39 = tpu.matmul %36, %38, %cst_29 {dimension_numbers = #tpu.dot_dimension_numbers<[1], [0], [0], [1], [0, 0, 1, 1], [], []>} : vector<64x32xbf16>, vector<32x64xbf16>, vector<64x64xf32> -> vector<64x64xf32>
    %40 = arith.addf %34, %39 : vector<64x64xf32>
    %41 = vector.extract_strided_slice %5 {offsets = [2, 15, 0], sizes = [8, 8, 32], strides = [1, 1, 1]} : vector<10x25x32xbf16> to vector<8x8x32xbf16>
    %42 = vector.shape_cast %41 : vector<8x8x32xbf16> to vector<64x32xbf16>
    %c6 = arith.constant 6 : index
    %c0_30 = arith.constant 0 : index
    %c0_31 = arith.constant 0 : index
    %43 = vector.load %arg2[%c6, %c0_30, %c0_31] : memref<9x32x64xbf16, #tpu.memory_space<vmem>>, vector<1x32x64xbf16>
    %44 = vector.shape_cast %43 : vector<1x32x64xbf16> to vector<32x64xbf16>
    %cst_32 = arith.constant dense<0.000000e+00> : vector<64x64xf32>
    %45 = tpu.matmul %42, %44, %cst_32 {dimension_numbers = #tpu.dot_dimension_numbers<[1], [0], [0], [1], [0, 0, 1, 1], [], []>} : vector<64x32xbf16>, vector<32x64xbf16>, vector<64x64xf32> -> vector<64x64xf32>
    %46 = arith.addf %40, %45 : vector<64x64xf32>
    %47 = vector.extract_strided_slice %5 {offsets = [2, 16, 0], sizes = [8, 8, 32], strides = [1, 1, 1]} : vector<10x25x32xbf16> to vector<8x8x32xbf16>
    %48 = vector.shape_cast %47 : vector<8x8x32xbf16> to vector<64x32xbf16>
    %c7 = arith.constant 7 : index
    %c0_33 = arith.constant 0 : index
    %c0_34 = arith.constant 0 : index
    %49 = vector.load %arg2[%c7, %c0_33, %c0_34] : memref<9x32x64xbf16, #tpu.memory_space<vmem>>, vector<1x32x64xbf16>
    %50 = vector.shape_cast %49 : vector<1x32x64xbf16> to vector<32x64xbf16>
    %cst_35 = arith.constant dense<0.000000e+00> : vector<64x64xf32>
    %51 = tpu.matmul %48, %50, %cst_35 {dimension_numbers = #tpu.dot_dimension_numbers<[1], [0], [0], [1], [0, 0, 1, 1], [], []>} : vector<64x32xbf16>, vector<32x64xbf16>, vector<64x64xf32> -> vector<64x64xf32>
    %52 = arith.addf %46, %51 : vector<64x64xf32>
    %53 = vector.extract_strided_slice %5 {offsets = [2, 17, 0], sizes = [8, 8, 32], strides = [1, 1, 1]} : vector<10x25x32xbf16> to vector<8x8x32xbf16>
    %54 = vector.shape_cast %53 : vector<8x8x32xbf16> to vector<64x32xbf16>
    %c8 = arith.constant 8 : index
    %c0_36 = arith.constant 0 : index
    %c0_37 = arith.constant 0 : index
    %55 = vector.load %arg2[%c8, %c0_36, %c0_37] : memref<9x32x64xbf16, #tpu.memory_space<vmem>>, vector<1x32x64xbf16>
    %56 = vector.shape_cast %55 : vector<1x32x64xbf16> to vector<32x64xbf16>
    %cst_38 = arith.constant dense<0.000000e+00> : vector<64x64xf32>
    %57 = tpu.matmul %54, %56, %cst_38 {dimension_numbers = #tpu.dot_dimension_numbers<[1], [0], [0], [1], [0, 0, 1, 1], [], []>} : vector<64x32xbf16>, vector<32x64xbf16>, vector<64x64xf32> -> vector<64x64xf32>
    %58 = arith.addf %52, %57 : vector<64x64xf32>
    %c0_39 = arith.constant 0 : index
    %c0_40 = arith.constant 0 : index
    %59 = vector.load %arg3[%c0_39, %c0_40] : memref<1x64xf32, #tpu.memory_space<vmem>>, vector<1x64xf32>
    %60 = vector.broadcast %59 : vector<1x64xf32> to vector<64x64xf32>
    %61 = arith.mulf %58, %60 : vector<64x64xf32>
    %c0_41 = arith.constant 0 : index
    %c0_42 = arith.constant 0 : index
    %62 = vector.load %arg4[%c0_41, %c0_42] : memref<1x64xf32, #tpu.memory_space<vmem>>, vector<1x64xf32>
    %63 = vector.broadcast %62 : vector<1x64xf32> to vector<64x64xf32>
    %64 = arith.addf %61, %63 : vector<64x64xf32>
    %cst_43 = arith.constant 0.000000e+00 : f32
    %65 = vector.broadcast %cst_43 : f32 to vector<64x64xf32>
    %66 = arith.maximumf %64, %65 : vector<64x64xf32>
    %67 = vector.shape_cast %66 : vector<64x64xf32> to vector<32x2x64xf32>
    %68 = vector.extract_strided_slice %67 {offsets = [0, 0, 0], sizes = [32, 1, 64], strides = [1, 1, 1]} : vector<32x2x64xf32> to vector<32x1x64xf32>
    %69 = vector.shape_cast %68 : vector<32x1x64xf32> to vector<32x64xf32>
    %70 = vector.extract_strided_slice %67 {offsets = [0, 1, 0], sizes = [32, 1, 64], strides = [1, 1, 1]} : vector<32x2x64xf32> to vector<32x1x64xf32>
    %71 = vector.shape_cast %70 : vector<32x1x64xf32> to vector<32x64xf32>
    %72 = arith.maximumf %69, %71 : vector<32x64xf32>
    %73 = vector.shape_cast %72 : vector<32x64xf32> to vector<4x2x4x64xf32>
    %74 = vector.extract_strided_slice %73 {offsets = [0, 0, 0, 0], sizes = [4, 1, 4, 64], strides = [1, 1, 1, 1]} : vector<4x2x4x64xf32> to vector<4x1x4x64xf32>
    %75 = vector.shape_cast %74 : vector<4x1x4x64xf32> to vector<4x4x64xf32>
    %76 = vector.extract_strided_slice %73 {offsets = [0, 1, 0, 0], sizes = [4, 1, 4, 64], strides = [1, 1, 1, 1]} : vector<4x2x4x64xf32> to vector<4x1x4x64xf32>
    %77 = vector.shape_cast %76 : vector<4x1x4x64xf32> to vector<4x4x64xf32>
    %78 = arith.maximumf %75, %77 : vector<4x4x64xf32>
    %79 = vector.shape_cast %78 : vector<4x4x64xf32> to vector<4x256xf32>
    %80 = arith.truncf %79 : vector<4x256xf32> to vector<4x256xbf16>
    %c0_44 = arith.constant 0 : index
    %c0_45 = arith.constant 0 : index
    %c0_46 = arith.constant 0 : index
    %81 = vector.load %arg5[%c0_44, %c0_45, %c0_46] : memref<1x4x256xbf16, #tpu.memory_space<vmem>>, vector<1x4x256xbf16>
    %82 = vector.shape_cast %81 : vector<1x4x256xbf16> to vector<4x256xbf16>
    %83 = vector.shape_cast %80 : vector<4x256xbf16> to vector<1x4x256xbf16>
    tpu.vector_store %arg5[%c0_44, %c0_45, %c0_46], %83 {strides = array<i32>} : memref<1x4x256xbf16, #tpu.memory_space<vmem>>, vector<1x4x256xbf16>,
    return
  }
  func.func @transform_0(%arg0: i32) -> (i32, i32, i32, i32) {
    %c0_i32 = arith.constant 0 : i32
    %c0_i32_0 = arith.constant 0 : i32
    %c0_i32_1 = arith.constant 0 : i32
    %c0_i32_2 = arith.constant 0 : i32
    return %arg0, %c0_i32, %c0_i32_0, %c0_i32_1 : i32, i32, i32, i32
  }
  func.func @transform_1(%arg0: i32) -> (i32, i32, i32) {
    %c0_i32 = arith.constant 0 : i32
    %c0_i32_0 = arith.constant 0 : i32
    %c0_i32_1 = arith.constant 0 : i32
    %c0_i32_2 = arith.constant 0 : i32
    return %c0_i32, %c0_i32_0, %c0_i32_1 : i32, i32, i32
  }
  func.func @transform_2(%arg0: i32) -> (i32, i32) {
    %c0_i32 = arith.constant 0 : i32
    %c0_i32_0 = arith.constant 0 : i32
    %c0_i32_1 = arith.constant 0 : i32
    return %c0_i32, %c0_i32_0 : i32, i32
  }
  func.func @transform_3(%arg0: i32) -> (i32, i32) {
    %c0_i32 = arith.constant 0 : i32
    %c0_i32_0 = arith.constant 0 : i32
    %c0_i32_1 = arith.constant 0 : i32
    return %c0_i32, %c0_i32_0 : i32, i32
  }
  func.func @transform_4(%arg0: i32) -> (i32, i32, i32) {
    %c0_i32 = arith.constant 0 : i32
    %c0_i32_0 = arith.constant 0 : i32
    %c0_i32_1 = arith.constant 0 : i32
    return %arg0, %c0_i32, %c0_i32_0 : i32, i32, i32
  }
}

module attributes {stable_mosaic.version = 11 : i64} {
  func.func @conv_block_whole_kernel(%arg0: i32, %arg1: memref<1x2x2x128xbf16, #tpu.memory_space<vmem>>, %arg2: memref<9x128x256xbf16, #tpu.memory_space<vmem>>, %arg3: memref<1x256xf32, #tpu.memory_space<vmem>>, %arg4: memref<1x256xf32, #tpu.memory_space<vmem>>, %arg5: memref<1x1x256xbf16, #tpu.memory_space<vmem>>, %arg6: memref<4x19x128xbf16, #tpu.memory_space<vmem>>) attributes {dimension_semantics = [#tpu.dimension_semantics<parallel>], iteration_bounds = array<i64: 2>, scalar_prefetch = 0 : i64, scratch_operands = 1 : i64, tpu.core_type = #tpu.core_type<tc>, window_params = [{transform_indices = @transform_0, window_bounds = array<i64: 1, 2, 2, 128>}, {pipeline_mode = #tpu.pipeline_mode<synchronous>, transform_indices = @transform_1, window_bounds = array<i64: 9, 128, 256>}, {pipeline_mode = #tpu.pipeline_mode<synchronous>, transform_indices = @transform_2, window_bounds = array<i64: 1, 256>}, {pipeline_mode = #tpu.pipeline_mode<synchronous>, transform_indices = @transform_3, window_bounds = array<i64: 1, 256>}, {transform_indices = @transform_4, window_bounds = array<i64: 1, 1, 256>}]} {
    %cst = arith.constant 0.000000e+00 : bf16
    %0 = vector.broadcast %cst : bf16 to vector<4x19x128xbf16>
    %c0 = arith.constant 0 : index
    %c0_0 = arith.constant 0 : index
    %c0_1 = arith.constant 0 : index
    %1 = vector.load %arg6[%c0, %c0_0, %c0_1] : memref<4x19x128xbf16, #tpu.memory_space<vmem>>, vector<4x19x128xbf16>
    tpu.vector_store %arg6[%c0, %c0_0, %c0_1], %0 {strides = array<i32>} : memref<4x19x128xbf16, #tpu.memory_space<vmem>>, vector<4x19x128xbf16>,
    %c0_2 = arith.constant 0 : index
    %c0_3 = arith.constant 0 : index
    %c0_4 = arith.constant 0 : index
    %c0_5 = arith.constant 0 : index
    %2 = vector.load %arg1[%c0_2, %c0_3, %c0_4, %c0_5] : memref<1x2x2x128xbf16, #tpu.memory_space<vmem>>, vector<1x2x2x128xbf16>
    %3 = vector.shape_cast %2 : vector<1x2x2x128xbf16> to vector<2x2x128xbf16>
    %c1 = arith.constant 1 : index
    %c16 = arith.constant 16 : index
    %c0_6 = arith.constant 0 : index
    %4 = vector.load %arg6[%c1, %c16, %c0_6] : memref<4x19x128xbf16, #tpu.memory_space<vmem>>, vector<2x2x128xbf16>
    tpu.vector_store %arg6[%c1, %c16, %c0_6], %3 {strides = array<i32>} : memref<4x19x128xbf16, #tpu.memory_space<vmem>>, vector<2x2x128xbf16>,
    %c0_7 = arith.constant 0 : index
    %c0_8 = arith.constant 0 : index
    %c0_9 = arith.constant 0 : index
    %5 = vector.load %arg6[%c0_7, %c0_8, %c0_9] : memref<4x19x128xbf16, #tpu.memory_space<vmem>>, vector<4x19x128xbf16>
    %6 = vector.extract_strided_slice %5 {offsets = [0, 15, 0], sizes = [2, 2, 128], strides = [1, 1, 1]} : vector<4x19x128xbf16> to vector<2x2x128xbf16>
    %7 = vector.shape_cast %6 : vector<2x2x128xbf16> to vector<4x128xbf16>
    %c0_10 = arith.constant 0 : index
    %c0_11 = arith.constant 0 : index
    %c0_12 = arith.constant 0 : index
    %8 = vector.load %arg2[%c0_10, %c0_11, %c0_12] : memref<9x128x256xbf16, #tpu.memory_space<vmem>>, vector<1x128x256xbf16>
    %9 = vector.shape_cast %8 : vector<1x128x256xbf16> to vector<128x256xbf16>
    %cst_13 = arith.constant dense<0.000000e+00> : vector<4x256xf32>
    %10 = tpu.matmul %7, %9, %cst_13 {dimension_numbers = #tpu.dot_dimension_numbers<[1], [0], [0], [1], [0, 0, 1, 1], [], []>} : vector<4x128xbf16>, vector<128x256xbf16>, vector<4x256xf32> -> vector<4x256xf32>
    %11 = vector.extract_strided_slice %5 {offsets = [0, 16, 0], sizes = [2, 2, 128], strides = [1, 1, 1]} : vector<4x19x128xbf16> to vector<2x2x128xbf16>
    %12 = vector.shape_cast %11 : vector<2x2x128xbf16> to vector<4x128xbf16>
    %c1_14 = arith.constant 1 : index
    %c0_15 = arith.constant 0 : index
    %c0_16 = arith.constant 0 : index
    %13 = vector.load %arg2[%c1_14, %c0_15, %c0_16] : memref<9x128x256xbf16, #tpu.memory_space<vmem>>, vector<1x128x256xbf16>
    %14 = vector.shape_cast %13 : vector<1x128x256xbf16> to vector<128x256xbf16>
    %cst_17 = arith.constant dense<0.000000e+00> : vector<4x256xf32>
    %15 = tpu.matmul %12, %14, %cst_17 {dimension_numbers = #tpu.dot_dimension_numbers<[1], [0], [0], [1], [0, 0, 1, 1], [], []>} : vector<4x128xbf16>, vector<128x256xbf16>, vector<4x256xf32> -> vector<4x256xf32>
    %16 = arith.addf %10, %15 : vector<4x256xf32>
    %17 = vector.extract_strided_slice %5 {offsets = [0, 17, 0], sizes = [2, 2, 128], strides = [1, 1, 1]} : vector<4x19x128xbf16> to vector<2x2x128xbf16>
    %18 = vector.shape_cast %17 : vector<2x2x128xbf16> to vector<4x128xbf16>
    %c2 = arith.constant 2 : index
    %c0_18 = arith.constant 0 : index
    %c0_19 = arith.constant 0 : index
    %19 = vector.load %arg2[%c2, %c0_18, %c0_19] : memref<9x128x256xbf16, #tpu.memory_space<vmem>>, vector<1x128x256xbf16>
    %20 = vector.shape_cast %19 : vector<1x128x256xbf16> to vector<128x256xbf16>
    %cst_20 = arith.constant dense<0.000000e+00> : vector<4x256xf32>
    %21 = tpu.matmul %18, %20, %cst_20 {dimension_numbers = #tpu.dot_dimension_numbers<[1], [0], [0], [1], [0, 0, 1, 1], [], []>} : vector<4x128xbf16>, vector<128x256xbf16>, vector<4x256xf32> -> vector<4x256xf32>
    %22 = arith.addf %16, %21 : vector<4x256xf32>
    %23 = vector.extract_strided_slice %5 {offsets = [1, 15, 0], sizes = [2, 2, 128], strides = [1, 1, 1]} : vector<4x19x128xbf16> to vector<2x2x128xbf16>
    %24 = vector.shape_cast %23 : vector<2x2x128xbf16> to vector<4x128xbf16>
    %c3 = arith.constant 3 : index
    %c0_21 = arith.constant 0 : index
    %c0_22 = arith.constant 0 : index
    %25 = vector.load %arg2[%c3, %c0_21, %c0_22] : memref<9x128x256xbf16, #tpu.memory_space<vmem>>, vector<1x128x256xbf16>
    %26 = vector.shape_cast %25 : vector<1x128x256xbf16> to vector<128x256xbf16>
    %cst_23 = arith.constant dense<0.000000e+00> : vector<4x256xf32>
    %27 = tpu.matmul %24, %26, %cst_23 {dimension_numbers = #tpu.dot_dimension_numbers<[1], [0], [0], [1], [0, 0, 1, 1], [], []>} : vector<4x128xbf16>, vector<128x256xbf16>, vector<4x256xf32> -> vector<4x256xf32>
    %28 = arith.addf %22, %27 : vector<4x256xf32>
    %29 = vector.extract_strided_slice %5 {offsets = [1, 16, 0], sizes = [2, 2, 128], strides = [1, 1, 1]} : vector<4x19x128xbf16> to vector<2x2x128xbf16>
    %30 = vector.shape_cast %29 : vector<2x2x128xbf16> to vector<4x128xbf16>
    %c4 = arith.constant 4 : index
    %c0_24 = arith.constant 0 : index
    %c0_25 = arith.constant 0 : index
    %31 = vector.load %arg2[%c4, %c0_24, %c0_25] : memref<9x128x256xbf16, #tpu.memory_space<vmem>>, vector<1x128x256xbf16>
    %32 = vector.shape_cast %31 : vector<1x128x256xbf16> to vector<128x256xbf16>
    %cst_26 = arith.constant dense<0.000000e+00> : vector<4x256xf32>
    %33 = tpu.matmul %30, %32, %cst_26 {dimension_numbers = #tpu.dot_dimension_numbers<[1], [0], [0], [1], [0, 0, 1, 1], [], []>} : vector<4x128xbf16>, vector<128x256xbf16>, vector<4x256xf32> -> vector<4x256xf32>
    %34 = arith.addf %28, %33 : vector<4x256xf32>
    %35 = vector.extract_strided_slice %5 {offsets = [1, 17, 0], sizes = [2, 2, 128], strides = [1, 1, 1]} : vector<4x19x128xbf16> to vector<2x2x128xbf16>
    %36 = vector.shape_cast %35 : vector<2x2x128xbf16> to vector<4x128xbf16>
    %c5 = arith.constant 5 : index
    %c0_27 = arith.constant 0 : index
    %c0_28 = arith.constant 0 : index
    %37 = vector.load %arg2[%c5, %c0_27, %c0_28] : memref<9x128x256xbf16, #tpu.memory_space<vmem>>, vector<1x128x256xbf16>
    %38 = vector.shape_cast %37 : vector<1x128x256xbf16> to vector<128x256xbf16>
    %cst_29 = arith.constant dense<0.000000e+00> : vector<4x256xf32>
    %39 = tpu.matmul %36, %38, %cst_29 {dimension_numbers = #tpu.dot_dimension_numbers<[1], [0], [0], [1], [0, 0, 1, 1], [], []>} : vector<4x128xbf16>, vector<128x256xbf16>, vector<4x256xf32> -> vector<4x256xf32>
    %40 = arith.addf %34, %39 : vector<4x256xf32>
    %41 = vector.extract_strided_slice %5 {offsets = [2, 15, 0], sizes = [2, 2, 128], strides = [1, 1, 1]} : vector<4x19x128xbf16> to vector<2x2x128xbf16>
    %42 = vector.shape_cast %41 : vector<2x2x128xbf16> to vector<4x128xbf16>
    %c6 = arith.constant 6 : index
    %c0_30 = arith.constant 0 : index
    %c0_31 = arith.constant 0 : index
    %43 = vector.load %arg2[%c6, %c0_30, %c0_31] : memref<9x128x256xbf16, #tpu.memory_space<vmem>>, vector<1x128x256xbf16>
    %44 = vector.shape_cast %43 : vector<1x128x256xbf16> to vector<128x256xbf16>
    %cst_32 = arith.constant dense<0.000000e+00> : vector<4x256xf32>
    %45 = tpu.matmul %42, %44, %cst_32 {dimension_numbers = #tpu.dot_dimension_numbers<[1], [0], [0], [1], [0, 0, 1, 1], [], []>} : vector<4x128xbf16>, vector<128x256xbf16>, vector<4x256xf32> -> vector<4x256xf32>
    %46 = arith.addf %40, %45 : vector<4x256xf32>
    %47 = vector.extract_strided_slice %5 {offsets = [2, 16, 0], sizes = [2, 2, 128], strides = [1, 1, 1]} : vector<4x19x128xbf16> to vector<2x2x128xbf16>
    %48 = vector.shape_cast %47 : vector<2x2x128xbf16> to vector<4x128xbf16>
    %c7 = arith.constant 7 : index
    %c0_33 = arith.constant 0 : index
    %c0_34 = arith.constant 0 : index
    %49 = vector.load %arg2[%c7, %c0_33, %c0_34] : memref<9x128x256xbf16, #tpu.memory_space<vmem>>, vector<1x128x256xbf16>
    %50 = vector.shape_cast %49 : vector<1x128x256xbf16> to vector<128x256xbf16>
    %cst_35 = arith.constant dense<0.000000e+00> : vector<4x256xf32>
    %51 = tpu.matmul %48, %50, %cst_35 {dimension_numbers = #tpu.dot_dimension_numbers<[1], [0], [0], [1], [0, 0, 1, 1], [], []>} : vector<4x128xbf16>, vector<128x256xbf16>, vector<4x256xf32> -> vector<4x256xf32>
    %52 = arith.addf %46, %51 : vector<4x256xf32>
    %53 = vector.extract_strided_slice %5 {offsets = [2, 17, 0], sizes = [2, 2, 128], strides = [1, 1, 1]} : vector<4x19x128xbf16> to vector<2x2x128xbf16>
    %54 = vector.shape_cast %53 : vector<2x2x128xbf16> to vector<4x128xbf16>
    %c8 = arith.constant 8 : index
    %c0_36 = arith.constant 0 : index
    %c0_37 = arith.constant 0 : index
    %55 = vector.load %arg2[%c8, %c0_36, %c0_37] : memref<9x128x256xbf16, #tpu.memory_space<vmem>>, vector<1x128x256xbf16>
    %56 = vector.shape_cast %55 : vector<1x128x256xbf16> to vector<128x256xbf16>
    %cst_38 = arith.constant dense<0.000000e+00> : vector<4x256xf32>
    %57 = tpu.matmul %54, %56, %cst_38 {dimension_numbers = #tpu.dot_dimension_numbers<[1], [0], [0], [1], [0, 0, 1, 1], [], []>} : vector<4x128xbf16>, vector<128x256xbf16>, vector<4x256xf32> -> vector<4x256xf32>
    %58 = arith.addf %52, %57 : vector<4x256xf32>
    %c0_39 = arith.constant 0 : index
    %c0_40 = arith.constant 0 : index
    %59 = vector.load %arg3[%c0_39, %c0_40] : memref<1x256xf32, #tpu.memory_space<vmem>>, vector<1x256xf32>
    %60 = vector.broadcast %59 : vector<1x256xf32> to vector<4x256xf32>
    %61 = arith.mulf %58, %60 : vector<4x256xf32>
    %c0_41 = arith.constant 0 : index
    %c0_42 = arith.constant 0 : index
    %62 = vector.load %arg4[%c0_41, %c0_42] : memref<1x256xf32, #tpu.memory_space<vmem>>, vector<1x256xf32>
    %63 = vector.broadcast %62 : vector<1x256xf32> to vector<4x256xf32>
    %64 = arith.addf %61, %63 : vector<4x256xf32>
    %cst_43 = arith.constant 0.000000e+00 : f32
    %65 = vector.broadcast %cst_43 : f32 to vector<4x256xf32>
    %66 = arith.maximumf %64, %65 : vector<4x256xf32>
    %67 = vector.shape_cast %66 : vector<4x256xf32> to vector<2x2x256xf32>
    %68 = vector.extract_strided_slice %67 {offsets = [0, 0, 0], sizes = [2, 1, 256], strides = [1, 1, 1]} : vector<2x2x256xf32> to vector<2x1x256xf32>
    %69 = vector.shape_cast %68 : vector<2x1x256xf32> to vector<2x256xf32>
    %70 = vector.extract_strided_slice %67 {offsets = [0, 1, 0], sizes = [2, 1, 256], strides = [1, 1, 1]} : vector<2x2x256xf32> to vector<2x1x256xf32>
    %71 = vector.shape_cast %70 : vector<2x1x256xf32> to vector<2x256xf32>
    %72 = arith.maximumf %69, %71 : vector<2x256xf32>
    %73 = vector.shape_cast %72 : vector<2x256xf32> to vector<1x2x1x256xf32>
    %74 = vector.extract_strided_slice %73 {offsets = [0, 0, 0, 0], sizes = [1, 1, 1, 256], strides = [1, 1, 1, 1]} : vector<1x2x1x256xf32> to vector<1x1x1x256xf32>
    %75 = vector.shape_cast %74 : vector<1x1x1x256xf32> to vector<1x1x256xf32>
    %76 = vector.extract_strided_slice %73 {offsets = [0, 1, 0, 0], sizes = [1, 1, 1, 256], strides = [1, 1, 1, 1]} : vector<1x2x1x256xf32> to vector<1x1x1x256xf32>
    %77 = vector.shape_cast %76 : vector<1x1x1x256xf32> to vector<1x1x256xf32>
    %78 = arith.maximumf %75, %77 : vector<1x1x256xf32>
    %79 = vector.shape_cast %78 : vector<1x1x256xf32> to vector<1x256xf32>
    %80 = arith.truncf %79 : vector<1x256xf32> to vector<1x256xbf16>
    %c0_44 = arith.constant 0 : index
    %c0_45 = arith.constant 0 : index
    %c0_46 = arith.constant 0 : index
    %81 = vector.load %arg5[%c0_44, %c0_45, %c0_46] : memref<1x1x256xbf16, #tpu.memory_space<vmem>>, vector<1x1x256xbf16>
    %82 = vector.shape_cast %81 : vector<1x1x256xbf16> to vector<1x256xbf16>
    %83 = vector.shape_cast %80 : vector<1x256xbf16> to vector<1x1x256xbf16>
    tpu.vector_store %arg5[%c0_44, %c0_45, %c0_46], %83 {strides = array<i32>} : memref<1x1x256xbf16, #tpu.memory_space<vmem>>, vector<1x1x256xbf16>,
    return
  }
  func.func @transform_0(%arg0: i32) -> (i32, i32, i32, i32) {
    %c0_i32 = arith.constant 0 : i32
    %c0_i32_0 = arith.constant 0 : i32
    %c0_i32_1 = arith.constant 0 : i32
    %c0_i32_2 = arith.constant 0 : i32
    return %arg0, %c0_i32, %c0_i32_0, %c0_i32_1 : i32, i32, i32, i32
  }
  func.func @transform_1(%arg0: i32) -> (i32, i32, i32) {
    %c0_i32 = arith.constant 0 : i32
    %c0_i32_0 = arith.constant 0 : i32
    %c0_i32_1 = arith.constant 0 : i32
    %c0_i32_2 = arith.constant 0 : i32
    return %c0_i32, %c0_i32_0, %c0_i32_1 : i32, i32, i32
  }
  func.func @transform_2(%arg0: i32) -> (i32, i32) {
    %c0_i32 = arith.constant 0 : i32
    %c0_i32_0 = arith.constant 0 : i32
    %c0_i32_1 = arith.constant 0 : i32
    return %c0_i32, %c0_i32_0 : i32, i32
  }
  func.func @transform_3(%arg0: i32) -> (i32, i32) {
    %c0_i32 = arith.constant 0 : i32
    %c0_i32_0 = arith.constant 0 : i32
    %c0_i32_1 = arith.constant 0 : i32
    return %c0_i32, %c0_i32_0 : i32, i32
  }
  func.func @transform_4(%arg0: i32) -> (i32, i32, i32) {
    %c0_i32 = arith.constant 0 : i32
    %c0_i32_0 = arith.constant 0 : i32
    %c0_i32_1 = arith.constant 0 : i32
    return %arg0, %c0_i32, %c0_i32_0 : i32, i32, i32
  }
}

module attributes {stable_mosaic.version = 11 : i64} {
  func.func @head_kernel(%arg0: memref<2x1x256xbf16, #tpu.memory_space<vmem>>, %arg1: memref<256x128xf32, #tpu.memory_space<vmem>>, %arg2: memref<1x128xf32, #tpu.memory_space<vmem>>, %arg3: memref<128x128xf32, #tpu.memory_space<vmem>>, %arg4: memref<1x128xf32, #tpu.memory_space<vmem>>, %arg5: memref<2x128xf32, #tpu.memory_space<vmem>>) attributes {dimension_semantics = [], scalar_prefetch = 0 : i64, scratch_operands = 0 : i64, tpu.core_type = #tpu.core_type<tc>} {
    %c0 = arith.constant 0 : index
    %c0_0 = arith.constant 0 : index
    %c0_1 = arith.constant 0 : index
    %0 = vector.load %arg0[%c0, %c0_0, %c0_1] : memref<2x1x256xbf16, #tpu.memory_space<vmem>>, vector<2x1x256xbf16>
    %1 = arith.extf %0 : vector<2x1x256xbf16> to vector<2x1x256xf32>
    %cst = arith.constant dense<0.000000e+00> : vector<2x256xf32>
    %2 = vector.multi_reduction <add>, %1, %cst [1] : vector<2x1x256xf32> to vector<2x256xf32>
    %cst_2 = arith.constant 1.000000e+00 : f32
    %3 = vector.broadcast %cst_2 : f32 to vector<2x256xf32>
    %4 = arith.divf %2, %3 : vector<2x256xf32>
    %c0_3 = arith.constant 0 : index
    %c0_4 = arith.constant 0 : index
    %5 = vector.load %arg1[%c0_3, %c0_4] : memref<256x128xf32, #tpu.memory_space<vmem>>, vector<256x128xf32>
    %cst_5 = arith.constant dense<0.000000e+00> : vector<2x128xf32>
    %6 = tpu.matmul %4, %5, %cst_5 {dimension_numbers = #tpu.dot_dimension_numbers<[1], [0], [0], [1], [0, 0, 1, 1], [], []>} : vector<2x256xf32>, vector<256x128xf32>, vector<2x128xf32> -> vector<2x128xf32>
    %c0_6 = arith.constant 0 : index
    %c0_7 = arith.constant 0 : index
    %7 = vector.load %arg2[%c0_6, %c0_7] : memref<1x128xf32, #tpu.memory_space<vmem>>, vector<1x128xf32>
    %8 = vector.broadcast %7 : vector<1x128xf32> to vector<2x128xf32>
    %9 = arith.addf %6, %8 : vector<2x128xf32>
    %cst_8 = arith.constant 0.000000e+00 : f32
    %10 = vector.broadcast %cst_8 : f32 to vector<2x128xf32>
    %11 = arith.maximumf %9, %10 : vector<2x128xf32>
    %c0_9 = arith.constant 0 : index
    %c0_10 = arith.constant 0 : index
    %12 = vector.load %arg3[%c0_9, %c0_10] : memref<128x128xf32, #tpu.memory_space<vmem>>, vector<128x128xf32>
    %cst_11 = arith.constant dense<0.000000e+00> : vector<2x128xf32>
    %13 = tpu.matmul %11, %12, %cst_11 {dimension_numbers = #tpu.dot_dimension_numbers<[1], [0], [0], [1], [0, 0, 1, 1], [], []>} : vector<2x128xf32>, vector<128x128xf32>, vector<2x128xf32> -> vector<2x128xf32>
    %c0_12 = arith.constant 0 : index
    %c0_13 = arith.constant 0 : index
    %14 = vector.load %arg4[%c0_12, %c0_13] : memref<1x128xf32, #tpu.memory_space<vmem>>, vector<1x128xf32>
    %15 = vector.broadcast %14 : vector<1x128xf32> to vector<2x128xf32>
    %16 = arith.addf %13, %15 : vector<2x128xf32>
    %c0_14 = arith.constant 0 : index
    %c0_15 = arith.constant 0 : index
    %17 = vector.load %arg5[%c0_14, %c0_15] : memref<2x128xf32, #tpu.memory_space<vmem>>, vector<2x128xf32>
    tpu.vector_store %arg5[%c0_14, %c0_15], %16 {strides = array<i32>} : memref<2x128xf32, #tpu.memory_space<vmem>>, vector<2x128xf32>,
    return
  }
}

</mosaic_0001>

<bundles_post_ra>
// kernel: plant_disease_model.8
= control target key start
LH: loop header
LB: loop body
LE: loop exit
PB: predicated region body
PF: predicated region fallthrough
CT: control target
= control target key end

     0   :  { %s2607_s15 = smov 0   ;;  %s3219_s0 = inlined_call_operand.vmem [shape: bf16[2,2,2,128], index: 0, kind: input, shape index: {}]   ;;  %s3220_s1 = inlined_call_operand.vmem [shape: bf16[9,128,256], index: 1, kind: input, shape index: {}]   ;;  %s3221_s2 = inlined_call_operand.vmem [shape: f32[1,256], index: 2, kind: input, shape index: {}]   ;;  %s3222_s3 = inlined_call_operand.vmem [shape: f32[1,256], index: 3, kind: input, shape index: {}]   ;;  %s3223_s4 = inlined_call_operand.vmem [shape: bf16[2,1,256], index: 4, kind: output, shape index: {}]  }
   0x1 LB: > { %s2016_s16 = sadd.s32 4294967295, %s2577_s15   ;;  %p2020_p0 = scmp.ge.s32.totalorder %s2577_s15, 1  ;;  %s2577_s15 = sphi %s2607_s15, %s14_s15  }
   0x2   : > { %p161_p1 = scmp.lt.s32.totalorder %s2577_s15, 3 }
   0x4   : > { %p162_p2 = pnand %p2020_p0, %p161_p1 }
   0x5   : > { %v2353_v0 = vld [vmem:[%s3220_s1 + $0x84] ss:$8 sps:$4 sm:$0xff] (!%p162_p2)   ;;  %v2579_v2 = vmov (!%p162_p2), 0   ;;  %v2357_v3 = vld [vmem:[%s3220_s1 + $0x80] ss:$8 sps:$4 sm:$0xff] (!%p162_p2)   ;;  %p185_p3 = scmp.lt.s32.totalorder (!%p162_p2), %s2016_s16, 1  ;;  %v245_v40 = vlaneseq (!%p162_p2) }
   0x6   : > { %165 = sbr.rel (%p162_p2) target bundleno = 412 (0x19c), region = 36  ;;  %v2355_v1 = vld [vmem:[%s3220_s1 + $0x204] ss:$8 sps:$4 sm:$0xff] (!%p162_p2)   ;;  %488 = vmatprep.mubr.bf16.mxu1 (!%p162_p2), %v2579_v2  ;;  %195 = vst [vmem:[#allocation2 + $0x4] sm:$0xf] (!%p162_p2), %v2579_v2  ;;  %1164 = vmatprep.mubr.bf16.mxu0 (!%p162_p2), %v2579_v2  ;;  %vm196_vm1 = vcmask (!%p162_p2), 1041408  }
   0x7   : > { %203 = vst [vmem:[#allocation2 + $0x10] sm:$0xf] (!%p162_p2), %v2579_v2  ;;  %208 = vst [vmem:[#allocation2 + $0x1c] sm:$0xf] (!%p162_p2), %v2579_v2  ;;  %456 = vmatprep.subr.bf16.mxu1 (!%p162_p2), %v2353_v0  ;;  %v2358_v4 = vld [vmem:[%s3220_s1 + $0x200] ss:$8 sps:$4 sm:$0xff] (!%p162_p2)   ;;  %1132 = vmatprep.subr.bf16.mxu0 (!%p162_p2), %v2355_v1 }
   0x8   : > { %213 = vst [vmem:[#allocation2 + $0x28] sm:$0xf] (!%p162_p2), %v2579_v2  ;;  %v2359_v5 = vld [vmem:[%s3220_s1 + $0x94] ss:$8 sps:$4 sm:$0xff] (!%p162_p2)   ;;  %457 = vmatpush1.bf16.msra.mxu1 (!%p162_p2), %v2357_v3  ;;  %1133 = vmatpush1.bf16.msra.mxu0 (!%p162_p2), %v2358_v4  ;;  %v2363_v7 = vld [vmem:[%s3220_s1 + $0x90] ss:$8 sps:$4 sm:$0xff] (!%p162_p2)  }
   0x9   : > { %v2361_v6 = vld [vmem:[%s3220_s1 + $0x214] ss:$8 sps:$4 sm:$0xff] (!%p162_p2)   ;;  %458 = vmatprep.subr.bf16.mxu1 (!%p162_p2), %v2359_v5  ;;  %v2364_v8 = vld [vmem:[%s3220_s1 + $0x210] ss:$8 sps:$4 sm:$0xff] (!%p162_p2)   ;;  %v2365_v9 = vld [vmem:[%s3220_s1 + $0xa4] ss:$8 sps:$4 sm:$0xff] (!%p162_p2)  }
   0xa   : > { %1134 = vmatprep.subr.bf16.mxu0 (!%p162_p2), %v2361_v6  ;;  %v2367_v10 = vld [vmem:[%s3220_s1 + $0x224] ss:$8 sps:$4 sm:$0xff] (!%p162_p2)   ;;  %v2369_v11 = vld [vmem:[%s3220_s1 + $0xa0] ss:$8 sps:$4 sm:$0xff] (!%p162_p2)   ;;  %v2371_v13 = vld [vmem:[%s3220_s1 + $0xb4] ss:$8 sps:$4 sm:$0xff] (!%p162_p2)  }
   0xb   : > { %v2370_v12 = vld [vmem:[%s3220_s1 + $0x220] ss:$8 sps:$4 sm:$0xff] (!%p162_p2)   ;;  %v2373_v14 = vld [vmem:[%s3220_s1 + $0x234] ss:$8 sps:$4 sm:$0xff] (!%p162_p2)   ;;  %v2375_v15 = vld [vmem:[%s3220_s1 + $0xb0] ss:$8 sps:$4 sm:$0xff] (!%p162_p2)  }
   0xc   : > { %459 = vmatpush1.bf16.msra.mxu1 (!%p162_p2), %v2363_v7  ;;  %1135 = vmatpush1.bf16.msra.mxu0 (!%p162_p2), %v2364_v8  ;;  %v2376_v16 = vld [vmem:[%s3220_s1 + $0x230] ss:$8 sps:$4 sm:$0xff] (!%p162_p2)   ;;  %v2377_v17 = vld [vmem:[%s3220_s1 + $0xc4] ss:$8 sps:$4 sm:$0xff] (!%p162_p2)   ;;  %v2381_v19 = vld [vmem:[%s3220_s1 + $0xc0] ss:$8 sps:$4 sm:$0xff] (!%p162_p2)  }
   0xd   : > { %460 = vmatprep.subr.bf16.mxu1 %v2365_v9  ;;  %1136 = vmatprep.subr.bf16.mxu0 %v2367_v10  ;;  %v2379_v18 = vld [vmem:[%s3220_s1 + $0x244] ss:$8 sps:$4 sm:$0xff]   ;;  %v2382_v20 = vld [vmem:[%s3220_s1 + $0x240] ss:$8 sps:$4 sm:$0xff]   ;;  %s3231_s16 = smov (!%p185_p3, %s2016_s16), 1  ;;  %v2748_v50 = vshrl.u32 %v245_v40, 7 }
   0xe   : > { %v2383_v21 = vld [vmem:[%s3220_s1 + $0xd4] ss:$8 sps:$4 sm:$0xff]   ;;  %vm197_vm0 = vsmask.f32 1280  ;;  %v2387_v23 = vld [vmem:[%s3220_s1 + $0xd0] ss:$8 sps:$4 sm:$0xff]  }
   0xf   : > { %v2385_v22 = vld [vmem:[%s3220_s1 + $0x254] ss:$8 sps:$4 sm:$0xff]   ;;  %s2021_s13 = sshll.u32 %s3231_s16, 1  ;;  %v2388_v24 = vld [vmem:[%s3220_s1 + $0x250] ss:$8 sps:$4 sm:$0xff]   ;;  %vm2724_vm2 = vmand %vm196_vm1, %vm197_vm0 }
  0x10   : > { %461 = vmatpush1.bf16.msra.mxu1 %v2369_v11  ;;  %1137 = vmatpush1.bf16.msra.mxu0 %v2370_v12  ;;  %v2389_v25 = vld [vmem:[%s3220_s1 + $0xe4] ss:$8 sps:$4 sm:$0xff]   ;;  %v2393_v27 = vld [vmem:[%s3220_s1 + $0xe0] ss:$8 sps:$4 sm:$0xff]   ;;  %s188_s28 = scalar_lea.vmem %s3219_s0, %s2021_s13  ;;  %v2395_v29 = vld [vmem:[%s3220_s1 + $0xf4] ss:$8 sps:$4 sm:$0xff]   ;;  %s192_s11 = scalar_lea.vmem %s3223_s4, %s2021_s13 }
  0x11   : > { %462 = vmatprep.subr.bf16.mxu1 %v2371_v13  ;;  %1138 = vmatprep.subr.bf16.mxu0 %v2373_v14  ;;  %v2391_v26 = vld [vmem:[%s3220_s1 + $0x264] ss:$8 sps:$4 sm:$0xff]   ;;  %v2394_v28 = vld [vmem:[%s3220_s1 + $0x260] ss:$8 sps:$4 sm:$0xff]   ;;  %v2397_v30 = vld [vmem:[%s3220_s1 + $0x274] ss:$8 sps:$4 sm:$0xff]  }
  0x12   : > { %v199_v32 = vld [vmem:[#allocation2 + $0x8] sm:$0x3]  ;;  %v204_v33 = vld [vmem:[#allocation2 + $0x14] sm:$0x3]  ;;  %v214_v36 = vld [vmem:[#allocation2 + $0x2c] sm:$0x3] }
  0x13   : > { %v200_v34 = vsel %vm2724_vm2, 0, %v199_v32  ;;  %v205_v35 = vsel %vm2724_vm2, 0, %v204_v33  ;;  %v217_v37 = vld [vmem:[%s188_s28] sm:$0x1]  ;;  %v2580_v38 = vmov 1966171168  }
  0x14   : > { %463 = vmatpush1.bf16.msra.mxu1 %v2375_v15  ;;  %1139 = vmatpush1.bf16.msra.mxu0 %v2376_v16  ;;  %v243_v39 = vunpack.c.l.s4 %v2580_v38  ;;  %201 = vst [vmem:[#allocation2 + $0x8] sm:$0x3] %v200_v34  ;;  %206 = vst [vmem:[#allocation2 + $0x14] sm:$0x3] %v205_v35  ;;  %v215_v41 = vsel %vm2724_vm2, 0, %v214_v36 }
  0x15   : > { %464 = vmatprep.subr.bf16.mxu1 %v2377_v17  ;;  %1140 = vmatprep.subr.bf16.mxu0 %v2379_v18  ;;  %v209_v42 = vld [vmem:[#allocation2 + $0x20] sm:$0x3]  ;;  %v2399_v44 = vld [vmem:[%s3220_s1 + $0xf0] ss:$8 sps:$4 sm:$0xff]   ;;  %216 = vst [vmem:[#allocation2 + $0x2c] sm:$0x3] %v215_v41 }
  0x16   : > { %v218_v43 = vld [vmem:[%s188_s28 + $0x1] sm:$0x1]  ;;  %v2400_v45 = vld [vmem:[%s3220_s1 + $0x270] ss:$8 sps:$4 sm:$0xff]   ;;  %220 = vst [vmem:[#allocation2 + $0x14] sm:$0x1] %v217_v37  ;;  %v244_v49 = vunpack.c.0.s8 %v243_v39 }
  0x17   : > { %v210_v46 = vsel %vm2724_vm2, 0, %v209_v42  ;;  %v2403_v47 = vld [vmem:[%s3220_s1 + $0x4] ss:$8 sps:$4 sm:$0xff]   ;;  %vm294_vm3 = vsmask.f32 256 }
  0x18   : > { %465 = vmatpush1.bf16.msra.mxu1 %v2381_v19  ;;  %1141 = vmatpush1.bf16.msra.mxu0 %v2382_v20  ;;  %211 = vst [vmem:[#allocation2 + $0x20] sm:$0x3] %v210_v46  ;;  %v2406_v48 = vld [vmem:[%s3220_s1 + $0x284] ss:$8 sps:$4 sm:$0xff]   ;;  %v2751_v52 = vsub.s32 %v244_v49, %v2748_v50  ;;  %vm295_vm4 = vsmask.f32 1284 }
  0x19   : > { %466 = vmatprep.subr.bf16.mxu1 %v2383_v21  ;;  %1142 = vmatprep.subr.bf16.mxu0 %v2385_v22  ;;  %221 = vst [vmem:[#allocation2 + $0x20] sm:$0x1] %v218_v43  ;;  %v2401_v57 = vld [vmem:[%s3220_s1] ss:$8 sps:$4 sm:$0xff]   ;;  %v2410_v60 = vld [vmem:[%s3220_s1 + $0x14] ss:$8 sps:$4 sm:$0xff]   ;;  %vm296_vm5 = vmor %vm294_vm3, %vm295_vm4 }
  0x1a   : > { %vm297_vm6 = vsmask.f32 2312  ;;  %v2404_v62 = vld [vmem:[%s3220_s1 + $0x280] ss:$8 sps:$4 sm:$0xff]   ;;  %v2408_v0 = vld [vmem:[%s3220_s1 + $0x10] ss:$8 sps:$4 sm:$0xff]  }
  0x1b   : > { %v223_v51 = vld [vmem:[#allocation2 + $0x8] sm:$0x3]  ;;  %v2413_v1 = vld [vmem:[%s3220_s1 + $0x294] ss:$8 sps:$4 sm:$0xff]   ;;  %v2416_v3 = vld [vmem:[%s3220_s1 + $0x24] ss:$8 sps:$4 sm:$0xff]  }
  0x1c   : > { %467 = vmatpush1.bf16.msra.mxu1 %v2387_v23  ;;  %1143 = vmatpush1.bf16.msra.mxu0 %v2388_v24  ;;  %vm298_vm7 = vmor %vm296_vm5, %vm297_vm6  ;;  %vm299_vm8 = vsmask.f32 3340  ;;  %v2411_v6 = vld [vmem:[%s3220_s1 + $0x290] ss:$8 sps:$4 sm:$0xff]   ;;  %v2414_v7 = vld [vmem:[%s3220_s1 + $0x20] ss:$8 sps:$4 sm:$0xff]   ;;  %v2794_v9 = vrot.slane %v223_v51, %v2751_v52 }
  0x1d   : > { %468 = vmatprep.subr.bf16.mxu1 %v2389_v25  ;;  %1144 = vmatprep.subr.bf16.mxu0 %v2391_v26  ;;  %v225_v53 = vld [vmem:[#allocation2 + $0x14] sm:$0x3]  ;;  %v2419_v8 = vld [vmem:[%s3220_s1 + $0x2a4] ss:$8 sps:$4 sm:$0xff]   ;;  %vm300_vm9 = vmor %vm298_vm7, %vm299_vm8  ;;  %vm301_vm10 = vsmask.f32 4368 }
  0x1e   : > { %v360_v54 = vcombine.low %v223_v51, %v225_v53  ;;  %v286_v4 = vrot.slane %v225_v53, %v2751_v52  ;;  %v2417_v10 = vld [vmem:[%s3220_s1 + $0x2a0] ss:$8 sps:$4 sm:$0xff]   ;;  %v2422_v11 = vld [vmem:[%s3220_s1 + $0x34] ss:$8 sps:$4 sm:$0xff]   ;;  %vm303_vm11 = vsmask.f32 5396  ;;  %vm302_vm12 = vmor %vm300_vm9, %vm301_vm10  ;;  %v2817_v19 = vrot.slane %v2794_v9, %v2751_v52 }
  0x1f   : > { %v2420_v12 = vld [vmem:[%s3220_s1 + $0x30] ss:$8 sps:$4 sm:$0xff]   ;;  %v2425_v15 = vld [vmem:[%s3220_s1 + $0x2b4] ss:$8 sps:$4 sm:$0xff]   ;;  %v2428_v16 = vld [vmem:[%s3220_s1 + $0x44] ss:$8 sps:$4 sm:$0xff]  }
  0x20   : > { %469 = vmatpush1.bf16.msra.mxu1 %v2393_v27  ;;  %1145 = vmatpush1.bf16.msra.mxu0 %v2394_v28  ;;  %v2753_v55 = vld [vmem:[#allocation2 + $0x20] sm:$0x3]  ;;  %v367_v56 = vrot.slane %v360_v54, %v2751_v52  ;;  %v642_v13 = vcombine.high %v286_v4, %v286_v4  ;;  %vm305_vm13 = vsmask.f32 6424  ;;  %vm2811_vm14 = vmor %vm302_vm12, %vm303_vm11  ;;  %v293_v22 = vrot.slane %v286_v4, %v2751_v52  ;;  %v2423_v23 = vld [vmem:[%s3220_s1 + $0x2b0] ss:$8 sps:$4 sm:$0xff]  }
  0x21   : > { %470 = vmatprep.subr.bf16.mxu1 %v2395_v29  ;;  %1146 = vmatprep.subr.bf16.mxu0 %v2397_v30  ;;  %v1036_v58 = vcombine.low %v225_v53, %v2753_v55  ;;  %v846_v5 = vrot.slane %v2753_v55, %v2751_v52  ;;  %v2023_v17 = vld.sshfl [vmem:[#allocation2 + $0x4] sm:$0x33 pattern:$0x75316420]  ;;  %v2426_v24 = vld [vmem:[%s3220_s1 + $0x40] ss:$8 sps:$4 sm:$0xff]   ;;  %vm306_vm1 = vmor %vm2811_vm14, %vm305_vm13 }
  0x22   : > { %v374_v59 = vrot.slane %v367_v56, %v2751_v52  ;;  %v2024_v20 = vld.sshfl [vmem:[#allocation2 + $0x10] sm:$0x33 pattern:$0x75316420]  ;;  %v241_v21 = vcombine.high %v2023_v17, %v2023_v17  ;;  %vm307_vm15 = vsmask.f32 7452  ;;  %v649_v26 = vrot.slane %v642_v13, %v2751_v52 }
  0x23   : > { %v1043_v61 = vrot.slane %v1036_v58, %v2751_v52  ;;  %v1175_v14 = vcombine.high %v846_v5, %v846_v5  ;;  %v271_v25 = vcombine.high %v2024_v20, %v2024_v20  ;;  %v2828_v27 = vrot.slane %v846_v5, %v2751_v52  ;;  %v2431_v30 = vld [vmem:[%s3220_s1 + $0x2c4] ss:$8 sps:$4 sm:$0xff]   ;;  %v2429_v33 = vld [vmem:[%s3220_s1 + $0x2c0] ss:$8 sps:$4 sm:$0xff]   ;;  %v2434_v34 = vld [vmem:[%s3220_s1 + $0x54] ss:$8 sps:$4 sm:$0xff]  }
  0x24   : > { %471 = vmatpush1.bf16.msra.mxu1 %v2399_v44  ;;  %1147 = vmatpush1.bf16.msra.mxu0 %v2400_v45  ;;  %v248_v29 = vrot.slane %v241_v21, %v2751_v52  ;;  %v315_v32 = vshll.u32 %v2817_v19, 16  ;;  %v324_v36 = vshll.u32 %v293_v22, 16  ;;  %v658_v37 = vshrl.u32 %v293_v22, 16  ;;  %v2432_v38 = vld [vmem:[%s3220_s1 + $0x50] ss:$8 sps:$4 sm:$0xff]   ;;  %vm2850_vm2 = vmor %vm306_vm1, %vm307_vm15 }
  0x25   : > { %593 = vmatprep.subr.bf16.mxu1 %v2403_v47  ;;  %1304 = vmatprep.subr.bf16.mxu0 %v2406_v48  ;;  %v1050_v63 = vrot.slane %v1043_v61, %v2751_v52  ;;  %v1182_v28 = vrot.slane %v1175_v14, %v2751_v52  ;;  %v278_v31 = vrot.slane %v271_v25, %v2751_v52  ;;  %v1183_v41 = vshrl.u32 %v2828_v27, 16  ;;  %v2437_v45 = vld [vmem:[%s3220_s1 + $0x2d4] ss:$8 sps:$4 sm:$0xff]   ;;  %v2440_v47 = vld [vmem:[%s3220_s1 + $0x64] ss:$8 sps:$4 sm:$0xff]  }
  0x26   : > { %v249_v35 = vcombine.high %v248_v29, %v248_v29  ;;  %v663_v43 = vshll.u32 %v649_v26, 16  ;;  %v2435_v49 = vld [vmem:[%s3220_s1 + $0x2d0] ss:$8 sps:$4 sm:$0xff]   ;;  %v2438_v53 = vld [vmem:[%s3220_s1 + $0x60] ss:$8 sps:$4 sm:$0xff]   ;;  %v634_v26 = vcombine.high %v2794_v9, %v2794_v9  ;;  %vm1955_vm4 = vcmask 1040384  }
  0x27   : > { %489 = vmatmul.mubr.bf16.vlgmr.msra.gmra.mrb[0].mxu1 %v374_v59  ;;  %1165 = vmatmul.mubr.bf16.vlgmr.msra.gmra.mrb[0].mxu0 %v1050_v63  ;;  %v279_v39 = vcombine.high %v278_v31, %v278_v31  ;;  %v1188_v44 = vshll.u32 %v1182_v28, 16  ;;  %v2443_v58 = vld [vmem:[%s3220_s1 + $0x2e4] ss:$8 sps:$4 sm:$0xff]   ;;  %v2446_v59 = vld [vmem:[%s3220_s1 + $0x74] ss:$8 sps:$4 sm:$0xff]   ;;  %vm1957_vm5 = vcmask 1041409   ;;  %vm1956_vm6 = vmand %vm1955_vm4, %vm294_vm3 }
  0x28   : > { %594 = vmatpush1.bf16.msra.mxu1 %v2401_v57  ;;  %625 = vmatprep.mubr.bf16.mxu1 %v2579_v2  ;;  %v310_v42 = vshrl.u32 %v249_v35, 16  ;;  %v2876_v56 = vsel %vm2850_vm2, %v658_v37, %v663_v43  ;;  %v2450_v5 = vld [vmem:[%s3220_s1 + $0x100] ss:$8 sps:$4 sm:$0xff]   ;;  %v2461_v13 = vld [vmem:[%s3220_s1 + $0x314] ss:$8 sps:$4 sm:$0xff]   ;;  %vm1958_vm7 = vmand %vm1957_vm5, %vm197_vm0 }
  0x29   : > { %595 = vmatprep.subr.bf16.mxu1 %v2410_v60  ;;  %1305 = vmatpush1.bf16.msra.mxu0 %v2404_v62  ;;  %v319_v46 = vshrl.u32 %v279_v39, 16  ;;  %v2880_v57 = vsel %vm2850_vm2, %v1183_v41, %v1188_v44  ;;  %v2441_v60 = vld [vmem:[%s3220_s1 + $0x2e0] ss:$8 sps:$4 sm:$0xff]   ;;  %v2444_v62 = vld [vmem:[%s3220_s1 + $0x70] ss:$8 sps:$4 sm:$0xff]   ;;  %vm1959_vm8 = vmor %vm1958_vm7, %vm1956_vm6 }
  0x2a   : > { %1336 = vmatprep.mubr.bf16.mxu0 %v2579_v2  ;;  %1306 = vmatprep.subr.bf16.mxu0 %v2413_v1  ;;  %v317_v48 = vsel %vm2850_vm2, %v310_v42, %v315_v32  ;;  %v1208_v61 = vcombine.low %v2876_v56, %v2880_v57  ;;  %v2452_v1 = vld [vmem:[%s3220_s1 + $0x104] ss:$8 sps:$4 sm:$0xff]   ;;  %v2109_v14 = vld.sshfl [vmem:[#allocation2 + $0x1c] sm:$0x33 pattern:$0x75316420] }
  0x2b   : > { %v2868_v51 = vsel %vm2850_vm2, %v319_v46, %v324_v36  ;;  %v2464_v18 = vld [vmem:[%s3220_s1 + $0x124] ss:$8 sps:$4 sm:$0xff]   ;;  %v2459_v20 = vld [vmem:[%s3220_s1 + $0x310] ss:$8 sps:$4 sm:$0xff]   ;;  %v2462_v22 = vld [vmem:[%s3220_s1 + $0x120] ss:$8 sps:$4 sm:$0xff]   ;;  %v641_v36 = vrot.slane %v634_v26, %v2751_v52 }
  0x2c   : > { %596 = vmatpush1.bf16.msra.mxu1 %v2408_v0  ;;  %v497_v54 = vcombine.low %v317_v48, %v2868_v51  ;;  %v2449_v0 = vld [vmem:[%s3220_s1 + $0x2f4] ss:$8 sps:$4 sm:$0xff]   ;;  %v1215_v4 = vrot.slane %v1208_v61, %v2751_v52  ;;  %v2467_v28 = vld [vmem:[%s3220_s1 + $0x324] ss:$8 sps:$4 sm:$0xff]   ;;  %v2465_v32 = vld [vmem:[%s3220_s1 + $0x320] ss:$8 sps:$4 sm:$0xff]  }
  0x2d   : > { %597 = vmatprep.subr.bf16.mxu1 %v2416_v3  ;;  %1307 = vmatpush1.bf16.msra.mxu0 %v2411_v6  ;;  %v2447_v3 = vld [vmem:[%s3220_s1 + $0x2f0] ss:$8 sps:$4 sm:$0xff]   ;;  %v2473_v37 = vld [vmem:[%s3220_s1 + $0x334] ss:$8 sps:$4 sm:$0xff]   ;;  %v2474_v43 = vld [vmem:[%s3220_s1 + $0x140] ss:$8 sps:$4 sm:$0xff]  }
  0x2e   : > { %1308 = vmatprep.subr.bf16.mxu0 %v2419_v8  ;;  %v504_v63 = vrot.slane %v497_v54, %v2751_v52  ;;  %v2453_v8 = vld [vmem:[%s3220_s1 + $0x300] ss:$8 sps:$4 sm:$0xff]   ;;  %v2468_v9 = vld [vmem:[%s3220_s1 + $0x130] ss:$8 sps:$4 sm:$0xff]   ;;  %v650_v46 = vshrl.u32 %v2817_v19, 16  ;;  %v860_v54 = vshll.u32 %v2828_v27, 16 }
  0x2f   : > { %v2471_v41 = vld [vmem:[%s3220_s1 + $0x330] ss:$8 sps:$4 sm:$0xff]   ;;  %v2479_v48 = vld [vmem:[%s3220_s1 + $0x344] ss:$8 sps:$4 sm:$0xff]   ;;  %v2485_v61 = vld [vmem:[%s3220_s1 + $0x354] ss:$8 sps:$4 sm:$0xff]  }
  0x30   : > { %598 = vmatpush1.bf16.msra.mxu1 %v2414_v7  ;;  %v511_v6 = vrot.slane %v504_v63, %v2751_v52  ;;  %v2455_v7 = vld [vmem:[%s3220_s1 + $0x304] ss:$8 sps:$4 sm:$0xff]   ;;  %v2480_v19 = vld [vmem:[%s3220_s1 + $0x150] ss:$8 sps:$4 sm:$0xff]   ;;  %v2510_v26 = vld [vmem:[%s3220_s1 + $0x1a0] ss:$8 sps:$4 sm:$0xff]  }
  0x31   : > { %599 = vmatprep.subr.bf16.mxu1 %v2422_v11  ;;  %1309 = vmatpush1.bf16.msra.mxu0 %v2417_v10  ;;  %v2458_v10 = vld [vmem:[%s3220_s1 + $0x114] ss:$8 sps:$4 sm:$0xff]   ;;  %v1222_v11 = vrot.slane %v1215_v4, %v2751_v52  ;;  %v2488_v63 = vld [vmem:[%s3220_s1 + $0x164] ss:$8 sps:$4 sm:$0xff]   ;;  %v2483_v27 = vld [vmem:[%s3220_s1 + $0x350] ss:$8 sps:$4 sm:$0xff]  }
  0x32   : > { %1310 = vmatprep.subr.bf16.mxu0 %v2425_v15  ;;  %v2927_v15 = vld [vmem:[#allocation2 + $0x2c] sm:$0x3]  ;;  %v2492_v40 = vld [vmem:[%s3220_s1 + $0x170] ss:$8 sps:$4 sm:$0xff]  }
  0x33   : > { %v1371_v17 = vrot.slane %v2927_v15, %v2751_v52 }
  0x34   : > { %600 = vmatpush1.bf16.msra.mxu1 %v2420_v12  ;;  %v2456_v12 = vld [vmem:[%s3220_s1 + $0x110] ss:$8 sps:$4 sm:$0xff]  }
  0x35   : > { %601 = vmatprep.subr.bf16.mxu1 %v2428_v16  ;;  %1311 = vmatpush1.bf16.msra.mxu0 %v2423_v23  ;;  %v2208_v16 = vld.sshfl [vmem:[#allocation2 + $0x28] sm:$0x33 pattern:$0x75316420]  ;;  %v1700_v21 = vcombine.high %v1371_v17, %v1371_v17  ;;  %v831_v23 = vcombine.high %v2109_v14, %v2109_v14  ;;  %v1378_v25 = vrot.slane %v1371_v17, %v2751_v52  ;;  %v2503_v17 = vld [vmem:[%s3220_s1 + $0x384] ss:$8 sps:$4 sm:$0xff]  }
  0x36   : > { %1312 = vmatprep.subr.bf16.mxu0 %v2431_v30  ;;  %v2470_v30 = vld [vmem:[%s3220_s1 + $0x134] ss:$8 sps:$4 sm:$0xff]   ;;  %v2498_v14 = vld [vmem:[%s3220_s1 + $0x180] ss:$8 sps:$4 sm:$0xff]  }
  0x37   : > { %v1707_v29 = vrot.slane %v1700_v21, %v2751_v52  ;;  %v1708_v31 = vshrl.u32 %v1378_v25, 16  ;;  %v2501_v21 = vld [vmem:[%s3220_s1 + $0x380] ss:$8 sps:$4 sm:$0xff]  }
  0x38   : > { %602 = vmatpush1.bf16.msra.mxu1 %v2426_v24  ;;  %v1356_v24 = vcombine.high %v2208_v16, %v2208_v16 }
  0x39   : > { %603 = vmatprep.subr.bf16.mxu1 %v2434_v34  ;;  %1313 = vmatpush1.bf16.msra.mxu0 %v2429_v33  ;;  %v838_v33 = vrot.slane %v831_v23, %v2751_v52  ;;  %v1713_v35 = vshll.u32 %v1707_v29, 16  ;;  %v2509_v23 = vld [vmem:[%s3220_s1 + $0x394] ss:$8 sps:$4 sm:$0xff]  }
  0x3a   : > { %1314 = vmatprep.subr.bf16.mxu0 %v2437_v45  ;;  %v1363_v34 = vrot.slane %v1356_v24, %v2751_v52  ;;  %v2512_v24 = vld [vmem:[%s3220_s1 + $0x1a4] ss:$8 sps:$4 sm:$0xff]   ;;  %v2518_v29 = vld [vmem:[%s3220_s1 + $0x1b4] ss:$8 sps:$4 sm:$0xff]  }
  0x3b   : > { %v2969_v39 = vsel %vm2850_vm2, %v1708_v31, %v1713_v35  ;;  %v839_v44 = vcombine.high %v838_v33, %v838_v33  ;;  %v2516_v31 = vld [vmem:[%s3220_s1 + $0x1b0] ss:$8 sps:$4 sm:$0xff]   ;;  %v2527_v35 = vld [vmem:[%s3220_s1 + $0x3c4] ss:$8 sps:$4 sm:$0xff]  }
  0x3c   : > { %604 = vmatpush1.bf16.msra.mxu1 %v2432_v38  ;;  %v2476_v38 = vld [vmem:[%s3220_s1 + $0x144] ss:$8 sps:$4 sm:$0xff]   ;;  %v1733_v42 = vcombine.low %v2880_v57, %v2969_v39  ;;  %v1364_v45 = vcombine.high %v1363_v34, %v1363_v34  ;;  %v2519_v33 = vld [vmem:[%s3220_s1 + $0x3b0] ss:$8 sps:$4 sm:$0xff]   ;;  %v2522_v34 = vld [vmem:[%s3220_s1 + $0x1c0] ss:$8 sps:$4 sm:$0xff]  }
  0x3d   : > { %605 = vmatprep.subr.bf16.mxu1 %v2440_v47  ;;  %1315 = vmatpush1.bf16.msra.mxu0 %v2435_v49  ;;  %v655_v47 = vshll.u32 %v641_v36, 16  ;;  %v2482_v49 = vld [vmem:[%s3220_s1 + $0x154] ss:$8 sps:$4 sm:$0xff]   ;;  %v1872_v57 = vld [vmem:[%s3221_s2] sm:$0x3]  ;;  %v1880_v39 = vsub.s32 1, %v2748_v50 }
  0x3e   : > { %1316 = vmatprep.subr.bf16.mxu0 %v2443_v58  ;;  %v855_v58 = vshrl.u32 %v839_v44, 16  ;;  %v2530_v36 = vld [vmem:[%s3220_s1 + $0x1d4] ss:$8 sps:$4 sm:$0xff]   ;;  %v2531_v44 = vld [vmem:[%s3220_s1 + $0x3d0] ss:$8 sps:$4 sm:$0xff]  }
  0x40   : > { %606 = vmatpush1.bf16.msra.mxu1 %v2438_v53  ;;  %v2477_v53 = vld [vmem:[%s3220_s1 + $0x340] ss:$8 sps:$4 sm:$0xff]  }
  0x41   : > { %607 = vmatprep.subr.bf16.mxu1 %v2446_v59  ;;  %1317 = vmatpush1.bf16.msra.mxu0 %v2441_v60  ;;  %v1380_v59 = vshrl.u32 %v1364_v45, 16  ;;  %v1385_v60 = vshll.u32 %v1378_v25, 16  ;;  %v2507_v25 = vld [vmem:[%s3220_s1 + $0x390] ss:$8 sps:$4 sm:$0xff]  }
  0x42   : > { %1318 = vmatprep.subr.bf16.mxu0 %v2449_v0  ;;  %v2486_v0 = vld [vmem:[%s3220_s1 + $0x160] ss:$8 sps:$4 sm:$0xff]  }
  0x43   : > { %v1387_v4 = vsel %vm2850_vm2, %v1380_v59, %v1385_v60  ;;  %v2548_v59 = vld [vmem:[%s3220_s1 + $0x404] ss:$8 sps:$4 sm:$0xff]  }
  0x44   : > { %608 = vmatpush1.bf16.msra.mxu1 %v2444_v62  ;;  %v657_v62 = vsel %vm2850_vm2, %v650_v46, %v655_v47  ;;  %v2534_v46 = vld [vmem:[%s3220_s1 + $0x1e0] ss:$8 sps:$4 sm:$0xff]   ;;  %v2539_v47 = vld [vmem:[%s3220_s1 + $0x3e4] ss:$8 sps:$4 sm:$0xff]  }
  0x45   : > { %779 = vmatprep.subr.bf16.mxu1 %v2452_v1  ;;  %1319 = vmatpush1.bf16.msra.mxu0 %v2447_v3  ;;  %v683_v1 = vcombine.low %v657_v62, %v2876_v56  ;;  %v3010_v3 = vsel %vm2850_vm2, %v855_v58, %v860_v54  ;;  %v2489_v56 = vld [vmem:[%s3220_s1 + $0x360] ss:$8 sps:$4 sm:$0xff]   ;;  %v2545_v54 = vld [vmem:[%s3220_s1 + $0x3f4] ss:$8 sps:$4 sm:$0xff]  }
  0x46   : > { %1501 = vmatprep.subr.bf16.mxu0 %v2455_v7  ;;  %v1405_v7 = vcombine.low %v3010_v3, %v1387_v4  ;;  %v880_v45 = vcombine.low %v2868_v51, %v3010_v3  ;;  %v2537_v51 = vld [vmem:[%s3220_s1 + $0x3e0] ss:$8 sps:$4 sm:$0xff]   ;;  %v2552_v62 = vld [vmem:[%s3220_s1 + $0x414] ss:$8 sps:$4 sm:$0xff]   ;;  %v2561_v3 = vld [vmem:[%s3220_s1 + $0x444] ss:$8 sps:$4 sm:$0xff]  }
  0x47   : > { %626 = vmatmul.mubr.bf16.vlgmr.msra.gmra.mrb[0].mxu1 %v511_v6  ;;  %v2494_v6 = vld [vmem:[%s3220_s1 + $0x174] ss:$8 sps:$4 sm:$0xff]   ;;  %v2559_v4 = vld [vmem:[%s3220_s1 + $0x440] ss:$8 sps:$4 sm:$0xff]  }
  0x48   : > { %780 = vmatpush1.bf16.msra.mxu1 %v2450_v5  ;;  %811 = vmatprep.mubr.bf16.mxu1 %v2579_v2  ;;  %v2491_v5 = vld [vmem:[%s3220_s1 + $0x364] ss:$8 sps:$4 sm:$0xff]  }
  0x49   : > { %781 = vmatprep.subr.bf16.mxu1 %v2458_v10  ;;  %1337 = vmatmul.mubr.bf16.vlgmr.msra.gmra.mrb[0].mxu0 %v1222_v11  ;;  %v2497_v10 = vld [vmem:[%s3220_s1 + $0x374] ss:$8 sps:$4 sm:$0xff]   ;;  %v2500_v11 = vld [vmem:[%s3220_s1 + $0x184] ss:$8 sps:$4 sm:$0xff]  }
  0x4a   : > { %1502 = vmatpush1.bf16.msra.mxu0 %v2453_v8  ;;  %1533 = vmatprep.mubr.bf16.mxu0 %v2579_v2  ;;  %v690_v8 = vrot.slane %v683_v1, %v2751_v52  ;;  %v2558_v1 = vld [vmem:[%s3220_s1 + $0x434] ss:$8 sps:$4 sm:$0xff]  }
  0x4b   : > { %1503 = vmatprep.subr.bf16.mxu0 %v2461_v13  ;;  %v1412_v13 = vrot.slane %v1405_v7, %v2751_v52  ;;  %v2565_v7 = vld [vmem:[%s3220_s1 + $0x460] ss:$8 sps:$4 sm:$0xff]  }
  0x4c   : > { %782 = vmatpush1.bf16.msra.mxu1 %v2456_v12  ;;  %v2495_v12 = vld [vmem:[%s3220_s1 + $0x370] ss:$8 sps:$4 sm:$0xff]   ;;  %v697_v16 = vrot.slane %v690_v8, %v2751_v52  ;;  %v1740_v8 = vrot.slane %v1733_v42, %v2751_v52  ;;  %v1886_v42 = vld [vmem:[%s3222_s3] sm:$0x3] }
  0x4d   : > { %783 = vmatprep.subr.bf16.mxu1 %v2464_v18  ;;  %v2506_v18 = vld [vmem:[%s3220_s1 + $0x194] ss:$8 sps:$4 sm:$0xff]  }
  0x4e   : > { %1504 = vmatpush1.bf16.msra.mxu0 %v2459_v20  ;;  %v1419_v20 = vrot.slane %v1412_v13, %v2751_v52 }
  0x4f   : > { %1505 = vmatprep.subr.bf16.mxu0 %v2467_v28  ;;  %v2515_v28 = vld [vmem:[%s3220_s1 + $0x3a4] ss:$8 sps:$4 sm:$0xff]  }
  0x50   : > { %784 = vmatpush1.bf16.msra.mxu1 %v2462_v22  ;;  %v2504_v22 = vld [vmem:[%s3220_s1 + $0x190] ss:$8 sps:$4 sm:$0xff]  }
  0x51   : > { %785 = vmatprep.subr.bf16.mxu1 %v2470_v30  ;;  %v2513_v30 = vld [vmem:[%s3220_s1 + $0x3a0] ss:$8 sps:$4 sm:$0xff]  }
  0x52   : > { %1506 = vmatpush1.bf16.msra.mxu0 %v2465_v32  ;;  %v2521_v32 = vld [vmem:[%s3220_s1 + $0x3b4] ss:$8 sps:$4 sm:$0xff]  }
  0x53   : > { %1507 = vmatprep.subr.bf16.mxu0 %v2473_v37  ;;  %v2525_v37 = vld [vmem:[%s3220_s1 + $0x3c0] ss:$8 sps:$4 sm:$0xff]  }
  0x54   : > { %786 = vmatpush1.bf16.msra.mxu1 %v2468_v9  ;;  %v2524_v9 = vld [vmem:[%s3220_s1 + $0x1c4] ss:$8 sps:$4 sm:$0xff]  }
  0x55   : > { %787 = vmatprep.subr.bf16.mxu1 %v2476_v38  ;;  %v2528_v38 = vld [vmem:[%s3220_s1 + $0x1d0] ss:$8 sps:$4 sm:$0xff]  }
  0x56   : > { %1508 = vmatpush1.bf16.msra.mxu0 %v2471_v41  ;;  %v2533_v41 = vld [vmem:[%s3220_s1 + $0x3d4] ss:$8 sps:$4 sm:$0xff]  }
  0x57   : > { %1509 = vmatprep.subr.bf16.mxu0 %v2479_v48  ;;  %v2542_v48 = vld [vmem:[%s3220_s1 + $0x1f4] ss:$8 sps:$4 sm:$0xff]  }
  0x58   : > { %788 = vmatpush1.bf16.msra.mxu1 %v2474_v43  ;;  %v2536_v43 = vld [vmem:[%s3220_s1 + $0x1e4] ss:$8 sps:$4 sm:$0xff]  }
  0x59   : > { %789 = vmatprep.subr.bf16.mxu1 %v2482_v49  ;;  %v1561_v49 = vcombine.low %v2753_v55, %v2927_v15  ;;  %v2543_v15 = vld [vmem:[%s3220_s1 + $0x3f0] ss:$8 sps:$4 sm:$0xff]  }
  0x5a   : > { %1510 = vmatpush1.bf16.msra.mxu0 %v2477_v53  ;;  %v887_v53 = vrot.slane %v880_v45, %v2751_v52 }
  0x5b   : > { %1511 = vmatprep.subr.bf16.mxu0 %v2485_v61  ;;  %v1568_v55 = vrot.slane %v1561_v49, %v2751_v52  ;;  %v2546_v61 = vld [vmem:[%s3220_s1 + $0x400] ss:$8 sps:$4 sm:$0xff]   ;;  %v1931_v49 = vsub.s32 2, %v2748_v50 }
  0x5c   : > { %790 = vmatpush1.bf16.msra.mxu1 %v2480_v19  ;;  %v2540_v19 = vld [vmem:[%s3220_s1 + $0x1f0] ss:$8 sps:$4 sm:$0xff]   ;;  %v894_v58 = vrot.slane %v887_v53, %v2751_v52 }
  0x5d   : > { %791 = vmatprep.subr.bf16.mxu1 %v2488_v63  ;;  %v1575_v60 = vrot.slane %v1568_v55, %v2751_v52  ;;  %v2550_v63 = vld [vmem:[%s3220_s1 + $0x410] ss:$8 sps:$4 sm:$0xff]  }
  0x5e   : > { %1512 = vmatpush1.bf16.msra.mxu0 %v2483_v27  ;;  %v2555_v27 = vld [vmem:[%s3220_s1 + $0x424] ss:$8 sps:$4 sm:$0xff]  }
  0x5f   : > { %1513 = vmatprep.subr.bf16.mxu0 %v2491_v5  ;;  %v2564_v5 = vld [vmem:[%s3220_s1 + $0x454] ss:$8 sps:$4 sm:$0xff]  }
  0x60   : > { %792 = vmatpush1.bf16.msra.mxu1 %v2486_v0  ;;  %v2553_v0 = vld [vmem:[%s3220_s1 + $0x420] ss:$8 sps:$4 sm:$0xff]  }
  0x61   : > { %793 = vmatprep.subr.bf16.mxu1 %v2494_v6  ;;  %v2562_v6 = vld [vmem:[%s3220_s1 + $0x450] ss:$8 sps:$4 sm:$0xff]  }
  0x62   : > { %1514 = vmatpush1.bf16.msra.mxu0 %v2489_v56  ;;  %v2567_v56 = vld [vmem:[%s3220_s1 + $0x464] ss:$8 sps:$4 sm:$0xff]  }
  0x63   : > { %1515 = vmatprep.subr.bf16.mxu0 %v2497_v10  ;;  %v2568_v10 = vld [vmem:[%s3220_s1 + $0x470] ss:$8 sps:$4 sm:$0xff]  }
  0x64   : > { %794 = vmatpush1.bf16.msra.mxu1 %v2492_v40  ;;  %v2570_v40 = vld [vmem:[%s3220_s1 + $0x474] ss:$8 sps:$4 sm:$0xff]  }
  0x65   : > { %976 = vmatprep.subr.bf16.mxu1 %v2500_v11  ;;  %v1747_v11 = vrot.slane %v1740_v8, %v2751_v52 }
  0x66   : > { %1516 = vmatpush1.bf16.msra.mxu0 %v2495_v12 }
  0x67   : > { %812 = vmatmul.mubr.bf16.vlgmr.msra.gmra.mrb[0].mxu1 %v697_v16  ;;  %1657 = vmatprep.subr.bf16.mxu0 %v2503_v17  ;;  %v1876_v17 = vsub.s32 0, %v2748_v50 }
  0x68   : > { %977 = vmatpush1.bf16.msra.mxu1 %v2498_v14  ;;  %1008 = vmatprep.mubr.bf16.mxu1 %v2579_v2 }
  0x69   : > { %978 = vmatprep.subr.bf16.mxu1 %v2506_v18  ;;  %1534 = vmatmul.mubr.bf16.vlgmr.msra.gmra.mrb[0].mxu0 %v1419_v20  ;;  %v1877_v18 = vrot.slane %v1872_v57, %v1876_v17 }
  0x6a   : > { %1658 = vmatpush1.bf16.msra.mxu0 %v2501_v21  ;;  %1689 = vmatprep.mubr.bf16.mxu0 %v2579_v2  ;;  %v1881_v21 = vrot.slane %v1872_v57, %v1880_v39 }
  0x6b   : > { %1659 = vmatprep.subr.bf16.mxu0 %v2509_v23 }
  0x6c   : > { %979 = vmatpush1.bf16.msra.mxu1 %v2504_v22  ;;  %v2581_v22 = vmov 1983009808  }
  0x6d   : > { %980 = vmatprep.subr.bf16.mxu1 %v2512_v24  ;;  %v1906_v23 = vunpack.c.l.s4 %v2581_v22 }
  0x6e   : > { %1660 = vmatpush1.bf16.msra.mxu0 %v2507_v25  ;;  %v1891_v25 = vrot.slane %v1886_v42, %v1876_v17 }
  0x6f   : > { %1661 = vmatprep.subr.bf16.mxu0 %v2515_v28 }
  0x70   : > { %981 = vmatpush1.bf16.msra.mxu1 %v2510_v26 }
  0x71   : > { %982 = vmatprep.subr.bf16.mxu1 %v2518_v29  ;;  %v1895_v29 = vrot.slane %v1886_v42, %v1880_v39 }
  0x72   : > { %1662 = vmatpush1.bf16.msra.mxu0 %v2513_v30 }
  0x73   : > { %1663 = vmatprep.subr.bf16.mxu0 %v2521_v32 }
  0x74   : > { %983 = vmatpush1.bf16.msra.mxu1 %v2516_v31 }
  0x75   : > { %984 = vmatprep.subr.bf16.mxu1 %v2524_v9 }
  0x76   : > { %1664 = vmatpush1.bf16.msra.mxu0 %v2519_v33  ;;  %v1907_v33 = vunpack.c.0.s8 %v1906_v23 }
  0x77   : > { %1665 = vmatprep.subr.bf16.mxu0 %v2527_v35 }
  0x78   : > { %985 = vmatpush1.bf16.msra.mxu1 %v2522_v34 }
  0x79   : > { %986 = vmatprep.subr.bf16.mxu1 %v2530_v36 }
  0x7a   : > { %1666 = vmatpush1.bf16.msra.mxu0 %v2525_v37 }
  0x7b   : > { %1667 = vmatprep.subr.bf16.mxu0 %v2533_v41 }
  0x7c   : > { %987 = vmatpush1.bf16.msra.mxu1 %v2528_v38  ;;  %v1910_v38 = vsub.s32 %v1907_v33, %v2748_v50 }
  0x7d   : > { %988 = vmatprep.subr.bf16.mxu1 %v2536_v43 }
  0x7e   : > { %1668 = vmatpush1.bf16.msra.mxu0 %v2531_v44 }
  0x7f   : > { %1669 = vmatprep.subr.bf16.mxu0 %v2539_v47 }
  0x80   : > { %989 = vmatpush1.bf16.msra.mxu1 %v2534_v46 }
  0x81   : > { %990 = vmatprep.subr.bf16.mxu1 %v2542_v48 }
  0x82   : > { %1670 = vmatpush1.bf16.msra.mxu0 %v2537_v51 }
  0x83   : > { %1671 = vmatprep.subr.bf16.mxu0 %v2545_v54 }
  0x84   : > { %991 = vmatpush1.bf16.msra.mxu1 %v2540_v19 }
  0x86   : > { %1672 = vmatpush1.bf16.msra.mxu0 %v2543_v15  ;;  %v1960_v15 = vld [vmem:[%s192_s11] sm:$0x3] }
  0x87   : > { %1009 = vmatmul.mubr.bf16.vlgmr.msra.gmra.mrb[0].mxu1 %v894_v58  ;;  %1829 = vmatprep.subr.bf16.mxu0 %v2548_v59 }
  0x89   : > { %1690 = vmatmul.mubr.bf16.vlgmr.msra.gmra.mrb[0].mxu0 %v1575_v60 }
  0x8a   : > { %1830 = vmatpush1.bf16.msra.mxu0 %v2546_v61  ;;  %1861 = vmatprep.mubr.bf16.mxu0 %v2579_v2  ;;  %v2556_v2 = vld [vmem:[%s3220_s1 + $0x430] ss:$8 sps:$4 sm:$0xff]  }
  0x8b   : > { %1831 = vmatprep.subr.bf16.mxu0 %v2552_v62 }
  0x8e   : > { %1832 = vmatpush1.bf16.msra.mxu0 %v2550_v63 }
  0x8f   : > { %1833 = vmatprep.subr.bf16.mxu0 %v2555_v27 }
  0x92   : > { %1834 = vmatpush1.bf16.msra.mxu0 %v2553_v0 }
  0x93   : > { %1835 = vmatprep.subr.bf16.mxu0 %v2558_v1 }
  0x96   : > { %1836 = vmatpush1.bf16.msra.mxu0 %v2556_v2 }
  0x97   : > { %1837 = vmatprep.subr.bf16.mxu0 %v2561_v3 }
  0x9a   : > { %1838 = vmatpush1.bf16.msra.mxu0 %v2559_v4 }
  0x9b   : > { %1839 = vmatprep.subr.bf16.mxu0 %v2564_v5 }
  0x9e   : > { %1840 = vmatpush1.bf16.msra.mxu0 %v2562_v6 }
  0x9f   : > { %1841 = vmatprep.subr.bf16.mxu0 %v2567_v56 }
  0xa2   : > { %1842 = vmatpush1.bf16.msra.mxu0 %v2565_v7 }
  0xa3   : > { %1843 = vmatprep.subr.bf16.mxu0 %v2570_v40 }
  0xa6   : > { %1844 = vmatpush1.bf16.msra.mxu0 %v2568_v10 }
  0xa9   : > { %1862 = vmatmul.mubr.bf16.vlgmr.msra.gmra.mrb[0].mxu0 %v1747_v11 }
 0x15a   : > { %v1010_v12 = vpop.f32.mrb[0].mxu1 }
 0x15b   : > { %v1012_v13 = vpop.f32.mrb[1].mxu1 }
 0x15c   : > { %v1014_v14 = vpop.f32.mrb[2].mxu1 }
 0x15d   : > { %v1015_v16 = vpop.f32.mrb[3].mxu1 }
 0x17c   : > { %v1863_v20 = vpop.f32.mrb[0].mxu0 }
 0x17d   : > { %v2312_v24 = vadd.f32 %v1863_v20, %v1010_v12  ;;  %v1865_v26 = vpop.f32.mrb[1].mxu0 }
 0x17e   : > { %v2313_v28 = vadd.f32 %v1865_v26, %v1012_v13  ;;  %v1867_v30 = vpop.f32.mrb[2].mxu0 }
 0x17f   : > { %v1884_v31 = vmul.f32 %v2312_v24, %v1877_v18  ;;  %v1868_v32 = vpop.f32.mrb[3].mxu0 }
 0x180   : > { %v1885_v9 = vmul.f32 %v2313_v28, %v1881_v21 }
 0x181   : > { %v1898_v34 = vadd.f32 %v1891_v25, %v1884_v31 }
 0x182   : > { %v1899_v35 = vadd.f32 %v1895_v29, %v1885_v9 }
 0x183   : > { %v1900_v36 = vmax.f32 %v1898_v34, 0.0 }
 0x184   : > { %v1901_v37 = vmax.f32 %v1899_v35, 0.0 }
 0x186   : > { %v1904_v41 = vcombine.low %v1900_v36, %v1901_v37 }
 0x188   : > { %v1911_v43 = vrot.slane %v1904_v41, %v1910_v38 }
 0x18a   : > { %v1912_v44 = vcombine.high %v1911_v43, %v1911_v43  ;;  %v2307_v45 = vrot.slane %v1911_v43, 9 }
 0x18c   : > { %v2308_v46 = vrot.slane %v1912_v44, 9  ;;  %v1921_v47 = vmax.f32 %v1911_v43, %v2307_v45 }
 0x18e   : > { %v1922_v48 = vmax.f32 %v1912_v44, %v2308_v46 }
 0x190   : > { %v1923_v51 = vmax.f32 %v1921_v47, %v1922_v48 }
 0x192   : > { %v1928_v53 = vrot.slane %v1923_v51, %v1876_v17  ;;  %v1932_v19 = vrot.slane %v1923_v51, %v1931_v49 }
 0x194   : > { %v2309_v54 = vpack.c.bf16 %v1932_v19, %v1928_v53 }
 0x196   : > { %v1946_v55 = vrot.slane %v2309_v54, %v2751_v52 }
 0x198   : > { %v1953_v50 = vrot.slane %v1946_v55, %v2751_v52 }
 0x19a   : > { %v1961_v58 = vsel %vm1959_vm8, %v1953_v50, %v1960_v15 }
 0x19b   : > { %1962 = vst [vmem:[%s192_s11] sm:$0x3] %v1961_v58 }
 0x19c PF: > { %s14_s15 = sadd.s32 1, %s2577_s15  }
 0x19d   : > { %p11_p4 = scmp.ge.s32.totalorder %s14_s15, 4  }
 0x19f   :  { %13 = sbr.rel (!%p11_p4) target bundleno = 1 (0x1), region = 75 }

// kernel: plant_disease_model.7
= control target key start
LH: loop header
LB: loop body
LE: loop exit
PB: predicated region body
PF: predicated region fallthrough
CT: control target
= control target key end

     0   :  { %9 = vsyncpa [#allocation4], 0  ;;  %s2543_s0 = inlined_call_operand.vmem [shape: bf16[2,4,4,64], index: 0, kind: input, shape index: {}]   ;;  %s2544_s1 = inlined_call_operand.hbm [shape: bf16[9,64,128], index: 1, kind: input, shape index: {}]   ;;  %s2545_s2 = inlined_call_operand.hbm [shape: f32[1,128], index: 2, kind: input, shape index: {}]   ;;  %s2546_s3 = inlined_call_operand.hbm [shape: f32[1,128], index: 3, kind: input, shape index: {}]   ;;  %s2547_s4 = inlined_call_operand.vmem [shape: bf16[2,2,256], index: 4, kind: output, shape index: {}]  }
   0x1   :  { %10 = vsyncpa [#allocation6], 0  ;;  %s2116_s15 = smov 0  }
   0x2 LB: > { %s2080_s16 = smov [#allocation5]   ;;  %s2122_s18 = sadd.s32 4294967295, %s2078_s15   ;;  %s2078_s15 = sphi %s2116_s15, %s16_s15  }
   0x3   : > { %s162_s17 = sshll.u32 %s2080_s16, 4  ;;  %p1625_p0 = scmp.ge.s32.totalorder %s2078_s15, 1  ;;  %s163_s17 = int_to_ptr.vmem [resolvable:$true] %s162_s17 }
   0x4   : > { %p136_p1 = scmp.lt.s32.totalorder %s2078_s15, 3  ;;  %p2548_p2 = scmp.eq.s32.totalorder %s2122_s18, 0 }
   0x5   : > { %s2081_s20 = smov [#allocation3]   ;;  %s2082_s23 = smov [#allocation7]  }
   0x6   : > { %p2127_p3 = pnand %p1625_p0, %p136_p1  ;;  %s148_s21 = sshll.u32 %s2081_s20, 4  ;;  %s2139_s21 = int_to_ptr.vmem [resolvable:$true] %s148_s21 }
   0x7   : > { %s173_s24 = sshll.u32 %s2082_s23, 4  ;;  %s1980_s27 = scalar_lea.hbm %s2545_s2, 16  ;;  %s2141_s24 = int_to_ptr.vmem [resolvable:$true] %s173_s24 }
   0x8   : > { %s2550_s19 = scalar_select %p2127_p3, 1, 0 }
   0x9   : > { %p1904_p4 = pneg %p2127_p3  ;;  %p1981_p6 = scmp.ne.s32.totalorder %s2545_s2, %s1980_s27 }
   0xa   : > { %p1987_p10 = scmp.lt.u32.totalorder %s1980_s27, %s2545_s2 }
   0xb   : > { %p2135_p5 = pnand %p2548_p2, %p1904_p4 }
   0xd   : > { %p2151_p7 = pneg %p2135_p5 }
   0xf   : > { %p1983_p8 = pnand %p2151_p7, %p1981_p6 }
  0x11   : > { %p1984_p9 = pneg %p1983_p8 }
  0x13   : > { %p1989_p11 = pnand %p1987_p10, %p1984_p9 }
  0x15   : > { %1992 = shalt.err (!%p1989_p11)
}
  0x16   : > { %s1993_s7 = scalar_lea.vmem %s163_s17, 16  ;;  %s2000_s8 = scalar_lea.vmem %s163_s17, 32 }
  0x17   : > { %p1994_p12 = scmp.ne.s32.totalorder %s163_s17, %s1993_s7  ;;  %p2001_p1 = scmp.lt.s32.totalorder %s163_s17, %s163_s17 }
  0x18   : > { %p2002_p4 = scmp.lt.s32.totalorder %s2000_s8, %s1993_s7 }
  0x19   : > { %p1996_p13 = pnand %p1994_p12, %p2151_p7 }
  0x1a   : > { %p2003_p2 = por %p2002_p4, %p2001_p1 }
  0x1b   : > { %p1997_p0 = pneg %p1996_p13 }
  0x1d   : > { %p2004_p3 = pnand %p2003_p2, %p1997_p0 }
  0x1f   : > { %2007 = shalt.err (!%p2004_p3)
}
  0x20   : > { %1910 = dma.hbm_to_vmem [thread:$0]  (!%p2135_p5), %s2545_s2, 16, %s163_s17, [#allocation6]  }
  0x21   : > { %s2008_s13 = scalar_lea.hbm %s2544_s1, 4608 }
  0x22   : > { %p2009_p6 = scmp.ne.s32.totalorder %s2544_s1, %s2008_s13  ;;  %p2015_p2 = scmp.lt.u32.totalorder %s2008_s13, %s2544_s1 }
  0x24   : > { %p2011_p8 = pnand %p2009_p6, %p2151_p7 }
  0x26   : > { %p2012_p9 = pneg %p2011_p8 }
  0x28   : > { %p2017_p3 = pnand %p2015_p2, %p2012_p9 }
  0x2a   : > { %2020 = shalt.err (!%p2017_p3)
}
  0x2b   : > { %s2021_s17 = scalar_lea.vmem %s2139_s21, 4608  ;;  %p2029_p13 = scmp.lt.s32.totalorder %s2139_s21, %s2139_s21 }
  0x2c   : > { %p2022_p10 = scmp.ne.s32.totalorder %s2139_s21, %s2021_s17  ;;  %p2030_p0 = scmp.lt.s32.totalorder %s2021_s17, %s2021_s17 }
  0x2e   : > { %p2024_p11 = pnand %p2022_p10, %p2151_p7  ;;  %p2031_p1 = por %p2030_p0, %p2029_p13 }
  0x30   : > { %p2025_p12 = pneg %p2024_p11 }
  0x32   : > { %p2032_p4 = pnand %p2031_p1, %p2025_p12 }
  0x34   : > { %2035 = shalt.err (!%p2032_p4)
}
  0x35   : > { %s2083_s25 = smov 64   ;;  %s2084_s26 = smov 4  }
  0x36   : > { %1907 = dma.hbm_to_vmem [thread:$0]  (!%p2135_p5), %s2544_s1, 4608, %s2139_s21, [#allocation4], %s2083_s25, %s2083_s25, %s2084_s26  }
  0x37   : > { %s2036_s6 = scalar_lea.hbm %s2546_s3, 16 }
  0x38   : > { %p2037_p6 = scmp.ne.s32.totalorder %s2546_s3, %s2036_s6  ;;  %p2043_p2 = scmp.lt.u32.totalorder %s2036_s6, %s2546_s3 }
  0x3a   : > { %p2039_p8 = pnand %p2037_p6, %p2151_p7 }
  0x3c   : > { %p2040_p9 = pneg %p2039_p8 }
  0x3e   : > { %p2045_p3 = pnand %p2043_p2, %p2040_p9 }
  0x40   : > { %2048 = shalt.err (!%p2045_p3)
}
  0x41   : > { %s2049_s21 = scalar_lea.vmem %s2141_s24, 16  ;;  %s2056_s11 = scalar_lea.vmem %s2141_s24, 32 }
  0x42   : > { %p2050_p10 = scmp.ne.s32.totalorder %s2141_s24, %s2049_s21  ;;  %p2057_p13 = scmp.lt.s32.totalorder %s2141_s24, %s2141_s24 }
  0x43   : > { %p2058_p0 = scmp.lt.s32.totalorder %s2056_s11, %s2049_s21 }
  0x44   : > { %p2052_p11 = pnand %p2050_p10, %p2151_p7 }
  0x45   : > { %p2059_p1 = por %p2058_p0, %p2057_p13 }
  0x46   : > { %p2053_p12 = pneg %p2052_p11 }
  0x48   : > { %p2060_p4 = pnand %p2059_p1, %p2053_p12 }
  0x4a   : > { %2063 = shalt.err (!%p2060_p4)
}
  0x4b   : > { %1913 = dma.hbm_to_vmem [thread:$0]  (!%p2135_p5), %s2546_s3, 16, %s2141_s24, [#allocation6]  }
  0x4c   : > { %p2553_p6 = scmp.ne.s32.totalorder %s2550_s19, 0 }
  0x4d   : > { %p2554_p7 = scmp.eq.s32.totalorder (!%p2553_p6), %s2122_s18, 0 }
  0x4e   : > { %194 = sbr.rel (%p2553_p6) target bundleno = 439 (0x1b7), region = 36 }
  0x55   : > { %2069 = dma.done.wait (%p2554_p7), [#allocation4], 4608   ;;  %p2555_p8 = pmov %p2554_p7 }
  0x56   : > { %p2556_p9 = pmov %p2554_p7 }
  0x57   : > { %2071 = vsyncadd (%p2555_p8), [#allocation4], 4294962688 }
  0x58   : > { %2073 = dma.done.wait (%p2556_p9), [#allocation6], 32   ;;  %p2557_p2 = pmov %p2554_p7 }
  0x59   : > { %v2085_v0 = vmov 0.0   ;;  %vm2086_vm0 = vmmov 0   ;;  %vm237_vm1 = vcmask 519168   ;;  %v2087_v1 = vmov 0   ;;  %p227_p5 = scmp.lt.s32.totalorder %s2122_s18, 1  ;;  %v1939_v2 = vld [vmem:[#allocation3 + $0x20] sm:$0xff]  }
  0x5a   : > { %2075 = vsyncadd (%p2557_p2), [#allocation6], 4294967264  ;;  %1754 = vmatprep.subr.bf16.mxu1 %v2085_v0  ;;  %1802 = vmatprep.subr.bf16.mxu0 %v2085_v0  ;;  %239 = vst.msk [vmem:[#allocation2 + $0x4] sm:$0xf] %vm237_vm1, %v2087_v1  ;;  %vm241_vm2 = vsmask.f32 2304  ;;  %v312_v6 = vlaneseq }
  0x5b   : > { %1762 = vmatprep.mubr.msk.bf16.mxu1 %vm2086_vm0, %v2085_v0  ;;  %1810 = vmatprep.mubr.msk.bf16.mxu0 %vm2086_vm0, %v2085_v0  ;;  %247 = vst.msk [vmem:[#allocation2 + $0x10] sm:$0xf] %vm237_vm1, %v2087_v1  ;;  %252 = vst.msk [vmem:[#allocation2 + $0x1c] sm:$0xf] %vm237_vm1, %v2087_v1  ;;  %v1940_v3 = vld [vmem:[#allocation3 + $0x80] sm:$0xff]   ;;  %s2573_s18 = smov (!%p227_p5, %s2122_s18), 1 }
  0x5c   : > { %257 = vst.msk [vmem:[#allocation2 + $0x28] sm:$0xf] %vm237_vm1, %v2087_v1  ;;  %262 = vst.msk [vmem:[#allocation2 + $0x34] sm:$0xf] %vm237_vm1, %v2087_v1  ;;  %1755 = vmatpush3.bf16.msra.mxu1 %v1939_v2  ;;  %v1941_v4 = vld [vmem:[#allocation3 + $0x28] sm:$0xff]   ;;  %vm240_vm3 = vcmask 518144   ;;  %1803 = vmatpush3.bf16.msra.mxu0 %v1940_v3 }
  0x5d   : > { %267 = vst.msk [vmem:[#allocation2 + $0x40] sm:$0xf] %vm237_vm1, %v2087_v1  ;;  %1756 = vmatprep.subr.bf16.mxu1 %v2085_v0  ;;  %v1942_v5 = vld [vmem:[#allocation3 + $0x88] sm:$0xff]   ;;  %1804 = vmatprep.subr.bf16.mxu0 %v2085_v0  ;;  %s1708_s19 = sshll.u32 %s2573_s18, 3  ;;  %vm2237_vm4 = vmand %vm240_vm3, %vm241_vm2  ;;  %v1943_v8 = vld [vmem:[#allocation3 + $0x30] sm:$0xff]   ;;  %vm276_vm5 = vcmask 517120  }
  0x5e   : > { %v1944_v9 = vld [vmem:[#allocation3 + $0x90] sm:$0xff]   ;;  %v2242_v10 = vshrl.u32 %v312_v6, 7  ;;  %s231_s30 = scalar_lea.vmem %s2543_s0, %s1708_s19  ;;  %v243_v11 = vld [vmem:[#allocation2 + $0x8] sm:$0x7]  ;;  %v248_v12 = vld [vmem:[#allocation2 + $0x14] sm:$0x7] }
  0x5f   : > { %v253_v13 = vld [vmem:[#allocation2 + $0x20] sm:$0x7]  ;;  %v2088_v14 = vmov 1983009808   ;;  %v244_v17 = vsel %vm2237_vm4, 0, %v243_v11  ;;  %v249_v18 = vsel %vm2237_vm4, 0, %v248_v12 }
  0x60   : > { %1757 = vmatpush3.bf16.msra.mxu1 %v1941_v4  ;;  %1805 = vmatpush3.bf16.msra.mxu0 %v1942_v5  ;;  %v310_v15 = vunpack.c.l.s4 %v2088_v14  ;;  %v1945_v16 = vld [vmem:[#allocation3 + $0x38] sm:$0xff]   ;;  %v254_v19 = vsel %vm2237_vm4, 0, %v253_v13  ;;  %v258_v20 = vld [vmem:[#allocation2 + $0x2c] sm:$0x7]  ;;  %245 = vst [vmem:[#allocation2 + $0x8] sm:$0x7] %v244_v17 }
  0x61   : > { %1758 = vmatprep.subr.bf16.mxu1 %v2085_v0  ;;  %1806 = vmatprep.subr.bf16.mxu0 %v2085_v0  ;;  %v1946_v21 = vld [vmem:[#allocation3 + $0x98] sm:$0xff]   ;;  %250 = vst [vmem:[#allocation2 + $0x14] sm:$0x7] %v249_v18  ;;  %255 = vst [vmem:[#allocation2 + $0x20] sm:$0x7] %v254_v19  ;;  %v259_v22 = vsel %vm2237_vm4, 0, %v258_v20 }
  0x62   : > { %v263_v23 = vld [vmem:[#allocation2 + $0x38] sm:$0x7]  ;;  %v268_v24 = vld [vmem:[#allocation2 + $0x44] sm:$0x7]  ;;  %260 = vst [vmem:[#allocation2 + $0x2c] sm:$0x7] %v259_v22  ;;  %v311_v31 = vunpack.c.0.s8 %v310_v15 }
  0x63   : > { %v264_v25 = vsel %vm2237_vm4, 0, %v263_v23  ;;  %v269_v26 = vsel %vm2237_vm4, 0, %v268_v24  ;;  %v271_v27 = vld [vmem:[%s231_s30] sm:$0x3]  ;;  %v272_v28 = vld [vmem:[%s231_s30 + $0x2] sm:$0x3] }
  0x64   : > { %1759 = vmatpush3.bf16.msra.mxu1 %v1943_v8  ;;  %1807 = vmatpush3.bf16.msra.mxu0 %v1944_v9  ;;  %265 = vst [vmem:[#allocation2 + $0x38] sm:$0x7] %v264_v25  ;;  %270 = vst [vmem:[#allocation2 + $0x44] sm:$0x7] %v269_v26  ;;  %v273_v29 = vld [vmem:[%s231_s30 + $0x4] sm:$0x3]  ;;  %v2269_v32 = vsub.s32 %v311_v31, %v2242_v10 }
  0x65   : > { %1760 = vmatprep.subr.bf16.mxu1 %v2085_v0  ;;  %1808 = vmatprep.subr.bf16.mxu0 %v2085_v0  ;;  %v274_v30 = vld [vmem:[%s231_s30 + $0x6] sm:$0x3]  ;;  %277 = vst.msk [vmem:[#allocation2 + $0x14] sm:$0x3] %vm276_vm5, %v271_v27  ;;  %278 = vst.msk [vmem:[#allocation2 + $0x20] sm:$0x3] %vm276_vm5, %v272_v28 }
  0x66   : > { %279 = vst.msk [vmem:[#allocation2 + $0x2c] sm:$0x3] %vm276_vm5, %v273_v29  ;;  %280 = vst.msk [vmem:[#allocation2 + $0x38] sm:$0x3] %vm276_vm5, %v274_v30  ;;  %vm361_vm6 = vsmask.f32 256 }
  0x67   : > { %v282_v33 = vld [vmem:[#allocation2 + $0x8] sm:$0x7]  ;;  %vm362_vm7 = vsmask.f32 2312  ;;  %vm364_vm8 = vsmask.f32 4368 }
  0x68   : > { %1761 = vmatpush3.bf16.msra.mxu1 %v1945_v16  ;;  %1809 = vmatpush3.bf16.msra.mxu0 %v1946_v21  ;;  %v2272_v34 = vrot.slane %v282_v33, %v2269_v32  ;;  %vm366_vm9 = vsmask.f32 6424  ;;  %vm478_vm10 = vcmask 523264   ;;  %vm612_vm11 = vsmask.f32 1280  ;;  %v1950_v53 = vld [vmem:[#allocation3] sm:$0xff]   ;;  %vm2309_vm14 = vmor %vm361_vm6, %vm362_vm7 }
  0x69   : > { %1766 = vmatprep.subr.bf16.mxu1 %v2085_v0  ;;  %1814 = vmatprep.subr.bf16.mxu0 %v2085_v0  ;;  %vm613_vm12 = vsmask.f32 3336  ;;  %vm615_vm13 = vsmask.f32 5392  ;;  %vm617_vm15 = vsmask.f32 7448  ;;  %vm2335_vm1 = vmor %vm2309_vm14, %vm364_vm8 }
  0x6a   : > { %v374_v40 = vshrl.u32 %v2272_v34, 16  ;;  %v377_v44 = vshll.u32 %v2272_v34, 16  ;;  %v608_v48 = vcombine.high %v2272_v34, %v2272_v34  ;;  %v1637_v60 = vld.sshfl [vmem:[#allocation2 + $0x4] sm:$0x33 pattern:$0x76325410]  ;;  %vm2358_vm2 = vmor %vm2335_vm1, %vm366_vm9 }
  0x6b   : > { %v2322_v2 = vld [vmem:[#allocation2 + $0x44] sm:$0x7]  ;;  %v1954_v7 = vld [vmem:[#allocation3 + $0x8] sm:$0xff]   ;;  %v308_v22 = vcombine.high %v1637_v60, %v1637_v60  ;;  %v1953_v28 = vld [vmem:[#allocation3 + $0xa0] sm:$0xff]   ;;  %vm1494_vm6 = vcmask 1043459   ;;  %vm1496_vm7 = vcmask 1045509  }
  0x6c   : > { %v2274_v35 = vld [vmem:[#allocation2 + $0x14] sm:$0x7]  ;;  %v2276_v36 = vld [vmem:[#allocation2 + $0x20] sm:$0x7]  ;;  %v376_v45 = vrot.slane %v374_v40, 7  ;;  %v2326_v4 = vrot.slane %v374_v40, 6  ;;  %vm2367_vm3 = vmor %vm612_vm11, %vm613_vm12  ;;  %v2373_v31 = vrot.slane %v2322_v2, %v2269_v32 }
  0x6d   : > { %v2278_v37 = vld [vmem:[#allocation2 + $0x2c] sm:$0x7]  ;;  %v2282_v38 = vrot.slane %v2274_v35, %v2269_v32  ;;  %v2286_v39 = vrot.slane %v2276_v36, %v2269_v32  ;;  %v437_v42 = vcombine.low %v282_v33, %v2274_v35  ;;  %v2313_v55 = vld [vmem:[#allocation2 + $0x38] sm:$0x7]  ;;  %v2328_v5 = vrot.slane %v377_v44, 7  ;;  %vm2382_vm4 = vmor %vm2367_vm3, %vm615_vm13  ;;  %s1636_s14 = sshll.u32 %s2573_s18, 1 }
  0x6e   : > { %v2291_v41 = vrot.slane %v2278_v37, %v2269_v32  ;;  %v438_v43 = vcombine.low %v2276_v36, %v2278_v37  ;;  %v2330_v6 = vshll.u32 %v608_v48, 16  ;;  %v1638_v14 = vld.sshfl [vmem:[#allocation2 + $0x10] sm:$0x33 pattern:$0x76325410]  ;;  %v2346_v17 = vrot.slane %v2313_v55, %v2269_v32  ;;  %vm2393_vm5 = vmor %vm2382_vm4, %vm617_vm15  ;;  %v1960_v29 = vld [vmem:[#allocation3 + $0x40] sm:$0xff]   ;;  %s235_s23 = scalar_lea.vmem %s2547_s4, %s1636_s14 }
  0x6f   : > { %v387_v46 = vshrl.u32 %v2282_v38, 16  ;;  %v445_v47 = vrot.slane %v437_v42, %v2269_v32  ;;  %v390_v49 = vshll.u32 %v2282_v38, 16  ;;  %v400_v50 = vshrl.u32 %v2286_v39, 16 }
  0x70   : > { %v413_v51 = vshrl.u32 %v2291_v41, 16  ;;  %v2305_v52 = vrot.slane %v438_v43, %v2269_v32  ;;  %v403_v56 = vshll.u32 %v2286_v39, 16  ;;  %v416_v57 = vshll.u32 %v2291_v41, 16 }
  0x71   : > { %v609_v58 = vcombine.high %v2282_v38, %v2282_v38  ;;  %v610_v59 = vcombine.high %v2286_v39, %v2286_v39  ;;  %v389_v61 = vrot.slane %v387_v46, 7  ;;  %v402_v62 = vrot.slane %v400_v50, 7  ;;  %v1639_v18 = vld.sshfl [vmem:[#allocation2 + $0x1c] sm:$0x33 pattern:$0x76325410] }
  0x72   : > { %v415_v63 = vrot.slane %v413_v51, 7  ;;  %v453_v1 = vcombine.low %v445_v47, %v2305_v52  ;;  %v611_v3 = vcombine.high %v2291_v41, %v2291_v41  ;;  %v628_v9 = vrot.slane %v387_v46, 6  ;;  %v1640_v21 = vld.sshfl [vmem:[#allocation2 + $0x28] sm:$0x33 pattern:$0x76325410] }
  0x73   : > { %v629_v11 = vrot.slane %v390_v49, 7  ;;  %v2340_v12 = vshll.u32 %v609_v58, 16  ;;  %v637_v13 = vrot.slane %v400_v50, 6  ;;  %v638_v15 = vrot.slane %v403_v56, 7  ;;  %v1955_v50 = vld [vmem:[#allocation3 + $0xa8] sm:$0xff]  }
  0x74   : > { %1763 = vmatmul.mubr.msk.bf16.vlgmr.msra.gmra.mrb[0].mxu1 %vm478_vm10, %v453_v1  ;;  %v2342_v16 = vshll.u32 %v610_v59, 16  ;;  %v886_v19 = vcombine.low %v2274_v35, %v2276_v36  ;;  %v887_v20 = vcombine.low %v2278_v37, %v2313_v55  ;;  %v646_v24 = vrot.slane %v413_v51, 6  ;;  %v1956_v35 = vld [vmem:[#allocation3 + $0x10] sm:$0xff]  }
  0x75   : > { %1767 = vmatpush3.bf16.msra.mxu1 %v1950_v53  ;;  %1774 = vmatprep.mubr.msk.bf16.mxu1 %vm2086_vm0, %v2085_v0  ;;  %v647_v25 = vrot.slane %v416_v57, 7  ;;  %v2362_v26 = vshll.u32 %v611_v3, 16  ;;  %v774_v27 = vshrl.u32 %v2346_v17, 16  ;;  %v379_v30 = vor.u32 %v377_v44, %v376_v45 }
  0x76   : > { %1768 = vmatprep.subr.bf16.mxu1 %v2085_v0  ;;  %v894_v33 = vrot.slane %v886_v19, %v2269_v32  ;;  %v901_v34 = vrot.slane %v887_v20, %v2269_v32  ;;  %v323_v36 = vcombine.high %v1638_v14, %v1638_v14  ;;  %v338_v37 = vcombine.high %v1639_v18, %v1639_v18  ;;  %v1957_v18 = vld [vmem:[#allocation3 + $0xb0] sm:$0xff]  }
  0x77   : > { %v353_v38 = vcombine.high %v1640_v21, %v1640_v21  ;;  %v369_v39 = vshrl.u32 %v308_v22, 16  ;;  %v777_v40 = vshll.u32 %v2346_v17, 16  ;;  %v392_v42 = vor.u32 %v390_v49, %v389_v61 }
  0x78   : > { %v902_v41 = vcombine.low %v894_v33, %v901_v34  ;;  %v405_v43 = vor.u32 %v403_v56, %v402_v62  ;;  %v382_v46 = vshrl.u32 %v323_v36, 16  ;;  %v395_v47 = vshrl.u32 %v338_v37, 16  ;;  %v1958_v56 = vld [vmem:[#allocation3 + $0x18] sm:$0xff]  }
  0x79   : > { %1769 = vmatpush3.bf16.msra.mxu1 %v1954_v7  ;;  %v1641_v45 = vrot.slane %v369_v39, 9  ;;  %v408_v48 = vshrl.u32 %v353_v38, 16  ;;  %v418_v51 = vor.u32 %v416_v57, %v415_v63  ;;  %v630_v53 = vor.u32 %v629_v11, %v628_v9  ;;  %v1959_v33 = vld [vmem:[#allocation3 + $0xb8] sm:$0xff]  }
  0x7a   : > { %1770 = vmatprep.subr.bf16.mxu1 %v2085_v0  ;;  %1811 = vmatmul.mubr.msk.bf16.vlgmr.msra.gmra.mrb[0].mxu0 %vm478_vm10, %v902_v41  ;;  %v635_v54 = vrot.slane %v2340_v12, 7  ;;  %v639_v49 = vor.u32 %v638_v15, %v637_v13  ;;  %v1642_v59 = vrot.slane %v382_v46, 9  ;;  %v1643_v60 = vrot.slane %v395_v47, 9 }
  0x7b   : > { %1815 = vmatpush3.bf16.msra.mxu0 %v1953_v28  ;;  %v380_v58 = vsel %vm2358_vm2, %v1641_v45, %v379_v30  ;;  %v1644_v61 = vrot.slane %v408_v48, 9  ;;  %v631_v57 = vrot.slane %v630_v53, 2  ;;  %v644_v1 = vrot.slane %v2342_v16, 7  ;;  %1822 = vmatprep.mubr.msk.bf16.mxu0 %vm2086_vm0, %v2085_v0 }
  0x7c   : > { %1816 = vmatprep.subr.bf16.mxu0 %v2085_v0  ;;  %v640_v63 = vrot.slane %v639_v49, 2  ;;  %v648_v3 = vor.u32 %v647_v25, %v646_v24  ;;  %v2404_v7 = vsel %vm2358_vm2, %v1642_v59, %v392_v42  ;;  %v2408_v8 = vsel %vm2358_vm2, %v1643_v60, %v405_v43  ;;  %v1660_v16 = vld.sshfl [vmem:[#allocation2 + $0x34] sm:$0x33 pattern:$0x76325410] }
  0x7d   : > { %1771 = vmatpush3.bf16.msra.mxu1 %v1956_v35  ;;  %v2412_v9 = vsel %vm2358_vm2, %v1644_v61, %v418_v51  ;;  %v653_v11 = vrot.slane %v2362_v26, 7  ;;  %v523_v12 = vcombine.low %v380_v58, %v2404_v7  ;;  %v636_v14 = vsel %vm2393_vm5, %v631_v57, %v635_v54  ;;  %v1677_v24 = vld.sshfl [vmem:[#allocation2 + $0x40] sm:$0x33 pattern:$0x76325410]  ;;  %v1962_v43 = vld [vmem:[#allocation3 + $0x48] sm:$0xff]  }
  0x7e   : > { %1772 = vmatprep.subr.bf16.mxu1 %v2085_v0  ;;  %v524_v13 = vcombine.low %v2408_v8, %v2412_v9  ;;  %v645_v15 = vsel %vm2393_vm5, %v640_v63, %v644_v1  ;;  %v649_v19 = vrot.slane %v648_v3, 2  ;;  %v973_v20 = vcombine.high %v2346_v17, %v2346_v17  ;;  %v1961_v54 = vld [vmem:[#allocation3 + $0xc0] sm:$0xff]  }
  0x7f   : > { %1817 = vmatpush3.bf16.msra.mxu0 %v1955_v50  ;;  %v974_v21 = vrot.slane %v774_v27, 6  ;;  %v975_v22 = vrot.slane %v777_v40, 7  ;;  %v626_v25 = vrot.slane %v2330_v6, 7  ;;  %v531_v26 = vrot.slane %v523_v12, %v2269_v32  ;;  %v1963_v12 = vld [vmem:[#allocation3 + $0xc8] sm:$0xff]  }
  0x80   : > { %1818 = vmatprep.subr.bf16.mxu0 %v2085_v0  ;;  %v2433_v28 = vrot.slane %v524_v13, %v2269_v32  ;;  %v1102_v30 = vshrl.u32 %v2373_v31, 16  ;;  %v979_v35 = vshll.u32 %v973_v20, 16  ;;  %v621_v36 = vor.u32 %v2328_v5, %v2326_v4  ;;  %v1966_v13 = vld [vmem:[#allocation3 + $0x58] sm:$0xff]   ;;  %v1970_v20 = vld [vmem:[#allocation3 + $0x68] sm:$0xff]  }
  0x81   : > { %1773 = vmatpush3.bf16.msra.mxu1 %v1958_v56  ;;  %v976_v34 = vor.u32 %v975_v22, %v974_v21  ;;  %v992_v37 = vcombine.low %v636_v14, %v645_v15  ;;  %v760_v38 = vcombine.high %v1660_v16, %v1660_v16  ;;  %v654_v39 = vsel %vm2393_vm5, %v649_v19, %v653_v11  ;;  %v1964_v56 = vld [vmem:[#allocation3 + $0x50] sm:$0xff]   ;;  %v1967_v19 = vld [vmem:[#allocation3 + $0xd8] sm:$0xff]  }
  0x82   : > { %1778 = vmatprep.subr.bf16.mxu1 %v2085_v0  ;;  %v539_v6 = vcombine.low %v531_v26, %v2433_v28  ;;  %v981_v42 = vrot.slane %v979_v35, 7  ;;  %v622_v44 = vrot.slane %v621_v36, 2  ;;  %v1105_v45 = vshll.u32 %v2373_v31, 16  ;;  %v1965_v16 = vld [vmem:[#allocation3 + $0xd0] sm:$0xff]  }
  0x83   : > { %1819 = vmatpush3.bf16.msra.mxu0 %v1957_v18  ;;  %v977_v41 = vrot.slane %v976_v34, 2  ;;  %v776_v4 = vrot.slane %v774_v27, 7  ;;  %v1088_v5 = vcombine.high %v1677_v24, %v1677_v24  ;;  %v769_v48 = vshrl.u32 %v760_v38, 16  ;;  %v1968_v18 = vld [vmem:[#allocation3 + $0x60] sm:$0xff]   ;;  %v1972_v26 = vld [vmem:[#allocation3 + $0x70] sm:$0xff]  }
  0x84   : > { %1820 = vmatprep.subr.bf16.mxu0 %v2085_v0  ;;  %1775 = vmatmul.mubr.msk.bf16.vlgmr.msra.gmra.mrb[0].mxu1 %vm478_vm10, %v539_v6  ;;  %v627_v47 = vsel %vm2393_vm5, %v622_v44, %v626_v25  ;;  %v1104_v50 = vrot.slane %v1102_v30, 7  ;;  %v1000_v27 = vrot.slane %v992_v37, %v2269_v32  ;;  %v665_v59 = vcombine.low %v645_v15, %v654_v39  ;;  %v1969_v25 = vld [vmem:[#allocation3 + $0xe0] sm:$0xff]   ;;  %v1973_v35 = vld [vmem:[#allocation3 + $0xf0] sm:$0xff]  }
  0x85   : > { %1779 = vmatpush3.bf16.msra.mxu1 %v1960_v29  ;;  %v2448_v46 = vsel %vm2393_vm5, %v977_v41, %v981_v42  ;;  %1786 = vmatprep.mubr.msk.bf16.mxu1 %vm2086_vm0, %v2085_v0  ;;  %v1097_v53 = vshrl.u32 %v1088_v5, 16  ;;  %v664_v58 = vcombine.low %v627_v47, %v636_v14  ;;  %v1661_v60 = vrot.slane %v769_v48, 9  ;;  %v1976_v41 = vld [vmem:[#allocation3 + $0x100] sm:$0xff]   ;;  %v1978_v44 = vld [vmem:[#allocation3 + $0x110] sm:$0xff]  }
  0x86   : > { %v993_v51 = vcombine.low %v654_v39, %v2448_v46  ;;  %1780 = vmatprep.subr.bf16.mxu1 %v2085_v0  ;;  %v779_v61 = vor.u32 %v777_v40, %v776_v4  ;;  %v1107_v63 = vor.u32 %v1105_v45, %v1104_v50  ;;  %v2469_v11 = vrot.slane %v665_v59, %v2269_v32  ;;  %v1979_v4 = vld [vmem:[#allocation3 + $0x118] sm:$0xff]  }
  0x87   : > { %1821 = vmatpush3.bf16.msra.mxu0 %v1959_v33  ;;  %v1678_v57 = vrot.slane %v1097_v53, 9  ;;  %v672_v3 = vrot.slane %v664_v58, %v2269_v32  ;;  %v790_v22 = vcombine.low %v2404_v7, %v2408_v8  ;;  %v1974_v7 = vld [vmem:[#allocation3 + $0x78] sm:$0xff]   ;;  %v1206_v8 = vcombine.low %v2313_v55, %v2322_v2 }
  0x88   : > { %1826 = vmatprep.subr.bf16.mxu0 %v2085_v0  ;;  %v1007_v49 = vrot.slane %v993_v51, %v2269_v32  ;;  %v780_v17 = vsel %vm2358_vm2, %v1661_v60, %v779_v61  ;;  %v1285_v34 = vcombine.high %v2373_v31, %v2373_v31  ;;  %v1286_v36 = vrot.slane %v1102_v30, 6  ;;  %v1975_v55 = vld [vmem:[#allocation3 + $0xf8] sm:$0xff]   ;;  %v1977_v31 = vld [vmem:[#allocation3 + $0x108] sm:$0xff]   ;;  %v1694_v51 = vld [vmem:[#allocation5] ss:$0 sm:$0xff] }
  0x89   : > { %1781 = vmatpush3.bf16.msra.mxu1 %v1962_v43  ;;  %v1108_v40 = vsel %vm2358_vm2, %v1678_v57, %v1107_v63  ;;  %v680_v14 = vcombine.low %v672_v3, %v2469_v11  ;;  %v791_v24 = vcombine.low %v2412_v9, %v780_v17  ;;  %v798_v29 = vrot.slane %v790_v22, %v2269_v32 }
  0x8a   : > { %v1008_v1 = vcombine.low %v1000_v27, %v1007_v49  ;;  %1782 = vmatprep.subr.bf16.mxu1 %v2085_v0  ;;  %v1118_v15 = vcombine.low %v780_v17, %v1108_v40  ;;  %v1287_v6 = vrot.slane %v1105_v45, 7  ;;  %v1213_v37 = vrot.slane %v1206_v8, %v2269_v32 }
  0x8b   : > { %v805_v33 = vrot.slane %v791_v24, %v2269_v32  ;;  %v1291_v38 = vshll.u32 %v1285_v34, 16  ;;  %vm1498_vm8 = vcmask 1047559  }
  0x8c   : > { %1823 = vmatmul.mubr.msk.bf16.vlgmr.msra.gmra.mrb[0].mxu0 %vm478_vm10, %v1008_v1  ;;  %v1125_v23 = vrot.slane %v1118_v15, %v2269_v32  ;;  %v1288_v2 = vor.u32 %v1287_v6, %v1286_v36  ;;  %v1214_v39 = vcombine.low %v2305_v52, %v1213_v37  ;;  %v2089_v36 = vmov 1934713408  }
  0x8d   : > { %1827 = vmatpush3.bf16.msra.mxu0 %v1961_v54  ;;  %1783 = vmatpush3.bf16.msra.mxu1 %v1964_v56  ;;  %v806_v9 = vcombine.low %v798_v29, %v805_v33  ;;  %v1293_v42 = vrot.slane %v1291_v38, 7  ;;  %v1695_v54 = vld [vmem:[#allocation7] ss:$0 sm:$0xff]  ;;  %v1511_v6 = vunpack.c.l.s4 %v2089_v36 }
  0x8e   : > { %1828 = vmatprep.subr.bf16.mxu0 %v2085_v0  ;;  %1784 = vmatprep.subr.bf16.mxu1 %v2085_v0  ;;  %v1126_v21 = vcombine.low %v2433_v28, %v1125_v23  ;;  %v1971_v28 = vld [vmem:[#allocation3 + $0xe8] sm:$0xff]   ;;  %v1289_v30 = vrot.slane %v1288_v2, 2 }
  0x8f   : > { %1834 = vmatprep.mubr.msk.bf16.mxu0 %vm2086_vm0, %v2085_v0 }
  0x90   : > { %v1294_v43 = vsel %vm2393_vm5, %v1289_v30, %v1293_v42  ;;  %v1512_v42 = vunpack.c.0.s8 %v1511_v6 }
  0x91   : > { %1829 = vmatpush3.bf16.msra.mxu0 %v1963_v12  ;;  %1785 = vmatpush3.bf16.msra.mxu1 %v1966_v13  ;;  %v1304_v52 = vcombine.low %v2448_v46, %v1294_v43 }
  0x92   : > { %1830 = vmatprep.subr.bf16.mxu0 %v2085_v0  ;;  %1790 = vmatprep.subr.bf16.mxu1 %v2085_v0 }
  0x93   : > { %v1311_v45 = vrot.slane %v1304_v52, %v2269_v32  ;;  %v2090_v52 = vmov 1966171168  }
  0x94   : > { %1787 = vmatmul.mubr.msk.bf16.vlgmr.msra.gmra.mrb[0].mxu1 %vm478_vm10, %v680_v14 }
  0x95   : > { %1831 = vmatpush3.bf16.msra.mxu0 %v1965_v16  ;;  %1791 = vmatpush3.bf16.msra.mxu1 %v1968_v18  ;;  %v1312_v5 = vcombine.low %v2469_v11, %v1311_v45 }
  0x96   : > { %1832 = vmatprep.subr.bf16.mxu0 %v2085_v0  ;;  %1792 = vmatprep.subr.bf16.mxu1 %v2085_v0 }
  0x97   : > { %1798 = vmatprep.mubr.msk.bf16.mxu1 %vm2086_vm0, %v2085_v0 }
  0x99   : > { %1833 = vmatpush3.bf16.msra.mxu0 %v1967_v19  ;;  %1793 = vmatpush3.bf16.msra.mxu1 %v1970_v20 }
  0x9a   : > { %1838 = vmatprep.subr.bf16.mxu0 %v2085_v0  ;;  %1794 = vmatprep.subr.bf16.mxu1 %v2085_v0 }
  0x9c   : > { %1835 = vmatmul.mubr.msk.bf16.vlgmr.msra.gmra.mrb[0].mxu0 %vm478_vm10, %v1126_v21 }
  0x9d   : > { %1839 = vmatpush3.bf16.msra.mxu0 %v1969_v25  ;;  %1795 = vmatpush3.bf16.msra.mxu1 %v1972_v26 }
  0x9e   : > { %1840 = vmatprep.subr.bf16.mxu0 %v2085_v0  ;;  %1796 = vmatprep.subr.bf16.mxu1 %v2085_v0 }
  0x9f   : > { %1846 = vmatprep.mubr.msk.bf16.mxu0 %vm2086_vm0, %v2085_v0 }
  0xa1   : > { %1841 = vmatpush3.bf16.msra.mxu0 %v1971_v28  ;;  %1797 = vmatpush3.bf16.msra.mxu1 %v1974_v7 }
  0xa2   : > { %1842 = vmatprep.subr.bf16.mxu0 %v2085_v0 }
  0xa4   : > { %1799 = vmatmul.mubr.msk.bf16.vlgmr.msra.gmra.mrb[0].mxu1 %vm478_vm10, %v806_v9 }
  0xa5   : > { %1843 = vmatpush3.bf16.msra.mxu0 %v1973_v35 }
  0xa6   : > { %1844 = vmatprep.subr.bf16.mxu0 %v2085_v0 }
  0xa9   : > { %1845 = vmatpush3.bf16.msra.mxu0 %v1975_v55 }
  0xaa   : > { %1850 = vmatprep.subr.bf16.mxu0 %v2085_v0 }
  0xac   : > { %1847 = vmatmul.mubr.msk.bf16.vlgmr.msra.gmra.mrb[0].mxu0 %vm478_vm10, %v1214_v39 }
  0xad   : > { %1851 = vmatpush3.bf16.msra.mxu0 %v1976_v41  ;;  %1858 = vmatprep.mubr.msk.bf16.mxu0 %vm2086_vm0, %v2085_v0  ;;  %vm1492_vm0 = vcmask 1041409  }
  0xae   : > { %1852 = vmatprep.subr.bf16.mxu0 %v2085_v0 }
  0xb1   : > { %1853 = vmatpush3.bf16.msra.mxu0 %v1977_v31 }
  0xb2   : > { %1854 = vmatprep.subr.bf16.mxu0 %v2085_v0 }
  0xb5   : > { %1855 = vmatpush3.bf16.msra.mxu0 %v1978_v44  ;;  %v1524_v44 = vunpack.c.l.s4 %v2090_v52 }
  0xb6   : > { %1856 = vmatprep.subr.bf16.mxu0 %v2085_v0 }
  0xb9   : > { %1857 = vmatpush3.bf16.msra.mxu0 %v1979_v4 }
  0xbc   : > { %1859 = vmatmul.mubr.msk.bf16.vlgmr.msra.gmra.mrb[0].mxu0 %vm478_vm10, %v1312_v5  ;;  %v1515_v5 = vsub.s32 %v1512_v42, %v2242_v10 }
 0x177   : > { %v868_v62 = vpop.f32.mrb[0].mxu1 }
 0x178   : > { %v1800_v47 = vpop.f32.mrb[1].mxu1 }
 0x179   : > { %v871_v48 = vpop.f32.mrb[2].mxu1 }
 0x17a   : > { %v1801_v50 = vpop.f32.mrb[3].mxu1 }
 0x17b   : > { %v1525_v50 = vunpack.c.0.s8 %v1524_v44 }
 0x18f   : > { %v1374_v46 = vpop.f32.mrb[0].mxu0 }
 0x190   : > { %v1862_v27 = vadd.f32 %v1374_v46, %v868_v62  ;;  %v1860_v53 = vpop.f32.mrb[1].mxu0 }
 0x191   : > { %v1377_v49 = vpop.f32.mrb[2].mxu0 }
 0x192   : > { %v1390_v56 = vmul.f32 %v1862_v27, %v1694_v51  ;;  %v1863_v58 = vadd.f32 %v1377_v49, %v871_v48  ;;  %v1861_v59 = vpop.f32.mrb[3].mxu0  ;;  %v1528_v27 = vsub.s32 %v1525_v50, %v2242_v10 }
 0x194   : > { %v1399_v60 = vadd.f32 %v1695_v54, %v1390_v56  ;;  %v1391_v61 = vmul.f32 %v1863_v58, %v1694_v51 }
 0x196   : > { %v1401_v57 = vmax.f32 %v1399_v60, 0.0  ;;  %v1400_v63 = vadd.f32 %v1695_v54, %v1391_v61 }
 0x198   : > { %v1405_v1 = vcombine.high %v1401_v57, %v1401_v57  ;;  %v1412_v3 = vrot.slane %v1401_v57, %v2269_v32  ;;  %v1402_v11 = vmax.f32 %v1400_v63, 0.0 }
 0x19a   : > { %v1419_v12 = vrot.slane %v1405_v1, %v2269_v32  ;;  %v1420_v13 = vcombine.high %v1412_v3, %v1412_v3  ;;  %v1422_v17 = vcombine.high %v1402_v11, %v1402_v11  ;;  %v1429_v40 = vrot.slane %v1402_v11, %v2269_v32 }
 0x19b   : > { %v1696_v19 = vrot.slane %v1412_v3, 9 }
 0x19c   : > { %v1421_v14 = vcombine.high %v1419_v12, %v1419_v12  ;;  %v1697_v15 = vrot.slane %v1420_v13, 9  ;;  %v1698_v16 = vrot.slane %v1419_v12, 9  ;;  %v1436_v18 = vrot.slane %v1422_v17, %v2269_v32 }
 0x19d   : > { %v1437_v23 = vcombine.high %v1429_v40, %v1429_v40  ;;  %v1700_v33 = vrot.slane %v1429_v40, 9  ;;  %v1471_v7 = vmax.f32 %v1412_v3, %v1696_v19 }
 0x19e   : > { %v1699_v20 = vrot.slane %v1421_v14, 9  ;;  %v1438_v21 = vcombine.high %v1436_v18, %v1436_v18  ;;  %v1702_v24 = vrot.slane %v1436_v18, 9  ;;  %v1472_v25 = vmax.f32 %v1420_v13, %v1697_v15 }
 0x19f   : > { %v1701_v22 = vrot.slane %v1437_v23, 9  ;;  %v1473_v26 = vmax.f32 %v1419_v12, %v1698_v16  ;;  %v1475_v55 = vmax.f32 %v1429_v40, %v1700_v33 }
 0x1a0   : > { %v1474_v29 = vmax.f32 %v1421_v14, %v1699_v20  ;;  %v1703_v28 = vrot.slane %v1438_v21, 9  ;;  %v1477_v34 = vmax.f32 %v1436_v18, %v1702_v24 }
 0x1a1   : > { %v1476_v9 = vmax.f32 %v1437_v23, %v1701_v22  ;;  %v1479_v32 = vmax.f32 %v1471_v7, %v1473_v26 }
 0x1a2   : > { %v1480_v8 = vmax.f32 %v1472_v25, %v1474_v29  ;;  %v1478_v35 = vmax.f32 %v1438_v21, %v1703_v28  ;;  %v1481_v41 = vmax.f32 %v1475_v55, %v1477_v34 }
 0x1a4   : > { %v1491_v37 = vrot.slane %v1480_v8, 7  ;;  %v1482_v2 = vmax.f32 %v1476_v9, %v1478_v35 }
 0x1a6   : > { %v1493_v38 = vsel %vm1492_vm0, %v1491_v37, %v1479_v32  ;;  %v1502_v30 = vrot.slane %v1482_v2, 7 }
 0x1a7   : > { %v1495_v39 = vsel %vm1494_vm6, %v1491_v37, %v1493_v38 }
 0x1a8   : > { %v1497_v31 = vsel %vm1496_vm7, %v1491_v37, %v1495_v39  ;;  %v1503_v43 = vsel %vm1492_vm0, %v1502_v30, %v1481_v41 }
 0x1a9   : > { %v1504_v45 = vsel %vm1494_vm6, %v1502_v30, %v1503_v43  ;;  %v1499_v62 = vsel %vm1498_vm8, %v1491_v37, %v1497_v31 }
 0x1aa   : > { %v1505_v4 = vsel %vm1496_vm7, %v1502_v30, %v1504_v45 }
 0x1ab   : > { %v1506_v47 = vsel %vm1498_vm8, %v1502_v30, %v1505_v4 }
 0x1ac   : > { %v1509_v48 = vcombine.low %v1499_v62, %v1506_v47 }
 0x1ae   : > { %v1516_v46 = vrot.slane %v1509_v48, %v1515_v5 }
 0x1b0   : > { %v1517_v51 = vcombine.high %v1516_v46, %v2085_v0 }
 0x1b2   : > { %v1704_v53 = vpack.c.bf16 %v1517_v51, %v1516_v46 }
 0x1b4   : > { %v1529_v54 = vrot.slane %v1704_v53, %v1528_v27 }
 0x1b6   : > { %1705 = vst.sshfl [vmem:[%s235_s23] sm:$0x5 pattern:$0x73625140] %v1529_v54 }
 0x1b7 PF: > { %s16_s15 = sadd.s32 1, %s2078_s15  }
 0x1b8   : > { %p13_p3 = scmp.ge.s32.totalorder %s16_s15, 4  }
 0x1ba   :  { %15 = sbr.rel (!%p13_p3) target bundleno = 2 (0x2), region = 88 }
 0x1c1   :  { %1558 = vsyncpa [#allocation4], 1 }
 0x1c2   :  { %1560 = vsyncpa [#allocation4 + $0x1], 1 }
 0x1c3   :  { %1561 = vsyncpa [#allocation6], 1 }

// kernel: plant_disease_model.6
= control target key start
LH: loop header
LB: loop body
LE: loop exit
PB: predicated region body
PF: predicated region fallthrough
CT: control target
= control target key end

     0   :  { %9 = vsyncpa [#allocation4], 0  ;;  %s3366_s0 = inlined_call_operand.vmem [shape: bf16[2,8,8,32], index: 0, kind: input, shape index: {}]   ;;  %s3367_s1 = inlined_call_operand.hbm [shape: bf16[9,32,64], index: 1, kind: input, shape index: {}]   ;;  %s3368_s2 = inlined_call_operand.hbm [shape: f32[1,64], index: 2, kind: input, shape index: {}]   ;;  %s3369_s3 = inlined_call_operand.hbm [shape: f32[1,64], index: 3, kind: input, shape index: {}]   ;;  %s3370_s4 = inlined_call_operand.vmem [shape: bf16[2,4,256], index: 4, kind: output, shape index: {}]  }
   0x1   :  { %10 = vsyncpa [#allocation6], 0  ;;  %s2731_s15 = smov 0  }
   0x2 LB: > { %s2697_s16 = smov [#allocation5]   ;;  %s2737_s18 = sadd.s32 4294967295, %s2695_s15   ;;  %s2695_s15 = sphi %s2731_s15, %s16_s15  }
   0x3   : > { %s162_s17 = sshll.u32 %s2697_s16, 4  ;;  %p2150_p0 = scmp.ge.s32.totalorder %s2695_s15, 1  ;;  %s163_s17 = int_to_ptr.vmem [resolvable:$true] %s162_s17 }
   0x4   : > { %p136_p1 = scmp.lt.s32.totalorder %s2695_s15, 3  ;;  %p3371_p2 = scmp.eq.s32.totalorder %s2737_s18, 0 }
   0x5   : > { %s2698_s20 = smov [#allocation3]   ;;  %s2699_s23 = smov [#allocation7]  }
   0x6   : > { %p2742_p3 = pnand %p2150_p0, %p136_p1  ;;  %s148_s21 = sshll.u32 %s2698_s20, 4  ;;  %s2754_s21 = int_to_ptr.vmem [resolvable:$true] %s148_s21 }
   0x7   : > { %s173_s24 = sshll.u32 %s2699_s23, 4  ;;  %s2597_s27 = scalar_lea.hbm %s3368_s2, 16  ;;  %s2756_s24 = int_to_ptr.vmem [resolvable:$true] %s173_s24 }
   0x8   : > { %s3373_s19 = scalar_select %p2742_p3, 1, 0 }
   0x9   : > { %p2538_p4 = pneg %p2742_p3  ;;  %p2598_p6 = scmp.ne.s32.totalorder %s3368_s2, %s2597_s27 }
   0xa   : > { %p2604_p10 = scmp.lt.u32.totalorder %s2597_s27, %s3368_s2 }
   0xb   : > { %p2750_p5 = pnand %p3371_p2, %p2538_p4 }
   0xd   : > { %p2766_p7 = pneg %p2750_p5 }
   0xf   : > { %p2600_p8 = pnand %p2766_p7, %p2598_p6 }
  0x11   : > { %p2601_p9 = pneg %p2600_p8 }
  0x13   : > { %p2606_p11 = pnand %p2604_p10, %p2601_p9 }
  0x15   : > { %2609 = shalt.err (!%p2606_p11)
}
  0x16   : > { %s2610_s7 = scalar_lea.vmem %s163_s17, 16  ;;  %s2617_s8 = scalar_lea.vmem %s163_s17, 32 }
  0x17   : > { %p2611_p12 = scmp.ne.s32.totalorder %s163_s17, %s2610_s7  ;;  %p2618_p1 = scmp.lt.s32.totalorder %s163_s17, %s163_s17 }
  0x18   : > { %p2619_p4 = scmp.lt.s32.totalorder %s2617_s8, %s2610_s7 }
  0x19   : > { %p2613_p13 = pnand %p2611_p12, %p2766_p7 }
  0x1a   : > { %p2620_p2 = por %p2619_p4, %p2618_p1 }
  0x1b   : > { %p2614_p0 = pneg %p2613_p13 }
  0x1d   : > { %p2621_p3 = pnand %p2620_p2, %p2614_p0 }
  0x1f   : > { %2624 = shalt.err (!%p2621_p3)
}
  0x20   : > { %2544 = dma.hbm_to_vmem [thread:$0]  (!%p2750_p5), %s3368_s2, 16, %s163_s17, [#allocation6]  }
  0x21   : > { %s2625_s13 = scalar_lea.hbm %s3367_s1, 2304 }
  0x22   : > { %p2626_p6 = scmp.ne.s32.totalorder %s3367_s1, %s2625_s13  ;;  %p2632_p2 = scmp.lt.u32.totalorder %s2625_s13, %s3367_s1 }
  0x24   : > { %p2628_p8 = pnand %p2626_p6, %p2766_p7 }
  0x26   : > { %p2629_p9 = pneg %p2628_p8 }
  0x28   : > { %p2634_p3 = pnand %p2632_p2, %p2629_p9 }
  0x2a   : > { %2637 = shalt.err (!%p2634_p3)
}
  0x2b   : > { %s2638_s17 = scalar_lea.vmem %s2754_s21, 2304  ;;  %p2646_p13 = scmp.lt.s32.totalorder %s2754_s21, %s2754_s21 }
  0x2c   : > { %p2639_p10 = scmp.ne.s32.totalorder %s2754_s21, %s2638_s17  ;;  %p2647_p0 = scmp.lt.s32.totalorder %s2638_s17, %s2638_s17 }
  0x2e   : > { %p2641_p11 = pnand %p2639_p10, %p2766_p7  ;;  %p2648_p1 = por %p2647_p0, %p2646_p13 }
  0x30   : > { %p2642_p12 = pneg %p2641_p11 }
  0x32   : > { %p2649_p4 = pnand %p2648_p1, %p2642_p12 }
  0x34   : > { %2652 = shalt.err (!%p2649_p4)
}
  0x35   : > { %s2700_s25 = smov 64   ;;  %s2701_s26 = smov 4  }
  0x36   : > { %2541 = dma.hbm_to_vmem [thread:$0]  (!%p2750_p5), %s3367_s1, 2304, %s2754_s21, [#allocation4], %s2700_s25, %s2700_s25, %s2701_s26  }
  0x37   : > { %s2653_s6 = scalar_lea.hbm %s3369_s3, 16 }
  0x38   : > { %p2654_p6 = scmp.ne.s32.totalorder %s3369_s3, %s2653_s6  ;;  %p2660_p2 = scmp.lt.u32.totalorder %s2653_s6, %s3369_s3 }
  0x3a   : > { %p2656_p8 = pnand %p2654_p6, %p2766_p7 }
  0x3c   : > { %p2657_p9 = pneg %p2656_p8 }
  0x3e   : > { %p2662_p3 = pnand %p2660_p2, %p2657_p9 }
  0x40   : > { %2665 = shalt.err (!%p2662_p3)
}
  0x41   : > { %s2666_s21 = scalar_lea.vmem %s2756_s24, 16  ;;  %s2673_s11 = scalar_lea.vmem %s2756_s24, 32 }
  0x42   : > { %p2667_p10 = scmp.ne.s32.totalorder %s2756_s24, %s2666_s21  ;;  %p2674_p13 = scmp.lt.s32.totalorder %s2756_s24, %s2756_s24 }
  0x43   : > { %p2675_p0 = scmp.lt.s32.totalorder %s2673_s11, %s2666_s21 }
  0x44   : > { %p2669_p11 = pnand %p2667_p10, %p2766_p7 }
  0x45   : > { %p2676_p1 = por %p2675_p0, %p2674_p13 }
  0x46   : > { %p2670_p12 = pneg %p2669_p11 }
  0x48   : > { %p2677_p4 = pnand %p2676_p1, %p2670_p12 }
  0x4a   : > { %2680 = shalt.err (!%p2677_p4)
}
  0x4b   : > { %2547 = dma.hbm_to_vmem [thread:$0]  (!%p2750_p5), %s3369_s3, 16, %s2756_s24, [#allocation6]  }
  0x4c   : > { %p3376_p6 = scmp.ne.s32.totalorder %s3373_s19, 0 }
  0x4d   : > { %p3377_p7 = scmp.eq.s32.totalorder (!%p3376_p6), %s2737_s18, 0 }
  0x4e   : > { %194 = sbr.rel (%p3376_p6) target bundleno = 581 (0x245), region = 36 }
  0x55   : > { %2686 = dma.done.wait (%p3377_p7), [#allocation4], 2304   ;;  %p3378_p8 = pmov %p3377_p7 }
  0x56   : > { %p3379_p9 = pmov %p3377_p7 }
  0x57   : > { %2688 = vsyncadd (%p3378_p8), [#allocation4], 4294964992 }
  0x58   : > { %2690 = dma.done.wait (%p3379_p9), [#allocation6], 32   ;;  %p3380_p2 = pmov %p3377_p7 }
  0x59   : > { %p228_p3 = scmp.lt.s32.totalorder %s2737_s18, 1  ;;  %vm239_vm0 = vcmask 257024   ;;  %v2702_v0 = vmov 0   ;;  %v2576_v1 = vld [vmem:[#allocation3 + $0x10] sm:$0xff]   ;;  %v2866_v2 = vld [vmem:[#allocation3 + $0x40] sm:$0xff]   ;;  %v2578_v3 = vld [vmem:[#allocation3 + $0x18] sm:$0xff]  }
  0x5a   : > { %2692 = vsyncadd (%p3380_p2), [#allocation6], 4294967264  ;;  %242 = vst.msk [vmem:[#allocation2 + $0x8] sm:$0xf] %vm239_vm0, %v2702_v0  ;;  %2350 = vmatprep.subr.bf16.mxu1 %v2576_v1  ;;  %2398 = vmatprep.subr.bf16.mxu0 %v2866_v2  ;;  %v2874_v4 = vld [vmem:[#allocation3 + $0x48] sm:$0xff]   ;;  %v2880_v6 = vld [vmem:[#allocation3] sm:$0xff]  }
  0x5b   : > { %251 = vst.msk [vmem:[#allocation2 + $0x18] sm:$0xf] %vm239_vm0, %v2702_v0  ;;  %241 = vst.msk [vmem:[#allocation2 + $0x4] sm:$0xf] %vm239_vm0, %v2702_v0  ;;  %s3388_s18 = smov (!%p228_p3, %s2737_s18), 1  ;;  %2351 = vmatpush3.bf16.msra.mxu1 %v2576_v1  ;;  %2399 = vmatpush3.bf16.msra.mxu0 %v2866_v2  ;;  %v2882_v7 = vld [vmem:[#allocation3 + $0x50] sm:$0xff]  }
  0x5c   : > { %250 = vst.msk [vmem:[#allocation2 + $0x14] sm:$0xf] %vm239_vm0, %v2702_v0  ;;  %256 = vst.msk [vmem:[#allocation2 + $0x24] sm:$0xf] %vm239_vm0, %v2702_v0  ;;  %s2294_s19 = sshll.u32 %s3388_s18, 5  ;;  %2352 = vmatprep.subr.bf16.mxu1 %v2578_v3  ;;  %2400 = vmatprep.subr.bf16.mxu0 %v2874_v4  ;;  %vm243_vm2 = vcmask 253952  }
  0x5d   : > { %257 = vst.msk [vmem:[#allocation2 + $0x28] sm:$0xf] %vm239_vm0, %v2702_v0  ;;  %262 = vst.msk [vmem:[#allocation2 + $0x34] sm:$0xf] %vm239_vm0, %v2702_v0  ;;  %s2871_s30 = scalar_lea.vmem %s3366_s0, %s2294_s19  ;;  %vm244_vm1 = vsmask.f32 256 }
  0x5e   : > { %263 = vst.msk [vmem:[#allocation2 + $0x38] sm:$0xf] %vm239_vm0, %v2702_v0  ;;  %268 = vst.msk [vmem:[#allocation2 + $0x44] sm:$0xf] %vm239_vm0, %v2702_v0  ;;  %v303_v5 = vld [vmem:[%s2871_s30] sm:$0xf] }
  0x5f   : > { %269 = vst.msk [vmem:[#allocation2 + $0x48] sm:$0xf] %vm239_vm0, %v2702_v0  ;;  %274 = vst.msk [vmem:[#allocation2 + $0x54] sm:$0xf] %vm239_vm0, %v2702_v0  ;;  %v304_v9 = vld [vmem:[%s2871_s30 + $0x4] sm:$0xf]  ;;  %2353 = vmatpush3.bf16.msra.mxu1 %v2578_v3  ;;  %2401 = vmatpush3.bf16.msra.mxu0 %v2874_v4 }
  0x60   : > { %275 = vst.msk [vmem:[#allocation2 + $0x58] sm:$0xf] %vm239_vm0, %v2702_v0  ;;  %280 = vst.msk [vmem:[#allocation2 + $0x64] sm:$0xf] %vm239_vm0, %v2702_v0  ;;  %2362 = vmatprep.subr.bf16.mxu1 %v2880_v6  ;;  %v305_v12 = vld [vmem:[%s2871_s30 + $0x8] sm:$0xf]  ;;  %2410 = vmatprep.subr.bf16.mxu0 %v2882_v7 }
  0x61   : > { %281 = vst.msk [vmem:[#allocation2 + $0x68] sm:$0xf] %vm239_vm0, %v2702_v0  ;;  %286 = vst.msk [vmem:[#allocation2 + $0x74] sm:$0xf] %vm239_vm0, %v2702_v0  ;;  %v2884_v8 = vld [vmem:[#allocation2 + $0x8] sm:$0xf] }
  0x62   : > { %287 = vst.msk [vmem:[#allocation2 + $0x78] sm:$0xf] %vm239_vm0, %v2702_v0  ;;  %292 = vst.msk [vmem:[#allocation2 + $0x84] sm:$0xf] %vm239_vm0, %v2702_v0  ;;  %v358_v10 = vshrl.u32 %v2884_v8, 16  ;;  %v361_v15 = vshll.u32 %v2884_v8, 16 }
  0x63   : > { %293 = vst.msk [vmem:[#allocation2 + $0x88] sm:$0xf] %vm239_vm0, %v2702_v0  ;;  %298 = vst.msk [vmem:[#allocation2 + $0x94] sm:$0xf] %vm239_vm0, %v2702_v0  ;;  %v326_v11 = vld [vmem:[#allocation2 + $0x24] sm:$0xf] }
  0x64   : > { %299 = vst.msk [vmem:[#allocation2 + $0x98] sm:$0xf] %vm239_vm0, %v2702_v0  ;;  %312 = vst.msk [vmem:[#allocation2 + $0x18] sm:$0xf] %vm239_vm0, %v303_v5  ;;  %v306_v13 = vld [vmem:[%s2871_s30 + $0xc] sm:$0xf] }
  0x65   : > { %313 = vst.msk [vmem:[#allocation2 + $0x28] sm:$0xf] %vm239_vm0, %v304_v9  ;;  %314 = vst.msk [vmem:[#allocation2 + $0x38] sm:$0xf] %vm239_vm0, %v305_v12  ;;  %v307_v14 = vld [vmem:[%s2871_s30 + $0x10] sm:$0xf] }
  0x66   : > { %315 = vst.msk [vmem:[#allocation2 + $0x48] sm:$0xf] %vm239_vm0, %v306_v13  ;;  %vm497_vm3 = vcmask 261120   ;;  %vm2899_vm4 = vmand %vm243_vm2, %vm244_vm1  ;;  %v360_v17 = vrot.slane %v358_v10, 7  ;;  %v379_v18 = vshrl.u32 %v326_v11, 16  ;;  %v2916_v33 = vrot.slane %v358_v10, 4 }
  0x67   : > { %316 = vst.msk [vmem:[#allocation2 + $0x58] sm:$0xf] %vm239_vm0, %v307_v14  ;;  %v308_v19 = vld [vmem:[%s2871_s30 + $0x14] sm:$0xf]  ;;  %v309_v20 = vld [vmem:[%s2871_s30 + $0x18] sm:$0xf] }
  0x68   : > { %v310_v22 = vld [vmem:[%s2871_s30 + $0x1c] sm:$0xf]  ;;  %317 = vst.msk [vmem:[#allocation2 + $0x68] sm:$0xf] %vm239_vm0, %v308_v19  ;;  %318 = vst.msk [vmem:[#allocation2 + $0x78] sm:$0xf] %vm239_vm0, %v309_v20  ;;  %v2922_v36 = vor.u32 %v361_v15, %v360_v17 }
  0x69   : > { %v252_v23 = vld [vmem:[#allocation2 + $0x1c] sm:$0x1]  ;;  %319 = vst.msk [vmem:[#allocation2 + $0x88] sm:$0xf] %vm239_vm0, %v310_v22  ;;  %v258_v28 = vld [vmem:[#allocation2 + $0x2c] sm:$0x1] }
  0x6a   : > { %v253_v27 = vsel %vm2899_vm4, 0, %v252_v23  ;;  %vm676_vm5 = vsmask.f32 3328  ;;  %vm677_vm6 = vsmask.f32 7440  ;;  %v259_v30 = vsel %vm2899_vm4, 0, %v258_v28 }
  0x6b   : > { %v324_v21 = vld [vmem:[#allocation2 + $0x18] sm:$0xf]  ;;  %254 = vst [vmem:[#allocation2 + $0x1c] sm:$0x1] %v253_v27  ;;  %v264_v31 = vld [vmem:[#allocation2 + $0x3c] sm:$0x1]  ;;  %vm2977_vm8 = vmor %vm676_vm5, %vm677_vm6 }
  0x6c   : > { %v371_v24 = vshrl.u32 %v324_v21, 16  ;;  %v374_v25 = vshll.u32 %v324_v21, 16  ;;  %v2171_v26 = vcombine.low %v2884_v8, %v324_v21  ;;  %v327_v29 = vld [vmem:[#allocation2 + $0x28] sm:$0xf]  ;;  %v2918_v34 = vrot.slane %v379_v18, 11  ;;  %v2583_v51 = vld [vmem:[#allocation3 + $0x58] sm:$0xff]  }
  0x6d   : > { %v384_v35 = vshrl.u32 %v327_v29, 16  ;;  %260 = vst [vmem:[#allocation2 + $0x2c] sm:$0x1] %v259_v30  ;;  %vm350_vm7 = vsmask.f32 4368  ;;  %v387_v37 = vshll.u32 %v327_v29, 16  ;;  %v2212_v38 = vcombine.low %v324_v21, %v327_v29 }
  0x6e   : > { %v373_v32 = vrot.slane %v371_v24, 7  ;;  %2354 = vmatprep.mubr.msk.bf16.mxu1 %vm497_vm3, %v2171_v26  ;;  %v330_v39 = vld [vmem:[#allocation2 + $0x38] sm:$0xf]  ;;  %v2924_v40 = vld [vmem:[#allocation2 + $0x48] sm:$0xf]  ;;  %v265_v41 = vsel %vm2899_vm4, 0, %v264_v31  ;;  %vm2984_vm9 = vmor %vm244_vm1, %vm350_vm7 }
  0x6f   : > { %v688_v42 = vrot.slane %v371_v24, 4  ;;  %v689_v43 = vrot.slane %v374_v25, 5  ;;  %v386_v44 = vrot.slane %v384_v35, 7  ;;  %v397_v45 = vshrl.u32 %v330_v39, 16  ;;  %v2928_v46 = vld [vmem:[#allocation2 + $0x58] sm:$0xf]  ;;  %2402 = vmatprep.mubr.msk.bf16.mxu0 %vm497_vm3, %v2212_v38 }
  0x70   : > { %266 = vst [vmem:[#allocation2 + $0x3c] sm:$0x1] %v265_v41  ;;  %v697_v47 = vrot.slane %v384_v35, 4  ;;  %v698_v48 = vrot.slane %v387_v37, 5  ;;  %v2931_v49 = vcombine.low %v327_v29, %v330_v39  ;;  %v410_v50 = vshrl.u32 %v2924_v40, 16  ;;  %v2584_v56 = vld [vmem:[#allocation3 + $0x8] sm:$0xff]  }
  0x71   : > { %v399_v52 = vrot.slane %v397_v45, 7  ;;  %v400_v53 = vshll.u32 %v330_v39, 16  ;;  %v413_v54 = vshll.u32 %v2924_v40, 16  ;;  %v2213_v55 = vcombine.low %v330_v39, %v2924_v40  ;;  %v270_v57 = vld [vmem:[#allocation2 + $0x4c] sm:$0x1]  ;;  %v2951_v0 = vld [vmem:[#allocation3 + $0x20] sm:$0xff]  }
  0x72   : > { %v2936_v58 = vor.u32 %v374_v25, %v373_v32  ;;  %2355 = vmatmul.mubr.msk.bf16.vlgmr.msra.gmra.mrb[0].mxu1 %vm497_vm3, %v2931_v49  ;;  %v715_v59 = vrot.slane %v410_v50, 4  ;;  %v423_v60 = vshrl.u32 %v2928_v46, 16  ;;  %v2945_v61 = vcombine.low %v2924_v40, %v2928_v46  ;;  %v2947_v62 = vld [vmem:[#allocation2 + $0x68] sm:$0xf]  ;;  %v2949_v63 = vld [vmem:[#allocation2 + $0x78] sm:$0xf] }
  0x73   : > { %v389_v1 = vor.u32 %v387_v37, %v386_v44  ;;  %v2953_v3 = vor.u32 %v400_v53, %v399_v52  ;;  %2363 = vmatpush3.bf16.msra.mxu1 %v2880_v6  ;;  %v716_v5 = vrot.slane %v413_v54, 5  ;;  %2403 = vmatmul.mubr.msk.bf16.vlgmr.msra.gmra.mrb[0].mxu0 %vm497_vm3, %v2213_v55  ;;  %v426_v9 = vshll.u32 %v2928_v46, 16  ;;  %v325_v10 = vld [vmem:[#allocation2 + $0x1c] sm:$0x1]  ;;  %v2960_v11 = vld [vmem:[#allocation3 + $0x60] sm:$0xff]   ;;  %s2705_s14 = smov 64  }
  0x74   : > { %2411 = vmatpush3.bf16.msra.mxu0 %v2882_v7  ;;  %2358 = vmatprep.mubr.msk.bf16.mxu1 %vm497_vm3, %v2945_v61  ;;  %v436_v12 = vshrl.u32 %v2947_v62, 16  ;;  %v439_v13 = vshll.u32 %v2947_v62, 16  ;;  %v449_v6 = vshrl.u32 %v2949_v63, 16  ;;  %v452_v14 = vshll.u32 %v2949_v63, 16  ;;  %v328_v17 = vld [vmem:[#allocation2 + $0x2c] sm:$0x1] }
  0x75   : > { %2412 = vmatprep.subr.bf16.mxu0 %v2583_v51  ;;  %2364 = vmatprep.subr.bf16.mxu1 %v2584_v56  ;;  %v2971_v18 = vcombine.low %v2947_v62, %v2949_v63  ;;  %v271_v7 = vsel %vm2899_vm4, 0, %v270_v57  ;;  %v690_v19 = vor.u32 %v689_v43, %v688_v42  ;;  %v693_v20 = vshll.u32 %v325_v10, 16  ;;  %v320_v21 = vld [vmem:[#allocation2 + $0x4] sm:$0xf]  ;;  %v323_v22 = vld [vmem:[#allocation2 + $0x14] sm:$0xf] }
  0x76   : > { %272 = vst [vmem:[#allocation2 + $0x4c] sm:$0x1] %v271_v7  ;;  %v699_v25 = vor.u32 %v698_v48, %v697_v47  ;;  %v702_v26 = vshll.u32 %v328_v17, 16  ;;  %v706_v27 = vrot.slane %v397_v45, 4  ;;  %v707_v28 = vrot.slane %v400_v53, 5  ;;  %s2295_s16 = sshll.u32 %s3388_s18, 2 }
  0x77   : > { %v331_v23 = vld [vmem:[#allocation2 + $0x3c] sm:$0x1]  ;;  %2365 = vmatpush3.bf16.msra.mxu1 %v2584_v56  ;;  %v691_v29 = vrot.slane %v690_v19, 4  ;;  %v695_v30 = vrot.slane %v693_v20, 5  ;;  %v717_v32 = vor.u32 %v716_v5, %v715_v59  ;;  %v353_v39 = vshrl.u32 %v320_v21, 16  ;;  %s237_s17 = scalar_lea.vmem %s3370_s4, %s2295_s16 }
  0x78   : > { %v711_v31 = vshll.u32 %v331_v23, 16  ;;  %2413 = vmatpush3.bf16.msra.mxu0 %v2583_v51  ;;  %v700_v35 = vrot.slane %v699_v25, 4  ;;  %v704_v37 = vrot.slane %v702_v26, 5  ;;  %v708_v38 = vor.u32 %v707_v28, %v706_v27  ;;  %2374 = vmatprep.subr.bf16.mxu1 %v2951_v0  ;;  %v329_v47 = vld [vmem:[#allocation2 + $0x34] sm:$0xf] }
  0x79   : > { %v2990_v42 = vsel %vm2977_vm8, %v691_v29, %v695_v30  ;;  %v718_v44 = vrot.slane %v717_v32, 4  ;;  %2422 = vmatprep.subr.bf16.mxu0 %v2960_v11  ;;  %v366_v45 = vshrl.u32 %v323_v22, 16  ;;  %v2163_v52 = vrot.slane %v353_v39, 11  ;;  %v276_v55 = vld [vmem:[#allocation2 + $0x5c] sm:$0x1] }
  0x7a   : > { %v713_v43 = vrot.slane %v711_v31, 5  ;;  %2359 = vmatmul.mubr.msk.bf16.gmra.mrb[4].mxu1 %vm497_vm3, %v2971_v18  ;;  %v2997_v48 = vsel %vm2977_vm8, %v700_v35, %v704_v37  ;;  %v709_v51 = vrot.slane %v708_v38, 4  ;;  %v392_v53 = vshrl.u32 %v329_v47, 16  ;;  %v282_v5 = vld [vmem:[#allocation2 + $0x6c] sm:$0x1] }
  0x7b   : > { %v2222_v56 = vcombine.low %v2990_v42, %v2997_v48  ;;  %v2164_v57 = vrot.slane %v366_v45, 11  ;;  %v277_v59 = vsel %vm2899_vm4, 0, %v276_v55  ;;  %v724_v10 = vrot.slane %v423_v60, 4  ;;  %v3010_v7 = vld [vmem:[#allocation2 + $0x88] sm:$0xf] }
  0x7c   : > { %v3008_v17 = vsel %vm2984_vm9, %v2918_v34, %v389_v1  ;;  %v364_v19 = vsel %vm2984_vm9, %v2163_v52, %v2922_v36  ;;  %v2166_v20 = vrot.slane %v392_v53, 11  ;;  %278 = vst [vmem:[#allocation2 + $0x5c] sm:$0x1] %v277_v59  ;;  %v283_v21 = vsel %vm2899_vm4, 0, %v282_v5  ;;  %v288_v25 = vld [vmem:[#allocation2 + $0x7c] sm:$0x1] }
  0x7d   : > { %v334_v22 = vld [vmem:[#allocation2 + $0x4c] sm:$0x1]  ;;  %v3019_v23 = vsel %vm2977_vm8, %v709_v51, %v713_v43  ;;  %2414 = vmatprep.mubr.msk.bf16.mxu0 %vm497_vm3, %v2222_v56  ;;  %v3025_v34 = vsel %vm2984_vm9, %v2164_v57, %v2936_v58  ;;  %284 = vst [vmem:[#allocation2 + $0x6c] sm:$0x1] %v283_v21  ;;  %v725_v36 = vrot.slane %v426_v9, 5  ;;  %v733_v1 = vrot.slane %v436_v12, 4 }
  0x7e   : > { %v720_v26 = vshll.u32 %v334_v22, 16  ;;  %v2181_v27 = vcombine.low %v364_v19, %v3025_v34  ;;  %v3035_v28 = vsel %vm2984_vm9, %v2166_v20, %v2953_v3  ;;  %v734_v58 = vrot.slane %v439_v13, 5  ;;  %v294_v29 = vld [vmem:[#allocation2 + $0x8c] sm:$0x1]  ;;  %v332_v30 = vld [vmem:[#allocation2 + $0x44] sm:$0xf] }
  0x7f   : > { %v3041_v31 = vcombine.low %v3008_v17, %v3035_v28  ;;  %v726_v32 = vor.u32 %v725_v36, %v724_v10  ;;  %v289_v35 = vsel %vm2899_vm4, 0, %v288_v25  ;;  %v295_v37 = vsel %vm2899_vm4, 0, %v294_v29  ;;  %v2590_v45 = vld [vmem:[#allocation3 + $0x28] sm:$0xff]   ;;  %v335_v55 = vld [vmem:[#allocation2 + $0x54] sm:$0xf] }
  0x80   : > { %v722_v38 = vrot.slane %v720_v26, 5  ;;  %2366 = vmatprep.mubr.msk.bf16.mxu1 %vm497_vm3, %v2181_v27  ;;  %v735_v3 = vor.u32 %v734_v58, %v733_v1  ;;  %290 = vst [vmem:[#allocation2 + $0x7c] sm:$0x1] %v289_v35  ;;  %296 = vst [vmem:[#allocation2 + $0x8c] sm:$0x1] %v295_v37  ;;  %v742_v39 = vrot.slane %v449_v6, 4 }
  0x81   : > { %v743_v43 = vrot.slane %v452_v14, 5  ;;  %v727_v47 = vrot.slane %v726_v32, 4  ;;  %v2589_v51 = vld [vmem:[#allocation3 + $0x68] sm:$0xff]   ;;  %v871_v52 = vshrl.u32 %v3010_v7, 16  ;;  %v874_v53 = vshll.u32 %v3010_v7, 16  ;;  %v3069_v1 = vld [vmem:[#allocation3 + $0x30] sm:$0xff]  }
  0x82   : > { %v405_v56 = vshrl.u32 %v332_v30, 16  ;;  %v3056_v57 = vsel %vm2977_vm8, %v718_v44, %v722_v38  ;;  %2367 = vmatmul.mubr.msk.bf16.vlgmr.msra.gmra.mrb[0].mxu1 %vm497_vm3, %v3041_v31  ;;  %v736_v59 = vrot.slane %v735_v3, 4  ;;  %v412_v10 = vrot.slane %v410_v50, 7  ;;  %v338_v19 = vld [vmem:[#allocation2 + $0x64] sm:$0xf]  ;;  %v3076_v35 = vld [vmem:[#allocation3 + $0x70] sm:$0xff]  }
  0x83   : > { %v744_v5 = vor.u32 %v743_v43, %v742_v39  ;;  %v2223_v20 = vcombine.low %v3019_v23, %v3056_v57  ;;  %2375 = vmatpush3.bf16.msra.mxu1 %v2951_v0  ;;  %v337_v21 = vld [vmem:[#allocation2 + $0x5c] sm:$0x1]  ;;  %v1093_v22 = vrot.slane %v871_v52, 4  ;;  %v1094_v44 = vrot.slane %v874_v53, 5  ;;  %v341_v58 = vld [vmem:[#allocation2 + $0x74] sm:$0xf] }
  0x84   : > { %v2167_v36 = vrot.slane %v405_v56, 11  ;;  %v340_v25 = vld [vmem:[#allocation2 + $0x6c] sm:$0x1]  ;;  %v729_v26 = vshll.u32 %v337_v21, 16  ;;  %v415_v50 = vor.u32 %v413_v54, %v412_v10  ;;  %v418_v27 = vshrl.u32 %v335_v55, 16  ;;  %2376 = vmatprep.subr.bf16.mxu1 %v2590_v45 }
  0x85   : > { %2415 = vmatmul.mubr.msk.bf16.vlgmr.msra.gmra.mrb[0].mxu0 %vm497_vm3, %v2223_v20  ;;  %v738_v0 = vshll.u32 %v340_v25, 16  ;;  %v1095_v29 = vor.u32 %v1094_v44, %v1093_v22  ;;  %v425_v30 = vrot.slane %v423_v60, 7  ;;  %v431_v32 = vshrl.u32 %v338_v19, 16  ;;  %v246_v54 = vld [vmem:[#allocation2 + $0xc] sm:$0x1] }
  0x86   : > { %2423 = vmatpush3.bf16.msra.mxu0 %v2960_v11  ;;  %v731_v37 = vrot.slane %v729_v26, 5  ;;  %v745_v38 = vrot.slane %v744_v5, 4  ;;  %v2168_v3 = vrot.slane %v418_v27, 11  ;;  %v438_v40 = vrot.slane %v436_v12, 7  ;;  %v347_v8 = vld [vmem:[#allocation2 + $0x94] sm:$0xf] }
  0x87   : > { %v740_v39 = vrot.slane %v738_v0, 5  ;;  %2424 = vmatprep.subr.bf16.mxu0 %v2589_v51  ;;  %v343_v43 = vld [vmem:[#allocation2 + $0x7c] sm:$0x1]  ;;  %v346_v55 = vld [vmem:[#allocation2 + $0x8c] sm:$0x1]  ;;  %v1096_v56 = vrot.slane %v1095_v29, 4  ;;  %v3083_v60 = vsel %vm2984_vm9, %v2167_v36, %v415_v50  ;;  %v428_v10 = vor.u32 %v426_v9, %v425_v30  ;;  %2377 = vmatpush3.bf16.msra.mxu1 %v2590_v45 }
  0x88   : > { %v3089_v11 = vsel %vm2977_vm8, %v727_v47, %v731_v37  ;;  %v747_v5 = vshll.u32 %v343_v43, 16  ;;  %v1098_v12 = vshll.u32 %v346_v55, 16  ;;  %v2169_v19 = vrot.slane %v431_v32, 11  ;;  %2386 = vmatprep.subr.bf16.mxu1 %v3069_v1  ;;  %v344_v50 = vld [vmem:[#allocation2 + $0x84] sm:$0xf] }
  0x89   : > { %v3094_v20 = vsel %vm2977_vm8, %v736_v59, %v740_v39  ;;  %v3098_v21 = vsel %vm2984_vm9, %v2168_v3, %v428_v10  ;;  %v441_v9 = vor.u32 %v439_v13, %v438_v40  ;;  %v444_v45 = vshrl.u32 %v341_v58, 16  ;;  %v300_v3 = vld [vmem:[#allocation2 + $0x9c] sm:$0x1] }
  0x8a   : > { %v2224_v47 = vcombine.low %v3089_v11, %v3094_v20  ;;  %v749_v22 = vrot.slane %v747_v5, 5  ;;  %v1100_v44 = vrot.slane %v1098_v12, 5  ;;  %2425 = vmatpush3.bf16.msra.mxu0 %v2589_v51  ;;  %v2183_v36 = vcombine.low %v3083_v60, %v3098_v21 }
  0x8b   : > { %v680_v59 = vrot.slane %v361_v15, 5  ;;  %v2170_v25 = vrot.slane %v444_v45, 11  ;;  %v451_v26 = vrot.slane %v449_v6, 7  ;;  %2434 = vmatprep.subr.bf16.mxu0 %v3076_v35  ;;  %v247_v13 = vsel %vm2899_vm4, 0, %v246_v54  ;;  %v3121_v15 = vld [vmem:[#allocation2 + $0x98] sm:$0xf] }
  0x8c   : > { %2418 = vmatprep.mubr.msk.bf16.mxu0 %vm497_vm3, %v2224_v47  ;;  %v750_v51 = vsel %vm2977_vm8, %v745_v38, %v749_v22  ;;  %v3118_v27 = vsel %vm2977_vm8, %v1096_v56, %v1100_v44  ;;  %2370 = vmatprep.mubr.msk.bf16.mxu1 %vm497_vm3, %v2183_v36  ;;  %248 = vst [vmem:[#allocation2 + $0xc] sm:$0x1] %v247_v13  ;;  %v1215_v29 = vshrl.u32 %v3121_v15, 16  ;;  %v866_v37 = vshrl.u32 %v344_v50, 16  ;;  %v2595_v22 = vld [vmem:[#allocation3 + $0x80] sm:$0xff]  }
  0x8d   : > { %v2225_v6 = vcombine.low %v750_v51, %v3118_v27  ;;  %v3126_v58 = vsel %vm2984_vm9, %v2169_v19, %v441_v9  ;;  %v454_v0 = vor.u32 %v452_v14, %v451_v26  ;;  %v681_v30 = vor.u32 %v680_v59, %v2916_v33 }
  0x8e   : > { %v873_v38 = vrot.slane %v871_v52, 7  ;;  %v1210_v14 = vshrl.u32 %v347_v8, 16  ;;  %v1217_v54 = vrot.slane %v1215_v29, 7  ;;  %v1218_v33 = vshll.u32 %v3121_v15, 16  ;;  %v3207_v8 = vld [vmem:[#allocation5] ss:$0 sm:$0xff] }
  0x8f   : > { %2419 = vmatmul.mubr.msk.bf16.gmra.mrb[4].mxu0 %vm497_vm3, %v2225_v6  ;;  %v3135_v32 = vsel %vm2984_vm9, %v2170_v25, %v454_v0  ;;  %v301_v39 = vsel %vm2899_vm4, 0, %v300_v3  ;;  %v682_v43 = vrot.slane %v681_v30, 4  ;;  %v2201_v56 = vrot.slane %v866_v37, 11 }
  0x90   : > { %v2184_v40 = vcombine.low %v3126_v58, %v3135_v32  ;;  %2426 = vmatprep.mubr.msk.bf16.mxu0 %vm497_vm3, %v3041_v31  ;;  %302 = vst [vmem:[#allocation2 + $0x9c] sm:$0x1] %v301_v39  ;;  %v876_v10 = vor.u32 %v874_v53, %v873_v38  ;;  %v2232_v5 = vrot.slane %v1210_v14, 11  ;;  %v1220_v12 = vor.u32 %v1218_v33, %v1217_v54  ;;  %v2593_v31 = vld [vmem:[#allocation3 + $0x78] sm:$0xff]  }
  0x91   : > { %v2192_v9 = vcombine.low %v2997_v48, %v3019_v23  ;;  %v2193_v48 = vcombine.low %v3056_v57, %v3089_v11  ;;  %v2594_v23 = vld [vmem:[#allocation3 + $0x38] sm:$0xff]   ;;  %v2194_v41 = vcombine.low %v3094_v20, %v750_v51  ;;  %v2596_v57 = vld [vmem:[#allocation3 + $0x88] sm:$0xff]   ;;  %v1414_v11 = vrot.slane %v1218_v33, 5 }
  0x92   : > { %2371 = vmatmul.mubr.msk.bf16.gmra.mrb[4].mxu1 %vm497_vm3, %v2184_v40  ;;  %v877_v45 = vsel %vm2984_vm9, %v2201_v56, %v876_v10  ;;  %v1221_v53 = vsel %vm2984_vm9, %v2232_v5, %v1220_v12  ;;  %v2214_v20 = vcombine.low %v2928_v46, %v2947_v62  ;;  %v2703_v26 = vmov 1983009808  }
  0x93   : > { %v322_v55 = vld [vmem:[#allocation2 + $0xc] sm:$0x1]  ;;  %v1565_v13 = vunpack.c.l.s4 %v2703_v26  ;;  %v1567_v50 = vlaneseq  ;;  %v2704_v14 = vmov 1934713408   ;;  %vm1896_vm10 = vcmask 1041409  }
  0x94   : > { %v684_v52 = vshll.u32 %v322_v55, 16  ;;  %v3220_v54 = vunpack.c.l.s4 %v2704_v14  ;;  %vm1898_vm11 = vcmask 1043459   ;;  %vm1900_vm12 = vcmask 1045509  }
  0x95   : > { %vm1902_vm13 = vcmask 1047559   ;;  %vm2045_vm14 = vcmask 523264  }
  0x96   : > { %v686_v19 = vrot.slane %v684_v52, 5 }
  0x97   : > { %2427 = vmatmul.mubr.msk.bf16.vlgmr.msra.gmra.mrb[0].mxu0 %vm497_vm3, %v2183_v36 }
  0x98   : > { %2435 = vmatpush3.bf16.msra.mxu0 %v3076_v35  ;;  %v687_v16 = vsel %vm2977_vm8, %v682_v43, %v686_v19  ;;  %2430 = vmatprep.mubr.msk.bf16.mxu0 %vm497_vm3, %v2184_v40  ;;  %v2233_v35 = vcombine.low %v877_v45, %v1221_v53 }
  0x99   : > { %v2191_v47 = vcombine.low %v687_v16, %v2990_v42  ;;  %2436 = vmatprep.subr.bf16.mxu0 %v2593_v31  ;;  %v2202_v42 = vcombine.low %v3025_v34, %v3008_v17  ;;  %v2240_v17 = vcombine.low %v3010_v7, %v3121_v15  ;;  %v1413_v34 = vrot.slane %v1215_v29, 4 }
  0x9a   : > { %v1566_v15 = vunpack.c.0.s8 %v1565_v13  ;;  %v1964_v16 = vunpack.c.0.s8 %v3220_v54 }
  0x9b   : > { %2378 = vmatprep.mubr.msk.bf16.mxu1 %vm497_vm3, %v2191_v47 }
  0x9c   : > { %2379 = vmatmul.mubr.msk.bf16.vlgmr.msra.gmra.mrb[0].mxu1 %vm497_vm3, %v2192_v9  ;;  %2437 = vmatpush3.bf16.msra.mxu0 %v2593_v31 }
  0x9d   : > { %2387 = vmatpush3.bf16.msra.mxu1 %v3069_v1  ;;  %2382 = vmatprep.mubr.msk.bf16.mxu1 %vm497_vm3, %v2193_v48  ;;  %v2203_v1 = vcombine.low %v3035_v28, %v3083_v60  ;;  %v1415_v28 = vor.u32 %v1414_v11, %v1413_v34 }
  0x9e   : > { %2388 = vmatprep.subr.bf16.mxu1 %v2594_v23  ;;  %2446 = vmatprep.subr.bf16.mxu0 %v2595_v22 }
  0x9f   : > { %2431 = vmatmul.mubr.msk.bf16.gmra.mrb[4].mxu0 %vm497_vm3, %v2233_v35 }
  0xa0   : > { %2438 = vmatprep.mubr.msk.bf16.mxu0 %vm497_vm3, %v2931_v49  ;;  %v2204_v49 = vcombine.low %v3098_v21, %v3126_v58 }
  0xa1   : > { %2389 = vmatpush3.bf16.msra.mxu1 %v2594_v23 }
  0xa2   : > { %2458 = vmatprep.subr.bf16.mxu1 %v2866_v2 }
  0xa4   : > { %2383 = vmatmul.mubr.msk.bf16.gmra.mrb[4].mxu1 %vm497_vm3, %v2194_v41 }
  0xa5   : > { %2390 = vmatprep.mubr.msk.bf16.mxu1 %vm497_vm3, %v2202_v42 }
  0xa7   : > { %2439 = vmatmul.mubr.msk.bf16.vlgmr.msra.gmra.mrb[0].mxu0 %vm497_vm3, %v2945_v61  ;;  %v349_v61 = vld [vmem:[#allocation2 + $0x9c] sm:$0x1] }
  0xa8   : > { %2447 = vmatpush3.bf16.msra.mxu0 %v2595_v22  ;;  %2442 = vmatprep.mubr.msk.bf16.mxu0 %vm497_vm3, %v2971_v18  ;;  %v2205_v18 = vcombine.low %v3135_v32, %v877_v45  ;;  %v1418_v60 = vshll.u32 %v349_v61, 16 }
  0xa9   : > { %2448 = vmatprep.subr.bf16.mxu0 %v2596_v57 }
  0xaa   : > { %v1420_v21 = vrot.slane %v1418_v60, 5 }
  0xac   : > { %2391 = vmatmul.mubr.msk.bf16.vlgmr.msra.gmra.mrb[0].mxu1 %vm497_vm3, %v2203_v1  ;;  %2449 = vmatpush3.bf16.msra.mxu0 %v2596_v57 }
  0xad   : > { %2460 = vmatpush3.bf16.msra.mxu1 %v2866_v2  ;;  %2394 = vmatprep.mubr.msk.bf16.mxu1 %vm497_vm3, %v2204_v49  ;;  %v1416_v2 = vrot.slane %v1415_v28, 4 }
  0xae   : > { %2459 = vmatprep.subr.bf16.mxu1 %v2874_v4 }
  0xaf   : > { %2443 = vmatmul.mubr.msk.bf16.gmra.mrb[4].mxu0 %vm497_vm3, %v2240_v17  ;;  %v1421_v44 = vsel %vm2977_vm8, %v1416_v2, %v1420_v21 }
  0xb0   : > { %2450 = vmatprep.mubr.msk.bf16.mxu0 %vm497_vm3, %v2192_v9  ;;  %v2247_v36 = vcombine.low %v3118_v27, %v1421_v44  ;;  %v3209_v27 = vshrl.u32 %v1567_v50, 7 }
  0xb1   : > { %2461 = vmatpush3.bf16.msra.mxu1 %v2874_v4  ;;  %v2215_v4 = vcombine.low %v2949_v63, %v3010_v7  ;;  %v3211_v63 = vld [vmem:[#allocation7] ss:$0 sm:$0xff] }
  0xb2   : > { %v3217_v3 = vsub.s32 %v1566_v15, %v3209_v27 }
  0xb4   : > { %2395 = vmatmul.mubr.msk.bf16.gmra.mrb[4].mxu1 %vm497_vm3, %v2205_v18 }
  0xb5   : > { %2406 = vmatprep.mubr.msk.bf16.mxu1 %vm497_vm3, %v2214_v20 }
  0xb7   : > { %2451 = vmatmul.mubr.msk.bf16.vlgmr.msra.gmra.mrb[0].mxu0 %vm497_vm3, %v2193_v48 }
  0xb8   : > { %2454 = vmatprep.mubr.msk.bf16.mxu0 %vm497_vm3, %v2194_v41 }
  0xbf   : > { %2455 = vmatmul.mubr.msk.bf16.gmra.mrb[4].mxu0 %vm497_vm3, %v2247_v36 }
  0xc0   : > { %2407 = vmatmul.mubr.msk.bf16.vlgmr.msra.gmra.mrb[4].mxu1 %vm497_vm3, %v2215_v4 }
 0x17f   : > { %v2392_v46 = vpop.f32.mrb[0].mxu1 }
 0x180   : > { %v946_v62 = vpop.f32.mrb[1].mxu1 }
 0x181   : > { %v2393_v59 = vpop.f32.mrb[2].mxu1 }
 0x182   : > { %v949_v25 = vpop.f32.mrb[3].mxu1 }
 0x18a   : > { %v2452_v51 = vpop.f32.mrb[0].mxu0 }
 0x18b   : > { %v2462_v24 = vadd.f32 %v2452_v51, %v2392_v46  ;;  %v1478_v6 = vpop.f32.mrb[1].mxu0 }
 0x18c   : > { %v2463_v7 = vadd.f32 %v1478_v6, %v946_v62  ;;  %v2453_v58 = vpop.f32.mrb[2].mxu0 }
 0x18d   : > { %v1526_v0 = vmul.f32 %v2462_v24, %v3207_v8  ;;  %v2464_v29 = vadd.f32 %v2453_v58, %v2393_v59  ;;  %v1481_v30 = vpop.f32.mrb[3].mxu0 }
 0x18e   : > { %v1524_v32 = vmul.f32 %v2463_v7, %v3207_v8  ;;  %v2465_v37 = vadd.f32 %v1481_v30, %v949_v25 }
 0x18f   : > { %v1541_v38 = vadd.f32 %v3211_v63, %v1526_v0  ;;  %v1527_v40 = vmul.f32 %v2464_v29, %v3207_v8 }
 0x190   : > { %v1539_v33 = vadd.f32 %v3211_v63, %v1524_v32  ;;  %v1525_v39 = vmul.f32 %v2465_v37, %v3207_v8 }
 0x191   : > { %v1549_v43 = vmax.f32 %v1541_v38, 0.0  ;;  %v1542_v55 = vadd.f32 %v3211_v63, %v1527_v40 }
 0x192   : > { %v1547_v56 = vmax.f32 %v1539_v33, 0.0  ;;  %v1540_v52 = vadd.f32 %v3211_v63, %v1525_v39  ;;  %v2456_v10 = vpop.f32.mrb[4].mxu0 }
 0x193   : > { %v1597_v5 = vcombine.high %v1549_v43, %v1549_v43  ;;  %v1604_v12 = vrot.slane %v1549_v43, %v3217_v3  ;;  %v1550_v31 = vmax.f32 %v1542_v55, 0.0  ;;  %v2408_v19 = vpop.f32.mrb[4].mxu1  ;;  %v3227_v9 = vpop.f32.mrb[5].mxu0 }
 0x194   : > { %v1563_v45 = vcombine.high %v1547_v56, %v1547_v56  ;;  %v1570_v53 = vrot.slane %v1547_v56, %v3217_v3  ;;  %v1548_v47 = vmax.f32 %v1540_v52, 0.0  ;;  %v2466_v48 = vadd.f32 %v2456_v10, %v2408_v19  ;;  %v1070_v23 = vpop.f32.mrb[5].mxu1  ;;  %v3231_v22 = vpop.f32.mrb[6].mxu0 }
 0x195   : > { %v1611_v35 = vrot.slane %v1597_v5, %v3217_v3  ;;  %v1612_v41 = vcombine.high %v1604_v12, %v1604_v12  ;;  %v2264_v42 = vrot.slane %v1604_v12, 9  ;;  %v1614_v57 = vcombine.high %v1550_v31, %v1550_v31  ;;  %v3234_v1 = vpop.f32.mrb[6].mxu1  ;;  %v3236_v49 = vpop.f32.mrb[7].mxu0 }
 0x196   : > { %v1577_v17 = vrot.slane %v1563_v45, %v3217_v3  ;;  %v1578_v34 = vcombine.high %v1570_v53, %v1570_v53  ;;  %v2256_v11 = vrot.slane %v1570_v53, 9  ;;  %v1621_v61 = vrot.slane %v1550_v31, %v3217_v3  ;;  %v3240_v18 = vpop.f32.mrb[7].mxu1 }
 0x197   : > { %v1613_v28 = vcombine.high %v1611_v35, %v1611_v35  ;;  %v2265_v60 = vrot.slane %v1612_v41, 9  ;;  %v2266_v20 = vrot.slane %v1611_v35, 9  ;;  %v3242_v2 = vmax.f32 %v1604_v12, %v2264_v42 }
 0x198   : > { %v1579_v21 = vcombine.high %v1577_v17, %v1577_v17  ;;  %v2257_v44 = vrot.slane %v1578_v34, 9  ;;  %v2258_v36 = vrot.slane %v1577_v17, 9  ;;  %v3244_v4 = vmax.f32 %v1570_v53, %v2256_v11 }
 0x199   : > { %v2267_v46 = vrot.slane %v1613_v28, 9  ;;  %v1836_v62 = vmax.f32 %v1612_v41, %v2265_v60  ;;  %v3246_v59 = vmax.f32 %v1611_v35, %v2266_v20  ;;  %v1628_v25 = vrot.slane %v1614_v57, %v3217_v3 }
 0x19a   : > { %v2259_v26 = vrot.slane %v1579_v21, 9  ;;  %v1828_v13 = vmax.f32 %v1578_v34, %v2257_v44  ;;  %v3249_v50 = vmax.f32 %v1577_v17, %v2258_v36  ;;  %v1629_v51 = vcombine.high %v1621_v61, %v1621_v61 }
 0x19b   : > { %v1838_v24 = vmax.f32 %v1613_v28, %v2267_v46  ;;  %v1630_v15 = vcombine.high %v1628_v25, %v1628_v25  ;;  %v2268_v6 = vrot.slane %v1621_v61, 9  ;;  %v2270_v7 = vrot.slane %v1628_v25, 9 }
 0x19c   : > { %v1830_v58 = vmax.f32 %v1579_v21, %v2259_v26  ;;  %v2269_v0 = vrot.slane %v1629_v51, 9  ;;  %v1580_v29 = vcombine.high %v1548_v47, %v1548_v47  ;;  %v1587_v30 = vrot.slane %v1548_v47, %v3217_v3 }
 0x19d   : > { %v2271_v32 = vrot.slane %v1630_v15, 9  ;;  %v3252_v37 = vmax.f32 %v1621_v61, %v2268_v6  ;;  %v3254_v38 = vmax.f32 %v1628_v25, %v2270_v7  ;;  %v1530_v40 = vmul.f32 %v2466_v48, %v3207_v8 }
 0x19e   : > { %v1840_v14 = vmax.f32 %v1629_v51, %v2269_v0  ;;  %v1594_v33 = vrot.slane %v1580_v29, %v3217_v3  ;;  %v1595_v39 = vcombine.high %v1587_v30, %v1587_v30  ;;  %v2260_v43 = vrot.slane %v1587_v30, 9 }
 0x19f   : > { %v1842_v55 = vmax.f32 %v1630_v15, %v2271_v32  ;;  %v1863_v56 = vmax.f32 %v3242_v2, %v3252_v37  ;;  %v1865_v52 = vmax.f32 %v3246_v59, %v3254_v38  ;;  %v1545_v10 = vadd.f32 %v3211_v63, %v1530_v40 }
 0x1a0   : > { %v1864_v5 = vmax.f32 %v1836_v62, %v1840_v14  ;;  %v1596_v12 = vcombine.high %v1594_v33, %v1594_v33  ;;  %v2261_v31 = vrot.slane %v1595_v39, 9  ;;  %v2262_v19 = vrot.slane %v1594_v33, 9 }
 0x1a1   : > { %v1866_v45 = vmax.f32 %v1838_v24, %v1842_v55  ;;  %v1831_v53 = vmax.f32 %v1587_v30, %v2260_v43  ;;  %v1553_v47 = vmax.f32 %v1545_v10, 0.0  ;;  %v2467_v48 = vadd.f32 %v3227_v9, %v1070_v23 }
 0x1a2   : > { %v3264_v35 = vrot.slane %v1864_v5, 7  ;;  %v2263_v41 = vrot.slane %v1596_v12, 9  ;;  %v1832_v42 = vmax.f32 %v1595_v39, %v2261_v31  ;;  %v1833_v57 = vmax.f32 %v1594_v33, %v2262_v19 }
 0x1a3   : > { %v3266_v17 = vrot.slane %v1866_v45, 7  ;;  %v1859_v34 = vmax.f32 %v3244_v4, %v1831_v53  ;;  %v1665_v11 = vcombine.high %v1553_v47, %v1553_v47  ;;  %v1672_v61 = vrot.slane %v1553_v47, %v3217_v3 }
 0x1a4   : > { %v1834_v28 = vmax.f32 %v1596_v12, %v2263_v41  ;;  %v1860_v60 = vmax.f32 %v1828_v13, %v1832_v42  ;;  %v1861_v20 = vmax.f32 %v3249_v50, %v1833_v57  ;;  %v1528_v2 = vmul.f32 %v2467_v48, %v3207_v8 }
 0x1a5   : > { %v1679_v9 = vrot.slane %v1665_v11, %v3217_v3  ;;  %v1680_v23 = vcombine.high %v1672_v61, %v1672_v61  ;;  %v2280_v21 = vrot.slane %v1672_v61, 9  ;;  %v2468_v44 = vadd.f32 %v3231_v22, %v3234_v1 }
 0x1a6   : > { %v1862_v36 = vmax.f32 %v1830_v58, %v1834_v28  ;;  %v1895_v46 = vrot.slane %v1860_v60, 7  ;;  %v1543_v4 = vadd.f32 %v3211_v63, %v1528_v2  ;;  %v2469_v62 = vadd.f32 %v3236_v49, %v3240_v18 }
 0x1a7   : > { %v1681_v25 = vcombine.high %v1679_v9, %v1679_v9  ;;  %v2281_v26 = vrot.slane %v1680_v23, 9  ;;  %v2282_v13 = vrot.slane %v1679_v9, 9  ;;  %v3278_v50 = vmax.f32 %v1672_v61, %v2280_v21 }
 0x1a8   : > { %v3280_v51 = vrot.slane %v1862_v36, 7  ;;  %v1551_v24 = vmax.f32 %v1543_v4, 0.0  ;;  %v1531_v15 = vmul.f32 %v2468_v44, %v3207_v8  ;;  %v1529_v22 = vmul.f32 %v2469_v62, %v3207_v8 }
 0x1a9   : > { %v2283_v1 = vrot.slane %v1681_v25, 9  ;;  %v3284_v6 = vmax.f32 %v1680_v23, %v2281_v26  ;;  %v3286_v7 = vmax.f32 %v1679_v9, %v2282_v13  ;;  %v1897_v58 = vsel %vm1896_vm10, %v1895_v46, %v1859_v34 }
 0x1aa   : > { %v1631_v49 = vcombine.high %v1551_v24, %v1551_v24  ;;  %v1638_v18 = vrot.slane %v1551_v24, %v3217_v3  ;;  %v1546_v0 = vadd.f32 %v3211_v63, %v1531_v15  ;;  %v1544_v29 = vadd.f32 %v3211_v63, %v1529_v22 }
 0x1ab   : > { %v3292_v30 = vmax.f32 %v1681_v25, %v2283_v1  ;;  %v1899_v32 = vsel %vm1898_vm11, %v1895_v46, %v1897_v58  ;;  %v1907_v8 = vsel %vm1896_vm10, %v3280_v51, %v1861_v20  ;;  %v1914_v37 = vsel %vm1896_vm10, %v3264_v35, %v1863_v56 }
 0x1ac   : > { %v1645_v40 = vrot.slane %v1631_v49, %v3217_v3  ;;  %v1646_v14 = vcombine.high %v1638_v18, %v1638_v18  ;;  %v2272_v33 = vrot.slane %v1638_v18, 9  ;;  %v1554_v39 = vmax.f32 %v1546_v0, 0.0 }
 0x1ad   : > { %v1552_v43 = vmax.f32 %v1544_v29, 0.0  ;;  %v1901_v55 = vsel %vm1900_vm12, %v1895_v46, %v1899_v32  ;;  %v1908_v63 = vsel %vm1898_vm11, %v3280_v51, %v1907_v8  ;;  %v1915_v10 = vsel %vm1898_vm11, %v3264_v35, %v1914_v37 }
 0x1ae   : > { %v1647_v5 = vcombine.high %v1645_v40, %v1645_v40  ;;  %v2273_v12 = vrot.slane %v1646_v14, 9  ;;  %v2274_v31 = vrot.slane %v1645_v40, 9  ;;  %v1843_v19 = vmax.f32 %v1638_v18, %v2272_v33 }
 0x1af   : > { %v1682_v45 = vcombine.high %v1554_v39, %v1554_v39  ;;  %v1689_v56 = vrot.slane %v1554_v39, %v3217_v3  ;;  %v1648_v53 = vcombine.high %v1552_v43, %v1552_v43  ;;  %v1655_v47 = vrot.slane %v1552_v43, %v3217_v3 }
 0x1b0   : > { %v2275_v48 = vrot.slane %v1647_v5, 9  ;;  %v1844_v41 = vmax.f32 %v1646_v14, %v2273_v12  ;;  %v1845_v42 = vmax.f32 %v1645_v40, %v2274_v31  ;;  %v3308_v57 = vsel %vm1902_vm13, %v1895_v46, %v1901_v55 }
 0x1b1   : > { %v1696_v34 = vrot.slane %v1682_v45, %v3217_v3  ;;  %v1697_v11 = vcombine.high %v1689_v56, %v1689_v56  ;;  %v2284_v61 = vrot.slane %v1689_v56, 9  ;;  %v1662_v28 = vrot.slane %v1648_v53, %v3217_v3 }
 0x1b2   : > { %v1846_v60 = vmax.f32 %v1647_v5, %v2275_v48  ;;  %v1663_v20 = vcombine.high %v1655_v47, %v1655_v47  ;;  %v2276_v2 = vrot.slane %v1655_v47, 9  ;;  %v1909_v9 = vsel %vm1900_vm12, %v3280_v51, %v1908_v63 }
 0x1b3   : > { %v1698_v23 = vcombine.high %v1696_v34, %v1696_v34  ;;  %v2285_v21 = vrot.slane %v1697_v11, 9  ;;  %v2286_v44 = vrot.slane %v1696_v34, 9  ;;  %v1855_v36 = vmax.f32 %v1689_v56, %v2284_v61 }
 0x1b4   : > { %v1664_v4 = vcombine.high %v1662_v28, %v1662_v28  ;;  %v2277_v62 = vrot.slane %v1663_v20, 9  ;;  %v2278_v46 = vrot.slane %v1662_v28, 9  ;;  %v1847_v25 = vmax.f32 %v1655_v47, %v2276_v2 }
 0x1b5   : > { %v2287_v26 = vrot.slane %v1698_v23, 9  ;;  %v1856_v13 = vmax.f32 %v1697_v11, %v2285_v21  ;;  %v1857_v24 = vmax.f32 %v1696_v34, %v2286_v44  ;;  %v1871_v15 = vmax.f32 %v3278_v50, %v1855_v36 }
 0x1b6   : > { %v2279_v22 = vrot.slane %v1664_v4, 9  ;;  %v1848_v1 = vmax.f32 %v1663_v20, %v2277_v62  ;;  %v1849_v58 = vmax.f32 %v1662_v28, %v2278_v46  ;;  %v1867_v49 = vmax.f32 %v1843_v19, %v1847_v25 }
 0x1b7   : > { %v1858_v18 = vmax.f32 %v1698_v23, %v2287_v26  ;;  %v1872_v0 = vmax.f32 %v3284_v6, %v1856_v13  ;;  %v1873_v29 = vmax.f32 %v3286_v7, %v1857_v24  ;;  %v1910_v32 = vsel %vm1902_vm13, %v3280_v51, %v1909_v9 }
 0x1b8   : > { %v1850_v8 = vmax.f32 %v1664_v4, %v2279_v22  ;;  %v1868_v37 = vmax.f32 %v1844_v41, %v1848_v1  ;;  %v1869_v40 = vmax.f32 %v1845_v42, %v1849_v58  ;;  %v1916_v14 = vsel %vm1900_vm12, %v3264_v35, %v1915_v10 }
 0x1b9   : > { %v1874_v50 = vmax.f32 %v3292_v30, %v1858_v18  ;;  %v1941_v33 = vrot.slane %v1872_v0, 7  ;;  %v1917_v39 = vsel %vm1902_vm13, %v3264_v35, %v1916_v14  ;;  %v1921_v6 = vsel %vm1896_vm10, %v3266_v17, %v1865_v52 }
 0x1ba   : > { %v1870_v7 = vmax.f32 %v1846_v60, %v1850_v8  ;;  %v1927_v51 = vrot.slane %v1868_v37, 7  ;;  %v1922_v43 = vsel %vm1898_vm11, %v3266_v17, %v1921_v6  ;;  %v1961_v55 = vcombine.low %v3308_v57, %v1917_v39 }
 0x1bb   : > { %v1948_v63 = vrot.slane %v1874_v50, 7  ;;  %v1923_v30 = vsel %vm1900_vm12, %v3266_v17, %v1922_v43  ;;  %v1942_v10 = vsel %vm1896_vm10, %v1941_v33, %v1871_v15  ;;  %v1967_v19 = vsub.s32 %v1964_v16, %v3209_v27 }
 0x1bc   : > { %v1934_v35 = vrot.slane %v1870_v7, 7  ;;  %v1924_v59 = vsel %vm1902_vm13, %v3266_v17, %v1923_v30  ;;  %v1928_v38 = vsel %vm1896_vm10, %v1927_v51, %v1867_v49  ;;  %v1943_v52 = vsel %vm1898_vm11, %v1941_v33, %v1942_v10 }
 0x1bd   : > { %v1929_v5 = vsel %vm1898_vm11, %v1927_v51, %v1928_v38  ;;  %v1944_v12 = vsel %vm1900_vm12, %v1941_v33, %v1943_v52  ;;  %v1949_v31 = vsel %vm1896_vm10, %v1948_v63, %v1873_v29  ;;  %v1979_v42 = vcombine.low %v1910_v32, %v1924_v59 }
 0x1be   : > { %v1930_v45 = vsel %vm1900_vm12, %v1927_v51, %v1929_v5  ;;  %v1935_v56 = vsel %vm1896_vm10, %v1934_v35, %v1869_v40  ;;  %v1945_v17 = vsel %vm1902_vm13, %v1941_v33, %v1944_v12  ;;  %v1950_v53 = vsel %vm1898_vm11, %v1948_v63, %v1949_v31 }
 0x1bf   : > { %v1931_v47 = vsel %vm1902_vm13, %v1927_v51, %v1930_v45  ;;  %v1936_v48 = vsel %vm1898_vm11, %v1934_v35, %v1935_v56  ;;  %v1951_v41 = vsel %vm1900_vm12, %v1948_v63, %v1950_v53  ;;  %v1968_v34 = vrot.slane %v1961_v55, %v1967_v19 }
 0x1c0   : > { %v1937_v57 = vsel %vm1900_vm12, %v1934_v35, %v1936_v48  ;;  %v1952_v54 = vsel %vm1902_vm13, %v1948_v63, %v1951_v41  ;;  %v1970_v27 = vcombine.low %v1931_v47, %v1945_v17  ;;  %v1986_v28 = vrot.slane %v1979_v42, %v1967_v19 }
 0x1c1   : > { %v1938_v16 = vsel %vm1902_vm13, %v1934_v35, %v1937_v57 }
 0x1c2   : > { %v1977_v11 = vrot.slane %v1970_v27, %v1967_v19  ;;  %v1988_v61 = vcombine.low %v1938_v16, %v1952_v54 }
 0x1c4   : > { %v1995_v60 = vrot.slane %v1988_v61, %v1967_v19  ;;  %v1999_v20 = vcombine.low %v1968_v34, %v1977_v11  ;;  %v2288_v2 = vcombine.high %v1968_v34, %v1977_v11 }
 0x1c6   : > { %v2289_v9 = vcombine.high %v1986_v28, %v1995_v60  ;;  %v2023_v23 = vcombine.low %v1986_v28, %v1995_v60  ;;  %v2006_v21 = vrot.slane %v1999_v20, %v3217_v3  ;;  %v2017_v44 = vrot.slane %v2288_v2, %v3217_v3 }
 0x1c8   : > { %v2041_v36 = vrot.slane %v2289_v9, %v3217_v3  ;;  %v2030_v4 = vrot.slane %v2023_v23, %v3217_v3 }
 0x1ca   : > { %v2571_v62 = vpack.i.bf16 %v2041_v36, %v2017_v44 }
 0x1cc   : > { %2572 = vrot.lane.b32.xlu0 %v2571_v62, %s2705_s14 }
 0x23e   : > { %v2573_v46 = vpop.permute.xlu0 %2572 }
 0x23f   : > { %v2575_v25 = vunpack.i.h.bf16 %v2573_v46  ;;  %v2574_v26 = vunpack.i.l.bf16 %v2573_v46 }
 0x241   : > { %v2046_v13 = vsel %vm2045_vm14, %v2006_v21, %v2574_v26  ;;  %v2047_v24 = vsel %vm2045_vm14, %v2030_v4, %v2575_v25 }
 0x242   : > { %v2290_v15 = vpack.c.bf16 %v2047_v24, %v2046_v13 }
 0x244   : > { %2291 = vst.sshfl [vmem:[%s237_s17] sm:$0x33 pattern:$0x76325410] %v2290_v15 }
 0x245 PF: > { %s16_s15 = sadd.s32 1, %s2695_s15  }
 0x246   : > { %p13_p5 = scmp.ge.s32.totalorder %s16_s15, 4  }
 0x248   :  { %15 = sbr.rel (!%p13_p5) target bundleno = 2 (0x2), region = 88 }
 0x24f   :  { %2083 = vsyncpa [#allocation4], 1 }
 0x250   :  { %2085 = vsyncpa [#allocation4 + $0x1], 1 }
 0x251   :  { %2086 = vsyncpa [#allocation6], 1 }

// kernel: plant_disease_model.9
= control target key start
LH: loop header
LB: loop body
LE: loop exit
PB: predicated region body
PF: predicated region fallthrough
CT: control target
= control target key end

     0   :  { %v68_v7 = vlaneseq  ;;  %v441_v8 = vmov 0.0|0.0   ;;  %vm84_vm0 = vcmask 1041409   ;;  %s667_s0 = inlined_call_operand.vmem [shape: bf16[2,1,256], index: 0, kind: input, shape index: {}]   ;;  %s668_s1 = inlined_call_operand.vmem [shape: f32[256,128], index: 1, kind: input, shape index: {}]   ;;  %s669_s2 = inlined_call_operand.vmem [shape: f32[1,128], index: 2, kind: input, shape index: {}]   ;;  %s670_s3 = inlined_call_operand.vmem [shape: f32[128,128], index: 3, kind: input, shape index: {}]   ;;  %s671_s4 = inlined_call_operand.vmem [shape: f32[1,128], index: 4, kind: input, shape index: {}]   ;;  %s672_s5 = inlined_call_operand.hbm [shape: f32[2,128], index: 5, kind: output, shape index: {}]  }
   0x1   :  { %v43_v0 = vld [vmem:[%s668_s1 + $0x80] sm:$0xff]  ;;  %v44_v1 = vld [vmem:[%s668_s1 + $0x88] sm:$0xff]  ;;  %v45_v5 = vld [vmem:[%s668_s1 + $0x90] sm:$0xff]  ;;  %389 = vmatprep.subr.bf16.mxu1 %v441_v8 }
   0x2   :  { %v27_v2 = vld [vmem:[%s668_s1] sm:$0xff]  ;;  %v357_v3 = vpack.c.bf16 %v44_v1, %v43_v0  ;;  %v28_v4 = vld [vmem:[%s668_s1 + $0x8] sm:$0xff]  ;;  %v46_v6 = vld [vmem:[%s668_s1 + $0x98] sm:$0xff]  ;;  %v512_v19 = vshrl.u32 %v68_v7, 7 }
   0x3   :  { %v359_v9 = vpack.c.bf16 %v28_v4, %v27_v2  ;;  %v361_v10 = vpack.c.bf16 %v46_v6, %v45_v5  ;;  %v29_v11 = vld [vmem:[%s668_s1 + $0x10] sm:$0xff]  ;;  %v30_v12 = vld [vmem:[%s668_s1 + $0x18] sm:$0xff]  ;;  %v47_v13 = vld [vmem:[%s668_s1 + $0xa0] sm:$0xff] }
   0x4   :  { %358 = vmatprep.subr.bf16.mxu0 %v357_v3  ;;  %v48_v14 = vld [vmem:[%s668_s1 + $0xa8] sm:$0xff]  ;;  %v363_v15 = vpack.c.bf16 %v30_v12, %v29_v11  ;;  %v31_v17 = vld [vmem:[%s668_s1 + $0x20] sm:$0xff]  ;;  %v49_v20 = vld [vmem:[%s668_s1 + $0xb0] sm:$0xff]  ;;  %v74_v26 = vsub.s32 2, %v512_v19 }
   0x5   :  { %360 = vmatpush3.bf16.msra.mxu0 %v359_v9  ;;  %v365_v16 = vpack.c.bf16 %v48_v14, %v47_v13  ;;  %v32_v18 = vld [vmem:[%s668_s1 + $0x28] sm:$0xff]  ;;  %v50_v21 = vld [vmem:[%s668_s1 + $0xb8] sm:$0xff]  ;;  %v33_v24 = vld [vmem:[%s668_s1 + $0x30] sm:$0xff] }
   0x6   :  { %362 = vmatprep.subr.bf16.mxu0 %v361_v10  ;;  %v367_v22 = vpack.c.bf16 %v32_v18, %v31_v17  ;;  %v369_v23 = vpack.c.bf16 %v50_v21, %v49_v20  ;;  %v34_v25 = vld [vmem:[%s668_s1 + $0x38] sm:$0xff]  ;;  %v51_v27 = vld [vmem:[%s668_s1 + $0xc0] sm:$0xff]  ;;  %v52_v28 = vld [vmem:[%s668_s1 + $0xc8] sm:$0xff] }
   0x7   :  { %v536_v29 = vld [vmem:[%s667_s0] sm:$0x3]  ;;  %v541_v30 = vld [vmem:[%s667_s0 + $0x2] sm:$0x3]  ;;  %v161_v33 = vld [vmem:[%s670_s3 + $0x8] sm:$0xff]  ;;  %v371_v34 = vpack.c.bf16 %v34_v25, %v33_v24  ;;  %v373_v39 = vpack.c.bf16 %v52_v28, %v51_v27 }
   0x8   :  { %v23_v31 = vunpack.c.l.bf16 %v536_v29  ;;  %v160_v32 = vld [vmem:[%s670_s3] sm:$0xff]  ;;  %v24_v35 = vunpack.c.l.bf16 %v541_v30  ;;  %v162_v37 = vld [vmem:[%s670_s3 + $0x10] sm:$0xff]  ;;  %v163_v38 = vld [vmem:[%s670_s3 + $0x18] sm:$0xff] }
   0x9   :  { %364 = vmatpush3.bf16.msra.mxu0 %v363_v15  ;;  %v390_v36 = vpack.c.bf16 %v161_v33, %v160_v32  ;;  %v35_v40 = vld [vmem:[%s668_s1 + $0x40] sm:$0xff]  ;;  %v36_v41 = vld [vmem:[%s668_s1 + $0x48] sm:$0xff]  ;;  %v53_v43 = vld [vmem:[%s668_s1 + $0xd0] sm:$0xff]  ;;  %v393_v46 = vpack.c.bf16 %v163_v38, %v162_v37 }
   0xa   :  { %366 = vmatprep.subr.bf16.mxu0 %v365_v16  ;;  %v75_v42 = vrot.slane %v23_v31, %v74_v26  ;;  %v54_v44 = vld [vmem:[%s668_s1 + $0xd8] sm:$0xff]  ;;  %v83_v45 = vrot.slane %v24_v35, %v74_v26  ;;  %v164_v47 = vld [vmem:[%s670_s3 + $0x20] sm:$0xff]  ;;  %v165_v48 = vld [vmem:[%s670_s3 + $0x28] sm:$0xff] }
   0xb   :  { %391 = vmatpush3.bf16.msra.mxu1 %v390_v36 }
   0xc   :  { %392 = vmatprep.subr.bf16.mxu1 %v441_v8 }
   0xd   :  { %368 = vmatpush3.bf16.msra.mxu0 %v367_v22 }
   0xe   :  { %370 = vmatprep.subr.bf16.mxu0 %v369_v23 }
   0xf   :  { %10 = vsyncpa [#allocation3], 0  ;;  %v375_v49 = vpack.c.bf16 %v36_v41, %v35_v40  ;;  %v86_v50 = vsel %vm84_vm0, %v83_v45, %v75_v42  ;;  %v377_v51 = vpack.c.bf16 %v54_v44, %v53_v43  ;;  %v37_v52 = vld [vmem:[%s668_s1 + $0x50] sm:$0xff]  ;;  %v38_v53 = vld [vmem:[%s668_s1 + $0x58] sm:$0xff]  ;;  %394 = vmatpush3.bf16.msra.mxu1 %v393_v46  ;;  %v396_v56 = vpack.c.bf16 %v165_v48, %v164_v47 }
  0x10   :  { %153 = vmatprep.mubr.f32.mxu0 %v86_v50  ;;  %v55_v54 = vld [vmem:[%s668_s1 + $0xe0] sm:$0xff]  ;;  %v56_v55 = vld [vmem:[%s668_s1 + $0xe8] sm:$0xff]  ;;  %395 = vmatprep.subr.bf16.mxu1 %v441_v8  ;;  %v166_v57 = vld [vmem:[%s670_s3 + $0x30] sm:$0xff]  ;;  %v379_v59 = vpack.c.bf16 %v38_v53, %v37_v52  ;;  %v70_v5 = vsub.s32 0, %v512_v19  ;;  %vm442_vm1 = vmmov 0   ;;  %v443_v24 = vmov 0.0  }
  0x11   :  { %372 = vmatpush3.bf16.msra.mxu0 %v371_v34  ;;  %v167_v58 = vld [vmem:[%s670_s3 + $0x38] sm:$0xff]  ;;  %v381_v60 = vpack.c.bf16 %v56_v55, %v55_v54  ;;  %v39_v61 = vld [vmem:[%s668_s1 + $0x60] sm:$0xff]  ;;  %v40_v62 = vld [vmem:[%s668_s1 + $0x68] sm:$0xff]  ;;  %354 = vmatprep.mubr.msk.f32.mxu1 %vm442_vm1, %v443_v24 }
  0x12   :  { %374 = vmatprep.subr.bf16.mxu0 %v373_v39  ;;  %v57_v63 = vld [vmem:[%s668_s1 + $0xf0] sm:$0xff]  ;;  %v58_v0 = vld [vmem:[%s668_s1 + $0xf8] sm:$0xff]  ;;  %v399_v1 = vpack.c.bf16 %v167_v58, %v166_v57  ;;  %v168_v2 = vld [vmem:[%s670_s3 + $0x40] sm:$0xff]  ;;  %v383_v4 = vpack.c.bf16 %v40_v62, %v39_v61  ;;  %v71_v14 = vrot.slane %v23_v31, %v70_v5  ;;  %v79_v15 = vrot.slane %v24_v35, %v70_v5 }
  0x13   :  { %397 = vmatpush3.bf16.msra.mxu1 %v396_v56  ;;  %v169_v3 = vld [vmem:[%s670_s3 + $0x48] sm:$0xff]  ;;  %v385_v6 = vpack.c.bf16 %v58_v0, %v57_v63  ;;  %v41_v7 = vld [vmem:[%s668_s1 + $0x70] sm:$0xff]  ;;  %v42_v9 = vld [vmem:[%s668_s1 + $0x78] sm:$0xff] }
  0x14   :  { %398 = vmatprep.subr.bf16.mxu1 %v441_v8  ;;  %v402_v10 = vpack.c.bf16 %v169_v3, %v168_v2  ;;  %v170_v11 = vld [vmem:[%s670_s3 + $0x50] sm:$0xff]  ;;  %v171_v12 = vld [vmem:[%s670_s3 + $0x58] sm:$0xff]  ;;  %v387_v13 = vpack.c.bf16 %v42_v9, %v41_v7  ;;  %v85_v17 = vsel %vm84_vm0, %v79_v15, %v71_v14  ;;  %v172_v18 = vld [vmem:[%s670_s3 + $0x60] sm:$0xff] }
  0x15   :  { %376 = vmatpush3.bf16.msra.mxu0 %v375_v49  ;;  %v405_v16 = vpack.c.bf16 %v171_v12, %v170_v11  ;;  %v173_v19 = vld [vmem:[%s670_s3 + $0x68] sm:$0xff]  ;;  %v174_v21 = vld [vmem:[%s670_s3 + $0x70] sm:$0xff]  ;;  %v175_v22 = vld [vmem:[%s670_s3 + $0x78] sm:$0xff]  ;;  %s444_s3 = smov [#allocation2]  }
  0x16   :  { %378 = vmatprep.subr.bf16.mxu0 %v377_v51  ;;  %v408_v20 = vpack.c.bf16 %v173_v19, %v172_v18  ;;  %v411_v23 = vpack.c.bf16 %v175_v22, %v174_v21  ;;  %v268_v26 = vld [vmem:[%s669_s2] ss:$0 sm:$0xff]  ;;  %s260_s18 = sshll.u32 %s444_s3, 4  ;;  %s261_s18 = int_to_ptr.vmem [resolvable:$true] %s260_s18 }
  0x17   :  { %400 = vmatpush3.bf16.msra.mxu1 %v399_v1  ;;  %v269_v30 = vld [vmem:[%s671_s4] ss:$0 sm:$0xff]  ;;  %s417_s19 = scalar_lea.vmem %s261_s18, 32  ;;  %p422_p1 = scmp.lt.s32.totalorder %s261_s18, %s261_s18 }
  0x18   :  { %401 = vmatprep.subr.bf16.mxu1 %v441_v8  ;;  %p418_p0 = scmp.ne.s32.totalorder %s261_s18, %s417_s19  ;;  %p423_p2 = scmp.lt.s32.totalorder %s417_s19, %s417_s19 }
  0x19   :  { %380 = vmatpush3.bf16.msra.mxu0 %v379_v59 }
  0x1a   :  { %382 = vmatprep.subr.bf16.mxu0 %v381_v60  ;;  %p424_p3 = por %p423_p2, %p422_p1 }
  0x1b   :  { %403 = vmatpush3.bf16.msra.mxu1 %v402_v10 }
  0x1c   :  { %404 = vmatprep.subr.bf16.mxu1 %v441_v8  ;;  %p425_p4 = pnand %p424_p3, %p418_p0 }
  0x1d   :  { %384 = vmatpush3.bf16.msra.mxu0 %v383_v4 }
  0x1e   :  { %386 = vmatprep.subr.bf16.mxu0 %v385_v6 }
  0x1f   :  { %406 = vmatpush3.bf16.msra.mxu1 %v405_v16 }
  0x20   :  { %407 = vmatprep.subr.bf16.mxu1 %v441_v8 }
  0x21   :  { %388 = vmatpush3.bf16.msra.mxu0 %v387_v13 }
  0x23   :  { %409 = vmatpush3.bf16.msra.mxu1 %v408_v20 }
  0x24   :  { %154 = vmatmul.mubr.f32.vlgmr.msra.gmra.mrb[0].mxu0 %v85_v17  ;;  %410 = vmatprep.subr.bf16.mxu1 %v441_v8 }
  0x27   :  { %412 = vmatpush3.bf16.msra.mxu1 %v411_v23 }
  0xf7   :  { %v302_v25 = vpop.f32.mrb[0].mxu0 }
  0xf8   :  { %v303_v27 = vpop.f32.mrb[1].mxu0 }
  0xf9   :  { %v304_v8 = vadd.f32 %v303_v27, %v302_v25 }
  0xfb   :  { %v156_v28 = vadd.f32 %v304_v8, %v268_v26 }
  0xfd   :  { %v159_v29 = vmax.f32 %v156_v28, 0.0 }
  0xff   :  { %355 = vmatmul.mubr.f32.vlgmr.msra.gmra.mrb[0].mxu1 %v159_v29 }
 0x1d2   :  { %v249_v31 = vpop.f32.mrb[0].mxu1 }
 0x1d3   :  { %v250_v32 = vadd.f32 %v269_v30, %v249_v31  ;;  %v356_v33 = vpop.f32.mrb[1].mxu1 }
 0x1d5   :  { %253 = vst [vmem:[#allocation2] sm:$0x3] %v250_v32 }
 0x1d6   :  { %428 = shalt.err (!%p425_p4)
}
 0x1d7   :  { %s429_s21 = scalar_lea.hbm %s672_s5, 32 }
 0x1d8   :  { %p430_p5 = scmp.ne.s32.totalorder %s672_s5, %s429_s21  ;;  %p433_p6 = scmp.lt.u32.totalorder %s429_s21, %s672_s5 }
 0x1da   :  { %p435_p7 = pnand %p433_p6, %p430_p5 }
 0x1dc   :  { %438 = shalt.err (!%p435_p7)
}
 0x1dd   :  { %263 = dma.vmem_to_hbm [thread:$0]  %s261_s18, 32, %s672_s5, [#allocation3]  }
 0x1de   :  { %439 = dma.done.wait [#allocation3], 32  }
 0x1df   :  { %440 = vsyncadd [#allocation3], 4294967264 }
 0x1e0   :  { %267 = vsyncpa [#allocation3], 1 }

// kernel: plant_disease_model.5
= control target key start
LH: loop header
LB: loop body
LE: loop exit
PB: predicated region body
PF: predicated region fallthrough
CT: control target
= control target key end

     0   :  { %9 = vsyncpa [#allocation4], 0  ;;  %s9138_s0 = inlined_call_operand.vmem [shape: bf16[2,16,16,3], index: 0, kind: input, shape index: {}]   ;;  %s9139_s1 = inlined_call_operand.hbm [shape: bf16[9,3,32], index: 1, kind: input, shape index: {}]   ;;  %s9140_s2 = inlined_call_operand.hbm [shape: f32[1,32], index: 2, kind: input, shape index: {}]   ;;  %s9141_s3 = inlined_call_operand.hbm [shape: f32[1,32], index: 3, kind: input, shape index: {}]   ;;  %s9142_s4 = inlined_call_operand.vmem [shape: bf16[2,8,256], index: 4, kind: output, shape index: {}]  }
   0x1   :  { %10 = vsyncpa [#allocation6], 0  ;;  %s6705_s15 = smov 0  }
   0x2 LB: > { %s6668_s16 = smov [#allocation5]   ;;  %s6711_s18 = sadd.s32 4294967295, %s6666_s15   ;;  %s6666_s15 = sphi %s6705_s15, %s16_s15  }
   0x3   : > { %s162_s17 = sshll.u32 %s6668_s16, 4  ;;  %p5395_p0 = scmp.ge.s32.totalorder %s6666_s15, 1  ;;  %s163_s17 = int_to_ptr.vmem [resolvable:$true] %s162_s17 }
   0x4   : > { %p136_p1 = scmp.lt.s32.totalorder %s6666_s15, 3  ;;  %p9143_p2 = scmp.eq.s32.totalorder %s6711_s18, 0 }
   0x5   : > { %s6669_s20 = smov [#allocation3]   ;;  %s6670_s23 = smov [#allocation7]  }
   0x6   : > { %p6716_p3 = pnand %p5395_p0, %p136_p1  ;;  %s148_s21 = sshll.u32 %s6669_s20, 4  ;;  %s6728_s21 = int_to_ptr.vmem [resolvable:$true] %s148_s21 }
   0x7   : > { %s173_s24 = sshll.u32 %s6670_s23, 4  ;;  %s6568_s27 = scalar_lea.hbm %s9140_s2, 16  ;;  %s6730_s24 = int_to_ptr.vmem [resolvable:$true] %s173_s24 }
   0x8   : > { %s9261_s19 = scalar_select %p6716_p3, 1, 0 }
   0x9   : > { %p6497_p4 = pneg %p6716_p3  ;;  %p6569_p6 = scmp.ne.s32.totalorder %s9140_s2, %s6568_s27 }
   0xa   : > { %p6575_p10 = scmp.lt.u32.totalorder %s6568_s27, %s9140_s2 }
   0xb   : > { %p6724_p5 = pnand %p9143_p2, %p6497_p4 }
   0xd   : > { %p6740_p7 = pneg %p6724_p5 }
   0xf   : > { %p6571_p8 = pnand %p6740_p7, %p6569_p6 }
  0x11   : > { %p6572_p9 = pneg %p6571_p8 }
  0x13   : > { %p6577_p11 = pnand %p6575_p10, %p6572_p9 }
  0x15   : > { %6580 = shalt.err (!%p6577_p11)
}
  0x16   : > { %s6581_s7 = scalar_lea.vmem %s163_s17, 16  ;;  %s6588_s8 = scalar_lea.vmem %s163_s17, 32 }
  0x17   : > { %p6582_p12 = scmp.ne.s32.totalorder %s163_s17, %s6581_s7  ;;  %p6589_p1 = scmp.lt.s32.totalorder %s163_s17, %s163_s17 }
  0x18   : > { %p6590_p4 = scmp.lt.s32.totalorder %s6588_s8, %s6581_s7 }
  0x19   : > { %p6584_p13 = pnand %p6582_p12, %p6740_p7 }
  0x1a   : > { %p6591_p2 = por %p6590_p4, %p6589_p1 }
  0x1b   : > { %p6585_p0 = pneg %p6584_p13 }
  0x1d   : > { %p6592_p3 = pnand %p6591_p2, %p6585_p0 }
  0x1f   : > { %6595 = shalt.err (!%p6592_p3)
}
  0x20   : > { %6503 = dma.hbm_to_vmem [thread:$0]  (!%p6724_p5), %s9140_s2, 16, %s163_s17, [#allocation6]  }
  0x21   : > { %s6596_s13 = scalar_lea.hbm %s9139_s1, 288 }
  0x22   : > { %p6597_p6 = scmp.ne.s32.totalorder %s9139_s1, %s6596_s13  ;;  %p6603_p2 = scmp.lt.u32.totalorder %s6596_s13, %s9139_s1 }
  0x24   : > { %p6599_p8 = pnand %p6597_p6, %p6740_p7 }
  0x26   : > { %p6600_p9 = pneg %p6599_p8 }
  0x28   : > { %p6605_p3 = pnand %p6603_p2, %p6600_p9 }
  0x2a   : > { %6608 = shalt.err (!%p6605_p3)
}
  0x2b   : > { %s6609_s17 = scalar_lea.vmem %s6728_s21, 288  ;;  %p6617_p13 = scmp.lt.s32.totalorder %s6728_s21, %s6728_s21 }
  0x2c   : > { %p6610_p10 = scmp.ne.s32.totalorder %s6728_s21, %s6609_s17  ;;  %p6618_p0 = scmp.lt.s32.totalorder %s6609_s17, %s6609_s17 }
  0x2e   : > { %p6612_p11 = pnand %p6610_p10, %p6740_p7  ;;  %p6619_p1 = por %p6618_p0, %p6617_p13 }
  0x30   : > { %p6613_p12 = pneg %p6612_p11 }
  0x32   : > { %p6620_p4 = pnand %p6619_p1, %p6613_p12 }
  0x34   : > { %6623 = shalt.err (!%p6620_p4)
}
  0x35   : > { %s6671_s25 = smov 32   ;;  %s6672_s26 = smov 2  }
  0x36   : > { %6500 = dma.hbm_to_vmem [thread:$0]  (!%p6724_p5), %s9139_s1, 288, %s6728_s21, [#allocation4], %s6671_s25, %s6671_s25, %s6672_s26  }
  0x37   : > { %s6624_s6 = scalar_lea.hbm %s9141_s3, 16 }
  0x38   : > { %p6625_p6 = scmp.ne.s32.totalorder %s9141_s3, %s6624_s6  ;;  %p6631_p2 = scmp.lt.u32.totalorder %s6624_s6, %s9141_s3 }
  0x3a   : > { %p6627_p8 = pnand %p6625_p6, %p6740_p7 }
  0x3c   : > { %p6628_p9 = pneg %p6627_p8 }
  0x3e   : > { %p6633_p3 = pnand %p6631_p2, %p6628_p9 }
  0x40   : > { %6636 = shalt.err (!%p6633_p3)
}
  0x41   : > { %s6637_s21 = scalar_lea.vmem %s6730_s24, 16  ;;  %s6644_s11 = scalar_lea.vmem %s6730_s24, 32 }
  0x42   : > { %p6638_p10 = scmp.ne.s32.totalorder %s6730_s24, %s6637_s21  ;;  %p6645_p13 = scmp.lt.s32.totalorder %s6730_s24, %s6730_s24 }
  0x43   : > { %p6646_p0 = scmp.lt.s32.totalorder %s6644_s11, %s6637_s21 }
  0x44   : > { %p6640_p11 = pnand %p6638_p10, %p6740_p7 }
  0x45   : > { %p6647_p1 = por %p6646_p0, %p6645_p13 }
  0x46   : > { %p6641_p12 = pneg %p6640_p11 }
  0x48   : > { %p6648_p4 = pnand %p6647_p1, %p6641_p12 }
  0x4a   : > { %6651 = shalt.err (!%p6648_p4)
}
  0x4b   : > { %6506 = dma.hbm_to_vmem [thread:$0]  (!%p6724_p5), %s9141_s3, 16, %s6730_s24, [#allocation6]  }
  0x4c   : > { %p9264_p6 = scmp.ne.s32.totalorder %s9261_s19, 0 }
  0x4e   : > { %194 = sbr.rel (%p9264_p6) target bundleno = 945 (0x3b1), region = 36 }
  0x55   : > { %p9265_p7 = scmp.eq.s32.totalorder %s6711_s18, 0 }
  0x57   : > { %6657 = dma.done.wait (%p9265_p7), [#allocation4], 288   ;;  %p9266_p8 = pmov %p9265_p7 }
  0x58   : > { %p9267_p9 = pmov %p9265_p7 }
  0x59   : > { %6659 = vsyncadd (%p9266_p8), [#allocation4], 4294967008 }
  0x5a   : > { %6661 = dma.done.wait (%p9267_p9), [#allocation6], 32   ;;  %p9268_p2 = pmov %p9265_p7 }
  0x5b   : > { %vm239_vm0 = vcmask 19456   ;;  %vm992_vm1 = vcmask 1040384   ;;  %v6673_v0 = vmov 0   ;;  %p228_p5 = scmp.lt.s32.totalorder %s6711_s18, 1  ;;  %vm993_vm2 = vcmask 1041408   ;;  %s6677_s14 = smov 32  }
  0x5c   : > { %6663 = vsyncadd (%p9268_p2), [#allocation6], 4294967264  ;;  %241 = vst.msk [vmem:[#allocation2 + $0x4] sm:$0xf] %vm239_vm0, %v6673_v0  ;;  %v6674_v1 = vmov 65535   ;;  %vm943_vm3 = vcmask 23552  }
  0x5d   : > { %242 = vst.msk [vmem:[#allocation2 + $0x8] sm:$0xf] %vm239_vm0, %v6673_v0  ;;  %243 = vst.msk [vmem:[#allocation2 + $0xc] sm:$0xf] %vm239_vm0, %v6673_v0  ;;  %v994_v2 = vsel %vm992_vm1, 4294967295, %v6674_v1  ;;  %s9584_s18 = smov (!%p228_p5, %s6711_s18), 1 }
  0x5e   : > { %251 = vst.msk [vmem:[#allocation2 + $0x18] sm:$0xf] %vm239_vm0, %v6673_v0  ;;  %252 = vst.msk [vmem:[#allocation2 + $0x1c] sm:$0xf] %vm239_vm0, %v6673_v0  ;;  %v6872_v3 = vsel %vm993_vm2, %v994_v2, 0  ;;  %s5765_s19 = sshll.u32 %s9584_s18, 7 }
  0x5f   : > { %253 = vst.msk [vmem:[#allocation2 + $0x20] sm:$0xf] %vm239_vm0, %v6673_v0  ;;  %258 = vst.msk [vmem:[#allocation2 + $0x2c] sm:$0xf] %vm239_vm0, %v6673_v0  ;;  %s6878_s30 = scalar_lea.vmem %s9138_s0, %s5765_s19  ;;  %vm245_vm4 = vsmask.f32 256 }
  0x60   : > { %259 = vst.msk [vmem:[#allocation2 + $0x30] sm:$0xf] %vm239_vm0, %v6673_v0  ;;  %260 = vst.msk [vmem:[#allocation2 + $0x34] sm:$0xf] %vm239_vm0, %v6673_v0  ;;  %vm506_vm5 = vsmask.f32 4368 }
  0x61   : > { %265 = vst.msk [vmem:[#allocation2 + $0x40] sm:$0xf] %vm239_vm0, %v6673_v0  ;;  %266 = vst.msk [vmem:[#allocation2 + $0x44] sm:$0xf] %vm239_vm0, %v6673_v0  ;;  %v862_v4 = vld [vmem:[#allocation3 + $0x2] sm:$0x3] }
  0x62   : > { %267 = vst.msk [vmem:[#allocation2 + $0x48] sm:$0xf] %vm239_vm0, %v6673_v0  ;;  %272 = vst.msk [vmem:[#allocation2 + $0x54] sm:$0xf] %vm239_vm0, %v6673_v0  ;;  %v2168_v5 = vld [vmem:[#allocation3 + $0x8] sm:$0x3]  ;;  %v997_v7 = vand.u32 %v6872_v3, %v862_v4 }
  0x63   : > { %273 = vst.msk [vmem:[#allocation2 + $0x58] sm:$0xf] %vm239_vm0, %v6673_v0  ;;  %274 = vst.msk [vmem:[#allocation2 + $0x5c] sm:$0xf] %vm239_vm0, %v6673_v0  ;;  %v369_v6 = vld [vmem:[%s6878_s30] sm:$0xf]  ;;  %v6883_v8 = vand.u32 %v2168_v5, %v6872_v3 }
  0x64   : > { %279 = vst.msk [vmem:[#allocation2 + $0x68] sm:$0xf] %vm239_vm0, %v6673_v0  ;;  %280 = vst.msk [vmem:[#allocation2 + $0x6c] sm:$0xf] %vm239_vm0, %v6673_v0  ;;  %v6885_v9 = vld [vmem:[#allocation2 + $0x8] sm:$0xf]  ;;  %5921 = vmatprep.subr.bf16.mxu1 %v997_v7 }
  0x65   : > { %281 = vst.msk [vmem:[#allocation2 + $0x70] sm:$0xf] %vm239_vm0, %v6673_v0  ;;  %286 = vst.msk [vmem:[#allocation2 + $0x7c] sm:$0xf] %vm239_vm0, %v6673_v0  ;;  %v436_v10 = vld [vmem:[#allocation2 + $0xc] sm:$0xf]  ;;  %6057 = vmatprep.subr.bf16.mxu0 %v6883_v8  ;;  %5922 = vmatpush3.bf16.msra.mxu1 %v997_v7 }
  0x66   : > { %287 = vst.msk [vmem:[#allocation2 + $0x80] sm:$0xf] %vm239_vm0, %v6673_v0  ;;  %288 = vst.msk [vmem:[#allocation2 + $0x84] sm:$0xf] %vm239_vm0, %v6673_v0  ;;  %v370_v11 = vld [vmem:[%s6878_s30 + $0x4] sm:$0xf]  ;;  %v5424_v17 = vcombine.low %v6885_v9, %v436_v10  ;;  %6058 = vmatpush3.bf16.msra.mxu0 %v6883_v8 }
  0x67   : > { %293 = vst.msk [vmem:[#allocation2 + $0x90] sm:$0xf] %vm239_vm0, %v6673_v0  ;;  %294 = vst.msk [vmem:[#allocation2 + $0x94] sm:$0xf] %vm239_vm0, %v6673_v0  ;;  %v514_v12 = vshrl.u32 %v6885_v9, 16  ;;  %v517_v13 = vshll.u32 %v6885_v9, 16 }
  0x68   : > { %295 = vst.msk [vmem:[#allocation2 + $0x98] sm:$0xf] %vm239_vm0, %v6673_v0  ;;  %300 = vst.msk [vmem:[#allocation2 + $0xa4] sm:$0xf] %vm239_vm0, %v6673_v0  ;;  %v523_v14 = vshrl.u32 %v436_v10, 16  ;;  %v526_v15 = vshll.u32 %v436_v10, 16  ;;  %5923 = vmatprep.mubr.msk.bf16.mxu1 %vm943_vm3, %v5424_v17 }
  0x69   : > { %301 = vst.msk [vmem:[#allocation2 + $0xa8] sm:$0xf] %vm239_vm0, %v6673_v0  ;;  %302 = vst.msk [vmem:[#allocation2 + $0xac] sm:$0xf] %vm239_vm0, %v6673_v0  ;;  %v860_v16 = vld [vmem:[#allocation3] sm:$0x3] }
  0x6a   : > { %307 = vst.msk [vmem:[#allocation2 + $0xb8] sm:$0xf] %vm239_vm0, %v6673_v0  ;;  %308 = vst.msk [vmem:[#allocation2 + $0xbc] sm:$0xf] %vm239_vm0, %v6673_v0  ;;  %v6895_v18 = vand.u32 %v6872_v3, %v860_v16  ;;  %v2388_v19 = vld [vmem:[#allocation3 + $0xa] sm:$0x3] }
  0x6b   : > { %309 = vst.msk [vmem:[#allocation2 + $0xc0] sm:$0xf] %vm239_vm0, %v6673_v0  ;;  %314 = vst.msk [vmem:[#allocation2 + $0xcc] sm:$0xf] %vm239_vm0, %v6673_v0  ;;  %v371_v20 = vld [vmem:[%s6878_s30 + $0x8] sm:$0xf]  ;;  %v6914_v29 = vand.u32 %v2388_v19, %v6872_v3 }
  0x6c   : > { %315 = vst.msk [vmem:[#allocation2 + $0xd0] sm:$0xf] %vm239_vm0, %v6673_v0  ;;  %316 = vst.msk [vmem:[#allocation2 + $0xd4] sm:$0xf] %vm239_vm0, %v6673_v0  ;;  %v372_v21 = vld [vmem:[%s6878_s30 + $0xc] sm:$0xf]  ;;  %5955 = vmatprep.subr.bf16.mxu1 %v6895_v18 }
  0x6d   : > { %321 = vst.msk [vmem:[#allocation2 + $0xe0] sm:$0xf] %vm239_vm0, %v6673_v0  ;;  %322 = vst.msk [vmem:[#allocation2 + $0xe4] sm:$0xf] %vm239_vm0, %v6673_v0  ;;  %v516_v22 = vrot.slane %v514_v12, 7  ;;  %v525_v23 = vrot.slane %v523_v14, 7  ;;  %6091 = vmatprep.subr.bf16.mxu0 %v6914_v29 }
  0x6e   : > { %323 = vst.msk [vmem:[#allocation2 + $0xe8] sm:$0xf] %vm239_vm0, %v6673_v0  ;;  %328 = vst.msk [vmem:[#allocation2 + $0xf4] sm:$0xf] %vm239_vm0, %v6673_v0  ;;  %v6900_v24 = vrot.slane %v514_v12, 4  ;;  %v6902_v25 = vrot.slane %v517_v13, 5 }
  0x6f   : > { %329 = vst.msk [vmem:[#allocation2 + $0xf8] sm:$0xf] %vm239_vm0, %v6673_v0  ;;  %330 = vst.msk [vmem:[#allocation2 + $0xfc] sm:$0xf] %vm239_vm0, %v6673_v0  ;;  %v373_v26 = vld [vmem:[%s6878_s30 + $0x10] sm:$0xf]  ;;  %v528_v36 = vor.u32 %v526_v15, %v525_v23  ;;  %v6950_v51 = vor.u32 %v517_v13, %v516_v22 }
  0x70   : > { %335 = vst.msk [vmem:[#allocation2 + $0x108] sm:$0xf] %vm239_vm0, %v6673_v0  ;;  %336 = vst.msk [vmem:[#allocation2 + $0x10c] sm:$0xf] %vm239_vm0, %v6673_v0  ;;  %v6908_v27 = vrot.slane %v526_v15, 5  ;;  %v6910_v28 = vrot.slane %v523_v14, 4 }
  0x71   : > { %337 = vst.msk [vmem:[#allocation2 + $0x110] sm:$0xf] %vm239_vm0, %v6673_v0  ;;  %342 = vst.msk [vmem:[#allocation2 + $0x11c] sm:$0xf] %vm239_vm0, %v6673_v0  ;;  %v374_v30 = vld [vmem:[%s6878_s30 + $0x14] sm:$0xf] }
  0x72   : > { %343 = vst.msk [vmem:[#allocation2 + $0x120] sm:$0xf] %vm239_vm0, %v6673_v0  ;;  %344 = vst.msk [vmem:[#allocation2 + $0x124] sm:$0xf] %vm239_vm0, %v6673_v0  ;;  %v375_v31 = vld [vmem:[%s6878_s30 + $0x18] sm:$0xf] }
  0x73   : > { %349 = vst.msk [vmem:[#allocation2 + $0x130] sm:$0xf] %vm239_vm0, %v6673_v0  ;;  %350 = vst.msk [vmem:[#allocation2 + $0x134] sm:$0xf] %vm239_vm0, %v6673_v0  ;;  %v521_v32 = vrot.slane %v516_v22, 4  ;;  %vm244_vm7 = vcmask 16384  }
  0x74   : > { %351 = vst.msk [vmem:[#allocation2 + $0x138] sm:$0xf] %vm239_vm0, %v6673_v0  ;;  %356 = vst.msk [vmem:[#allocation2 + $0x144] sm:$0xf] %vm239_vm0, %v6673_v0  ;;  %v376_v34 = vld [vmem:[%s6878_s30 + $0x1c] sm:$0xf] }
  0x75   : > { %357 = vst.msk [vmem:[#allocation2 + $0x148] sm:$0xf] %vm239_vm0, %v6673_v0  ;;  %358 = vst.msk [vmem:[#allocation2 + $0x14c] sm:$0xf] %vm239_vm0, %v6673_v0  ;;  %v377_v35 = vld [vmem:[%s6878_s30 + $0x20] sm:$0xf] }
  0x76   : > { %363 = vst.msk [vmem:[#allocation2 + $0x158] sm:$0xf] %vm239_vm0, %v6673_v0  ;;  %364 = vst.msk [vmem:[#allocation2 + $0x15c] sm:$0xf] %vm239_vm0, %v6673_v0  ;;  %v378_v38 = vld [vmem:[%s6878_s30 + $0x24] sm:$0xf] }
  0x77   : > { %365 = vst.msk [vmem:[#allocation2 + $0x160] sm:$0xf] %vm239_vm0, %v6673_v0  ;;  %9269 = vst [vmem:[#allocation10_spill] sm:$0xff] %v6883_v8  ;;  %v379_v39 = vld [vmem:[%s6878_s30 + $0x28] sm:$0xf]  ;;  %vm4700_vm12 = vcmask 1041409  }
  0x78   : > { %402 = vst.msk [vmem:[#allocation2 + $0x1c] sm:$0xf] %vm239_vm0, %v369_v6  ;;  %403 = vst.msk [vmem:[#allocation2 + $0x20] sm:$0xf] %vm239_vm0, %v370_v11  ;;  %v380_v40 = vld [vmem:[%s6878_s30 + $0x2c] sm:$0xf] }
  0x79   : > { %9270 = vst [vmem:[#allocation11_spill] sm:$0xff] %v6900_v24  ;;  %9271 = vst [vmem:[#allocation12_spill] sm:$0xff] %v6902_v25  ;;  %v381_v42 = vld [vmem:[%s6878_s30 + $0x30] sm:$0xf]  ;;  %v382_v49 = vld [vmem:[%s6878_s30 + $0x34] sm:$0xf] }
  0x7a   : > { %404 = vst.msk [vmem:[#allocation2 + $0x30] sm:$0xf] %vm239_vm0, %v371_v20  ;;  %405 = vst.msk [vmem:[#allocation2 + $0x34] sm:$0xf] %vm239_vm0, %v372_v21  ;;  %v383_v50 = vld [vmem:[%s6878_s30 + $0x38] sm:$0xf] }
  0x7b   : > { %9272 = vst [vmem:[#allocation13_spill] sm:$0xff] %v6908_v27  ;;  %9273 = vst [vmem:[#allocation14_spill] sm:$0xff] %v6910_v28  ;;  %vm1420_vm8 = vsmask.f32 3328  ;;  %vm1421_vm9 = vsmask.f32 7440 }
  0x7c   : > { %406 = vst.msk [vmem:[#allocation2 + $0x44] sm:$0xf] %vm239_vm0, %v373_v26  ;;  %407 = vst.msk [vmem:[#allocation2 + $0x48] sm:$0xf] %vm239_vm0, %v374_v30  ;;  %v387_v8 = vld [vmem:[%s6878_s30 + $0x48] sm:$0xf] }
  0x7d   : > { %408 = vst.msk [vmem:[#allocation2 + $0x58] sm:$0xf] %vm239_vm0, %v375_v31  ;;  %409 = vst.msk [vmem:[#allocation2 + $0x5c] sm:$0xf] %vm239_vm0, %v376_v34  ;;  %vm4702_vm13 = vcmask 1043459   ;;  %vm4704_vm14 = vcmask 1045509  }
  0x7e   : > { %410 = vst.msk [vmem:[#allocation2 + $0x6c] sm:$0xf] %vm239_vm0, %v377_v35  ;;  %411 = vst.msk [vmem:[#allocation2 + $0x70] sm:$0xf] %vm239_vm0, %v378_v38  ;;  %vm4706_vm15 = vcmask 1047559   ;;  %s6678_s16 = smov 96  }
  0x7f   : > { %v439_v41 = vld [vmem:[#allocation2 + $0x1c] sm:$0xf]  ;;  %412 = vst.msk [vmem:[#allocation2 + $0x80] sm:$0xf] %vm239_vm0, %v379_v39  ;;  %413 = vst.msk [vmem:[#allocation2 + $0x84] sm:$0xf] %vm239_vm0, %v380_v40 }
  0x80   : > { %vm6939_vm6 = vmor %vm245_vm4, %vm506_vm5  ;;  %v6943_v44 = vld [vmem:[#allocation2 + $0x20] sm:$0xf]  ;;  %v536_v45 = vshrl.u32 %v439_v41, 16  ;;  %v539_v46 = vshll.u32 %v439_v41, 16  ;;  %414 = vst.msk [vmem:[#allocation2 + $0x94] sm:$0xf] %vm239_vm0, %v381_v42 }
  0x81   : > { %v545_v47 = vshrl.u32 %v6943_v44, 16  ;;  %v5425_v48 = vcombine.low %v439_v41, %v6943_v44  ;;  %v9150_v53 = vshll.u32 %v6943_v44, 16  ;;  %v6955_v54 = vld [vmem:[#allocation2 + $0x30] sm:$0xf]  ;;  %415 = vst.msk [vmem:[#allocation2 + $0x98] sm:$0xf] %vm239_vm0, %v382_v49  ;;  %v6961_v55 = vsel %vm6939_vm6, %v521_v32, %v528_v36  ;;  %vm7131_vm10 = vmand %vm244_vm7, %vm245_vm4 }
  0x82   : > { %v6952_v52 = vrot.slane %v536_v45, 7  ;;  %416 = vst.msk [vmem:[#allocation2 + $0xa8] sm:$0xf] %vm239_vm0, %v383_v50  ;;  %v6964_v57 = vrot.slane %v536_v45, 4  ;;  %v6967_v58 = vld [vmem:[#allocation2 + $0x34] sm:$0xf]  ;;  %vm7221_vm11 = vmor %vm1420_vm8, %vm1421_vm9 }
  0x83   : > { %v547_v56 = vrot.slane %v545_v47, 7  ;;  %5924 = vmatmul.mubr.msk.bf16.vlgmr.msra.gmra.mrb[0].mxu1 %vm943_vm3, %v5425_v48  ;;  %6059 = vmatprep.mubr.msk.bf16.mxu0 %vm943_vm3, %v5425_v48  ;;  %v558_v59 = vshrl.u32 %v6955_v54, 16  ;;  %v9148_v60 = vshll.u32 %v6955_v54, 16  ;;  %v6971_v61 = vrot.slane %v539_v46, 5  ;;  %v6986_v6 = vld [vmem:[#allocation2 + $0x44] sm:$0xf] }
  0x84   : > { %v6973_v62 = vrot.slane %v545_v47, 4  ;;  %5956 = vmatpush3.bf16.msra.mxu1 %v6895_v18  ;;  %v567_v63 = vshrl.u32 %v6967_v58, 16  ;;  %v9147_v0 = vshll.u32 %v6967_v58, 16  ;;  %v6979_v1 = vor.u32 %v539_v46, %v6952_v52  ;;  %9277 = vst [vmem:[#allocation16_spill] sm:$0xff] %v6986_v6  ;;  %v6988_v7 = vld [vmem:[#allocation2 + $0x48] sm:$0xf] }
  0x85   : > { %v6984_v4 = vcombine.low %v6955_v54, %v6967_v58  ;;  %v1451_v5 = vrot.slane %v558_v59, 4  ;;  %9278 = vst [vmem:[#allocation17_spill] sm:$0xff] %v6988_v7  ;;  %v6992_v9 = vor.u32 %v9150_v53, %v547_v56  ;;  %v1452_v10 = vrot.slane %v9148_v60, 5  ;;  %v7017_v21 = vld [vmem:[#allocation2 + $0x58] sm:$0xf]  ;;  %s6679_s20 = smov 64  }
  0x86   : > { %v6998_v11 = vrot.slane %v9147_v0, 5  ;;  %v1457_v12 = vrot.slane %v567_v63, 4  ;;  %v7000_v13 = vrot.slane %v558_v59, 7  ;;  %v580_v14 = vshrl.u32 %v6986_v6, 16  ;;  %9280 = vst [vmem:[#allocation19_spill] sm:$0xff] %v7017_v21  ;;  %s5766_s23 = sshll.u32 %s9584_s18, 3 }
  0x87   : > { %9276 = vst [vmem:[#allocation15_spill] sm:$0xff] %v6984_v4  ;;  %6060 = vmatmul.mubr.msk.bf16.vlgmr.msra.gmra.mrb[0].mxu0 %vm943_vm3, %v6984_v4  ;;  %5927 = vmatprep.mubr.msk.bf16.mxu1 %vm943_vm3, %v6984_v4  ;;  %v9146_v15 = vshll.u32 %v6986_v6, 16  ;;  %v589_v16 = vshrl.u32 %v6988_v7, 16  ;;  %v7009_v17 = vrot.slane %v567_v63, 7  ;;  %v1453_v18 = vor.u32 %v1452_v10, %v1451_v5  ;;  %v7019_v22 = vld [vmem:[#allocation2 + $0x5c] sm:$0xf]  ;;  %s237_s26 = scalar_lea.vmem %s9142_s4, %s5766_s23 }
  0x88   : > { %v1458_v19 = vor.u32 %v1457_v12, %v6998_v11  ;;  %6092 = vmatpush3.bf16.msra.mxu0 %v6914_v29  ;;  %v7015_v20 = vcombine.low %v6986_v6, %v6988_v7  ;;  %9281 = vst [vmem:[#allocation20_spill] sm:$0xff] %v7019_v22  ;;  %v7021_v23 = vrot.slane %v580_v14, 7  ;;  %v602_v31 = vshrl.u32 %v7017_v21, 16  ;;  %v7039_v36 = vld [vmem:[#allocation2 + $0x6c] sm:$0xf] }
  0x89   : > { %v7023_v26 = vrot.slane %v589_v16, 7  ;;  %v7027_v32 = vrot.slane %v1453_v18, 4  ;;  %v7031_v29 = vrot.slane %v580_v14, 4  ;;  %v7035_v35 = vrot.slane %v9146_v15, 5  ;;  %9283 = vst [vmem:[#allocation22_spill] sm:$0xff] %v7039_v36 }
  0x8a   : > { %9279 = vst [vmem:[#allocation18_spill] sm:$0xff] %v7015_v20  ;;  %v7029_v34 = vrot.slane %v1458_v19, 4  ;;  %6063 = vmatprep.mubr.msk.bf16.mxu0 %vm943_vm3, %v7015_v20  ;;  %v7043_v38 = vrot.slane %v589_v16, 4  ;;  %v9145_v39 = vshll.u32 %v7017_v21, 16  ;;  %v611_v40 = vshrl.u32 %v7019_v22, 16 }
  0x8b   : > { %9282 = vst [vmem:[#allocation21_spill] sm:$0xff] %v7023_v26  ;;  %5928 = vmatmul.mubr.msk.bf16.gmra.mrb[4].mxu1 %vm943_vm3, %v7015_v20  ;;  %v7049_v41 = vcombine.low %v7017_v21, %v7019_v22  ;;  %v7051_v42 = vld [vmem:[#allocation2 + $0x70] sm:$0xf]  ;;  %v7053_v45 = vrot.slane %v602_v31, 7  ;;  %v624_v46 = vshrl.u32 %v7039_v36, 16  ;;  %v9149_v47 = vshll.u32 %v7039_v36, 16 }
  0x8c   : > { %v633_v48 = vshrl.u32 %v7051_v42, 16  ;;  %v7058_v49 = vld [vmem:[#allocation2 + $0x80] sm:$0xf]  ;;  %v7060_v50 = vld [vmem:[#allocation2 + $0x84] sm:$0xf]  ;;  %v7063_v59 = vrot.slane %v611_v40, 7  ;;  %v7084_v19 = vcombine.low %v7039_v36, %v7051_v42 }
  0x8d   : > { %9284 = vst [vmem:[#allocation23_spill] sm:$0xff] %v7049_v41  ;;  %9285 = vst [vmem:[#allocation24_spill] sm:$0xff] %v7053_v45  ;;  %v384_v56 = vld [vmem:[%s6878_s30 + $0x3c] sm:$0xf]  ;;  %v7066_v5 = vrot.slane %v602_v31, 4  ;;  %v7070_v10 = vrot.slane %v9145_v39, 5  ;;  %5931 = vmatprep.mubr.msk.bf16.mxu1 %vm943_vm3, %v7049_v41 }
  0x8e   : > { %9286 = vst [vmem:[#allocation25_spill] sm:$0xff] %v7058_v49  ;;  %9287 = vst [vmem:[#allocation26_spill] sm:$0xff] %v7060_v50  ;;  %v7074_v12 = vld [vmem:[#allocation2 + $0x94] sm:$0xf]  ;;  %v7077_v14 = vrot.slane %v611_v40, 4  ;;  %v7079_v16 = vrot.slane %v624_v46, 7 }
  0x8f   : > { %9288 = vst [vmem:[#allocation27_spill] sm:$0xff] %v7063_v59  ;;  %9289 = vst [vmem:[#allocation28_spill] sm:$0xff] %v7074_v12  ;;  %v385_v31 = vld [vmem:[%s6878_s30 + $0x40] sm:$0xf]  ;;  %6064 = vmatmul.mubr.msk.bf16.gmra.mrb[4].mxu0 %vm943_vm3, %v7049_v41  ;;  %v7089_v37 = vrot.slane %v633_v48, 7  ;;  %v7091_v33 = vrot.slane %v624_v46, 4 }
  0x90   : > { %417 = vst.msk [vmem:[#allocation2 + $0xac] sm:$0xf] %vm239_vm0, %v384_v56  ;;  %9290 = vst [vmem:[#allocation29_spill] sm:$0xff] %v7079_v16  ;;  %v646_v56 = vshrl.u32 %v7058_v49, 16  ;;  %v9153_v40 = vshll.u32 %v7058_v49, 16  ;;  %v7099_v15 = vrot.slane %v9149_v47, 5  ;;  %6067 = vmatprep.mubr.msk.bf16.mxu0 %vm943_vm3, %v7084_v19 }
  0x91   : > { %9291 = vst [vmem:[#allocation30_spill] sm:$0xff] %v7084_v19  ;;  %9292 = vst [vmem:[#allocation31_spill] sm:$0xff] %v7089_v37  ;;  %v386_v39 = vld [vmem:[%s6878_s30 + $0x44] sm:$0xf]  ;;  %v7101_v0 = vrot.slane %v633_v48, 4  ;;  %v655_v46 = vshrl.u32 %v7060_v50, 16  ;;  %v7115_v48 = vcombine.low %v7058_v49, %v7060_v50 }
  0x92   : > { %418 = vst.msk [vmem:[#allocation2 + $0xbc] sm:$0xf] %vm239_vm0, %v385_v31  ;;  %v7106_v60 = vld [vmem:[#allocation2 + $0x98] sm:$0xf]  ;;  %v668_v2 = vshrl.u32 %v7074_v12, 16  ;;  %v7110_v31 = vrot.slane %v646_v56, 7 }
  0x93   : > { %9293 = vst [vmem:[#allocation32_spill] sm:$0xff] %v7106_v60  ;;  %419 = vst.msk [vmem:[#allocation2 + $0xc0] sm:$0xf] %vm239_vm0, %v386_v39  ;;  %v7118_v63 = vld [vmem:[#allocation2 + $0xa8] sm:$0xf]  ;;  %v7120_v30 = vrot.slane %v655_v46, 7  ;;  %5932 = vmatmul.mubr.msk.bf16.gmra.mrb[8].mxu1 %vm943_vm3, %v7084_v19  ;;  %v7144_v4 = vcombine.low %v7074_v12, %v7106_v60 }
  0x94   : > { %9294 = vst [vmem:[#allocation33_spill] sm:$0xff] %v7110_v31  ;;  %9295 = vst [vmem:[#allocation34_spill] sm:$0xff] %v7115_v48  ;;  %v7122_v53 = vrot.slane %v646_v56, 4  ;;  %v7126_v39 = vrot.slane %v9153_v40, 5  ;;  %v677_v41 = vshrl.u32 %v7106_v60, 16  ;;  %v7137_v47 = vrot.slane %v655_v46, 4  ;;  %5935 = vmatprep.mubr.msk.bf16.mxu1 %vm943_vm3, %v7115_v48 }
  0x95   : > { %9296 = vst [vmem:[#allocation35_spill] sm:$0xff] %v7118_v63  ;;  %9297 = vst [vmem:[#allocation36_spill] sm:$0xff] %v7120_v30  ;;  %v254_v20 = vld [vmem:[#allocation2 + $0x24] sm:$0x1]  ;;  %v7139_v56 = vrot.slane %v668_v2, 7  ;;  %v7149_v28 = vrot.slane %v668_v2, 4 }
  0x96   : > { %9301 = vst [vmem:[#allocation38_spill] sm:$0xff] %v7144_v4  ;;  %v9302_v27 = vshll.u32 %v7074_v12, 16  ;;  %v690_v24 = vshrl.u32 %v7118_v63, 16  ;;  %420 = vst.msk [vmem:[#allocation2 + $0xd0] sm:$0xf] %vm239_vm0, %v387_v8  ;;  %v7160_v25 = vrot.slane %v677_v41, 7 }
  0x97   : > { %9300 = vst [vmem:[#allocation37_spill] sm:$0xff] %v7139_v56  ;;  %v7155_v46 = vld [vmem:[#allocation2 + $0xac] sm:$0xf]  ;;  %v7162_v56 = vrot.slane %v677_v41, 4  ;;  %v255_v2 = vsel %vm7131_vm10, 0, %v254_v20  ;;  %v1439_v41 = vor.u32 %v6971_v61, %v6964_v57  ;;  %6068 = vmatmul.mubr.msk.bf16.gmra.mrb[8].mxu0 %vm943_vm3, %v7115_v48  ;;  %v9307_v31 = vshll.u32 %v7118_v63, 16 }
  0x98   : > { %v7153_v19 = vrot.slane %v9302_v27, 5  ;;  %9303 = vst [vmem:[#allocation39_spill] sm:$0xff] %v7160_v25  ;;  %v699_v30 = vshrl.u32 %v7155_v46, 16  ;;  %v2614_v12 = vld [vmem:[#allocation3 + $0xc] sm:$0x3]  ;;  %v7168_v49 = vrot.slane %v690_v24, 7  ;;  %v7173_v40 = vcombine.low %v7118_v63, %v7155_v46  ;;  %6071 = vmatprep.mubr.msk.bf16.mxu0 %vm943_vm3, %v7144_v4 }
  0x99   : > { %v388_v27 = vld [vmem:[%s6878_s30 + $0x4c] sm:$0xf]  ;;  %v7175_v8 = vld [vmem:[#allocation2 + $0xbc] sm:$0xf]  ;;  %256 = vst [vmem:[#allocation2 + $0x24] sm:$0x1] %v255_v2 }
  0x9a   : > { %9304 = vst [vmem:[#allocation40_spill] sm:$0xff] %v7168_v49  ;;  %9305 = vst [vmem:[#allocation41_spill] sm:$0xff] %v7173_v40  ;;  %v261_v25 = vld [vmem:[#allocation2 + $0x38] sm:$0x1]  ;;  %v7182_v20 = vrot.slane %v690_v24, 4  ;;  %v7186_v49 = vrot.slane %v9307_v31, 5 }
  0x9b   : > { %9306 = vst [vmem:[#allocation42_spill] sm:$0xff] %v7175_v8  ;;  %421 = vst.msk [vmem:[#allocation2 + $0xd4] sm:$0xf] %vm239_vm0, %v388_v27  ;;  %v7188_v37 = vld [vmem:[#allocation2 + $0xc0] sm:$0xf]  ;;  %v712_v2 = vshrl.u32 %v7175_v8, 16  ;;  %5936 = vmatmul.mubr.msk.bf16.gmra.mrb[12].mxu1 %vm943_vm3, %v7144_v4 }
  0x9c   : > { %v7194_v57 = vrot.slane %v699_v30, 7  ;;  %v7196_v61 = vrot.slane %v699_v30, 4  ;;  %v721_v24 = vshrl.u32 %v7188_v37, 16  ;;  %v389_v48 = vld [vmem:[%s6878_s30 + $0x50] sm:$0xf]  ;;  %v7205_v16 = vrot.slane %v1439_v41, 4  ;;  %5939 = vmatprep.mubr.msk.bf16.mxu1 %vm943_vm3, %v7173_v40 }
  0x9d   : > { %v7201_v31 = vrot.slane %v712_v2, 7  ;;  %v7203_v63 = vrot.slane %v712_v2, 4  ;;  %v9310_v36 = vshll.u32 %v6943_v44, 16  ;;  %v390_v21 = vld [vmem:[%s6878_s30 + $0x54] sm:$0xf]  ;;  %v7226_v41 = vand.u32 %v2614_v12, %v6872_v3  ;;  %v9459_v43 = vld [vmem:[#allocation15_spill] sm:$0xff] }
  0x9e   : > { %9308 = vst [vmem:[#allocation43_spill] sm:$0xff] %v7194_v57  ;;  %422 = vst.msk [vmem:[#allocation2 + $0xe4] sm:$0xf] %vm239_vm0, %v389_v48  ;;  %v7213_v30 = vrot.slane %v721_v24, 7  ;;  %v9312_v57 = vshll.u32 %v7175_v8, 16  ;;  %v262_v44 = vsel %vm7131_vm10, 0, %v261_v25  ;;  %v7235_v48 = vcombine.low %v7175_v8, %v7188_v37 }
  0x9f   : > { %9309 = vst [vmem:[#allocation44_spill] sm:$0xff] %v7201_v31  ;;  %v7209_v59 = vrot.slane %v9310_v36, 5  ;;  %423 = vst.msk [vmem:[#allocation2 + $0xe8] sm:$0xf] %vm239_vm0, %v390_v21  ;;  %v268_v36 = vld [vmem:[#allocation2 + $0x4c] sm:$0x1]  ;;  %6125 = vmatprep.subr.bf16.mxu0 %v7226_v41  ;;  %6072 = vmatmul.mubr.msk.bf16.gmra.mrb[12].mxu0 %vm943_vm3, %v7173_v40 }
  0xa0   : > { %9311 = vst [vmem:[#allocation45_spill] sm:$0xff] %v7213_v30  ;;  %v7217_v45 = vrot.slane %v9312_v57, 5  ;;  %9315 = vst [vmem:[#allocation46_spill] sm:$0xff] %v7235_v48  ;;  %v7237_v57 = vrot.slane %v721_v24, 4  ;;  %v7241_v27 = vld [vmem:[#allocation2 + $0xd0] sm:$0xf] }
  0xa1   : > { %v1444_v12 = vor.u32 %v6973_v62, %v7209_v59  ;;  %263 = vst [vmem:[#allocation2 + $0x38] sm:$0x1] %v262_v44  ;;  %9316 = vst [vmem:[#allocation47_spill] sm:$0xff] %v7241_v27  ;;  %v269_v25 = vsel %vm7131_vm10, 0, %v268_v36  ;;  %v275_v21 = vld [vmem:[#allocation2 + $0x60] sm:$0x1]  ;;  %v1467_v62 = vor.u32 %v7035_v35, %v7031_v29  ;;  %v1442_v31 = vsel %vm7221_vm11, %v7205_v16, %v7209_v59 }
  0xa2   : > { %v734_v4 = vshrl.u32 %v7241_v27, 16  ;;  %270 = vst [vmem:[#allocation2 + $0x4c] sm:$0x1] %v269_v25  ;;  %v9317_v44 = vshll.u32 %v6988_v7, 16  ;;  %v391_v36 = vld [vmem:[%s6878_s30 + $0x58] sm:$0xf]  ;;  %v1456_v25 = vsel %vm7221_vm11, %v7027_v32, %v6998_v11  ;;  %v1481_v59 = vor.u32 %v7070_v10, %v7066_v5 }
  0xa3   : > { %v441_v8 = vld [vmem:[#allocation2 + $0x24] sm:$0x1]  ;;  %v1445_v26 = vrot.slane %v1444_v12, 4  ;;  %v7265_v24 = vld [vmem:[#allocation2 + $0xd4] sm:$0xf]  ;;  %v276_v29 = vsel %vm7131_vm10, 0, %v275_v21  ;;  %5940 = vmatmul.mubr.msk.bf16.gmra.mrb[16].mxu1 %vm943_vm3, %v7235_v48 }
  0xa4   : > { %v7254_v30 = vrot.slane %v9317_v44, 5  ;;  %424 = vst.msk [vmem:[#allocation2 + $0xf8] sm:$0xf] %vm239_vm0, %v391_v36  ;;  %v1447_v35 = vshll.u32 %v441_v8, 16  ;;  %v743_v44 = vshrl.u32 %v7265_v24, 16  ;;  %v7278_v11 = vrot.slane %v734_v4, 7 }
  0xa5   : > { %277 = vst [vmem:[#allocation2 + $0x60] sm:$0x1] %v276_v29  ;;  %v392_v16 = vld [vmem:[%s6878_s30 + $0x5c] sm:$0xf]  ;;  %v7283_v8 = vcombine.low %v7241_v27, %v7265_v24  ;;  %v7285_v21 = vrot.slane %v1467_v62, 4  ;;  %v7291_v29 = vrot.slane %v734_v4, 4 }
  0xa6   : > { %9318 = vst [vmem:[#allocation48_spill] sm:$0xff] %v7278_v11  ;;  %425 = vst.msk [vmem:[#allocation2 + $0xfc] sm:$0xf] %vm239_vm0, %v392_v16  ;;  %v393_v5 = vld [vmem:[%s6878_s30 + $0x60] sm:$0xf]  ;;  %v1449_v10 = vrot.slane %v1447_v35, 5  ;;  %v1472_v4 = vor.u32 %v7043_v38, %v7254_v30 }
  0xa7   : > { %9319 = vst [vmem:[#allocation49_spill] sm:$0xff] %v7283_v8  ;;  %v7289_v36 = vrot.slane %v743_v44, 7  ;;  %v9321_v12 = vshll.u32 %v7241_v27, 16  ;;  %v7297_v32 = vld [vmem:[#allocation2 + $0xe4] sm:$0xf]  ;;  %v7300_v11 = vrot.slane %v743_v44, 4  ;;  %v1470_v44 = vsel %vm7221_vm11, %v7285_v21, %v7254_v30  ;;  %5943 = vmatprep.mubr.msk.bf16.mxu1 %vm943_vm3, %v7283_v8 }
  0xa8   : > { %9322 = vst [vmem:[#allocation51_spill] sm:$0xff] %v7297_v32  ;;  %426 = vst.msk [vmem:[#allocation2 + $0x10c] sm:$0xf] %vm239_vm0, %v393_v5  ;;  %v7302_v62 = vld [vmem:[#allocation2 + $0xe8] sm:$0xf]  ;;  %v756_v16 = vshrl.u32 %v7297_v32, 16 }
  0xa9   : > { %9320 = vst [vmem:[#allocation50_spill] sm:$0xff] %v7289_v36  ;;  %v7295_v40 = vrot.slane %v9321_v12, 5  ;;  %9323 = vst [vmem:[#allocation52_spill] sm:$0xff] %v7302_v62  ;;  %v1450_v36 = vsel %vm7221_vm11, %v1445_v26, %v1449_v10  ;;  %v445_v12 = vld [vmem:[#allocation2 + $0x38] sm:$0x1]  ;;  %v765_v27 = vshrl.u32 %v7302_v62, 16  ;;  %v7323_v26 = vcombine.low %v7297_v32, %v7302_v62 }
  0xaa   : > { %v1482_v5 = vrot.slane %v1481_v59, 4  ;;  %v394_v7 = vld [vmem:[%s6878_s30 + $0x64] sm:$0xf]  ;;  %v7318_v35 = vcombine.low %v1442_v31, %v1450_v36  ;;  %v1461_v6 = vshll.u32 %v445_v12, 16  ;;  %v449_v10 = vld [vmem:[#allocation2 + $0x4c] sm:$0x1] }
  0xab   : > { %9325 = vst [vmem:[#allocation54_spill] sm:$0xff] %v7323_v26  ;;  %427 = vst.msk [vmem:[#allocation2 + $0x110] sm:$0xf] %vm239_vm0, %v394_v7  ;;  %v7328_v30 = vrot.slane %v756_v16, 7  ;;  %v7330_v59 = vrot.slane %v765_v27, 7  ;;  %v7332_v21 = vrot.slane %v756_v16, 4  ;;  %5944 = vmatmul.mubr.msk.bf16.gmra.mrb[20].mxu1 %vm943_vm3, %v7323_v26 }
  0xac   : > { %9324 = vst [vmem:[#allocation53_spill] sm:$0xff] %v7318_v35  ;;  %v9329_v31 = vshll.u32 %v7297_v32, 16  ;;  %v7338_v12 = vld [vmem:[#allocation2 + $0xf8] sm:$0xf]  ;;  %6093 = vmatprep.mubr.msk.bf16.mxu0 %vm943_vm3, %v7318_v35  ;;  %v1463_v38 = vrot.slane %v1461_v6, 5  ;;  %v1473_v7 = vrot.slane %v1472_v4, 4 }
  0xad   : > { %9326 = vst [vmem:[#allocation55_spill] sm:$0xff] %v7328_v30  ;;  %9327 = vst [vmem:[#allocation56_spill] sm:$0xff] %v7330_v59  ;;  %v1475_v48 = vshll.u32 %v449_v10, 16  ;;  %v453_v62 = vld [vmem:[#allocation2 + $0x60] sm:$0x1]  ;;  %v9332_v8 = vshll.u32 %v7019_v22, 16 }
  0xae   : > { %9328 = vst [vmem:[#allocation57_spill] sm:$0xff] %v7332_v21  ;;  %v7336_v36 = vrot.slane %v9329_v31, 5  ;;  %9331 = vst [vmem:[#allocation59_spill] sm:$0xff] %v7338_v12  ;;  %v7344_v59 = vrot.slane %v765_v27, 4  ;;  %v1489_v16 = vshll.u32 %v453_v62, 16  ;;  %v778_v31 = vshrl.u32 %v7338_v12, 16 }
  0xaf   : > { %v1483_v30 = vrot.slane %v9332_v8, 5  ;;  %v7346_v21 = vld [vmem:[#allocation2 + $0xfc] sm:$0xf]  ;;  %v1464_v6 = vsel %vm7221_vm11, %v7029_v34, %v1463_v38  ;;  %v1477_v4 = vrot.slane %v1475_v48, 5  ;;  %v1509_v27 = vor.u32 %v7126_v39, %v7122_v53  ;;  %v7359_v22 = vld [vmem:[#allocation2 + $0x10c] sm:$0xf] }
  0xb0   : > { %9330 = vst [vmem:[#allocation58_spill] sm:$0xff] %v7336_v36  ;;  %9333 = vst [vmem:[#allocation60_spill] sm:$0xff] %v7344_v59  ;;  %v7356_v8 = vcombine.low %v1456_v25, %v1464_v6  ;;  %v1491_v62 = vrot.slane %v1489_v16, 5  ;;  %v787_v35 = vshrl.u32 %v7346_v21, 16  ;;  %v282_v32 = vld [vmem:[#allocation2 + $0x74] sm:$0x1]  ;;  %v1523_v36 = vor.u32 %v7153_v19, %v7149_v28 }
  0xb1   : > { %v1486_v10 = vor.u32 %v7077_v14, %v1483_v30  ;;  %9335 = vst [vmem:[#allocation62_spill] sm:$0xff] %v7359_v22  ;;  %v395_v59 = vld [vmem:[%s6878_s30 + $0x68] sm:$0xf]  ;;  %v1478_v34 = vsel %vm7221_vm11, %v1473_v7, %v1477_v4  ;;  %v1484_v14 = vsel %vm7221_vm11, %v1482_v5, %v1483_v30  ;;  %v7370_v53 = vcombine.low %v7338_v12, %v7346_v21  ;;  %v396_v39 = vld [vmem:[%s6878_s30 + $0x6c] sm:$0xf] }
  0xb2   : > { %9334 = vst [vmem:[#allocation61_spill] sm:$0xff] %v7356_v8  ;;  %428 = vst.msk [vmem:[#allocation2 + $0x120] sm:$0xf] %vm239_vm0, %v395_v59  ;;  %v397_v25 = vld [vmem:[%s6878_s30 + $0x70] sm:$0xf]  ;;  %6094 = vmatmul.mubr.msk.bf16.vlgmr.msra.gmra.mrb[0].mxu0 %vm943_vm3, %v7356_v8  ;;  %v7377_v28 = vcombine.low %v1470_v44, %v1478_v34  ;;  %v7379_v19 = vrot.slane %v778_v31, 7 }
  0xb3   : > { %v1487_v48 = vrot.slane %v1486_v10, 4  ;;  %9336 = vst [vmem:[#allocation63_spill] sm:$0xff] %v7370_v53  ;;  %v7381_v38 = vrot.slane %v787_v35, 7  ;;  %v7384_v30 = vld [vmem:[#allocation2 + $0x110] sm:$0xf]  ;;  %6126 = vmatpush3.bf16.msra.mxu0 %v7226_v41  ;;  %v7393_v59 = vrot.slane %v778_v31, 4  ;;  %5947 = vmatprep.mubr.msk.bf16.mxu1 %vm943_vm3, %v7370_v53 }
  0xb4   : > { %9337 = vst [vmem:[#allocation64_spill] sm:$0xff] %v7377_v28  ;;  %9338 = vst [vmem:[#allocation65_spill] sm:$0xff] %v7379_v19  ;;  %v289_v7 = vld [vmem:[#allocation2 + $0x88] sm:$0x1]  ;;  %v800_v16 = vshrl.u32 %v7359_v22, 16  ;;  %v9198_v6 = vshll.u32 %v7359_v22, 16  ;;  %6097 = vmatprep.mubr.msk.bf16.mxu0 %vm943_vm3, %v7377_v28 }
  0xb5   : > { %9339 = vst [vmem:[#allocation66_spill] sm:$0xff] %v7381_v38  ;;  %429 = vst.msk [vmem:[#allocation2 + $0x124] sm:$0xf] %vm239_vm0, %v396_v39  ;;  %v1492_v44 = vsel %vm7221_vm11, %v1487_v48, %v1491_v62  ;;  %v398_v4 = vld [vmem:[%s6878_s30 + $0x74] sm:$0xf]  ;;  %v9341_v41 = vshll.u32 %v7338_v12, 16 }
  0xb6   : > { %430 = vst.msk [vmem:[#allocation2 + $0x134] sm:$0xf] %vm239_vm0, %v397_v25  ;;  %v7400_v10 = vcombine.low %v1484_v14, %v1492_v44  ;;  %v7408_v62 = vrot.slane %v787_v35, 4  ;;  %v809_v31 = vshrl.u32 %v7384_v30, 16  ;;  %431 = vst.msk [vmem:[#allocation2 + $0x138] sm:$0xf] %vm239_vm0, %v398_v4  ;;  %v7417_v14 = vcombine.low %v7359_v22, %v7384_v30 }
  0xb7   : > { %v7406_v34 = vrot.slane %v9341_v41, 5  ;;  %v296_v48 = vld [vmem:[#allocation2 + $0x9c] sm:$0x1]  ;;  %v7412_v39 = vrot.slane %v800_v16, 7  ;;  %v283_v44 = vsel %vm7131_vm10, 0, %v282_v32  ;;  %v7421_v41 = vrot.slane %v800_v16, 4 }
  0xb8   : > { %9340 = vst [vmem:[#allocation67_spill] sm:$0xff] %v7400_v10  ;;  %9343 = vst [vmem:[#allocation69_spill] sm:$0xff] %v7417_v14  ;;  %v7425_v35 = vrot.slane %v9198_v6, 5  ;;  %v9344_v4 = vor.u32 %v7099_v15, %v7091_v33  ;;  %v9345_v25 = vshll.u32 %v7051_v42, 16  ;;  %v290_v26 = vsel %vm7131_vm10, 0, %v289_v7  ;;  %5948 = vmatmul.mubr.msk.bf16.gmra.mrb[24].mxu1 %vm943_vm3, %v7417_v14  ;;  %v9461_v2 = vld [vmem:[#allocation23_spill] sm:$0xff] }
  0xb9   : > { %9342 = vst [vmem:[#allocation68_spill] sm:$0xff] %v7412_v39  ;;  %284 = vst [vmem:[#allocation2 + $0x74] sm:$0x1] %v283_v44  ;;  %v7438_v32 = vrot.slane %v1509_v27, 4  ;;  %v9346_v16 = vshll.u32 %v7060_v50, 16  ;;  %v297_v44 = vsel %vm7131_vm10, 0, %v296_v48 }
  0xba   : > { %v7430_v5 = vrot.slane %v9344_v4, 4  ;;  %v7434_v53 = vrot.slane %v9345_v25, 5  ;;  %v7446_v6 = vrot.slane %v809_v31, 7  ;;  %v7448_v33 = vrot.slane %v809_v31, 4  ;;  %291 = vst [vmem:[#allocation2 + $0x88] sm:$0x1] %v290_v26  ;;  %6098 = vmatmul.mubr.msk.bf16.gmra.mrb[4].mxu0 %vm943_vm3, %v7400_v10 }
  0xbb   : > { %v7442_v28 = vrot.slane %v9346_v16, 5  ;;  %v7456_v7 = vld [vmem:[#allocation2 + $0x120] sm:$0xf]  ;;  %298 = vst [vmem:[#allocation2 + $0x9c] sm:$0x1] %v297_v44  ;;  %v7464_v16 = vrot.slane %v1523_v36, 4 }
  0xbc   : > { %9347 = vst [vmem:[#allocation70_spill] sm:$0xff] %v7446_v6  ;;  %v1498_v15 = vsel %vm7221_vm11, %v7430_v5, %v7434_v53  ;;  %v1500_v27 = vor.u32 %v7101_v0, %v7434_v53  ;;  %9348 = vst [vmem:[#allocation71_spill] sm:$0xff] %v7456_v7  ;;  %v7460_v48 = vld [vmem:[#allocation2 + $0x124] sm:$0xf]  ;;  %v822_v31 = vshrl.u32 %v7456_v7, 16  ;;  %v9352_v5 = vshll.u32 %v7106_v60, 16 }
  0xbd   : > { %v1514_v25 = vor.u32 %v7137_v47, %v7442_v28  ;;  %9349 = vst [vmem:[#allocation72_spill] sm:$0xff] %v7460_v48  ;;  %v1512_v0 = vsel %vm7221_vm11, %v7438_v32, %v7442_v28  ;;  %v831_v26 = vshrl.u32 %v7460_v48, 16  ;;  %v7475_v47 = vcombine.low %v7456_v7, %v7460_v48  ;;  %v7477_v53 = vld [vmem:[#allocation2 + $0x134] sm:$0xf]  ;;  %v7486_v32 = vld [vmem:[#allocation2 + $0x138] sm:$0xf] }
  0xbe   : > { %9351 = vst [vmem:[#allocation74_spill] sm:$0xff] %v7477_v53  ;;  %v1525_v36 = vrot.slane %v9352_v5, 5  ;;  %v1501_v44 = vrot.slane %v1500_v27, 4  ;;  %v7483_v10 = vrot.slane %v822_v31, 7  ;;  %v7490_v8 = vrot.slane %v822_v31, 4 }
  0xbf   : > { %9350 = vst [vmem:[#allocation73_spill] sm:$0xff] %v7475_v47  ;;  %v1515_v4 = vrot.slane %v1514_v25, 4  ;;  %5951 = vmatprep.mubr.msk.bf16.mxu1 %vm943_vm3, %v7475_v47  ;;  %v9354_v22 = vshll.u32 %v7456_v7, 16  ;;  %v9214_v5 = vshrl.u32 %v7477_v53, 16  ;;  %v303_v25 = vld [vmem:[#allocation2 + $0xb0] sm:$0x1]  ;;  %v7506_v7 = vcombine.low %v7477_v53, %v7486_v32 }
  0xc0   : > { %9353 = vst [vmem:[#allocation75_spill] sm:$0xff] %v7483_v10  ;;  %v457_v14 = vld [vmem:[#allocation2 + $0x74] sm:$0x1]  ;;  %v7498_v10 = vrot.slane %v831_v26, 7  ;;  %v7500_v28 = vrot.slane %v831_v26, 4  ;;  %v1526_v27 = vsel %vm7221_vm11, %v7464_v16, %v1525_v36  ;;  %v9358_v39 = vshll.u32 %v7477_v53, 16 }
  0xc1   : > { %v7494_v6 = vrot.slane %v9354_v22, 5  ;;  %v1503_v31 = vshll.u32 %v457_v14, 16  ;;  %v7510_v22 = vrot.slane %v9214_v5, 4  ;;  %v438_v26 = vld [vmem:[#allocation2 + $0x18] sm:$0xf]  ;;  %v9359_v14 = vshrl.u32 %v7486_v32, 16  ;;  %5952 = vmatmul.mubr.msk.bf16.gmra.mrb[28].mxu1 %vm943_vm3, %v7506_v7 }
  0xc2   : > { %9355 = vst [vmem:[#allocation76_spill] sm:$0xff] %v7498_v10  ;;  %9356 = vst [vmem:[#allocation77_spill] sm:$0xff] %v7500_v28  ;;  %v434_v10 = vld [vmem:[#allocation2 + $0x4] sm:$0xf]  ;;  %v461_v38 = vld [vmem:[#allocation2 + $0x88] sm:$0x1]  ;;  %v1528_v60 = vor.u32 %v7162_v56, %v1525_v36  ;;  %v1537_v5 = vor.u32 %v7186_v49, %v7182_v20 }
  0xc3   : > { %9357 = vst [vmem:[#allocation78_spill] sm:$0xff] %v7510_v22  ;;  %v7517_v12 = vrot.slane %v9358_v39, 5  ;;  %v7521_v47 = vrot.slane %v9359_v14, 4  ;;  %v465_v19 = vld [vmem:[#allocation2 + $0x9c] sm:$0x1]  ;;  %v1505_v22 = vrot.slane %v1503_v31, 5 }
  0xc4   : > { %v1517_v50 = vshll.u32 %v461_v38, 16  ;;  %v1531_v16 = vshll.u32 %v465_v19, 16  ;;  %v304_v28 = vsel %vm7131_vm10, 0, %v303_v25  ;;  %v1529_v48 = vrot.slane %v1528_v60, 4  ;;  %v317_v31 = vld [vmem:[#allocation2 + $0xd8] sm:$0x1] }
  0xc5   : > { %9360 = vst [vmem:[#allocation79_spill] sm:$0xff] %v7521_v47  ;;  %305 = vst [vmem:[#allocation2 + $0xb0] sm:$0x1] %v304_v28  ;;  %v7528_v39 = vrot.slane %v1537_v5, 4  ;;  %v9361_v53 = vshll.u32 %v7155_v46, 16  ;;  %v509_v47 = vshrl.u32 %v434_v10, 16  ;;  %v1506_v56 = vsel %vm7221_vm11, %v1501_v44, %v1505_v22 }
  0xc6   : > { %v1519_v36 = vrot.slane %v1517_v50, 5  ;;  %v1533_v49 = vrot.slane %v1531_v16, 5  ;;  %v531_v20 = vshrl.u32 %v438_v26, 16  ;;  %v7536_v38 = vcombine.low %v1498_v15, %v1506_v56  ;;  %v310_v28 = vld [vmem:[#allocation2 + $0xc4] sm:$0x1] }
  0xc7   : > { %v7532_v14 = vrot.slane %v9361_v53, 5  ;;  %v5408_v10 = vrot.slane %v509_v47, 11  ;;  %v1648_v53 = vld [vmem:[#allocation3 + $0x4] sm:$0x3]  ;;  %v9362_v5 = vrot.slane %v6952_v52, 4  ;;  %vm5291_vm1 = vcmask 523264  }
  0xc8   : > { %v1520_v50 = vsel %vm7221_vm11, %v1515_v4, %v1519_v36  ;;  %v1534_v15 = vsel %vm7221_vm11, %v1529_v48, %v1533_v49  ;;  %v5409_v44 = vrot.slane %v531_v20, 11  ;;  %6101 = vmatprep.mubr.msk.bf16.mxu0 %vm943_vm3, %v7536_v38  ;;  %v442_v22 = vld [vmem:[#allocation2 + $0x2c] sm:$0xf]  ;;  %v399_v16 = vld [vmem:[%s6878_s30 + $0x78] sm:$0xf]  ;;  %vm5293_vm2 = vcmask 785408  }
  0xc9   : > { %v1540_v60 = vsel %vm7221_vm11, %v7528_v39, %v7532_v14  ;;  %v1542_v19 = vor.u32 %v7196_v61, %v7532_v14  ;;  %v551_v25 = vsel %vm6939_vm6, %v9362_v5, %v6992_v9  ;;  %v7557_v61 = vcombine.low %v1512_v0, %v1520_v50  ;;  %432 = vst.msk [vmem:[#allocation2 + $0x148] sm:$0xf] %vm239_vm0, %v399_v16  ;;  %v9372_v14 = vld [vmem:[#allocation57_spill] sm:$0xff] }
  0xca   : > { %v7559_v47 = vcombine.low %v1526_v27, %v1534_v15  ;;  %v520_v48 = vsel %vm6939_vm6, %v5408_v10, %v6950_v51  ;;  %v542_v52 = vsel %vm6939_vm6, %v5409_v44, %v6979_v1  ;;  %v1746_v9 = vand.u32 %v1648_v53, %v6872_v3  ;;  %v400_v27 = vld [vmem:[%s6878_s30 + $0x7c] sm:$0xf] }
  0xcb   : > { %v1543_v4 = vrot.slane %v1542_v19, 4  ;;  %v5456_v26 = vcombine.low %v520_v48, %v6961_v55  ;;  %v311_v0 = vsel %vm7131_vm10, 0, %v310_v28  ;;  %6102 = vmatmul.mubr.msk.bf16.gmra.mrb[8].mxu0 %vm943_vm3, %v7557_v61  ;;  %v7575_v56 = vcombine.low %v542_v52, %v551_v25  ;;  %433 = vst.msk [vmem:[#allocation2 + $0x14c] sm:$0xf] %vm239_vm0, %v400_v27  ;;  %v446_v28 = vld [vmem:[#allocation2 + $0x40] sm:$0xf] }
  0xcc   : > { %312 = vst [vmem:[#allocation2 + $0xc4] sm:$0x1] %v311_v0  ;;  %v1551_v51 = vor.u32 %v7217_v45, %v7203_v63  ;;  %v9363_v55 = vshll.u32 %v7188_v37, 16  ;;  %v318_v1 = vsel %vm7131_vm10, 0, %v317_v31  ;;  %6105 = vmatprep.mubr.msk.bf16.mxu0 %vm943_vm3, %v7559_v47  ;;  %v469_v49 = vld [vmem:[#allocation2 + $0xb0] sm:$0x1]  ;;  %v1565_v45 = vor.u32 %v7295_v40, %v7291_v29  ;;  %5989 = vmatprep.subr.bf16.mxu1 %v1746_v9 }
  0xcd   : > { %5957 = vmatprep.mubr.msk.bf16.mxu1 %vm943_vm3, %v5456_v26  ;;  %319 = vst [vmem:[#allocation2 + $0xd8] sm:$0x1] %v318_v1  ;;  %v9364_v63 = vshll.u32 %v7265_v24, 16  ;;  %v553_v19 = vshrl.u32 %v442_v22, 16  ;;  %v9365_v10 = vshll.u32 %v6955_v54, 16  ;;  %v1545_v50 = vshll.u32 %v469_v49, 16 }
  0xce   : > { %v7581_v36 = vrot.slane %v9363_v55, 5  ;;  %v1552_v15 = vrot.slane %v1551_v51, 4  ;;  %v565_v5 = vrot.slane %v7000_v13, 4  ;;  %v1566_v25 = vrot.slane %v1565_v45, 4  ;;  %5958 = vmatmul.mubr.msk.bf16.vlgmr.msra.gmra.mrb[0].mxu1 %vm943_vm3, %v7575_v56  ;;  %v9367_v51 = vld [vmem:[#allocation16_spill] sm:$0xff] }
  0xcf   : > { %v7594_v20 = vrot.slane %v9364_v63, 5  ;;  %v563_v53 = vor.u32 %v9365_v10, %v7000_v13  ;;  %v5410_v29 = vrot.slane %v553_v19, 11  ;;  %v9366_v31 = vshll.u32 %v6967_v58, 16  ;;  %v324_v13 = vld [vmem:[#allocation2 + $0xec] sm:$0x1]  ;;  %5990 = vmatpush3.bf16.msra.mxu1 %v1746_v9  ;;  %v9369_v63 = vld [vmem:[#allocation21_spill] sm:$0xff] }
  0xd0   : > { %v1556_v44 = vor.u32 %v7237_v57, %v7581_v36  ;;  %v1547_v54 = vrot.slane %v1545_v50, 5  ;;  %v1554_v22 = vsel %vm7221_vm11, %v1552_v15, %v7581_v36  ;;  %v575_v26 = vshrl.u32 %v446_v28, 16  ;;  %v331_v36 = vld [vmem:[#allocation2 + $0x100] sm:$0x1] }
  0xd1   : > { %v1570_v40 = vor.u32 %v7300_v11, %v7594_v20  ;;  %v572_v48 = vor.u32 %v9366_v31, %v7009_v17  ;;  %v1568_v11 = vsel %vm7221_vm11, %v1566_v25, %v7594_v20  ;;  %v564_v58 = vsel %vm6939_vm6, %v5410_v29, %v563_v53 }
  0xd2   : > { %v1557_v57 = vrot.slane %v1556_v44, 4  ;;  %v1548_v0 = vsel %vm7221_vm11, %v1543_v4, %v1547_v54  ;;  %v5411_v27 = vrot.slane %v575_v26, 11  ;;  %v9368_v9 = vshll.u32 %v9367_v51, 16  ;;  %v9370_v4 = vld [vmem:[#allocation17_spill] sm:$0xff] }
  0xd3   : > { %v1571_v52 = vrot.slane %v1570_v40, 4  ;;  %v573_v17 = vsel %vm6939_vm6, %v565_v5, %v572_v48  ;;  %v7631_v1 = vcombine.low %v1540_v60, %v1548_v0  ;;  %v473_v49 = vld [vmem:[#allocation2 + $0xc4] sm:$0x1]  ;;  %v587_v45 = vrot.slane %v7021_v23, 4  ;;  %v450_v5 = vld [vmem:[#allocation2 + $0x54] sm:$0xf] }
  0xd4   : > { %v7621_v16 = vcombine.low %v564_v58, %v573_v17  ;;  %v585_v55 = vor.u32 %v9368_v9, %v7021_v23  ;;  %v9371_v20 = vshll.u32 %v9370_v4, 16  ;;  %v325_v10 = vsel %vm7131_vm10, 0, %v324_v13  ;;  %v477_v28 = vld [vmem:[#allocation2 + $0xd8] sm:$0x1]  ;;  %v9373_v60 = vld [vmem:[#allocation58_spill] sm:$0xff]  ;;  %v9374_v23 = vld [vmem:[#allocation52_spill] sm:$0xff] }
  0xd5   : > { %v1559_v53 = vshll.u32 %v473_v49, 16  ;;  %326 = vst [vmem:[#allocation2 + $0xec] sm:$0x1] %v325_v10  ;;  %v1579_v50 = vor.u32 %v9373_v60, %v9372_v14  ;;  %v9375_v15 = vshll.u32 %v9374_v23, 16  ;;  %6106 = vmatmul.mubr.msk.bf16.gmra.mrb[12].mxu0 %vm943_vm3, %v7631_v1  ;;  %v1573_v25 = vshll.u32 %v477_v28, 16  ;;  %v9376_v13 = vld [vmem:[#allocation60_spill] sm:$0xff] }
  0xd6   : > { %v594_v19 = vor.u32 %v9371_v20, %v9369_v63  ;;  %5961 = vmatprep.mubr.msk.bf16.mxu1 %vm943_vm3, %v7621_v16  ;;  %v586_v39 = vsel %vm6939_vm6, %v5411_v27, %v585_v55  ;;  %v332_v29 = vsel %vm7131_vm10, 0, %v331_v36  ;;  %v1593_v31 = vor.u32 %v7406_v34, %v7393_v59  ;;  %v9378_v36 = vld [vmem:[#allocation24_spill] sm:$0xff]  ;;  %v9379_v49 = vld [vmem:[#allocation19_spill] sm:$0xff] }
  0xd7   : > { %v7647_v44 = vrot.slane %v9375_v15, 5  ;;  %v1561_v48 = vrot.slane %v1559_v53, 5  ;;  %v1580_v26 = vrot.slane %v1579_v50, 4  ;;  %333 = vst [vmem:[#allocation2 + $0x100] sm:$0x1] %v332_v29  ;;  %v1575_v17 = vrot.slane %v1573_v25, 5 }
  0xd8   : > { %v595_v40 = vsel %vm6939_vm6, %v587_v45, %v594_v19  ;;  %v7661_v0 = vrot.slane %v1593_v31, 4  ;;  %v9377_v27 = vshll.u32 %v7346_v21, 16  ;;  %v597_v9 = vshrl.u32 %v450_v5, 16  ;;  %v454_v4 = vld [vmem:[#allocation2 + $0x68] sm:$0xf]  ;;  %v9382_v60 = vld [vmem:[#allocation20_spill] sm:$0xff] }
  0xd9   : > { %v7657_v54 = vcombine.low %v586_v39, %v595_v40  ;;  %v1584_v58 = vor.u32 %v9376_v13, %v7647_v44  ;;  %v1562_v55 = vsel %vm7221_vm11, %v1557_v57, %v1561_v48  ;;  %v1582_v59 = vsel %vm7221_vm11, %v1580_v26, %v7647_v44  ;;  %v9381_v14 = vld [vmem:[#allocation27_spill] sm:$0xff]  ;;  %v338_v15 = vld [vmem:[#allocation2 + $0x114] sm:$0x1]  ;;  %v9384_v25 = vld [vmem:[#allocation29_spill] sm:$0xff] }
  0xda   : > { %v7665_v51 = vrot.slane %v9377_v27, 5  ;;  %v9380_v45 = vshll.u32 %v9379_v49, 16  ;;  %v7677_v20 = vcombine.low %v1554_v22, %v1562_v55  ;;  %v1576_v19 = vsel %vm7221_vm11, %v1571_v52, %v1575_v17  ;;  %v9385_v40 = vld [vmem:[#allocation22_spill] sm:$0xff]  ;;  %v9387_v13 = vld [vmem:[#allocation31_spill] sm:$0xff] }
  0xdb   : > { %5962 = vmatmul.mubr.msk.bf16.gmra.mrb[4].mxu1 %vm943_vm3, %v7657_v54  ;;  %v1585_v34 = vrot.slane %v1584_v58, 4  ;;  %v7687_v53 = vcombine.low %v1568_v11, %v1576_v19  ;;  %v5412_v28 = vrot.slane %v597_v9, 11  ;;  %v609_v39 = vrot.slane %v9378_v36, 4 }
  0xdc   : > { %v607_v63 = vor.u32 %v9380_v45, %v9378_v36  ;;  %v1596_v57 = vsel %vm7221_vm11, %v7661_v0, %v7665_v51  ;;  %v1598_v10 = vor.u32 %v7408_v62, %v7665_v51  ;;  %v9383_v22 = vshll.u32 %v9382_v60, 16  ;;  %6109 = vmatprep.mubr.msk.bf16.mxu0 %vm943_vm3, %v7677_v20  ;;  %v481_v52 = vld [vmem:[#allocation2 + $0xec] sm:$0x1]  ;;  %v345_v0 = vld [vmem:[#allocation2 + $0x128] sm:$0x1] }
  0xdd   : > { %v619_v5 = vshrl.u32 %v454_v4, 16  ;;  %v9386_v29 = vshll.u32 %v9385_v40, 16  ;;  %v631_v11 = vrot.slane %v9384_v25, 4  ;;  %v1587_v31 = vshll.u32 %v481_v52, 16  ;;  %6110 = vmatmul.mubr.msk.bf16.gmra.mrb[16].mxu0 %vm943_vm3, %v7687_v53  ;;  %v9392_v40 = vld [vmem:[#allocation33_spill] sm:$0xff] }
  0xde   : > { %v616_v50 = vor.u32 %v9383_v22, %v9381_v14  ;;  %v1599_v44 = vrot.slane %v1598_v10, 4  ;;  %v608_v48 = vsel %vm6939_vm6, %v5412_v28, %v607_v63  ;;  %v9388_v58 = vshll.u32 %v7051_v42, 16  ;;  %v485_v27 = vld [vmem:[#allocation2 + $0x100] sm:$0x1]  ;;  %v458_v28 = vld [vmem:[#allocation2 + $0x7c] sm:$0xf] }
  0xdf   : > { %v629_v62 = vor.u32 %v9386_v29, %v9384_v25  ;;  %v5413_v9 = vrot.slane %v619_v5, 11  ;;  %v339_v55 = vsel %vm7131_vm10, 0, %v338_v15  ;;  %v1607_v36 = vor.u32 %v7425_v35, %v7421_v41  ;;  %v9393_v29 = vld [vmem:[#allocation25_spill] sm:$0xff] }
  0xe0   : > { %v617_v26 = vsel %vm6939_vm6, %v609_v39, %v616_v50  ;;  %v638_v17 = vor.u32 %v9388_v58, %v9387_v13  ;;  %v1589_v49 = vrot.slane %v1587_v31, 5  ;;  %v1601_v45 = vshll.u32 %v485_v27, 16  ;;  %340 = vst [vmem:[#allocation2 + $0x114] sm:$0x1] %v339_v55  ;;  %v352_v31 = vld [vmem:[#allocation2 + $0x13c] sm:$0x1] }
  0xe1   : > { %v7708_v51 = vcombine.low %v608_v48, %v617_v26  ;;  %v9389_v63 = vshll.u32 %v7384_v30, 16  ;;  %v630_v19 = vsel %vm6939_vm6, %v5413_v9, %v629_v62  ;;  %v7724_v10 = vrot.slane %v1607_v36, 4  ;;  %v9395_v26 = vld [vmem:[#allocation77_spill] sm:$0xff]  ;;  %v9397_v27 = vld [vmem:[#allocation26_spill] sm:$0xff] }
  0xe2   : > { %v639_v42 = vsel %vm6939_vm6, %v631_v11, %v638_v17  ;;  %v346_v41 = vsel %vm7131_vm10, 0, %v345_v0  ;;  %v1621_v35 = vor.u32 %v7494_v6, %v7490_v8  ;;  %v1590_v39 = vsel %vm7221_vm11, %v1585_v34, %v1589_v49  ;;  %v9390_v8 = vld [vmem:[#allocation72_spill] sm:$0xff]  ;;  %v9399_v49 = vld [vmem:[#allocation37_spill] sm:$0xff] }
  0xe3   : > { %v7718_v4 = vrot.slane %v9389_v63, 5  ;;  %5965 = vmatprep.mubr.msk.bf16.mxu1 %vm943_vm3, %v7708_v51  ;;  %v1603_v14 = vrot.slane %v1601_v45, 5  ;;  %v7732_v60 = vcombine.low %v630_v19, %v639_v42  ;;  %347 = vst [vmem:[#allocation2 + $0x128] sm:$0x1] %v346_v41  ;;  %v7736_v50 = vcombine.low %v1582_v59, %v1590_v39  ;;  %v462_v34 = vld [vmem:[#allocation2 + $0x90] sm:$0xf] }
  0xe4   : > { %v7742_v52 = vrot.slane %v1621_v35, 4  ;;  %v9391_v6 = vshll.u32 %v9390_v8, 16  ;;  %v641_v59 = vshrl.u32 %v458_v28, 16  ;;  %v9394_v62 = vshll.u32 %v9393_v29, 16  ;;  %v9396_v0 = vld [vmem:[#allocation36_spill] sm:$0xff]  ;;  %v9402_v41 = vld [vmem:[#allocation39_spill] sm:$0xff] }
  0xe5   : > { %v1612_v22 = vor.u32 %v7448_v33, %v7718_v4  ;;  %v1610_v15 = vsel %vm7221_vm11, %v7724_v10, %v7718_v4  ;;  %v1604_v25 = vsel %vm7221_vm11, %v1599_v44, %v1603_v14  ;;  %5966 = vmatmul.mubr.msk.bf16.gmra.mrb[8].mxu1 %vm943_vm3, %v7732_v60  ;;  %6113 = vmatprep.mubr.msk.bf16.mxu0 %vm943_vm3, %v7736_v50  ;;  %v653_v58 = vrot.slane %v9392_v40, 4  ;;  %v9400_v45 = vld [vmem:[#allocation28_spill] sm:$0xff]  ;;  %v9405_v29 = vld [vmem:[#allocation78_spill] sm:$0xff] }
  0xe6   : > { %v7746_v5 = vrot.slane %v9391_v6, 5  ;;  %v651_v11 = vor.u32 %v9394_v62, %v9392_v40  ;;  %v7757_v48 = vcombine.low %v1596_v57, %v1604_v25  ;;  %v5414_v17 = vrot.slane %v641_v59, 11  ;;  %v359_v63 = vld [vmem:[#allocation2 + $0x150] sm:$0x1] }
  0xe7   : > { %v1613_v33 = vrot.slane %v1612_v22, 4  ;;  %v9398_v9 = vshll.u32 %v9397_v27, 16  ;;  %v663_v36 = vshrl.u32 %v462_v34, 16  ;;  %v9401_v57 = vshll.u32 %v9400_v45, 16  ;;  %v489_v4 = vld [vmem:[#allocation2 + $0x114] sm:$0x1] }
  0xe8   : > { %v1624_v44 = vsel %vm7221_vm11, %v7742_v52, %v7746_v5  ;;  %v1626_v13 = vor.u32 %v9395_v26, %v7746_v5  ;;  %6114 = vmatmul.mubr.msk.bf16.gmra.mrb[20].mxu0 %vm943_vm3, %v7757_v48  ;;  %v675_v10 = vrot.slane %v9399_v49, 4  ;;  %v9403_v35 = vld [vmem:[#allocation32_spill] sm:$0xff]  ;;  %v353_v14 = vsel %vm7131_vm10, 0, %v352_v31  ;;  %v7784_v34 = vld [vmem:[#allocation2 + $0x148] sm:$0xf] }
  0xe9   : > { %v660_v55 = vor.u32 %v9398_v9, %v9396_v0  ;;  %v673_v42 = vor.u32 %v9401_v57, %v9399_v49  ;;  %v9404_v28 = vshll.u32 %v9403_v35, 16  ;;  %v1615_v22 = vshll.u32 %v489_v4, 16  ;;  %354 = vst [vmem:[#allocation2 + $0x13c] sm:$0x1] %v353_v14  ;;  %v470_v14 = vld [vmem:[#allocation2 + $0xb8] sm:$0xf] }
  0xea   : > { %v1627_v19 = vrot.slane %v1626_v13, 4  ;;  %v652_v52 = vsel %vm6939_vm6, %v5414_v17, %v651_v11  ;;  %v5415_v5 = vrot.slane %v663_v36, 11  ;;  %v493_v25 = vld [vmem:[#allocation2 + $0x128] sm:$0x1]  ;;  %v1635_v62 = vor.u32 %v7517_v12, %v9405_v29  ;;  %v7794_v11 = vld [vmem:[#allocation2 + $0x14c] sm:$0xf] }
  0xeb   : > { %v682_v39 = vor.u32 %v9404_v28, %v9402_v41  ;;  %v661_v6 = vsel %vm6939_vm6, %v653_v58, %v660_v55  ;;  %v9406_v31 = vshll.u32 %v7486_v32, 16  ;;  %v1617_v13 = vrot.slane %v1615_v22, 5  ;;  %v9407_v12 = vld [vmem:[#allocation79_spill] sm:$0xff] }
  0xec   : > { %v7786_v59 = vcombine.low %v652_v52, %v661_v6  ;;  %v1629_v58 = vshll.u32 %v493_v25, 16  ;;  %v674_v17 = vsel %vm6939_vm6, %v5415_v5, %v673_v42  ;;  %v360_v0 = vsel %vm7131_vm10, 0, %v359_v63  ;;  %v466_v63 = vld [vmem:[#allocation2 + $0xa4] sm:$0xf]  ;;  %v9408_v5 = vld [vmem:[#allocation40_spill] sm:$0xff] }
  0xed   : > { %v683_v40 = vsel %vm6939_vm6, %v675_v10, %v682_v39  ;;  %v1637_v26 = vrot.slane %v9406_v31, 5  ;;  %v1636_v9 = vrot.slane %v1635_v62, 4  ;;  %361 = vst [vmem:[#allocation2 + $0x150] sm:$0x1] %v360_v0  ;;  %v1947_v36 = vshrl.u32 %v7784_v34, 16  ;;  %v9409_v25 = vld [vmem:[#allocation35_spill] sm:$0xff] }
  0xee   : > { %5969 = vmatprep.mubr.msk.bf16.mxu1 %vm943_vm3, %v7786_v59  ;;  %v7802_v27 = vcombine.low %v674_v17, %v683_v40  ;;  %v1618_v49 = vsel %vm7221_vm11, %v1613_v33, %v1617_v13  ;;  %v1631_v45 = vrot.slane %v1629_v58, 5  ;;  %v1950_v57 = vshll.u32 %v7784_v34, 16  ;;  %v9411_v13 = vld [vmem:[#allocation43_spill] sm:$0xff] }
  0xef   : > { %v1640_v55 = vor.u32 %v9407_v12, %v1637_v26  ;;  %v1956_v42 = vshrl.u32 %v7794_v11, 16  ;;  %v7810_v4 = vcombine.low %v1610_v15, %v1618_v49  ;;  %v1638_v10 = vsel %vm7221_vm11, %v1636_v9, %v1637_v26  ;;  %v9413_v12 = vld [vmem:[#allocation44_spill] sm:$0xff] }
  0xf0   : > { %5970 = vmatmul.mubr.msk.bf16.gmra.mrb[12].mxu1 %vm943_vm3, %v7802_v27  ;;  %v1959_v35 = vshll.u32 %v7794_v11, 16  ;;  %v1632_v33 = vsel %vm7221_vm11, %v1627_v19, %v1631_v45  ;;  %v2373_v28 = vrot.slane %v1947_v36, 4  ;;  %v2374_v39 = vrot.slane %v1950_v57, 5  ;;  %v497_v52 = vld [vmem:[#allocation2 + $0x13c] sm:$0x1] }
  0xf1   : > { %v1641_v41 = vrot.slane %v1640_v55, 4  ;;  %v2379_v15 = vrot.slane %v1956_v42, 4  ;;  %6117 = vmatprep.mubr.msk.bf16.mxu0 %vm943_vm3, %v7810_v4  ;;  %v7827_v22 = vcombine.low %v1624_v44, %v1632_v33  ;;  %v685_v19 = vshrl.u32 %v466_v63, 16  ;;  %v9414_v55 = vld [vmem:[#allocation42_spill] sm:$0xff]  ;;  %v2818_v63 = vld [vmem:[#allocation3 + $0xe] sm:$0x3] }
  0xf2   : > { %v2377_v6 = vrot.slane %v1959_v35, 5  ;;  %v9410_v40 = vshll.u32 %v9409_v25, 16  ;;  %v1643_v62 = vshll.u32 %v497_v52, 16  ;;  %v2375_v31 = vor.u32 %v2374_v39, %v2373_v28 }
  0xf3   : > { %v697_v26 = vrot.slane %v9408_v5, 4  ;;  %v9412_v58 = vshll.u32 %v7155_v46, 16  ;;  %6118 = vmatmul.mubr.msk.bf16.gmra.mrb[24].mxu0 %vm943_vm3, %v7827_v22  ;;  %v5416_v0 = vrot.slane %v685_v19, 11  ;;  %v707_v9 = vshrl.u32 %v470_v14, 16  ;;  %v474_v14 = vld [vmem:[#allocation2 + $0xcc] sm:$0xf] }
  0xf4   : > { %v695_v29 = vor.u32 %v9410_v40, %v9408_v5  ;;  %v2380_v44 = vor.u32 %v2379_v15, %v2377_v6  ;;  %v9415_v49 = vshll.u32 %v9414_v55, 16  ;;  %v1645_v33 = vrot.slane %v1643_v62, 5  ;;  %v501_v52 = vld [vmem:[#allocation2 + $0x150] sm:$0x1] }
  0xf5   : > { %v704_v17 = vor.u32 %v9412_v58, %v9411_v13  ;;  %v2376_v28 = vrot.slane %v2375_v31, 4  ;;  %v719_v46 = vrot.slane %v9413_v12, 4  ;;  %v2383_v25 = vshll.u32 %v501_v52, 16  ;;  %v9416_v31 = vld [vmem:[#allocation45_spill] sm:$0xff]  ;;  %v9421_v52 = vld [vmem:[#allocation50_spill] sm:$0xff] }
  0xf6   : > { %v717_v45 = vor.u32 %v9415_v49, %v9413_v12  ;;  %v2381_v5 = vrot.slane %v2380_v44, 4  ;;  %v696_v15 = vsel %vm6939_vm6, %v5416_v0, %v695_v29  ;;  %v5417_v19 = vrot.slane %v707_v9, 11  ;;  %v9418_v9 = vld [vmem:[#allocation48_spill] sm:$0xff] }
  0xf7   : > { %v705_v39 = vsel %vm6939_vm6, %v697_v26, %v704_v17  ;;  %v1646_v40 = vsel %vm7221_vm11, %v1641_v41, %v1645_v33  ;;  %v2378_v62 = vsel %vm7221_vm11, %v2376_v28, %v2377_v6  ;;  %v9417_v26 = vshll.u32 %v7188_v37, 16  ;;  %v478_v17 = vld [vmem:[#allocation2 + $0xe0] sm:$0xf]  ;;  %v9419_v37 = vld [vmem:[#allocation47_spill] sm:$0xff]  ;;  %v482_v33 = vld [vmem:[#allocation2 + $0xf4] sm:$0xf] }
  0xf8   : > { %v7852_v13 = vcombine.low %v696_v15, %v705_v39  ;;  %v7857_v44 = vcombine.low %v1638_v10, %v1646_v40  ;;  %v2385_v12 = vrot.slane %v2383_v25, 5  ;;  %v718_v29 = vsel %vm6939_vm6, %v5417_v19, %v717_v45  ;;  %v9423_v19 = vld [vmem:[#allocation55_spill] sm:$0xff] }
  0xf9   : > { %v726_v58 = vor.u32 %v9417_v26, %v9416_v31  ;;  %v7862_v0 = vand.u32 %v2818_v63, %v6872_v3  ;;  %v729_v6 = vshrl.u32 %v474_v14, 16  ;;  %v9420_v55 = vshll.u32 %v9419_v37, 16  ;;  %v9424_v14 = vld [vmem:[#allocation51_spill] sm:$0xff] }
  0xfa   : > { %5973 = vmatprep.mubr.msk.bf16.mxu1 %vm943_vm3, %v7852_v13  ;;  %v741_v10 = vrot.slane %v9418_v9, 4  ;;  %6121 = vmatprep.mubr.msk.bf16.mxu0 %vm943_vm3, %v7857_v44  ;;  %v2386_v45 = vsel %vm7221_vm11, %v2381_v5, %v2385_v12  ;;  %v9422_v28 = vshll.u32 %v7265_v24, 16  ;;  %v9425_v40 = vshll.u32 %v9424_v14, 16  ;;  %v9426_v12 = vld [vmem:[#allocation56_spill] sm:$0xff] }
  0xfb   : > { %v727_v41 = vsel %vm6939_vm6, %v719_v46, %v726_v58  ;;  %v739_v49 = vor.u32 %v9420_v55, %v9418_v9  ;;  %6159 = vmatprep.subr.bf16.mxu0 %v7862_v0  ;;  %v751_v46 = vshrl.u32 %v478_v17, 16  ;;  %v7882_v25 = vcombine.low %v2378_v62, %v2386_v45  ;;  %v9429_v9 = vld [vmem:[#allocation59_spill] sm:$0xff] }
  0xfc   : > { %v7876_v63 = vcombine.low %v718_v29, %v727_v41  ;;  %v748_v39 = vor.u32 %v9422_v28, %v9421_v52  ;;  %v5418_v15 = vrot.slane %v729_v6, 11  ;;  %v761_v31 = vor.u32 %v9425_v40, %v9423_v19  ;;  %v486_v29 = vld [vmem:[#allocation2 + $0x108] sm:$0xf]  ;;  %v9428_v6 = vld [vmem:[#allocation65_spill] sm:$0xff]  ;;  %v9433_v40 = vld [vmem:[#allocation68_spill] sm:$0xff] }
  0xfd   : > { %v763_v26 = vrot.slane %v9423_v19, 4  ;;  %v5419_v58 = vrot.slane %v751_v46, 11  ;;  %v9427_v24 = vshll.u32 %v9374_v23, 16  ;;  %v773_v62 = vshrl.u32 %v482_v33, 16  ;;  %6122 = vmatmul.mubr.msk.bf16.gmra.mrb[28].mxu0 %vm943_vm3, %v7882_v25  ;;  %v490_v23 = vld [vmem:[#allocation2 + $0x11c] sm:$0xf] }
  0xfe   : > { %5974 = vmatmul.mubr.msk.bf16.gmra.mrb[16].mxu1 %vm943_vm3, %v7876_v63  ;;  %v749_v5 = vsel %vm6939_vm6, %v741_v10, %v748_v39  ;;  %v740_v41 = vsel %vm6939_vm6, %v5418_v15, %v739_v49  ;;  %v9430_v37 = vshll.u32 %v9429_v9, 16  ;;  %v785_v45 = vrot.slane %v9428_v6, 4  ;;  %v9431_v10 = vld [vmem:[#allocation66_spill] sm:$0xff]  ;;  %6127 = vmatprep.mubr.msk.bf16.mxu0 %vm943_vm3, %v7621_v16 }
  0xff   : > { %v770_v17 = vor.u32 %v9427_v24, %v9426_v12  ;;  %v9432_v52 = vshll.u32 %v7346_v21, 16  ;;  %v7908_v33 = vcombine.low %v740_v41, %v749_v5  ;;  %v762_v39 = vsel %vm6939_vm6, %v5419_v58, %v761_v31  ;;  %v9434_v12 = vld [vmem:[#allocation70_spill] sm:$0xff]  ;;  %v9436_v24 = vld [vmem:[#allocation12_spill] sm:$0xff] }
 0x100   : > { %v783_v55 = vor.u32 %v9430_v37, %v9428_v6  ;;  %v5420_v46 = vrot.slane %v773_v62, 11  ;;  %v795_v21 = vshrl.u32 %v486_v29, 16  ;;  %v807_v5 = vrot.slane %v9433_v40, 4  ;;  %v9439_v9 = vld [vmem:[#allocation62_spill] sm:$0xff] }
 0x101   : > { %v792_v28 = vor.u32 %v9432_v52, %v9431_v10  ;;  %v771_v49 = vsel %vm6939_vm6, %v763_v26, %v770_v17  ;;  %5977 = vmatprep.mubr.msk.bf16.mxu1 %vm943_vm3, %v7908_v33  ;;  %v9435_v31 = vshll.u32 %v7384_v30, 16  ;;  %v817_v26 = vshrl.u32 %v490_v23, 16  ;;  %v9437_v17 = vld [vmem:[#allocation11_spill] sm:$0xff] }
 0x102   : > { %v7914_v15 = vcombine.low %v762_v39, %v771_v49  ;;  %v784_v14 = vsel %vm6939_vm6, %v5420_v46, %v783_v55  ;;  %v9438_v62 = vor.u32 %v9436_v24, %v9437_v17  ;;  %v5421_v29 = vrot.slane %v795_v21, 11  ;;  %v9441_v55 = vld [vmem:[#allocation75_spill] sm:$0xff]  ;;  %v9444_v49 = vld [vmem:[#allocation76_spill] sm:$0xff] }
 0x103   : > { %v793_v19 = vsel %vm6939_vm6, %v785_v45, %v792_v28  ;;  %v814_v58 = vor.u32 %v9435_v31, %v9434_v12  ;;  %v9440_v37 = vshll.u32 %v9439_v9, 16  ;;  %v5422_v10 = vrot.slane %v817_v26, 11  ;;  %v9442_v52 = vld [vmem:[#allocation71_spill] sm:$0xff]  ;;  %v494_v12 = vld [vmem:[#allocation2 + $0x130] sm:$0xf] }
 0x104   : > { %v1426_v41 = vrot.slane %v9438_v62, 4  ;;  %v7929_v6 = vcombine.low %v784_v14, %v793_v19  ;;  %v9443_v28 = vshll.u32 %v9442_v52, 16  ;;  %v829_v30 = vrot.slane %v9441_v55, 4  ;;  %v247_v31 = vld [vmem:[#allocation2 + $0x10] sm:$0x1]  ;;  %v9446_v14 = vld [vmem:[#allocation74_spill] sm:$0xff] }
 0x105   : > { %v805_v45 = vor.u32 %v9440_v37, %v9433_v40  ;;  %v9445_v23 = vshll.u32 %v9390_v8, 16  ;;  %v1964_v19 = vld [vmem:[#allocation3 + $0x6] sm:$0x3]  ;;  %v9447_v21 = vshrl.u32 %v9446_v14, 16  ;;  %v9448_v17 = vshrl.u32 %v7486_v32, 16  ;;  %6128 = vmatmul.mubr.msk.bf16.vlgmr.msra.gmra.mrb[0].mxu0 %vm943_vm3, %v7657_v54  ;;  %v9449_v37 = vld [vmem:[#allocation13_spill] sm:$0xff] }
 0x106   : > { %v827_v39 = vor.u32 %v9443_v28, %v9441_v55  ;;  %5978 = vmatmul.mubr.msk.bf16.gmra.mrb[20].mxu1 %vm943_vm3, %v7914_v15  ;;  %v815_v26 = vsel %vm6939_vm6, %v807_v5, %v814_v58  ;;  %v839_v62 = vshrl.u32 %v494_v12, 16  ;;  %v248_v9 = vsel %vm7131_vm10, 0, %v247_v31  ;;  %6160 = vmatpush3.bf16.msra.mxu0 %v7862_v0  ;;  %v7985_v31 = vld [vmem:[#allocation2 + $0x160] sm:$0xf] }
 0x107   : > { %v836_v46 = vor.u32 %v9445_v23, %v9444_v49  ;;  %v846_v24 = vrot.slane %v9447_v21, 7  ;;  %v855_v40 = vrot.slane %v9448_v17, 7  ;;  %5981 = vmatprep.mubr.msk.bf16.mxu1 %vm943_vm3, %v7929_v6  ;;  %v806_v8 = vsel %vm6939_vm6, %v5421_v29, %v805_v45  ;;  %6131 = vmatprep.mubr.msk.bf16.mxu0 %vm943_vm3, %v7708_v51  ;;  %249 = vst [vmem:[#allocation2 + $0x10] sm:$0x1] %v248_v9  ;;  %v3038_v45 = vld [vmem:[#allocation3 + $0x10] sm:$0x3] }
 0x108   : > { %v1428_v55 = vsel %vm7221_vm11, %v1426_v41, %v9449_v37  ;;  %v828_v5 = vsel %vm6939_vm6, %v5422_v10, %v827_v39  ;;  %v1972_v29 = vand.u32 %v1964_v19, %v6872_v3  ;;  %v7968_v52 = vcombine.low %v806_v8, %v815_v26  ;;  %v9452_v21 = vld [vmem:[#allocation14_spill] sm:$0xff] }
 0x109   : > { %v837_v58 = vsel %vm6939_vm6, %v829_v30, %v836_v46  ;;  %v9450_v28 = vshll.u32 %v9446_v14, 16  ;;  %v5423_v49 = vrot.slane %v839_v62, 11  ;;  %v851_v23 = vrot.slane %v846_v24, 4  ;;  %v7983_v46 = vld [vmem:[#allocation2 + $0x15c] sm:$0xf] }
 0x10a   : > { %6023 = vmatprep.subr.bf16.mxu1 %v1972_v29  ;;  %v7972_v0 = vcombine.low %v828_v5, %v837_v58  ;;  %v9451_v12 = vshll.u32 %v7486_v32, 16  ;;  %v7977_v39 = vand.u32 %v3038_v45, %v6872_v3  ;;  %v7981_v30 = vcombine.low %v7784_v34, %v7794_v11  ;;  %v9456_v5 = vld [vmem:[#allocation10_spill] sm:$0xff]  ;;  %v9457_v58 = vld [vmem:[#allocation64_spill] sm:$0xff] }
 0x10b   : > { %v849_v41 = vor.u32 %v9450_v28, %v846_v24  ;;  %v5590_v32 = vcombine.low %v7983_v46, %v7985_v31  ;;  %v9453_v24 = vor.u32 %v9452_v21, %v9449_v37  ;;  %v9454_v37 = vld [vmem:[#allocation53_spill] sm:$0xff]  ;;  %v498_v45 = vld [vmem:[#allocation2 + $0x144] sm:$0xf]  ;;  %vm5289_vm0 = vcmask 261120  }
 0x10c   : > { %v858_v10 = vor.u32 %v9451_v12, %v855_v40  ;;  %6193 = vmatprep.subr.bf16.mxu0 %v7977_v39  ;;  %v9458_v28 = vld [vmem:[#allocation67_spill] sm:$0xff]  ;;  %v502_v12 = vld [vmem:[#allocation2 + $0x158] sm:$0xf] }
 0x10d   : > { %6132 = vmatmul.mubr.msk.bf16.gmra.mrb[4].mxu0 %vm943_vm3, %v7732_v60  ;;  %v850_v3 = vsel %vm6939_vm6, %v5423_v49, %v849_v41  ;;  %v1431_v17 = vrot.slane %v9453_v24, 4  ;;  %v1949_v41 = vrot.slane %v1947_v36, 7  ;;  %v1958_v49 = vrot.slane %v1956_v42, 7  ;;  %v366_v36 = vld [vmem:[#allocation2 + $0x164] sm:$0x1] }
 0x10e   : > { %5982 = vmatmul.mubr.msk.bf16.gmra.mrb[24].mxu1 %vm943_vm3, %v7968_v52  ;;  %v859_v19 = vsel %vm6939_vm6, %v851_v23, %v858_v10  ;;  %v437_v14 = vld [vmem:[#allocation2 + $0x10] sm:$0x1]  ;;  %6135 = vmatprep.mubr.msk.bf16.mxu0 %vm943_vm3, %v7786_v59  ;;  %v2597_v23 = vshrl.u32 %v7983_v46, 16  ;;  %v2606_v10 = vshrl.u32 %v7985_v31, 16  ;;  %v2592_v42 = vshrl.u32 %v502_v12, 16 }
 0x10f   : > { %5985 = vmatprep.mubr.msk.bf16.mxu1 %vm943_vm3, %v7972_v0  ;;  %v1433_v40 = vshll.u32 %v437_v14, 16  ;;  %v8005_v26 = vcombine.low %v850_v3, %v859_v19  ;;  %v1952_v19 = vor.u32 %v1950_v57, %v1949_v41  ;;  %v1954_v14 = vrot.slane %v1949_v41, 4 }
 0x110   : > { %v1961_v21 = vor.u32 %v1959_v35, %v1958_v49  ;;  %v2599_v24 = vrot.slane %v2597_v23, 7  ;;  %v367_v34 = vsel %vm7131_vm10, 0, %v366_v36  ;;  %v2608_v11 = vrot.slane %v2606_v10, 7 }
 0x111   : > { %v1435_v8 = vrot.slane %v1433_v40, 5  ;;  %v2609_v57 = vshll.u32 %v7985_v31, 16  ;;  %368 = vst [vmem:[#allocation2 + $0x164] sm:$0x1] %v367_v34  ;;  %v3029_v49 = vrot.slane %v2606_v10, 4 }
 0x112   : > { %v1962_v40 = vsel %vm6939_vm6, %v1954_v14, %v1961_v21 }
 0x113   : > { %v1436_v62 = vsel %vm7221_vm11, %v1431_v17, %v1435_v8  ;;  %v2600_v17 = vshll.u32 %v7983_v46, 16  ;;  %v5572_v8 = vrot.slane %v2592_v42, 11  ;;  %v2611_v18 = vor.u32 %v2609_v57, %v2608_v11  ;;  %v8234_v46 = vld [vmem:[#allocation7] ss:$0 sm:$0xff] }
 0x114   : > { %v5488_v9 = vcombine.low %v1428_v55, %v1436_v62  ;;  %v9455_v55 = vld [vmem:[#allocation61_spill] sm:$0xff]  ;;  %v3027_v41 = vrot.slane %v2609_v57, 5  ;;  %v9460_v57 = vld [vmem:[#allocation18_spill] sm:$0xff] }
 0x115   : > { %6136 = vmatmul.mubr.msk.bf16.gmra.mrb[8].mxu0 %vm943_vm3, %v7802_v27  ;;  %v2602_v62 = vor.u32 %v2600_v17, %v2599_v24 }
 0x116   : > { %5986 = vmatmul.mubr.msk.bf16.gmra.mrb[28].mxu1 %vm943_vm3, %v8005_v26  ;;  %6139 = vmatprep.mubr.msk.bf16.mxu0 %vm943_vm3, %v7852_v13  ;;  %v3030_v14 = vor.u32 %v3029_v49, %v3027_v41 }
 0x117   : > { %5991 = vmatprep.mubr.msk.bf16.mxu1 %vm943_vm3, %v5488_v9  ;;  %v2603_v12 = vsel %vm6939_vm6, %v5572_v8, %v2602_v62  ;;  %v9464_v8 = vld [vmem:[#allocation38_spill] sm:$0xff] }
 0x118   : > { %v3031_v36 = vrot.slane %v3030_v14, 4  ;;  %v9466_v62 = vld [vmem:[#allocation46_spill] sm:$0xff] }
 0x11d   : > { %6140 = vmatmul.mubr.msk.bf16.gmra.mrb[12].mxu0 %vm943_vm3, %v7876_v63 }
 0x11e   : > { %5992 = vmatmul.mubr.msk.bf16.vlgmr.msra.gmra.mrb[0].mxu1 %vm943_vm3, %v9454_v37  ;;  %6143 = vmatprep.mubr.msk.bf16.mxu0 %vm943_vm3, %v7908_v33  ;;  %v2604_v37 = vrot.slane %v2599_v24, 4 }
 0x11f   : > { %6024 = vmatpush3.bf16.msra.mxu1 %v1972_v29  ;;  %5995 = vmatprep.mubr.msk.bf16.mxu1 %vm943_vm3, %v9455_v55  ;;  %v1942_v29 = vshrl.u32 %v498_v45, 16  ;;  %v3023_v45 = vrot.slane %v2597_v23, 4 }
 0x120   : > { %6227 = vmatprep.subr.bf16.mxu1 %v9456_v5 }
 0x121   : > { %v5520_v3 = vrot.slane %v1942_v29, 11  ;;  %v3024_v29 = vrot.slane %v2600_v17, 5 }
 0x123   : > { %v1953_v35 = vsel %vm6939_vm6, %v5520_v3, %v1952_v19  ;;  %v505_v3 = vld [vmem:[#allocation2 + $0x164] sm:$0x1]  ;;  %v2612_v19 = vsel %vm6939_vm6, %v2604_v37, %v2611_v18  ;;  %v3025_v23 = vor.u32 %v3024_v29, %v3023_v45  ;;  %v9467_v37 = vld [vmem:[#allocation49_spill] sm:$0xff] }
 0x124   : > { %v8059_v9 = vcombine.low %v1953_v35, %v1962_v40  ;;  %v3033_v21 = vshll.u32 %v505_v3, 16  ;;  %v5573_v24 = vcombine.low %v2603_v12, %v2612_v19  ;;  %v9462_v35 = vld [vmem:[#allocation30_spill] sm:$0xff] }
 0x125   : > { %6144 = vmatmul.mubr.msk.bf16.gmra.mrb[16].mxu0 %vm943_vm3, %v7914_v15  ;;  %v3026_v10 = vrot.slane %v3025_v23, 4  ;;  %v9463_v40 = vld [vmem:[#allocation34_spill] sm:$0xff] }
 0x126   : > { %5996 = vmatmul.mubr.msk.bf16.gmra.mrb[4].mxu1 %vm943_vm3, %v9457_v58  ;;  %6147 = vmatprep.mubr.msk.bf16.mxu0 %vm943_vm3, %v7929_v6  ;;  %v3035_v42 = vrot.slane %v3033_v21, 5 }
 0x127   : > { %5999 = vmatprep.mubr.msk.bf16.mxu1 %vm943_vm3, %v9458_v28  ;;  %v3028_v17 = vsel %vm7221_vm11, %v3026_v10, %v3027_v41 }
 0x128   : > { %v3036_v34 = vsel %vm7221_vm11, %v3031_v36, %v3035_v42 }
 0x129   : > { %v8077_v11 = vcombine.low %v3028_v17, %v3036_v34 }
 0x12d   : > { %6148 = vmatmul.mubr.msk.bf16.gmra.mrb[20].mxu0 %vm943_vm3, %v7968_v52 }
 0x12e   : > { %6000 = vmatmul.mubr.msk.bf16.gmra.mrb[8].mxu1 %vm943_vm3, %v7536_v38  ;;  %6151 = vmatprep.mubr.msk.bf16.mxu0 %vm943_vm3, %v7972_v0 }
 0x12f   : > { %6003 = vmatprep.mubr.msk.bf16.mxu1 %vm943_vm3, %v7557_v61 }
 0x135   : > { %6152 = vmatmul.mubr.msk.bf16.gmra.mrb[24].mxu0 %vm943_vm3, %v8005_v26 }
 0x136   : > { %6004 = vmatmul.mubr.msk.bf16.gmra.mrb[12].mxu1 %vm943_vm3, %v7559_v47  ;;  %6155 = vmatprep.mubr.msk.bf16.mxu0 %vm943_vm3, %v8059_v9 }
 0x137   : > { %6007 = vmatprep.mubr.msk.bf16.mxu1 %vm943_vm3, %v7631_v1 }
 0x13d   : > { %6156 = vmatmul.mubr.msk.bf16.gmra.mrb[28].mxu0 %vm943_vm3, %v5573_v24 }
 0x13e   : > { %6008 = vmatmul.mubr.msk.bf16.gmra.mrb[16].mxu1 %vm943_vm3, %v7677_v20  ;;  %6161 = vmatprep.mubr.msk.bf16.mxu0 %vm943_vm3, %v9459_v43 }
 0x13f   : > { %6011 = vmatprep.mubr.msk.bf16.mxu1 %vm943_vm3, %v7687_v53 }
 0x145   : > { %6162 = vmatmul.mubr.msk.bf16.vlgmr.msra.gmra.mrb[0].mxu0 %vm943_vm3, %v9460_v57 }
 0x146   : > { %6012 = vmatmul.mubr.msk.bf16.gmra.mrb[20].mxu1 %vm943_vm3, %v7736_v50  ;;  %6194 = vmatpush3.bf16.msra.mxu0 %v7977_v39  ;;  %v9465_v39 = vld [vmem:[#allocation41_spill] sm:$0xff] }
 0x147   : > { %6015 = vmatprep.mubr.msk.bf16.mxu1 %vm943_vm3, %v7757_v48  ;;  %6165 = vmatprep.mubr.msk.bf16.mxu0 %vm943_vm3, %v9461_v2 }
 0x14d   : > { %6166 = vmatmul.mubr.msk.bf16.gmra.mrb[4].mxu0 %vm943_vm3, %v9462_v35 }
 0x14e   : > { %6016 = vmatmul.mubr.msk.bf16.gmra.mrb[24].mxu1 %vm943_vm3, %v7810_v4  ;;  %6169 = vmatprep.mubr.msk.bf16.mxu0 %vm943_vm3, %v9463_v40 }
 0x14f   : > { %6019 = vmatprep.mubr.msk.bf16.mxu1 %vm943_vm3, %v7827_v22 }
 0x155   : > { %6170 = vmatmul.mubr.msk.bf16.gmra.mrb[8].mxu0 %vm943_vm3, %v9464_v8 }
 0x156   : > { %6020 = vmatmul.mubr.msk.bf16.gmra.mrb[28].mxu1 %vm943_vm3, %v7857_v44  ;;  %6173 = vmatprep.mubr.msk.bf16.mxu0 %vm943_vm3, %v9465_v39 }
 0x157   : > { %6025 = vmatprep.mubr.msk.bf16.mxu1 %vm943_vm3, %v7575_v56  ;;  %v9468_v56 = vld [vmem:[#allocation54_spill] sm:$0xff] }
 0x15d   : > { %6174 = vmatmul.mubr.msk.bf16.gmra.mrb[12].mxu0 %vm943_vm3, %v9466_v62 }
 0x15e   : > { %6026 = vmatmul.mubr.msk.bf16.vlgmr.msra.gmra.mrb[0].mxu1 %vm943_vm3, %v7621_v16  ;;  %6177 = vmatprep.mubr.msk.bf16.mxu0 %vm943_vm3, %v9467_v37  ;;  %v9469_v16 = vld [vmem:[#allocation63_spill] sm:$0xff] }
 0x15f   : > { %6228 = vmatpush3.bf16.msra.mxu1 %v9456_v5  ;;  %6029 = vmatprep.mubr.msk.bf16.mxu1 %vm943_vm3, %v7657_v54  ;;  %v9470_v5 = vld [vmem:[#allocation69_spill] sm:$0xff] }
 0x160   : > { %v9471_v54 = vld [vmem:[#allocation73_spill] sm:$0xff] }
 0x165   : > { %6178 = vmatmul.mubr.msk.bf16.gmra.mrb[16].mxu0 %vm943_vm3, %v9468_v56 }
 0x166   : > { %6030 = vmatmul.mubr.msk.bf16.gmra.mrb[4].mxu1 %vm943_vm3, %v7708_v51  ;;  %6181 = vmatprep.mubr.msk.bf16.mxu0 %vm943_vm3, %v9469_v16 }
 0x167   : > { %6033 = vmatprep.mubr.msk.bf16.mxu1 %vm943_vm3, %v7732_v60 }
 0x16d   : > { %6182 = vmatmul.mubr.msk.bf16.gmra.mrb[20].mxu0 %vm943_vm3, %v9470_v5 }
 0x16e   : > { %6034 = vmatmul.mubr.msk.bf16.gmra.mrb[8].mxu1 %vm943_vm3, %v7786_v59  ;;  %6185 = vmatprep.mubr.msk.bf16.mxu0 %vm943_vm3, %v9471_v54 }
 0x16f   : > { %6037 = vmatprep.mubr.msk.bf16.mxu1 %vm943_vm3, %v7802_v27 }
 0x175   : > { %6186 = vmatmul.mubr.msk.bf16.gmra.mrb[24].mxu0 %vm943_vm3, %v7506_v7 }
 0x176   : > { %6038 = vmatmul.mubr.msk.bf16.gmra.mrb[12].mxu1 %vm943_vm3, %v7852_v13  ;;  %6189 = vmatprep.mubr.msk.bf16.mxu0 %vm943_vm3, %v7981_v30 }
 0x177   : > { %6041 = vmatprep.mubr.msk.bf16.mxu1 %vm943_vm3, %v7876_v63 }
 0x17d   : > { %6190 = vmatmul.mubr.msk.bf16.gmra.mrb[28].mxu0 %vm943_vm3, %v5590_v32 }
 0x17e   : > { %6042 = vmatmul.mubr.msk.bf16.gmra.mrb[16].mxu1 %vm943_vm3, %v7908_v33  ;;  %6195 = vmatprep.mubr.msk.bf16.mxu0 %vm943_vm3, %v9455_v55 }
 0x17f   : > { %6045 = vmatprep.mubr.msk.bf16.mxu1 %vm943_vm3, %v7914_v15  ;;  %v8230_v15 = vld [vmem:[#allocation5] ss:$0 sm:$0xff] }
 0x185   : > { %6196 = vmatmul.mubr.msk.bf16.vlgmr.msra.gmra.mrb[0].mxu0 %vm943_vm3, %v9457_v58 }
 0x186   : > { %6046 = vmatmul.mubr.msk.bf16.gmra.mrb[20].mxu1 %vm943_vm3, %v7929_v6  ;;  %6199 = vmatprep.mubr.msk.bf16.mxu0 %vm943_vm3, %v9458_v28 }
 0x187   : > { %6049 = vmatprep.mubr.msk.bf16.mxu1 %vm943_vm3, %v7968_v52 }
 0x18d   : > { %6200 = vmatmul.mubr.msk.bf16.gmra.mrb[4].mxu0 %vm943_vm3, %v7536_v38 }
 0x18e   : > { %6050 = vmatmul.mubr.msk.bf16.gmra.mrb[24].mxu1 %vm943_vm3, %v7972_v0  ;;  %6203 = vmatprep.mubr.msk.bf16.mxu0 %vm943_vm3, %v7557_v61 }
 0x18f   : > { %6053 = vmatprep.mubr.msk.bf16.mxu1 %vm943_vm3, %v8005_v26 }
 0x195   : > { %6204 = vmatmul.mubr.msk.bf16.gmra.mrb[8].mxu0 %vm943_vm3, %v7559_v47 }
 0x196   : > { %6054 = vmatmul.mubr.msk.bf16.gmra.mrb[28].mxu1 %vm943_vm3, %v8059_v9  ;;  %6207 = vmatprep.mubr.msk.bf16.mxu0 %vm943_vm3, %v7631_v1 }
 0x197   : > { %6075 = vmatprep.mubr.msk.bf16.mxu1 %vm943_vm3, %v9466_v62 }
 0x19d   : > { %6208 = vmatmul.mubr.msk.bf16.gmra.mrb[12].mxu0 %vm943_vm3, %v7677_v20 }
 0x19e   : > { %6076 = vmatmul.mubr.msk.bf16.vlgmr.msra.gmra.mrb[16].mxu1 %vm943_vm3, %v9467_v37  ;;  %6211 = vmatprep.mubr.msk.bf16.mxu0 %vm943_vm3, %v7687_v53 }
 0x19f   : > { %6079 = vmatprep.mubr.msk.bf16.mxu1 %vm943_vm3, %v9468_v56 }
 0x1a5   : > { %6212 = vmatmul.mubr.msk.bf16.gmra.mrb[16].mxu0 %vm943_vm3, %v7736_v50 }
 0x1a6   : > { %6080 = vmatmul.mubr.msk.bf16.gmra.mrb[20].mxu1 %vm943_vm3, %v9469_v16  ;;  %6215 = vmatprep.mubr.msk.bf16.mxu0 %vm943_vm3, %v7757_v48 }
 0x1a7   : > { %6083 = vmatprep.mubr.msk.bf16.mxu1 %vm943_vm3, %v9470_v5 }
 0x1ad   : > { %6216 = vmatmul.mubr.msk.bf16.gmra.mrb[20].mxu0 %vm943_vm3, %v7810_v4 }
 0x1ae   : > { %6084 = vmatmul.mubr.msk.bf16.gmra.mrb[24].mxu1 %vm943_vm3, %v9471_v54  ;;  %6219 = vmatprep.mubr.msk.bf16.mxu0 %vm943_vm3, %v7827_v22 }
 0x1af   : > { %6087 = vmatprep.mubr.msk.bf16.mxu1 %vm943_vm3, %v7506_v7 }
 0x1b5   : > { %6220 = vmatmul.mubr.msk.bf16.gmra.mrb[24].mxu0 %vm943_vm3, %v7857_v44  ;;  %v6675_v44 = vmov 1983009808  }
 0x1b6   : > { %6088 = vmatmul.mubr.msk.bf16.gmra.mrb[28].mxu1 %vm943_vm3, %v7981_v30  ;;  %6223 = vmatprep.mubr.msk.bf16.mxu0 %vm943_vm3, %v7882_v25  ;;  %v3385_v63 = vunpack.c.l.s4 %v6675_v44  ;;  %v3387_v25 = vlaneseq }
 0x1b8   : > { %v3386_v52 = vunpack.c.0.s8 %v3385_v63  ;;  %v8232_v0 = vshrl.u32 %v3387_v25, 7 }
 0x1ba   : > { %9472 = vst [vmem:[#allocation16_spill] sm:$0xff] %v8232_v0  ;;  %v8240_v45 = vsub.s32 %v3386_v52, %v8232_v0 }
 0x1bd   : > { %6224 = vmatmul.mubr.msk.bf16.gmra.mrb[28].mxu0 %vm943_vm3, %v8077_v11 }
 0x231   : > { %v6027_v38 = vpop.f32.mrb[0].mxu1 }
 0x232   : > { %v2008_v61 = vpop.f32.mrb[1].mxu1 }
 0x233   : > { %v6028_v47 = vpop.f32.mrb[2].mxu1 }
 0x234   : > { %v2011_v1 = vpop.f32.mrb[3].mxu1 }
 0x239   : > { %v6031_v7 = vpop.f32.mrb[4].mxu1 }
 0x23a   : > { %v2024_v20 = vpop.f32.mrb[5].mxu1 }
 0x23b   : > { %v8210_v53 = vpop.f32.mrb[6].mxu1 }
 0x23c   : > { %v8212_v51 = vpop.f32.mrb[7].mxu1 }
 0x241   : > { %v8214_v60 = vpop.f32.mrb[8].mxu1 }
 0x242   : > { %v8216_v50 = vpop.f32.mrb[9].mxu1 }
 0x243   : > { %v8218_v48 = vpop.f32.mrb[10].mxu1 }
 0x244   : > { %v8220_v59 = vpop.f32.mrb[11].mxu1 }
 0x249   : > { %v8222_v27 = vpop.f32.mrb[12].mxu1 }
 0x24a   : > { %v8224_v4 = vpop.f32.mrb[13].mxu1 }
 0x24b   : > { %v8226_v22 = vpop.f32.mrb[14].mxu1 }
 0x24c   : > { %v8228_v13 = vpop.f32.mrb[15].mxu1 }
 0x258   : > { %v6197_v33 = vpop.f32.mrb[0].mxu0 }
 0x259   : > { %v6229_v6 = vadd.f32 %v6197_v33, %v6027_v38  ;;  %v3082_v30 = vpop.f32.mrb[1].mxu0 }
 0x25a   : > { %v6230_v31 = vadd.f32 %v3082_v30, %v2008_v61  ;;  %v6198_v32 = vpop.f32.mrb[2].mxu0 }
 0x25b   : > { %v3250_v26 = vmul.f32 %v6229_v6, %v8230_v15  ;;  %v6231_v55 = vadd.f32 %v6198_v32, %v6028_v47  ;;  %v3085_v58 = vpop.f32.mrb[3].mxu0 }
 0x25c   : > { %v3248_v28 = vmul.f32 %v6230_v31, %v8230_v15  ;;  %v6232_v9 = vadd.f32 %v3085_v58, %v2011_v1 }
 0x25d   : > { %v3289_v18 = vadd.f32 %v8234_v46, %v3250_v26  ;;  %v3251_v29 = vmul.f32 %v6231_v55, %v8230_v15 }
 0x25e   : > { %v3287_v41 = vadd.f32 %v8234_v46, %v3248_v28  ;;  %v3249_v49 = vmul.f32 %v6232_v9, %v8230_v15 }
 0x25f   : > { %v3321_v12 = vmax.f32 %v3289_v18, 0.0  ;;  %v3290_v3 = vadd.f32 %v8234_v46, %v3251_v29 }
 0x260   : > { %v3319_v19 = vmax.f32 %v3287_v41, 0.0  ;;  %v3288_v23 = vadd.f32 %v8234_v46, %v3249_v49  ;;  %v6201_v14 = vpop.f32.mrb[4].mxu0 }
 0x261   : > { %v3417_v21 = vcombine.high %v3321_v12, %v3321_v12  ;;  %v3424_v10 = vrot.slane %v3321_v12, %v8240_v45  ;;  %v3322_v36 = vmax.f32 %v3290_v3, 0.0  ;;  %v6233_v42 = vadd.f32 %v6201_v14, %v6031_v7  ;;  %v3098_v24 = vpop.f32.mrb[5].mxu0 }
 0x262   : > { %v3383_v17 = vcombine.high %v3319_v19, %v3319_v19  ;;  %v3390_v34 = vrot.slane %v3319_v19, %v8240_v45  ;;  %v3320_v11 = vmax.f32 %v3288_v23, 0.0  ;;  %v6234_v43 = vadd.f32 %v3098_v24, %v2024_v20  ;;  %v6202_v57 = vpop.f32.mrb[6].mxu0 }
 0x263   : > { %v3431_v2 = vrot.slane %v3417_v21, %v8240_v45  ;;  %v3432_v35 = vcombine.high %v3424_v10, %v3424_v10  ;;  %v5634_v40 = vrot.slane %v3424_v10, 9  ;;  %v3434_v8 = vcombine.high %v3322_v36, %v3322_v36  ;;  %v3101_v39 = vpop.f32.mrb[7].mxu0 }
 0x264   : > { %v3397_v62 = vrot.slane %v3383_v17, %v8240_v45  ;;  %v3398_v37 = vcombine.high %v3390_v34, %v3390_v34  ;;  %v5626_v56 = vrot.slane %v3390_v34, 9  ;;  %v3441_v16 = vrot.slane %v3322_v36, %v8240_v45 }
 0x265   : > { %v3433_v5 = vcombine.high %v3431_v2, %v3431_v2  ;;  %v5635_v54 = vrot.slane %v3432_v35, 9  ;;  %v5636_v38 = vrot.slane %v3431_v2, 9  ;;  %v4447_v61 = vmax.f32 %v3424_v10, %v5634_v40 }
 0x266   : > { %v3399_v47 = vcombine.high %v3397_v62, %v3397_v62  ;;  %v5627_v1 = vrot.slane %v3398_v37, 9  ;;  %v5628_v7 = vrot.slane %v3397_v62, 9  ;;  %v4439_v20 = vmax.f32 %v3390_v34, %v5626_v56 }
 0x267   : > { %v5637_v44 = vrot.slane %v3433_v5, 9  ;;  %v4448_v63 = vmax.f32 %v3432_v35, %v5635_v54  ;;  %v8252_v25 = vmax.f32 %v3431_v2, %v5636_v38  ;;  %v3448_v33 = vrot.slane %v3434_v8, %v8240_v45 }
 0x268   : > { %v5629_v6 = vrot.slane %v3399_v47, 9  ;;  %v4440_v52 = vmax.f32 %v3398_v37, %v5627_v1  ;;  %v8255_v30 = vmax.f32 %v3397_v62, %v5628_v7  ;;  %v4567_v31 = vmax.f32 %v4439_v20, %v4447_v61  ;;  %v8257_v32 = vpop.f32.mrb[8].mxu0 }
 0x269   : > { %9473 = vst [vmem:[#allocation21_spill] sm:$0xff] %v8252_v25  ;;  %v4450_v26 = vmax.f32 %v3433_v5, %v5637_v44  ;;  %v3449_v55 = vcombine.high %v3441_v16, %v3441_v16  ;;  %v3450_v58 = vcombine.high %v3448_v33, %v3448_v33  ;;  %v5638_v28 = vrot.slane %v3441_v16, 9  ;;  %v8259_v9 = vpop.f32.mrb[9].mxu0 }
 0x26a   : > { %9474 = vst [vmem:[#allocation17_spill] sm:$0xff] %v8255_v30  ;;  %v4442_v18 = vmax.f32 %v3399_v47, %v5629_v6  ;;  %v4568_v29 = vmax.f32 %v4440_v52, %v4448_v63  ;;  %v5640_v49 = vrot.slane %v3448_v33, 9  ;;  %v8263_v12 = vpop.f32.mrb[10].mxu0  ;;  %v3400_v14 = vcombine.high %v3320_v11, %v3320_v11 }
 0x26b   : > { %v5639_v3 = vrot.slane %v3449_v55, 9  ;;  %v5641_v19 = vrot.slane %v3450_v58, 9  ;;  %v4451_v23 = vmax.f32 %v3441_v16, %v5638_v28  ;;  %v8265_v21 = vpop.f32.mrb[11].mxu0  ;;  %v3407_v17 = vrot.slane %v3320_v11, %v8240_v45 }
 0x26c   : > { %v4570_v10 = vmax.f32 %v4442_v18, %v4450_v26  ;;  %v8267_v36 = vrot.slane %v4568_v29, 7  ;;  %v8269_v24 = vmax.f32 %v3448_v33, %v5640_v49  ;;  %v3414_v35 = vrot.slane %v3400_v14, %v8240_v45 }
 0x26d   : > { %v4452_v34 = vmax.f32 %v3449_v55, %v5639_v3  ;;  %v4454_v2 = vmax.f32 %v3450_v58, %v5641_v19  ;;  %v3254_v40 = vmul.f32 %v6233_v42, %v8230_v15  ;;  %v3415_v37 = vcombine.high %v3407_v17, %v3407_v17 }
 0x26e   : > { %9475 = vst [vmem:[#allocation57_spill] sm:$0xff] %v8267_v36  ;;  %9476 = vst [vmem:[#allocation58_spill] sm:$0xff] %v8269_v24  ;;  %v8276_v8 = vsel %vm4700_vm12, %v8267_v36, %v4567_v31  ;;  %v8278_v62 = vrot.slane %v4570_v10, 7  ;;  %v5630_v56 = vrot.slane %v3407_v17, 9  ;;  %v3416_v16 = vcombine.high %v3414_v35, %v3414_v35 }
 0x26f   : > { %9477 = vst [vmem:[#allocation52_spill] sm:$0xff] %v8276_v8  ;;  %v5632_v5 = vrot.slane %v3414_v35, 9  ;;  %v3293_v54 = vadd.f32 %v8234_v46, %v3254_v40  ;;  %v3252_v11 = vmul.f32 %v6234_v43, %v8230_v15  ;;  %v5631_v61 = vrot.slane %v3415_v37, 9 }
 0x270   : > { %9478 = vst [vmem:[#allocation60_spill] sm:$0xff] %v8278_v62  ;;  %v4443_v47 = vmax.f32 %v3407_v17, %v5630_v56  ;;  %v6235_v42 = vadd.f32 %v6202_v57, %v8210_v53  ;;  %v6236_v1 = vadd.f32 %v3101_v39, %v8212_v51  ;;  %v8286_v7 = vpop.f32.mrb[12].mxu0  ;;  %v5633_v44 = vrot.slane %v3416_v16, 9 }
 0x271   : > { %v8282_v38 = vpop.f32.mrb[16].mxu1  ;;  %v8290_v63 = vmax.f32 %v3414_v35, %v5632_v5  ;;  %v3325_v33 = vmax.f32 %v3293_v54, 0.0  ;;  %v3291_v6 = vadd.f32 %v8234_v46, %v3252_v11  ;;  %v8293_v52 = vpop.f32.mrb[13].mxu0  ;;  %v4444_v31 = vmax.f32 %v3415_v37, %v5631_v61 }
 0x272   : > { %v8288_v20 = vpop.f32.mrb[17].mxu1  ;;  %v4571_v26 = vmax.f32 %v4443_v47, %v4451_v23  ;;  %v3255_v53 = vmul.f32 %v6235_v42, %v8230_v15  ;;  %v3253_v51 = vmul.f32 %v6236_v1, %v8230_v15  ;;  %v8299_v57 = vpop.f32.mrb[14].mxu0  ;;  %v4446_v55 = vmax.f32 %v3416_v16, %v5633_v44 }
 0x273   : > { %9479 = vst [vmem:[#allocation24_spill] sm:$0xff] %v8290_v63  ;;  %v8295_v43 = vpop.f32.mrb[18].mxu1  ;;  %v3485_v28 = vcombine.high %v3325_v33, %v3325_v33  ;;  %v3492_v18 = vrot.slane %v3325_v33, %v8240_v45  ;;  %v8306_v29 = vpop.f32.mrb[15].mxu0  ;;  %v4572_v49 = vmax.f32 %v4444_v31, %v4452_v34  ;;  %v3323_v3 = vmax.f32 %v3291_v6, 0.0 }
 0x274   : > { %v8301_v39 = vpop.f32.mrb[19].mxu1  ;;  %v3294_v19 = vadd.f32 %v8234_v46, %v3255_v53  ;;  %v3292_v23 = vadd.f32 %v8234_v46, %v3253_v51  ;;  %v4574_v14 = vmax.f32 %v4446_v55, %v4454_v2 }
 0x275   : > { %v3499_v10 = vrot.slane %v3485_v28, %v8240_v45  ;;  %v3500_v17 = vcombine.high %v3492_v18, %v3492_v18  ;;  %v5650_v35 = vrot.slane %v3492_v18, 9  ;;  %v8311_v40 = vrot.slane %v4572_v49, 7 }
 0x276   : > { %v3451_v37 = vcombine.high %v3323_v3, %v3323_v3  ;;  %v3458_v56 = vrot.slane %v3323_v3, %v8240_v45  ;;  %v3326_v16 = vmax.f32 %v3294_v19, 0.0  ;;  %v8314_v5 = vrot.slane %v4574_v14, 7 }
 0x277   : > { %9480 = vst [vmem:[#allocation19_spill] sm:$0xff] %v8311_v40  ;;  %v3501_v54 = vcombine.high %v3499_v10, %v3499_v10  ;;  %v5651_v34 = vrot.slane %v3500_v17, 9  ;;  %v5652_v11 = vrot.slane %v3499_v10, 9  ;;  %v8320_v2 = vsel %vm4700_vm12, %v8311_v40, %v4571_v26 }
 0x278   : > { %9481 = vst [vmem:[#allocation27_spill] sm:$0xff] %v8314_v5  ;;  %9482 = vst [vmem:[#allocation20_spill] sm:$0xff] %v8320_v2  ;;  %v4463_v47 = vmax.f32 %v3492_v18, %v5650_v35  ;;  %v3465_v42 = vrot.slane %v3451_v37, %v8240_v45  ;;  %v3466_v1 = vcombine.high %v3458_v56, %v3458_v56  ;;  %v8323_v44 = vpop.f32.mrb[16].mxu0  ;;  %v5642_v51 = vrot.slane %v3458_v56, 9 }
 0x279   : > { %v8316_v61 = vpop.f32.mrb[20].mxu1  ;;  %v5653_v6 = vrot.slane %v3501_v54, 9  ;;  %v4464_v31 = vmax.f32 %v3500_v17, %v5651_v34  ;;  %v8327_v53 = vmax.f32 %v3499_v10, %v5652_v11  ;;  %v8329_v55 = vpop.f32.mrb[17].mxu0  ;;  %v3502_v18 = vcombine.high %v3326_v16, %v3326_v16 }
 0x27a   : > { %v8325_v33 = vpop.f32.mrb[21].mxu1  ;;  %v3467_v49 = vcombine.high %v3465_v42, %v3465_v42  ;;  %v5643_v26 = vrot.slane %v3466_v1, 9  ;;  %v5644_v3 = vrot.slane %v3465_v42, 9  ;;  %v8333_v19 = vpop.f32.mrb[18].mxu0  ;;  %v4455_v37 = vmax.f32 %v3458_v56, %v5642_v51 }
 0x27b   : > { %9483 = vst [vmem:[#allocation29_spill] sm:$0xff] %v8327_v53  ;;  %v8331_v28 = vpop.f32.mrb[22].mxu1  ;;  %v4466_v35 = vmax.f32 %v3501_v54, %v5653_v6  ;;  %v3509_v58 = vrot.slane %v3326_v16, %v8240_v45  ;;  %v3324_v17 = vmax.f32 %v3292_v23, 0.0  ;;  %v8338_v10 = vpop.f32.mrb[19].mxu0  ;;  %v3516_v0 = vrot.slane %v3502_v18, %v8240_v45 }
 0x27c   : > { %v8335_v14 = vpop.f32.mrb[23].mxu1  ;;  %v5645_v34 = vrot.slane %v3467_v49, 9  ;;  %v4456_v11 = vmax.f32 %v3466_v1, %v5643_v26  ;;  %v8340_v41 = vmax.f32 %v3465_v42, %v5644_v3  ;;  %v4575_v5 = vmax.f32 %v4455_v37, %v4463_v47 }
 0x27d   : > { %v3517_v24 = vcombine.high %v3509_v58, %v3509_v58  ;;  %v5654_v63 = vrot.slane %v3509_v58, 9  ;;  %v3468_v62 = vcombine.high %v3324_v17, %v3324_v17  ;;  %v3518_v54 = vcombine.high %v3516_v0, %v3516_v0 }
 0x27e   : > { %9484 = vst [vmem:[#allocation22_spill] sm:$0xff] %v8340_v41  ;;  %v4458_v25 = vmax.f32 %v3467_v49, %v5645_v34  ;;  %v4576_v30 = vmax.f32 %v4456_v11, %v4464_v31  ;;  %v5656_v23 = vrot.slane %v3516_v0, 9  ;;  %v3475_v1 = vrot.slane %v3324_v17, %v8240_v45 }
 0x27f   : > { %v5655_v16 = vrot.slane %v3517_v24, 9  ;;  %v8345_v6 = vmax.f32 %v3509_v58, %v5654_v63  ;;  %v5657_v47 = vrot.slane %v3518_v54, 9  ;;  %v3482_v3 = vrot.slane %v3468_v62, %v8240_v45 }
 0x280   : > { %v4578_v51 = vmax.f32 %v4458_v25, %v4466_v35  ;;  %v8350_v26 = vrot.slane %v4576_v30, 7  ;;  %v8353_v49 = vpop.f32.mrb[20].mxu0  ;;  %v8357_v37 = vmax.f32 %v3516_v0, %v5656_v23  ;;  %v3483_v34 = vcombine.high %v3475_v1, %v3475_v1 }
 0x281   : > { %v8348_v42 = vpop.f32.mrb[24].mxu1  ;;  %v4468_v18 = vmax.f32 %v3517_v24, %v5655_v16  ;;  %v5646_v63 = vrot.slane %v3475_v1, 9  ;;  %v8359_v58 = vpop.f32.mrb[21].mxu0  ;;  %v4470_v62 = vmax.f32 %v3518_v54, %v5657_v47  ;;  %v3484_v35 = vcombine.high %v3482_v3, %v3482_v3 }
 0x282   : > { %9485 = vst [vmem:[#allocation31_spill] sm:$0xff] %v8350_v26  ;;  %v8355_v31 = vpop.f32.mrb[25].mxu1  ;;  %9486 = vst [vmem:[#allocation72_spill] sm:$0xff] %v8357_v37  ;;  %v8365_v25 = vsel %vm4700_vm12, %v8350_v26, %v4575_v5  ;;  %v8367_v30 = vrot.slane %v4578_v51, 7  ;;  %v8369_v11 = vpop.f32.mrb[22].mxu0  ;;  %v5647_v0 = vrot.slane %v3483_v34, 9  ;;  %v6237_v23 = vadd.f32 %v8257_v32, %v8214_v60 }
 0x283   : > { %v8361_v17 = vpop.f32.mrb[26].mxu1  ;;  %9487 = vst [vmem:[#allocation33_spill] sm:$0xff] %v8365_v25  ;;  %v5648_v24 = vrot.slane %v3482_v3, 9  ;;  %v4459_v16 = vmax.f32 %v3475_v1, %v5646_v63  ;;  %v8375_v53 = vpop.f32.mrb[23].mxu0  ;;  %v5649_v41 = vrot.slane %v3484_v35, 9  ;;  %v6238_v5 = vadd.f32 %v8259_v9, %v8216_v50 }
 0x284   : > { %9488 = vst [vmem:[#allocation25_spill] sm:$0xff] %v8367_v30  ;;  %v8371_v56 = vpop.f32.mrb[27].mxu1  ;;  %v6239_v54 = vadd.f32 %v8263_v12, %v8218_v48  ;;  %v6240_v51 = vadd.f32 %v8265_v21, %v8220_v59  ;;  %v4460_v47 = vmax.f32 %v3483_v34, %v5647_v0  ;;  %v3258_v63 = vmul.f32 %v6237_v23, %v8230_v15 }
 0x285   : > { %v8383_v30 = vmax.f32 %v3482_v3, %v5648_v24  ;;  %v4579_v1 = vmax.f32 %v4459_v16, %v8345_v6  ;;  %v4462_v60 = vmax.f32 %v3484_v35, %v5649_v41  ;;  %v3256_v32 = vmul.f32 %v6238_v5, %v8230_v15 }
 0x286   : > { %v3259_v26 = vmul.f32 %v6239_v54, %v8230_v15  ;;  %v3257_v50 = vmul.f32 %v6240_v51, %v8230_v15  ;;  %v4580_v9 = vmax.f32 %v4460_v47, %v4468_v18  ;;  %v3297_v59 = vadd.f32 %v8234_v46, %v3258_v63 }
 0x287   : > { %9489 = vst [vmem:[#allocation77_spill] sm:$0xff] %v8383_v30  ;;  %v6241_v12 = vadd.f32 %v8286_v7, %v8222_v27  ;;  %v4582_v6 = vmax.f32 %v4462_v60, %v4470_v62  ;;  %v3295_v41 = vadd.f32 %v8234_v46, %v3256_v32  ;;  %v8409_v27 = vadd.f32 %v8293_v52, %v8224_v4 }
 0x288   : > { %v3298_v3 = vadd.f32 %v8234_v46, %v3259_v26  ;;  %v3296_v34 = vadd.f32 %v8234_v46, %v3257_v50  ;;  %v8400_v35 = vpop.f32.mrb[24].mxu0  ;;  %v8404_v0 = vrot.slane %v4580_v9, 7  ;;  %v3329_v24 = vmax.f32 %v3297_v59, 0.0 }
 0x289   : > { %v8395_v21 = vpop.f32.mrb[28].mxu1  ;;  %v3262_v16 = vmul.f32 %v6241_v12, %v8230_v15  ;;  %v8411_v7 = vpop.f32.mrb[25].mxu0  ;;  %v8415_v26 = vrot.slane %v4582_v6, 7  ;;  %v3327_v23 = vmax.f32 %v3295_v41, 0.0 }
 0x28a   : > { %9490 = vst [vmem:[#allocation36_spill] sm:$0xff] %v8395_v21  ;;  %v8402_v18 = vpop.f32.mrb[29].mxu1  ;;  %9492 = vst [vmem:[#allocation37_spill] sm:$0xff] %v8404_v0  ;;  %v3330_v5 = vmax.f32 %v3298_v3, 0.0  ;;  %v3328_v54 = vmax.f32 %v3296_v34, 0.0  ;;  %v8417_v51 = vpop.f32.mrb[26].mxu0  ;;  %v8423_v63 = vsel %vm4700_vm12, %v8404_v0, %v4579_v1  ;;  %v3553_v60 = vcombine.high %v3329_v24, %v3329_v24 }
 0x28b   : > { %9491 = vst [vmem:[#allocation26_spill] sm:$0xff] %v8402_v18  ;;  %v8413_v62 = vpop.f32.mrb[30].mxu1  ;;  %9494 = vst [vmem:[#allocation39_spill] sm:$0xff] %v8415_v26  ;;  %v3560_v4 = vrot.slane %v3329_v24, %v8240_v45  ;;  %v3301_v52 = vadd.f32 %v8234_v46, %v3262_v16  ;;  %v8427_v32 = vpop.f32.mrb[27].mxu0  ;;  %v3519_v50 = vcombine.high %v3327_v23, %v3327_v23 }
 0x28c   : > { %9493 = vst [vmem:[#allocation28_spill] sm:$0xff] %v8413_v62  ;;  %v8419_v47 = vpop.f32.mrb[31].mxu1  ;;  %9496 = vst [vmem:[#allocation78_spill] sm:$0xff] %v8423_v63  ;;  %v3526_v9 = vrot.slane %v3327_v23, %v8240_v45  ;;  %v3570_v59 = vcombine.high %v3330_v5, %v3330_v5  ;;  %v3577_v12 = vrot.slane %v3330_v5, %v8240_v45 }
 0x28d   : > { %9495 = vst [vmem:[#allocation32_spill] sm:$0xff] %v8419_v47  ;;  %9497 = vst [vmem:[#allocation79_spill] sm:$0xff] %v8427_v32  ;;  %v3567_v6 = vrot.slane %v3553_v60, %v8240_v45  ;;  %v3568_v41 = vcombine.high %v3560_v4, %v3560_v4  ;;  %v5666_v3 = vrot.slane %v3560_v4, 9  ;;  %v3536_v34 = vcombine.high %v3328_v54, %v3328_v54 }
 0x28e   : > { %v3533_v1 = vrot.slane %v3519_v50, %v8240_v45  ;;  %v3534_v48 = vcombine.high %v3526_v9, %v3526_v9  ;;  %v5658_v26 = vrot.slane %v3526_v9, 9  ;;  %v3584_v24 = vrot.slane %v3570_v59, %v8240_v45 }
 0x28f   : > { %v3569_v16 = vcombine.high %v3567_v6, %v3567_v6  ;;  %v5667_v37 = vrot.slane %v3568_v41, 9  ;;  %v5668_v30 = vrot.slane %v3567_v6, 9  ;;  %v4479_v0 = vmax.f32 %v3560_v4, %v5666_v3 }
 0x290   : > { %v3535_v63 = vcombine.high %v3533_v1, %v3533_v1  ;;  %v5659_v23 = vrot.slane %v3534_v48, 9  ;;  %v5660_v25 = vrot.slane %v3533_v1, 9  ;;  %v4471_v40 = vmax.f32 %v3526_v9, %v5658_v26  ;;  %v8434_v5 = vpop.f32.mrb[28].mxu0 }
 0x291   : > { %9498 = vst [vmem:[#allocation40_spill] sm:$0xff] %v8434_v5  ;;  %v5669_v60 = vrot.slane %v3569_v16, 9  ;;  %v4480_v2 = vmax.f32 %v3568_v41, %v5667_v37  ;;  %v8436_v36 = vmax.f32 %v3567_v6, %v5668_v30  ;;  %v3585_v8 = vcombine.high %v3577_v12, %v3577_v12  ;;  %v8438_v50 = vpop.f32.mrb[29].mxu0 }
 0x292   : > { %9500 = vst [vmem:[#allocation43_spill] sm:$0xff] %v8438_v50  ;;  %v5661_v47 = vrot.slane %v3535_v63, 9  ;;  %v4472_v62 = vmax.f32 %v3534_v48, %v5659_v23  ;;  %v8440_v59 = vmax.f32 %v3533_v1, %v5660_v25  ;;  %v4583_v18 = vmax.f32 %v4471_v40, %v4479_v0  ;;  %v8442_v21 = vpop.f32.mrb[30].mxu0 }
 0x293   : > { %9499 = vst [vmem:[#allocation35_spill] sm:$0xff] %v8436_v36  ;;  %v4482_v4 = vmax.f32 %v3569_v16, %v5669_v60  ;;  %v3586_v3 = vcombine.high %v3584_v24, %v3584_v24  ;;  %v5670_v32 = vrot.slane %v3577_v12, 9  ;;  %v5671_v26 = vrot.slane %v3585_v8, 9  ;;  %v8444_v9 = vpop.f32.mrb[31].mxu0 }
 0x294   : > { %v4474_v5 = vmax.f32 %v3535_v63, %v5661_v47  ;;  %v4584_v37 = vmax.f32 %v4472_v62, %v4480_v2  ;;  %v5672_v6 = vrot.slane %v3584_v24, 9  ;;  %v3543_v25 = vrot.slane %v3328_v54, %v8240_v45 }
 0x295   : > { %v5673_v41 = vrot.slane %v3586_v3, 9  ;;  %v4483_v50 = vmax.f32 %v3577_v12, %v5670_v32  ;;  %v4484_v48 = vmax.f32 %v3585_v8, %v5671_v26  ;;  %v3550_v16 = vrot.slane %v3536_v34, %v8240_v45 }
 0x296   : > { %v4586_v40 = vmax.f32 %v4474_v5, %v4482_v4  ;;  %v8449_v0 = vrot.slane %v4584_v37, 7  ;;  %v8451_v1 = vmax.f32 %v3584_v24, %v5672_v6  ;;  %v3551_v60 = vcombine.high %v3543_v25, %v3543_v25 }
 0x297   : > { %v4486_v23 = vmax.f32 %v3586_v3, %v5673_v41  ;;  %v5662_v47 = vrot.slane %v3543_v25, 9  ;;  %v3333_v2 = vmax.f32 %v3301_v52, 0.0  ;;  %v3552_v8 = vcombine.high %v3550_v16, %v3550_v16 }
 0x298   : > { %v8456_v62 = vsel %vm4700_vm12, %v8449_v0, %v4583_v18  ;;  %v8458_v63 = vrot.slane %v4586_v40, 7  ;;  %v5664_v32 = vrot.slane %v3550_v16, 9  ;;  %v5663_v54 = vrot.slane %v3551_v60, 9 }
 0x299   : > { %v4475_v12 = vmax.f32 %v3543_v25, %v5662_v47  ;;  %v3621_v5 = vcombine.high %v3333_v2, %v3333_v2  ;;  %v3628_v24 = vrot.slane %v3333_v2, %v8240_v45  ;;  %v5665_v4 = vrot.slane %v3552_v8, 9 }
 0x29a   : > { %9501 = vst [vmem:[#allocation44_spill] sm:$0xff] %v8458_v63  ;;  %v8461_v26 = vmax.f32 %v3550_v16, %v5664_v32  ;;  %v3260_v34 = vmul.f32 %v8409_v27, %v8230_v15  ;;  %v6243_v52 = vadd.f32 %v8299_v57, %v8226_v22  ;;  %v4476_v18 = vmax.f32 %v3551_v60, %v5663_v54 }
 0x29b   : > { %v4587_v3 = vmax.f32 %v4475_v12, %v4483_v50  ;;  %v3635_v37 = vrot.slane %v3621_v5, %v8240_v45  ;;  %v3636_v6 = vcombine.high %v3628_v24, %v3628_v24  ;;  %v4478_v41 = vmax.f32 %v3552_v8, %v5665_v4 }
 0x29c   : > { %v5682_v40 = vrot.slane %v3628_v24, 9  ;;  %v3299_v47 = vadd.f32 %v8234_v46, %v3260_v34  ;;  %v4588_v16 = vmax.f32 %v4476_v18, %v4484_v48  ;;  %v3263_v22 = vmul.f32 %v6243_v52, %v8230_v15 }
 0x29d   : > { %v3637_v2 = vcombine.high %v3635_v37, %v3635_v37  ;;  %v5683_v32 = vrot.slane %v3636_v6, 9  ;;  %v5684_v30 = vrot.slane %v3635_v37, 9  ;;  %v4590_v27 = vmax.f32 %v4478_v41, %v4486_v23 }
 0x29e   : > { %v4495_v63 = vmax.f32 %v3628_v24, %v5682_v40  ;;  %v3331_v36 = vmax.f32 %v3299_v47, 0.0  ;;  %v8472_v57 = vrot.slane %v4588_v16, 7  ;;  %v3302_v48 = vadd.f32 %v8234_v46, %v3263_v22 }
 0x29f   : > { %v5685_v50 = vrot.slane %v3637_v2, 9  ;;  %v4496_v60 = vmax.f32 %v3636_v6, %v5683_v32  ;;  %v8474_v8 = vmax.f32 %v3635_v37, %v5684_v30  ;;  %v8476_v54 = vrot.slane %v4590_v27, 7 }
 0x2a0   : > { %v3587_v12 = vcombine.high %v3331_v36, %v3331_v36  ;;  %v3594_v5 = vrot.slane %v3331_v36, %v8240_v45  ;;  %v8482_v23 = vsel %vm4700_vm12, %v8472_v57, %v4587_v3  ;;  %v6244_v4 = vadd.f32 %v8306_v29, %v8228_v13 }
 0x2a1   : > { %9502 = vst [vmem:[#allocation42_spill] sm:$0xff] %v8474_v8  ;;  %v4498_v24 = vmax.f32 %v3637_v2, %v5685_v50  ;;  %v6245_v34 = vadd.f32 %v8323_v44, %v8282_v38  ;;  %v3334_v37 = vmax.f32 %v3302_v48, 0.0  ;;  %v6246_v3 = vadd.f32 %v8329_v55, %v8288_v20 }
 0x2a2   : > { %v3601_v30 = vrot.slane %v3587_v12, %v8240_v45  ;;  %v3602_v52 = vcombine.high %v3594_v5, %v3594_v5  ;;  %v5674_v18 = vrot.slane %v3594_v5, 9  ;;  %v3261_v36 = vmul.f32 %v6244_v4, %v8230_v15 }
 0x2a3   : > { %v3266_v6 = vmul.f32 %v6245_v34, %v8230_v15  ;;  %v8495_v41 = vadd.f32 %v8333_v19, %v8295_v43  ;;  %v3638_v44 = vcombine.high %v3334_v37, %v3334_v37  ;;  %v3645_v47 = vrot.slane %v3334_v37, %v8240_v45 }
 0x2a4   : > { %v3603_v13 = vcombine.high %v3601_v30, %v3601_v30  ;;  %v5675_v29 = vrot.slane %v3602_v52, 9  ;;  %v5676_v40 = vrot.slane %v3601_v30, 9  ;;  %v4487_v38 = vmax.f32 %v3594_v5, %v5674_v18 }
 0x2a5   : > { %v3300_v16 = vadd.f32 %v8234_v46, %v3261_v36  ;;  %v3305_v2 = vadd.f32 %v8234_v46, %v3266_v6  ;;  %v3652_v55 = vrot.slane %v3638_v44, %v8240_v45  ;;  %v3653_v43 = vcombine.high %v3645_v47, %v3645_v47 }
 0x2a6   : > { %v5677_v32 = vrot.slane %v3603_v13, 9  ;;  %v4488_v27 = vmax.f32 %v3602_v52, %v5675_v29  ;;  %v8500_v22 = vmax.f32 %v3601_v30, %v5676_v40  ;;  %v4591_v20 = vmax.f32 %v4487_v38, %v4495_v63 }
 0x2a7   : > { %v5686_v19 = vrot.slane %v3645_v47, 9  ;;  %v3332_v50 = vmax.f32 %v3300_v16, 0.0  ;;  %v3337_v4 = vmax.f32 %v3305_v2, 0.0  ;;  %v3654_v34 = vcombine.high %v3652_v55, %v3652_v55 }
 0x2a8   : > { %v4490_v12 = vmax.f32 %v3603_v13, %v5677_v32  ;;  %v4592_v48 = vmax.f32 %v4488_v27, %v4496_v60  ;;  %v5687_v18 = vrot.slane %v3653_v43, 9  ;;  %v5688_v37 = vrot.slane %v3652_v55, 9 }
 0x2a9   : > { %v4499_v36 = vmax.f32 %v3645_v47, %v5686_v19  ;;  %v3604_v30 = vcombine.high %v3332_v50, %v3332_v50  ;;  %v3611_v63 = vrot.slane %v3332_v50, %v8240_v45  ;;  %v5689_v29 = vrot.slane %v3654_v34, 9 }
 0x2aa   : > { %v4594_v6 = vmax.f32 %v4490_v12, %v4498_v24  ;;  %v8505_v52 = vrot.slane %v4592_v48, 7  ;;  %v4500_v40 = vmax.f32 %v3653_v43, %v5687_v18  ;;  %v8508_v38 = vmax.f32 %v3652_v55, %v5688_v37 }
 0x2ab   : > { %v3689_v13 = vcombine.high %v3337_v4, %v3337_v4  ;;  %v3618_v16 = vrot.slane %v3604_v30, %v8240_v45  ;;  %v3619_v47 = vcombine.high %v3611_v63, %v3611_v63  ;;  %v4502_v24 = vmax.f32 %v3654_v34, %v5689_v29 }
 0x2ac   : > { %v8512_v60 = vsel %vm4700_vm12, %v8505_v52, %v4591_v20  ;;  %v8514_v44 = vrot.slane %v4594_v6, 7  ;;  %v5678_v2 = vrot.slane %v3611_v63, 9  ;;  %v3696_v32 = vrot.slane %v3337_v4, %v8240_v45 }
 0x2ad   : > { %v3703_v27 = vrot.slane %v3689_v13, %v8240_v45  ;;  %v3620_v19 = vcombine.high %v3618_v16, %v3618_v16  ;;  %v5679_v43 = vrot.slane %v3619_v47, 9  ;;  %v5680_v55 = vrot.slane %v3618_v16, 9 }
 0x2ae   : > { %9503 = vst [vmem:[#allocation45_spill] sm:$0xff] %v8514_v44  ;;  %v3264_v50 = vmul.f32 %v6246_v3, %v8230_v15  ;;  %v4491_v12 = vmax.f32 %v3611_v63, %v5678_v2  ;;  %v3704_v48 = vcombine.high %v3696_v32, %v3696_v32  ;;  %v5698_v18 = vrot.slane %v3696_v32, 9 }
 0x2af   : > { %v3705_v20 = vcombine.high %v3703_v27, %v3703_v27  ;;  %v5681_v37 = vrot.slane %v3620_v19, 9  ;;  %v4492_v6 = vmax.f32 %v3619_v47, %v5679_v43  ;;  %v8520_v5 = vmax.f32 %v3618_v16, %v5680_v55 }
 0x2b0   : > { %v5700_v30 = vrot.slane %v3703_v27, 9  ;;  %v4595_v34 = vmax.f32 %v4491_v12, %v4499_v36  ;;  %v5699_v29 = vrot.slane %v3704_v48, 9  ;;  %v8522_v4 = vmax.f32 %v3696_v32, %v5698_v18 }
 0x2b1   : > { %v5701_v25 = vrot.slane %v3705_v20, 9  ;;  %v4494_v13 = vmax.f32 %v3620_v19, %v5681_v37  ;;  %v4596_v44 = vmax.f32 %v4492_v6, %v4500_v40  ;;  %v3303_v47 = vadd.f32 %v8234_v46, %v3264_v50 }
 0x2b2   : > { %v8526_v3 = vmax.f32 %v3703_v27, %v5700_v30  ;;  %v4512_v63 = vmax.f32 %v3704_v48, %v5699_v29  ;;  %v3267_v16 = vmul.f32 %v8495_v41, %v8230_v15  ;;  %v6248_v32 = vadd.f32 %v8338_v10, %v8301_v39 }
 0x2b3   : > { %v8528_v2 = vmax.f32 %v3705_v20, %v5701_v25  ;;  %v4598_v36 = vmax.f32 %v4494_v13, %v4502_v24  ;;  %v8533_v43 = vrot.slane %v4596_v44, 7  ;;  %v6249_v40 = vadd.f32 %v8353_v49, %v8316_v61 }
 0x2b4   : > { %v3335_v19 = vmax.f32 %v3303_v47, 0.0  ;;  %v3306_v27 = vadd.f32 %v8234_v46, %v3267_v16  ;;  %v6250_v25 = vadd.f32 %v8359_v58, %v8325_v33  ;;  %v6251_v55 = vadd.f32 %v8369_v11, %v8331_v28 }
 0x2b5   : > { %v8546_v41 = vsel %vm4700_vm12, %v8533_v43, %v4595_v34  ;;  %v8548_v44 = vrot.slane %v4598_v36, 7  ;;  %v3265_v39 = vmul.f32 %v6248_v32, %v8230_v15  ;;  %v3270_v10 = vmul.f32 %v6249_v40, %v8230_v15 }
 0x2b6   : > { %v3655_v61 = vcombine.high %v3335_v19, %v3335_v19  ;;  %v3662_v49 = vrot.slane %v3335_v19, %v8240_v45  ;;  %v3338_v24 = vmax.f32 %v3306_v27, 0.0  ;;  %v3268_v50 = vmul.f32 %v6250_v25, %v8230_v15 }
 0x2b7   : > { %v3304_v33 = vadd.f32 %v8234_v46, %v3265_v39  ;;  %v3309_v28 = vadd.f32 %v8234_v46, %v3270_v10  ;;  %v3271_v58 = vmul.f32 %v6251_v55, %v8230_v15  ;;  %v8559_v11 = vadd.f32 %v8375_v53, %v8335_v14 }
 0x2b8   : > { %v3669_v12 = vrot.slane %v3655_v61, %v8240_v45  ;;  %v3670_v48 = vcombine.high %v3662_v49, %v3662_v49  ;;  %v5690_v20 = vrot.slane %v3662_v49, 9  ;;  %v3706_v18 = vcombine.high %v3338_v24, %v3338_v24 }
 0x2b9   : > { %v3713_v37 = vrot.slane %v3338_v24, %v8240_v45  ;;  %v3336_v6 = vmax.f32 %v3304_v33, 0.0  ;;  %v3341_v30 = vmax.f32 %v3309_v28, 0.0  ;;  %v3307_v34 = vadd.f32 %v8234_v46, %v3268_v50 }
 0x2ba   : > { %v3671_v29 = vcombine.high %v3669_v12, %v3669_v12  ;;  %v5691_v13 = vrot.slane %v3670_v48, 9  ;;  %v5692_v47 = vrot.slane %v3669_v12, 9  ;;  %v4503_v16 = vmax.f32 %v3662_v49, %v5690_v20 }
 0x2bb   : > { %v3720_v36 = vrot.slane %v3706_v18, %v8240_v45  ;;  %v3721_v32 = vcombine.high %v3713_v37, %v3713_v37  ;;  %v5702_v53 = vrot.slane %v3713_v37, 9  ;;  %v3672_v14 = vcombine.high %v3336_v6, %v3336_v6 }
 0x2bc   : > { %v5693_v40 = vrot.slane %v3671_v29, 9  ;;  %v4504_v19 = vmax.f32 %v3670_v48, %v5691_v13  ;;  %v8565_v27 = vmax.f32 %v3669_v12, %v5692_v47  ;;  %v4599_v25 = vmax.f32 %v4503_v16, %v8522_v4 }
 0x2bd   : > { %v3722_v55 = vcombine.high %v3720_v36, %v3720_v36  ;;  %v5703_v39 = vrot.slane %v3721_v32, 9  ;;  %v5704_v10 = vrot.slane %v3720_v36, 9  ;;  %v4515_v61 = vmax.f32 %v3713_v37, %v5702_v53 }
 0x2be   : > { %v4506_v24 = vmax.f32 %v3671_v29, %v5693_v40  ;;  %v4600_v50 = vmax.f32 %v4504_v19, %v4512_v63  ;;  %v3679_v33 = vrot.slane %v3336_v6, %v8240_v45  ;;  %v3686_v12 = vrot.slane %v3672_v14, %v8240_v45 }
 0x2bf   : > { %v5705_v28 = vrot.slane %v3722_v55, 9  ;;  %v4516_v20 = vmax.f32 %v3721_v32, %v5703_v39  ;;  %v8571_v18 = vmax.f32 %v3720_v36, %v5704_v10  ;;  %v3757_v16 = vcombine.high %v3341_v30, %v3341_v30 }
 0x2c0   : > { %v4602_v48 = vmax.f32 %v4506_v24, %v8528_v2  ;;  %v8575_v4 = vrot.slane %v4600_v50, 7  ;;  %v3687_v13 = vcombine.high %v3679_v33, %v3679_v33  ;;  %v5694_v47 = vrot.slane %v3679_v33, 9 }
 0x2c1   : > { %9504 = vst [vmem:[#allocation48_spill] sm:$0xff] %v8571_v18  ;;  %v4518_v37 = vmax.f32 %v3722_v55, %v5705_v28  ;;  %v3688_v29 = vcombine.high %v3686_v12, %v3686_v12  ;;  %v5696_v63 = vrot.slane %v3686_v12, 9  ;;  %v3764_v2 = vrot.slane %v3341_v30, %v8240_v45 }
 0x2c2   : > { %v8579_v53 = vsel %vm4700_vm12, %v8575_v4, %v4599_v25  ;;  %v8581_v6 = vrot.slane %v4602_v48, 7  ;;  %v5695_v36 = vrot.slane %v3687_v13, 9  ;;  %v4507_v32 = vmax.f32 %v3679_v33, %v5694_v47 }
 0x2c3   : > { %v5697_v40 = vrot.slane %v3688_v29, 9  ;;  %v8583_v14 = vmax.f32 %v3686_v12, %v5696_v63  ;;  %v3771_v19 = vrot.slane %v3757_v16, %v8240_v45  ;;  %v3339_v10 = vmax.f32 %v3307_v34, 0.0 }
 0x2c4   : > { %v4508_v39 = vmax.f32 %v3687_v13, %v5695_v36  ;;  %v4603_v55 = vmax.f32 %v4507_v32, %v4515_v61  ;;  %v3310_v24 = vadd.f32 %v8234_v46, %v3271_v58  ;;  %v3772_v28 = vcombine.high %v3764_v2, %v3764_v2 }
 0x2c5   : > { %9505 = vst [vmem:[#allocation47_spill] sm:$0xff] %v8583_v14  ;;  %v4510_v50 = vmax.f32 %v3688_v29, %v5697_v40  ;;  %v3773_v48 = vcombine.high %v3771_v19, %v3771_v19  ;;  %v5714_v33 = vrot.slane %v3764_v2, 9  ;;  %v5716_v47 = vrot.slane %v3771_v19, 9 }
 0x2c6   : > { %v4604_v49 = vmax.f32 %v4508_v39, %v4516_v20  ;;  %v3723_v12 = vcombine.high %v3339_v10, %v3339_v10  ;;  %v5715_v8 = vrot.slane %v3772_v28, 9  ;;  %v3730_v16 = vrot.slane %v3339_v10, %v8240_v45 }
 0x2c7   : > { %v4606_v63 = vmax.f32 %v4510_v50, %v4518_v37  ;;  %v5717_v30 = vrot.slane %v3773_v48, 9  ;;  %v4527_v34 = vmax.f32 %v3764_v2, %v5714_v33  ;;  %v8593_v61 = vmax.f32 %v3771_v19, %v5716_v47 }
 0x2c8   : > { %v8591_v13 = vrot.slane %v4604_v49, 7  ;;  %v3737_v58 = vrot.slane %v3723_v12, %v8240_v45  ;;  %v4528_v36 = vmax.f32 %v3772_v28, %v5715_v8  ;;  %v3738_v20 = vcombine.high %v3730_v16, %v3730_v16 }
 0x2c9   : > { %9506 = vst [vmem:[#allocation50_spill] sm:$0xff] %v8593_v61  ;;  %v8596_v29 = vrot.slane %v4606_v63, 7  ;;  %v4530_v32 = vmax.f32 %v3773_v48, %v5717_v30  ;;  %v5706_v39 = vrot.slane %v3730_v16, 9  ;;  %v3342_v49 = vmax.f32 %v3310_v24, 0.0 }
 0x2ca   : > { %v8600_v40 = vsel %vm4700_vm12, %v8591_v13, %v4603_v55  ;;  %v3739_v37 = vcombine.high %v3737_v58, %v3737_v58  ;;  %v5708_v50 = vrot.slane %v3737_v58, 9  ;;  %v5707_v10 = vrot.slane %v3738_v20, 9 }
 0x2cb   : > { %9507 = vst [vmem:[#allocation55_spill] sm:$0xff] %v8596_v29  ;;  %v3269_v2 = vmul.f32 %v8559_v11, %v8230_v15  ;;  %v6253_v19 = vadd.f32 %v8400_v35, %v8348_v42  ;;  %v4519_v47 = vmax.f32 %v3730_v16, %v5706_v39  ;;  %v6254_v28 = vadd.f32 %v8411_v7, %v8355_v31  ;;  %v8616_v7 = vld [vmem:[#allocation7] ss:$0 sm:$0xff] }
 0x2cc   : > { %v5709_v33 = vrot.slane %v3739_v37, 9  ;;  %v8606_v8 = vmax.f32 %v3737_v58, %v5708_v50  ;;  %v4520_v55 = vmax.f32 %v3738_v20, %v5707_v10  ;;  %v3774_v48 = vcombine.high %v3342_v49, %v3342_v49  ;;  %v8619_v10 = vld [vmem:[#allocation5] ss:$0 sm:$0xff] }
 0x2cd   : > { %v3781_v12 = vrot.slane %v3342_v49, %v8240_v45  ;;  %v3308_v63 = vadd.f32 %v8234_v46, %v3269_v2  ;;  %v4607_v30 = vmax.f32 %v4519_v47, %v4527_v34  ;;  %v3274_v42 = vmul.f32 %v6253_v19, %v8230_v15 }
 0x2ce   : > { %9508 = vst [vmem:[#allocation51_spill] sm:$0xff] %v8606_v8  ;;  %v4522_v24 = vmax.f32 %v3739_v37, %v5709_v33  ;;  %v4608_v35 = vmax.f32 %v4520_v55, %v4528_v36  ;;  %v3788_v16 = vrot.slane %v3774_v48, %v8240_v45  ;;  %v3272_v46 = vmul.f32 %v8619_v10, %v6254_v28 }
 0x2cf   : > { %v3789_v58 = vcombine.high %v3781_v12, %v3781_v12  ;;  %v5718_v39 = vrot.slane %v3781_v12, 9  ;;  %v3340_v31 = vmax.f32 %v3308_v63, 0.0  ;;  %v3313_v20 = vadd.f32 %v8616_v7, %v3274_v42 }
 0x2d0   : > { %v4610_v50 = vmax.f32 %v4522_v24, %v4530_v32  ;;  %v8622_v34 = vrot.slane %v4608_v35, 7  ;;  %v3790_v37 = vcombine.high %v3788_v16, %v3788_v16  ;;  %v5720_v15 = vrot.slane %v3788_v16, 9 }
 0x2d1   : > { %v5719_v49 = vrot.slane %v3789_v58, 9  ;;  %v4531_v2 = vmax.f32 %v3781_v12, %v5718_v39  ;;  %v3740_v19 = vcombine.high %v3340_v31, %v3340_v31  ;;  %v3747_v32 = vrot.slane %v3340_v31, %v8240_v45  ;;  %v9511_v39 = vld [vmem:[#allocation79_spill] sm:$0xff] }
 0x2d2   : > { %v8624_v36 = vrot.slane %v4610_v50, 7  ;;  %v8629_v33 = vsel %vm4700_vm12, %v8622_v34, %v4607_v30  ;;  %v5721_v47 = vrot.slane %v3790_v37, 9  ;;  %v8631_v48 = vmax.f32 %v3788_v16, %v5720_v15 }
 0x2d3   : > { %v4532_v55 = vmax.f32 %v3789_v58, %v5719_v49  ;;  %v3754_v28 = vrot.slane %v3740_v19, %v8240_v45  ;;  %v3755_v63 = vcombine.high %v3747_v32, %v3747_v32  ;;  %v5710_v24 = vrot.slane %v3747_v32, 9 }
 0x2d4   : > { %9509 = vst [vmem:[#allocation56_spill] sm:$0xff] %v8624_v36  ;;  %9510 = vst [vmem:[#allocation65_spill] sm:$0xff] %v8631_v48  ;;  %v3345_v42 = vmax.f32 %v3313_v20, 0.0  ;;  %v4534_v35 = vmax.f32 %v3790_v37, %v5721_v47  ;;  %v3311_v50 = vadd.f32 %v8616_v7, %v3272_v46  ;;  %v6255_v12 = vadd.f32 %v8417_v51, %v8361_v17 }
 0x2d5   : > { %v6256_v31 = vadd.f32 %v9511_v39, %v8371_v56  ;;  %v3756_v30 = vcombine.high %v3754_v28, %v3754_v28  ;;  %v5711_v11 = vrot.slane %v3755_v63, 9  ;;  %v5712_v25 = vrot.slane %v3754_v28, 9 }
 0x2d6   : > { %v4523_v58 = vmax.f32 %v3747_v32, %v5710_v24  ;;  %v3825_v16 = vcombine.high %v3345_v42, %v3345_v42  ;;  %v3832_v49 = vrot.slane %v3345_v42, %v8240_v45  ;;  %v3343_v15 = vmax.f32 %v3311_v50, 0.0 }
 0x2d7   : > { %v3275_v19 = vmul.f32 %v8619_v10, %v6255_v12  ;;  %v5713_v20 = vrot.slane %v3756_v30, 9  ;;  %v4524_v37 = vmax.f32 %v3755_v63, %v5711_v11  ;;  %v8641_v47 = vmax.f32 %v3754_v28, %v5712_v25 }
 0x2d8   : > { %v4611_v46 = vmax.f32 %v4523_v58, %v4531_v2  ;;  %v3839_v17 = vrot.slane %v3825_v16, %v8240_v45  ;;  %v3840_v51 = vcombine.high %v3832_v49, %v3832_v49  ;;  %v5730_v36 = vrot.slane %v3832_v49, 9 }
 0x2d9   : > { %9512 = vst [vmem:[#allocation59_spill] sm:$0xff] %v8641_v47  ;;  %v3791_v56 = vcombine.high %v3343_v15, %v3343_v15  ;;  %v4526_v39 = vmax.f32 %v3756_v30, %v5713_v20  ;;  %v4612_v61 = vmax.f32 %v4524_v37, %v4532_v55  ;;  %v3798_v24 = vrot.slane %v3343_v15, %v8240_v45 }
 0x2da   : > { %v3841_v42 = vcombine.high %v3839_v17, %v3839_v17  ;;  %v5731_v50 = vrot.slane %v3840_v51, 9  ;;  %v5732_v12 = vrot.slane %v3839_v17, 9  ;;  %v4543_v8 = vmax.f32 %v3832_v49, %v5730_v36 }
 0x2db   : > { %v4614_v11 = vmax.f32 %v4526_v39, %v4534_v35  ;;  %v8647_v25 = vrot.slane %v4612_v61, 7  ;;  %v3805_v2 = vrot.slane %v3791_v56, %v8240_v45  ;;  %v3806_v28 = vcombine.high %v3798_v24, %v3798_v24 }
 0x2dc   : > { %v5733_v63 = vrot.slane %v3841_v42, 9  ;;  %v4544_v58 = vmax.f32 %v3840_v51, %v5731_v50  ;;  %v8650_v16 = vmax.f32 %v3839_v17, %v5732_v12  ;;  %v5722_v55 = vrot.slane %v3798_v24, 9  ;;  %v9515_v17 = vld [vmem:[#allocation36_spill] sm:$0xff] }
 0x2dd   : > { %v8654_v30 = vsel %vm4700_vm12, %v8647_v25, %v4611_v46  ;;  %v8656_v15 = vrot.slane %v4614_v11, 7  ;;  %v3807_v20 = vcombine.high %v3805_v2, %v3805_v2  ;;  %v5723_v37 = vrot.slane %v3806_v28, 9  ;;  %v9516_v50 = vld [vmem:[#allocation40_spill] sm:$0xff]  ;;  %v9518_v11 = vld [vmem:[#allocation26_spill] sm:$0xff] }
 0x2de   : > { %9513 = vst [vmem:[#allocation66_spill] sm:$0xff] %v8650_v16  ;;  %v4546_v36 = vmax.f32 %v3841_v42, %v5733_v63  ;;  %v5724_v35 = vrot.slane %v3805_v2, 9  ;;  %v4535_v61 = vmax.f32 %v3798_v24, %v5722_v55  ;;  %v3314_v49 = vadd.f32 %v8616_v7, %v3275_v19 }
 0x2df   : > { %9514 = vst [vmem:[#allocation68_spill] sm:$0xff] %v8656_v15  ;;  %v5725_v56 = vrot.slane %v3807_v20, 9  ;;  %v4536_v39 = vmax.f32 %v3806_v28, %v5723_v37  ;;  %v3273_v51 = vmul.f32 %v8619_v10, %v6256_v31  ;;  %v6257_v12 = vadd.f32 %v9516_v50, %v9515_v17  ;;  %v9519_v15 = vld [vmem:[#allocation43_spill] sm:$0xff] }
 0x2e0   : > { %v8662_v32 = vmax.f32 %v3805_v2, %v5724_v35  ;;  %v4615_v46 = vmax.f32 %v4535_v61, %v4543_v8  ;;  %v3346_v48 = vmax.f32 %v3314_v49, 0.0  ;;  %v6258_v47 = vadd.f32 %v9519_v15, %v9518_v11 }
 0x2e1   : > { %v4538_v29 = vmax.f32 %v3807_v20, %v5725_v56  ;;  %v4616_v42 = vmax.f32 %v4536_v39, %v4544_v58  ;;  %v3312_v24 = vadd.f32 %v8616_v7, %v3273_v51  ;;  %v3278_v19 = vmul.f32 %v8619_v10, %v6257_v12 }
 0x2e2   : > { %9517 = vst [vmem:[#allocation70_spill] sm:$0xff] %v8662_v32  ;;  %v3842_v31 = vcombine.high %v3346_v48, %v3346_v48  ;;  %v3849_v63 = vrot.slane %v3346_v48, %v8240_v45  ;;  %v3276_v2 = vmul.f32 %v8619_v10, %v6258_v47 }
 0x2e3   : > { %v4618_v55 = vmax.f32 %v4538_v29, %v4546_v36  ;;  %v8672_v8 = vrot.slane %v4616_v42, 7  ;;  %v3344_v37 = vmax.f32 %v3312_v24, 0.0  ;;  %v3317_v15 = vadd.f32 %v8616_v7, %v3278_v19 }
 0x2e4   : > { %v3856_v58 = vrot.slane %v3842_v31, %v8240_v45  ;;  %v3857_v20 = vcombine.high %v3849_v63, %v3849_v63  ;;  %v5734_v35 = vrot.slane %v3849_v63, 9  ;;  %v3315_v61 = vadd.f32 %v8616_v7, %v3276_v2 }
 0x2e5   : > { %v8679_v49 = vsel %vm4700_vm12, %v8672_v8, %v4615_v46  ;;  %v8681_v56 = vrot.slane %v4618_v55, 7  ;;  %v3808_v48 = vcombine.high %v3344_v37, %v3344_v37  ;;  %v3815_v29 = vrot.slane %v3344_v37, %v8240_v45 }
 0x2e6   : > { %v3858_v47 = vcombine.high %v3856_v58, %v3856_v58  ;;  %v5735_v36 = vrot.slane %v3857_v20, 9  ;;  %v5736_v39 = vrot.slane %v3856_v58, 9  ;;  %v4547_v51 = vmax.f32 %v3849_v63, %v5734_v35 }
 0x2e7   : > { %9520 = vst [vmem:[#allocation12_spill] sm:$0xff] %v8681_v56  ;;  %v3822_v17 = vrot.slane %v3808_v48, %v8240_v45  ;;  %v3823_v50 = vcombine.high %v3815_v29, %v3815_v29  ;;  %v5726_v12 = vrot.slane %v3815_v29, 9  ;;  %v3349_v11 = vmax.f32 %v3317_v15, 0.0 }
 0x2e8   : > { %v5737_v42 = vrot.slane %v3858_v47, 9  ;;  %v4548_v24 = vmax.f32 %v3857_v20, %v5735_v36  ;;  %v8685_v19 = vmax.f32 %v3856_v58, %v5736_v39  ;;  %v3347_v46 = vmax.f32 %v3315_v61, 0.0 }
 0x2e9   : > { %v3824_v31 = vcombine.high %v3822_v17, %v3822_v17  ;;  %v5727_v2 = vrot.slane %v3823_v50, 9  ;;  %v5728_v55 = vrot.slane %v3822_v17, 9  ;;  %v4539_v28 = vmax.f32 %v3815_v29, %v5726_v12 }
 0x2ea   : > { %9521 = vst [vmem:[#allocation11_spill] sm:$0xff] %v8685_v19  ;;  %v4550_v37 = vmax.f32 %v3858_v47, %v5737_v42  ;;  %v3893_v56 = vcombine.high %v3349_v11, %v3349_v11  ;;  %v3900_v16 = vrot.slane %v3349_v11, %v8240_v45  ;;  %v3859_v63 = vcombine.high %v3347_v46, %v3347_v46 }
 0x2eb   : > { %v5729_v35 = vrot.slane %v3824_v31, 9  ;;  %v4540_v48 = vmax.f32 %v3823_v50, %v5727_v2  ;;  %v8688_v32 = vmax.f32 %v3822_v17, %v5728_v55  ;;  %v4619_v15 = vmax.f32 %v4539_v28, %v4547_v51 }
 0x2ec   : > { %v3907_v20 = vrot.slane %v3893_v56, %v8240_v45  ;;  %v3908_v58 = vcombine.high %v3900_v16, %v3900_v16  ;;  %v5746_v36 = vrot.slane %v3900_v16, 9  ;;  %v3866_v61 = vrot.slane %v3347_v46, %v8240_v45 }
 0x2ed   : > { %v4542_v39 = vmax.f32 %v3824_v31, %v5729_v35  ;;  %v4620_v18 = vmax.f32 %v4540_v48, %v4548_v24  ;;  %v3873_v47 = vrot.slane %v3859_v63, %v8240_v45 }
 0x2ee   : > { %v3909_v12 = vcombine.high %v3907_v20, %v3907_v20  ;;  %v5747_v11 = vrot.slane %v3908_v58, 9  ;;  %v5748_v42 = vrot.slane %v3907_v20, 9  ;;  %v4559_v50 = vmax.f32 %v3900_v16, %v5746_v36 }
 0x2ef   : > { %v4622_v17 = vmax.f32 %v4542_v39, %v4550_v37  ;;  %v8695_v2 = vrot.slane %v4620_v18, 7  ;;  %v3874_v28 = vcombine.high %v3866_v61, %v3866_v61  ;;  %v3875_v56 = vcombine.high %v3873_v47, %v3873_v47  ;;  %v9524_v18 = vld [vmem:[#allocation28_spill] sm:$0xff] }
 0x2f0   : > { %v5749_v51 = vrot.slane %v3909_v12, 9  ;;  %v4560_v55 = vmax.f32 %v3908_v58, %v5747_v11  ;;  %v8697_v14 = vmax.f32 %v3907_v20, %v5748_v42  ;;  %v5738_v46 = vrot.slane %v3866_v61, 9  ;;  %v9525_v20 = vld [vmem:[#allocation32_spill] sm:$0xff]  ;;  %v9527_v42 = vld [vmem:[#allocation57_spill] sm:$0xff] }
 0x2f1   : > { %v8701_v24 = vsel %vm4700_vm12, %v8695_v2, %v4619_v15  ;;  %v8703_v31 = vrot.slane %v4622_v17, 7  ;;  %v5739_v63 = vrot.slane %v3874_v28, 9  ;;  %v5740_v35 = vrot.slane %v3873_v47, 9  ;;  %v9526_v11 = vld [vmem:[#allocation52_spill] sm:$0xff] }
 0x2f2   : > { %9522 = vst [vmem:[#allocation62_spill] sm:$0xff] %v8697_v14  ;;  %v4562_v48 = vmax.f32 %v3909_v12, %v5749_v51  ;;  %v5741_v16 = vrot.slane %v3875_v56, 9  ;;  %v4551_v37 = vmax.f32 %v3866_v61, %v5738_v46  ;;  %v6259_v36 = vadd.f32 %v8442_v21, %v9524_v18  ;;  %v9528_v51 = vld [vmem:[#allocation20_spill] sm:$0xff]  ;;  %v9529_v46 = vld [vmem:[#allocation19_spill] sm:$0xff] }
 0x2f3   : > { %9523 = vst [vmem:[#allocation75_spill] sm:$0xff] %v8703_v31  ;;  %v4552_v39 = vmax.f32 %v3874_v28, %v5739_v63  ;;  %v8707_v29 = vmax.f32 %v3873_v47, %v5740_v35  ;;  %v6260_v58 = vadd.f32 %v8444_v9, %v9525_v20  ;;  %v4703_v15 = vsel %vm4702_vm13, %v9527_v42, %v9526_v11  ;;  %v9533_v20 = vld [vmem:[#allocation78_spill] sm:$0xff] }
 0x2f4   : > { %v4554_v17 = vmax.f32 %v3875_v56, %v5741_v16  ;;  %v4623_v31 = vmax.f32 %v4551_v37, %v4559_v50  ;;  %v3279_v19 = vmul.f32 %v8619_v10, %v6259_v36  ;;  %v4705_v47 = vsel %vm4704_vm14, %v9527_v42, %v4703_v15  ;;  %v9531_v16 = vld [vmem:[#allocation33_spill] sm:$0xff]  ;;  %v9532_v37 = vld [vmem:[#allocation31_spill] sm:$0xff] }
 0x2f5   : > { %v4624_v12 = vmax.f32 %v4552_v39, %v4560_v55  ;;  %v3277_v21 = vmul.f32 %v8619_v10, %v6260_v58  ;;  %v4719_v50 = vsel %vm4702_vm13, %v9529_v46, %v9528_v51  ;;  %v8729_v63 = vsel %vm4706_vm15, %v9527_v42, %v4705_v47  ;;  %v9534_v58 = vld [vmem:[#allocation37_spill] sm:$0xff] }
 0x2f6   : > { %v4626_v28 = vmax.f32 %v4554_v17, %v4562_v48  ;;  %v3318_v9 = vadd.f32 %v8616_v7, %v3279_v19  ;;  %v4720_v10 = vsel %vm4704_vm14, %v9529_v46, %v4719_v50  ;;  %v4733_v18 = vsel %vm4702_vm13, %v9532_v37, %v9531_v16 }
 0x2f7   : > { %v8724_v56 = vrot.slane %v4624_v12, 7  ;;  %v3316_v55 = vadd.f32 %v8616_v7, %v3277_v21  ;;  %v8737_v19 = vsel %vm4706_vm15, %v9529_v46, %v4720_v10  ;;  %v4734_v39 = vsel %vm4704_vm14, %v9532_v37, %v4733_v18 }
 0x2f8   : > { %v8733_v35 = vrot.slane %v4626_v28, 7  ;;  %v3350_v48 = vmax.f32 %v3318_v9, 0.0  ;;  %v4747_v11 = vsel %vm4702_vm13, %v9534_v58, %v9533_v20  ;;  %v8754_v17 = vsel %vm4706_vm15, %v9532_v37, %v4734_v39 }
 0x2f9   : > { %v8744_v7 = vsel %vm4700_vm12, %v8724_v56, %v4623_v31  ;;  %v3348_v36 = vmax.f32 %v3316_v55, 0.0  ;;  %v4748_v12 = vsel %vm4704_vm14, %v9534_v58, %v4747_v11  ;;  %v4761_v28 = vsel %vm4702_vm13, %v8449_v0, %v8456_v62 }
 0x2fa   : > { %9530 = vst [vmem:[#allocation71_spill] sm:$0xff] %v8733_v35  ;;  %v3910_v42 = vcombine.high %v3350_v48, %v3350_v48  ;;  %v3917_v15 = vrot.slane %v3350_v48, %v8240_v45  ;;  %v8761_v47 = vsel %vm4706_vm15, %v9534_v58, %v4748_v12  ;;  %v4762_v50 = vsel %vm4704_vm14, %v8449_v0, %v4761_v28 }
 0x2fb   : > { %v3876_v31 = vcombine.high %v3348_v36, %v3348_v36  ;;  %v3883_v21 = vrot.slane %v3348_v36, %v8240_v45  ;;  %v8772_v16 = vsel %vm4706_vm15, %v8449_v0, %v4762_v50 }
 0x2fc   : > { %v3924_v9 = vrot.slane %v3910_v42, %v8240_v45  ;;  %v3925_v51 = vcombine.high %v3917_v15, %v3917_v15  ;;  %v5750_v46 = vrot.slane %v3917_v15, 9 }
 0x2fd   : > { %v3890_v55 = vrot.slane %v3876_v31, %v8240_v45  ;;  %v3891_v10 = vcombine.high %v3883_v21, %v3883_v21  ;;  %v5742_v48 = vrot.slane %v3883_v21, 9  ;;  %v4775_v31 = vsel %vm4702_vm13, %v8472_v57, %v8482_v23 }
 0x2fe   : > { %v3926_v37 = vcombine.high %v3924_v9, %v3924_v9  ;;  %v5751_v18 = vrot.slane %v3925_v51, 9  ;;  %v5752_v36 = vrot.slane %v3924_v9, 9  ;;  %v4563_v39 = vmax.f32 %v3917_v15, %v5750_v46 }
 0x2ff   : > { %v3892_v62 = vcombine.high %v3890_v55, %v3890_v55  ;;  %v5743_v20 = vrot.slane %v3891_v10, 9  ;;  %v5744_v58 = vrot.slane %v3890_v55, 9  ;;  %v4555_v11 = vmax.f32 %v3883_v21, %v5742_v48 }
 0x300   : > { %v5753_v42 = vrot.slane %v3926_v37, 9  ;;  %v4564_v12 = vmax.f32 %v3925_v51, %v5751_v18  ;;  %v8774_v61 = vmax.f32 %v3924_v9, %v5752_v36  ;;  %v4776_v15 = vsel %vm4704_vm14, %v8472_v57, %v4775_v31 }
 0x301   : > { %v5745_v28 = vrot.slane %v3892_v62, 9  ;;  %v4556_v35 = vmax.f32 %v3891_v10, %v5743_v20  ;;  %v8779_v0 = vmax.f32 %v3890_v55, %v5744_v58  ;;  %v4627_v50 = vmax.f32 %v4555_v11, %v4563_v39 }
 0x302   : > { %v4566_v14 = vmax.f32 %v3926_v37, %v5753_v42  ;;  %v4789_v21 = vsel %vm4702_vm13, %v8505_v52, %v8512_v60  ;;  %v4803_v9 = vsel %vm4702_vm13, %v8533_v43, %v8546_v41  ;;  %v8793_v55 = vsel %vm4706_vm15, %v8472_v57, %v4776_v15 }
 0x303   : > { %v4558_v51 = vmax.f32 %v3892_v62, %v5745_v28  ;;  %v4628_v46 = vmax.f32 %v4556_v35, %v4564_v12  ;;  %v4629_v23 = vmax.f32 %v8779_v0, %v8774_v61  ;;  %v4790_v10 = vsel %vm4704_vm14, %v8505_v52, %v4789_v21 }
 0x304   : > { %v4804_v48 = vsel %vm4704_vm14, %v8533_v43, %v4803_v9  ;;  %v4817_v60 = vsel %vm4702_vm13, %v8575_v4, %v8579_v53  ;;  %v4831_v41 = vsel %vm4702_vm13, %v8591_v13, %v8600_v40  ;;  %v4791_v57 = vsel %vm4706_vm15, %v8505_v52, %v4790_v10 }
 0x305   : > { %v4630_v35 = vmax.f32 %v4558_v51, %v4566_v14  ;;  %v4913_v37 = vrot.slane %v4628_v46, 7  ;;  %v4805_v18 = vsel %vm4706_vm15, %v8533_v43, %v4804_v48  ;;  %v4818_v36 = vsel %vm4704_vm14, %v8575_v4, %v4817_v60 }
 0x306   : > { %v4832_v39 = vsel %vm4704_vm14, %v8591_v13, %v4831_v41  ;;  %v4845_v53 = vsel %vm4702_vm13, %v8622_v34, %v8629_v33  ;;  %v4859_v14 = vsel %vm4702_vm13, %v8647_v25, %v8654_v30  ;;  %v4819_v43 = vsel %vm4706_vm15, %v8575_v4, %v4818_v36 }
 0x307   : > { %v4914_v40 = vsel %vm4700_vm12, %v4913_v37, %v4627_v50  ;;  %v8820_v52 = vrot.slane %v4630_v35, 7  ;;  %v4833_v62 = vsel %vm4706_vm15, %v8591_v13, %v4832_v39  ;;  %v4846_v20 = vsel %vm4704_vm14, %v8622_v34, %v4845_v53  ;;  %v9542_v39 = vld [vmem:[#allocation27_spill] sm:$0xff]  ;;  %v9546_v53 = vld [vmem:[#allocation25_spill] sm:$0xff] }
 0x308   : > { %v4860_v33 = vsel %vm4704_vm14, %v8647_v25, %v4859_v14  ;;  %v4873_v30 = vsel %vm4702_vm13, %v8672_v8, %v8679_v49  ;;  %v4887_v58 = vsel %vm4702_vm13, %v8695_v2, %v8701_v24  ;;  %v4847_v4 = vsel %vm4706_vm15, %v8622_v34, %v4846_v20  ;;  %v9550_v20 = vld [vmem:[#allocation39_spill] sm:$0xff] }
 0x309   : > { %v4861_v13 = vsel %vm4706_vm15, %v8647_v25, %v4860_v33  ;;  %v4874_v11 = vsel %vm4704_vm14, %v8672_v8, %v4873_v30  ;;  %v4888_v42 = vsel %vm4704_vm14, %v8695_v2, %v4887_v58  ;;  %v4901_v24 = vsel %vm4702_vm13, %v8724_v56, %v8744_v7  ;;  %v9551_v30 = vld [vmem:[#allocation16_spill] sm:$0xff] }
 0x30a   : > { %v4875_v12 = vsel %vm4706_vm15, %v8672_v8, %v4874_v11  ;;  %v4889_v49 = vsel %vm4706_vm15, %v8695_v2, %v4888_v42  ;;  %v4915_v34 = vsel %vm4702_vm13, %v4913_v37, %v4914_v40  ;;  %v4902_v25 = vsel %vm4704_vm14, %v8724_v56, %v4901_v24  ;;  %v9547_v40 = vld [vmem:[#allocation77_spill] sm:$0xff] }
 0x30b   : > { %v4916_v31 = vsel %vm4704_vm14, %v4913_v37, %v4915_v34  ;;  %v4957_v28 = vcombine.low %v8729_v63, %v8754_v17  ;;  %v4903_v8 = vsel %vm4706_vm15, %v8724_v56, %v4902_v25  ;;  %v6676_v2 = vmov 1934713408   ;;  %v9535_v63 = vld [vmem:[#allocation17_spill] sm:$0xff]  ;;  %v9538_v56 = vld [vmem:[#allocation60_spill] sm:$0xff] }
 0x30c   : > { %v4917_v50 = vsel %vm4706_vm15, %v4913_v37, %v4916_v31  ;;  %v4959_v15 = vunpack.c.l.s4 %v6676_v2  ;;  %v4966_v21 = vcombine.low %v8772_v16, %v4791_v57  ;;  %v4975_v7 = vcombine.low %v4819_v43, %v4847_v4  ;;  %v9536_v17 = vld [vmem:[#allocation21_spill] sm:$0xff]  ;;  %v9539_v16 = vld [vmem:[#allocation24_spill] sm:$0xff]  ;;  %v9540_v57 = vld [vmem:[#allocation58_spill] sm:$0xff] }
 0x30d   : > { %v4984_v9 = vcombine.low %v4875_v12, %v4903_v8  ;;  %v5029_v51 = vcombine.low %v8737_v19, %v8761_v47  ;;  %v5038_v46 = vcombine.low %v8793_v55, %v4805_v18  ;;  %v5047_v48 = vcombine.low %v4833_v62, %v4861_v13  ;;  %v9543_v47 = vld [vmem:[#allocation22_spill] sm:$0xff]  ;;  %v9544_v55 = vld [vmem:[#allocation29_spill] sm:$0xff]  ;;  %v9548_v43 = vld [vmem:[#allocation72_spill] sm:$0xff] }
 0x30e   : > { %v4960_v10 = vunpack.c.0.s8 %v4959_v15  ;;  %v5056_v60 = vcombine.low %v4889_v49, %v4917_v50  ;;  %v9537_v41 = vmax.f32 %v9535_v63, %v9536_v17  ;;  %v9541_v36 = vmax.f32 %v9539_v16, %v9540_v57  ;;  %v9552_v57 = vld [vmem:[#allocation35_spill] sm:$0xff] }
 0x30f   : > { %v9545_v18 = vmax.f32 %v9543_v47, %v9544_v55  ;;  %v9549_v62 = vmax.f32 %v9547_v40, %v9548_v43 }
 0x310   : > { %v4711_v35 = vsel %vm4700_vm12, %v9538_v56, %v9537_v41  ;;  %v4725_v19 = vsel %vm4700_vm12, %v9542_v39, %v9541_v36  ;;  %v8887_v58 = vsub.s32 %v4960_v10, %v9551_v30  ;;  %v9553_v36 = vmax.f32 %v8440_v59, %v9552_v57 }
 0x311   : > { %v4712_v37 = vsel %vm4702_vm13, %v9538_v56, %v4711_v35  ;;  %v4739_v14 = vsel %vm4700_vm12, %v9546_v53, %v9545_v18  ;;  %v4753_v33 = vsel %vm4700_vm12, %v9550_v20, %v9549_v62  ;;  %v4726_v13 = vsel %vm4702_vm13, %v9542_v39, %v4725_v19  ;;  %v9554_v19 = vld [vmem:[#allocation44_spill] sm:$0xff]  ;;  %v9556_v62 = vld [vmem:[#allocation42_spill] sm:$0xff] }
 0x312   : > { %v4713_v4 = vsel %vm4704_vm14, %v9538_v56, %v4712_v37  ;;  %v4740_v11 = vsel %vm4702_vm13, %v9546_v53, %v4739_v14  ;;  %v4727_v12 = vsel %vm4704_vm14, %v9542_v39, %v4726_v13  ;;  %v4754_v24 = vsel %vm4702_vm13, %v9550_v20, %v4753_v33  ;;  %v9558_v33 = vld [vmem:[#allocation45_spill] sm:$0xff] }
 0x313   : > { %v8897_v42 = vsel %vm4706_vm15, %v9538_v56, %v4713_v4  ;;  %v4741_v49 = vsel %vm4704_vm14, %v9546_v53, %v4740_v11  ;;  %v8906_v34 = vrot.slane %v4957_v28, %v8887_v58  ;;  %v8909_v25 = vrot.slane %v4966_v21, %v8887_v58 }
 0x314   : > { %v8912_v31 = vrot.slane %v4975_v7, %v8887_v58  ;;  %v8915_v8 = vrot.slane %v4984_v9, %v8887_v58  ;;  %v8918_v50 = vrot.slane %v5029_v51, %v8887_v58  ;;  %v8921_v2 = vrot.slane %v5038_v46, %v8887_v58 }
 0x315   : > { %v8924_v15 = vrot.slane %v5047_v48, %v8887_v58  ;;  %v8927_v28 = vrot.slane %v5056_v60, %v8887_v58  ;;  %v5105_v21 = vcombine.low %v8906_v34, %v8909_v25  ;;  %v5754_v9 = vcombine.high %v8906_v34, %v8909_v25 }
 0x316   : > { %v5106_v7 = vcombine.low %v8912_v31, %v8915_v8  ;;  %v5755_v51 = vcombine.high %v8912_v31, %v8915_v8  ;;  %v5199_v46 = vcombine.low %v8918_v50, %v8921_v2  ;;  %v5758_v10 = vcombine.high %v8918_v50, %v8921_v2 }
 0x317   : > { %v5759_v48 = vcombine.high %v8924_v15, %v8927_v28  ;;  %v5200_v60 = vcombine.low %v8924_v15, %v8927_v28  ;;  %v5135_v63 = vrot.slane %v5754_v9, %v8240_v45  ;;  %v8949_v41 = vsel %vm4706_vm15, %v9542_v39, %v4727_v12 }
 0x318   : > { %v5142_v17 = vrot.slane %v5755_v51, %v8240_v45  ;;  %v8953_v56 = vsel %vm4706_vm15, %v9546_v53, %v4741_v49  ;;  %v5229_v35 = vrot.slane %v5758_v10, %v8240_v45  ;;  %v4755_v16 = vsel %vm4704_vm14, %v9550_v20, %v4754_v24  ;;  %v9561_v10 = vld [vmem:[#allocation47_spill] sm:$0xff] }
 0x319   : > { %v5236_v37 = vrot.slane %v5759_v48, %v8240_v45  ;;  %v4767_v47 = vsel %vm4700_vm12, %v9554_v19, %v9553_v36  ;;  %v8966_v39 = vsel %vm4706_vm15, %v9550_v20, %v4755_v16  ;;  %v9555_v53 = vmax.f32 %v8461_v26, %v8451_v1  ;;  %v9566_v16 = vld [vmem:[#allocation50_spill] sm:$0xff]  ;;  %v9568_v36 = vld [vmem:[#allocation56_spill] sm:$0xff] }
 0x31a   : > { %v5143_v55 = vcombine.low %v5135_v63, %v5142_v17  ;;  %v4768_v18 = vsel %vm4702_vm13, %v9554_v19, %v4767_v47  ;;  %v9557_v20 = vmax.f32 %v8500_v22, %v9556_v62  ;;  %v9559_v13 = vmax.f32 %v8520_v5, %v8508_v38  ;;  %v9564_v63 = vld [vmem:[#allocation55_spill] sm:$0xff] }
 0x31b   : > { %v4781_v14 = vsel %vm4700_vm12, %v8476_v54, %v9555_v53  ;;  %v5237_v40 = vcombine.low %v5229_v35, %v5236_v37  ;;  %v4769_v59 = vsel %vm4704_vm14, %v9554_v19, %v4768_v18  ;;  %v9560_v5 = vmax.f32 %v8565_v27, %v8526_v3  ;;  %v9565_v27 = vld [vmem:[#allocation51_spill] sm:$0xff]  ;;  %v9570_v53 = vld [vmem:[#allocation65_spill] sm:$0xff] }
 0x31c   : > { %v4782_v43 = vsel %vm4702_vm13, %v8476_v54, %v4781_v14  ;;  %v4795_v30 = vsel %vm4700_vm12, %v9558_v33, %v9557_v20  ;;  %v4770_v4 = vsel %vm4706_vm15, %v9554_v19, %v4769_v59  ;;  %v4809_v11 = vsel %vm4700_vm12, %v8548_v44, %v9559_v13  ;;  %v9569_v18 = vld [vmem:[#allocation59_spill] sm:$0xff]  ;;  %v9574_v13 = vld [vmem:[#allocation66_spill] sm:$0xff] }
 0x31d   : > { %v4783_v1 = vsel %vm4704_vm14, %v8476_v54, %v4782_v43  ;;  %v4796_v26 = vsel %vm4702_vm13, %v9558_v33, %v4795_v30  ;;  %v6533_v12 = vpack.i.bf16 %v5237_v40, %v5143_v55  ;;  %v4810_v24 = vsel %vm4702_vm13, %v8548_v44, %v4809_v11  ;;  %v9572_v40 = vld [vmem:[#allocation68_spill] sm:$0xff] }
 0x31e   : > { %v4784_v22 = vsel %vm4706_vm15, %v8476_v54, %v4783_v1  ;;  %v4797_v49 = vsel %vm4704_vm14, %v9558_v33, %v4796_v26  ;;  %v4811_v51 = vsel %vm4704_vm14, %v8548_v44, %v4810_v24  ;;  %v4823_v38 = vsel %vm4700_vm12, %v8581_v6, %v9560_v5  ;;  %v9562_v54 = vld [vmem:[#allocation48_spill] sm:$0xff]  ;;  %v9573_v26 = vld [vmem:[#allocation70_spill] sm:$0xff] }
 0x31f   : > { %v4798_v9 = vsel %vm4706_vm15, %v9558_v33, %v4797_v49  ;;  %v9563_v48 = vmax.f32 %v9561_v10, %v9562_v54  ;;  %6534 = vrot.lane.b32.xlu0 %v6533_v12, %s6677_s14  ;;  %v4812_v35 = vsel %vm4706_vm15, %v8548_v44, %v4811_v51  ;;  %v4824_v37 = vsel %vm4702_vm13, %v8581_v6, %v4823_v38  ;;  %v9576_v12 = vld [vmem:[#allocation12_spill] sm:$0xff]  ;;  %v9577_v49 = vld [vmem:[#allocation11_spill] sm:$0xff] }
 0x320   : > { %v9567_v57 = vmax.f32 %v9565_v27, %v9566_v16  ;;  %v4825_v47 = vsel %vm4704_vm14, %v8581_v6, %v4824_v37  ;;  %v9571_v14 = vmax.f32 %v9569_v18, %v9570_v53  ;;  %v9575_v11 = vmax.f32 %v9573_v26, %v9574_v13  ;;  %v9579_v51 = vld [vmem:[#allocation75_spill] sm:$0xff] }
 0x321   : > { %v4837_v17 = vsel %vm4700_vm12, %v9564_v63, %v9563_v48  ;;  %v4826_v43 = vsel %vm4706_vm15, %v8581_v6, %v4825_v47  ;;  %v9578_v24 = vmax.f32 %v8688_v32, %v9577_v49  ;;  %v9580_v48 = vld [vmem:[#allocation62_spill] sm:$0xff]  ;;  %v4921_v16 = vsel %vm4700_vm12, %v8820_v52, %v4629_v23 }
 0x322   : > { %v4838_v3 = vsel %vm4702_vm13, %v9564_v63, %v4837_v17  ;;  %v4851_v19 = vsel %vm4700_vm12, %v9568_v36, %v9567_v57  ;;  %v4865_v59 = vsel %vm4700_vm12, %v9572_v40, %v9571_v14  ;;  %v4879_v6 = vsel %vm4700_vm12, %v9576_v12, %v9575_v11  ;;  %v9582_v17 = vld [vmem:[#allocation71_spill] sm:$0xff] }
 0x323   : > { %v4839_v55 = vsel %vm4704_vm14, %v9564_v63, %v4838_v3  ;;  %v4852_v44 = vsel %vm4702_vm13, %v9568_v36, %v4851_v19  ;;  %v4866_v33 = vsel %vm4702_vm13, %v9572_v40, %v4865_v59  ;;  %v4893_v5 = vsel %vm4700_vm12, %v9579_v51, %v9578_v24 }
 0x324   : > { %v4840_v62 = vsel %vm4706_vm15, %v9564_v63, %v4839_v55  ;;  %v4853_v20 = vsel %vm4704_vm14, %v9568_v36, %v4852_v44  ;;  %v4867_v1 = vsel %vm4704_vm14, %v9572_v40, %v4866_v33  ;;  %v4880_v10 = vsel %vm4702_vm13, %v9576_v12, %v4879_v6 }
 0x325   : > { %v4854_v30 = vsel %vm4706_vm15, %v9568_v36, %v4853_v20  ;;  %v4868_v38 = vsel %vm4706_vm15, %v9572_v40, %v4867_v1  ;;  %v4894_v54 = vsel %vm4702_vm13, %v9579_v51, %v4893_v5  ;;  %v9581_v63 = vmax.f32 %v8707_v29, %v9580_v48 }
 0x326   : > { %v4881_v32 = vsel %vm4704_vm14, %v9576_v12, %v4880_v10  ;;  %v4895_v3 = vsel %vm4704_vm14, %v9579_v51, %v4894_v54  ;;  %v4922_v19 = vsel %vm4702_vm13, %v8820_v52, %v4921_v16  ;;  %v4993_v0 = vcombine.low %v8897_v42, %v8953_v56 }
 0x327   : > { %v4907_v37 = vsel %vm4700_vm12, %v9582_v17, %v9581_v63  ;;  %v4882_v29 = vsel %vm4706_vm15, %v9576_v12, %v4881_v32  ;;  %v4896_v57 = vsel %vm4706_vm15, %v9579_v51, %v4895_v3  ;;  %v4923_v61 = vsel %vm4704_vm14, %v8820_v52, %v4922_v19 }
 0x328   : > { %v4908_v27 = vsel %vm4702_vm13, %v9582_v17, %v4907_v37  ;;  %v5002_v23 = vcombine.low %v4770_v4, %v4798_v9  ;;  %v4924_v55 = vsel %vm4706_vm15, %v8820_v52, %v4923_v61  ;;  %v5011_v44 = vcombine.low %v4826_v43, %v4854_v30 }
 0x329   : > { %v4909_v36 = vsel %vm4704_vm14, %v9582_v17, %v4908_v27  ;;  %v5065_v53 = vcombine.low %v8949_v41, %v8966_v39  ;;  %v5000_v14 = vrot.slane %v4993_v0, %v8887_v58  ;;  %v5074_v59 = vcombine.low %v4784_v22, %v4812_v35 }
 0x32a   : > { %v4910_v47 = vsel %vm4706_vm15, %v9582_v17, %v4909_v36  ;;  %v5009_v40 = vrot.slane %v5002_v23, %v8887_v58  ;;  %v5083_v20 = vcombine.low %v4840_v62, %v4868_v38  ;;  %v5018_v33 = vrot.slane %v5011_v44, %v8887_v58 }
 0x32b   : > { %v5020_v18 = vcombine.low %v4882_v29, %v4910_v47  ;;  %v5092_v42 = vcombine.low %v4896_v57, %v4924_v55  ;;  %v5072_v56 = vrot.slane %v5065_v53, %v8887_v58  ;;  %v5081_v52 = vrot.slane %v5074_v59, %v8887_v58 }
 0x32c   : > { %v5756_v4 = vcombine.high %v5000_v14, %v5009_v40  ;;  %v5151_v9 = vcombine.low %v5000_v14, %v5009_v40  ;;  %v5090_v43 = vrot.slane %v5083_v20, %v8887_v58  ;;  %v5120_v51 = vrot.slane %v5106_v7, %v8240_v45 }
 0x32d   : > { %v5027_v1 = vrot.slane %v5020_v18, %v8887_v58  ;;  %v5099_v41 = vrot.slane %v5092_v42, %v8887_v58  ;;  %v5760_v35 = vcombine.high %v5072_v56, %v5081_v52  ;;  %v5245_v26 = vcombine.low %v5072_v56, %v5081_v52 }
 0x32e   : > { %v5183_v22 = vrot.slane %v5756_v4, %v8240_v45  ;;  %v5159_v62 = vrot.slane %v5151_v9, %v8240_v45  ;;  %v5113_v58 = vrot.slane %v5105_v21, %v8240_v45  ;;  %v5207_v63 = vrot.slane %v5199_v46, %v8240_v45 }
 0x32f   : > { %v5757_v39 = vcombine.high %v5018_v33, %v5027_v1  ;;  %v5152_v30 = vcombine.low %v5018_v33, %v5027_v1  ;;  %v5761_v11 = vcombine.high %v5090_v43, %v5099_v41  ;;  %v5246_v6 = vcombine.low %v5090_v43, %v5099_v41 }
 0x330   : > { %v5277_v49 = vrot.slane %v5760_v35, %v8240_v45  ;;  %v5253_v24 = vrot.slane %v5245_v26, %v8240_v45  ;;  %v5121_v48 = vcombine.low %v5113_v58, %v5120_v51  ;;  %v5214_v34 = vrot.slane %v5200_v60, %v8240_v45 }
 0x331   : > { %v5190_v13 = vrot.slane %v5757_v39, %v8240_v45  ;;  %v5166_v12 = vrot.slane %v5152_v30, %v8240_v45  ;;  %v5284_v38 = vrot.slane %v5761_v11, %v8240_v45  ;;  %v5260_v54 = vrot.slane %v5246_v6, %v8240_v45 }
 0x332   : > { %v5215_v8 = vcombine.low %v5207_v63, %v5214_v34 }
 0x333   : > { %v5191_v5 = vcombine.low %v5183_v22, %v5190_v13  ;;  %v5167_v10 = vcombine.low %v5159_v62, %v5166_v12  ;;  %v5285_v25 = vcombine.low %v5277_v49, %v5284_v38  ;;  %v5261_v31 = vcombine.low %v5253_v24, %v5260_v54 }
 0x335   : > { %v6543_v21 = vpack.i.bf16 %v5285_v25, %v5191_v5  ;;  %v6538_v7 = vpack.i.bf16 %v5261_v31, %v5167_v10 }
 0x337   : > { %6544 = vrot.lane.b32.xlu1 %v6543_v21, %s6678_s16  ;;  %6539 = vrot.lane.b32.xlu0 %v6538_v7, %s6679_s20 }
 0x391   : > { %v6535_v17 = vpop.permute.xlu0 %6534 }
 0x392   : > { %v6537_v37 = vunpack.i.h.bf16 %v6535_v17  ;;  %v6536_v32 = vunpack.i.l.bf16 %v6535_v17 }
 0x394   : > { %v5290_v28 = vsel %vm5289_vm0, %v5121_v48, %v6536_v32  ;;  %v5295_v46 = vsel %vm5289_vm0, %v5215_v8, %v6537_v37 }
 0x3a9   : > { %v6545_v50 = vpop.permute.xlu1 %6544  ;;  %v6540_v2 = vpop.permute.xlu0 %6539 }
 0x3aa   : > { %v6542_v45 = vunpack.i.h.bf16 %v6540_v2  ;;  %v6541_v15 = vunpack.i.l.bf16 %v6540_v2  ;;  %v6547_v60 = vunpack.i.h.bf16 %v6545_v50  ;;  %v6546_v3 = vunpack.i.l.bf16 %v6545_v50 }
 0x3ac   : > { %v5296_v27 = vsel %vm5291_vm1, %v5295_v46, %v6542_v45  ;;  %v5292_v16 = vsel %vm5291_vm1, %v5290_v28, %v6541_v15 }
 0x3ad   : > { %v5297_v29 = vsel %vm5293_vm2, %v5296_v27, %v6547_v60  ;;  %v5294_v57 = vsel %vm5293_vm2, %v5292_v16, %v6546_v3 }
 0x3ae   : > { %v5767_v36 = vpack.c.bf16 %v5297_v29, %v5294_v57 }
 0x3b0   : > { %5306 = vst [vmem:[%s237_s26] sm:$0xff] %v5767_v36 }
 0x3b1 PF: > { %s16_s15 = sadd.s32 1, %s6666_s15  }
 0x3b2   : > { %p13_p3 = scmp.ge.s32.totalorder %s16_s15, 4  }
 0x3b4   :  { %15 = sbr.rel (!%p13_p3) target bundleno = 2 (0x2), region = 88 }
 0x3bb   :  { %5328 = vsyncpa [#allocation4], 1 }
 0x3bc   :  { %5330 = vsyncpa [#allocation4 + $0x1], 1 }
 0x3bd   :  { %5331 = vsyncpa [#allocation6], 1 }

</bundles_post_ra>
